<compile_context>
chip_gen: v5e
topology: v5e:2x2
jax: 0.10.0
libtpu: 0.0.40
codegen_flags: <defaults>
</compile_context>

<pallas_src>
import jax
import jax.numpy as jnp
from jax.experimental import pallas as pl
from jax.experimental.pallas import tpu as pltpu

EPS = 1e-5


def encoder_block_kernel(xpad_ref, w1p_ref, g1_ref, be1_ref,
                         w2p_ref, g2_ref, be2_ref,
                         out_ref,
                         patches_scr, h1pad_scr, hrow_scr):
    N, Hp, Wp, Cin = xpad_ref.shape
    H, W = Hp - 2, Wp - 2
    Cout = w1p_ref.shape[-1]
    Ho, Wo = H // 2, W // 2
    R = N * H * W                 # rows of the flattened activation / im2col slabs
    K1 = 9 * Cin
    K2 = 9 * Cout

    taps = [(dy, dx) for dy in range(3) for dx in range(3)]

    # ---------------- conv1: build im2col slab once, single MXU matmul ----------------
    for t, (dy, dx) in enumerate(taps):
        patch = xpad_ref[:, dy:dy + H, dx:dx + W, :].reshape(R, Cin)
        patches_scr[:, t * Cin:(t + 1) * Cin] = patch
    acc1 = jnp.dot(patches_scr[:, :K1], w1p_ref[...],
                   preferred_element_type=jnp.float32)

    # ---------------- BN1 (train-mode batch stats) as one affine + ReLU ----------------
    # conv bias is a no-op before train-mode BN (it shifts the mean by the same
    # constant), so it is folded out exactly.
    mean1 = jnp.mean(acc1, axis=0, keepdims=True)
    var1 = jnp.mean((acc1 - mean1) ** 2, axis=0, keepdims=True)
    scale1 = g1_ref[...] * jax.lax.rsqrt(var1 + EPS)
    shift1 = be1_ref[...] - mean1 * scale1
    h1 = jnp.maximum(acc1 * scale1 + shift1, 0.0)

    # ------------- padded h1 scratch: zero ONLY the 1-wide halo, store interior --------
    h1pad_scr[:, 0:1, :, :] = jnp.zeros((N, 1, Wp, Cout), jnp.float32)
    h1pad_scr[:, H + 1:H + 2, :, :] = jnp.zeros((N, 1, Wp, Cout), jnp.float32)
    h1pad_scr[:, 1:H + 1, 0:1, :] = jnp.zeros((N, H, 1, Cout), jnp.float32)
    h1pad_scr[:, 1:H + 1, W + 1:W + 2, :] = jnp.zeros((N, H, 1, Cout), jnp.float32)
    h1pad_scr[:, 1:H + 1, 1:W + 1, :] = h1.reshape(N, H, W, Cout)

    # ---------------- conv2: reuse the same im2col slab, single matmul ----------------
    for t, (dy, dx) in enumerate(taps):
        patch = h1pad_scr[:, dy:dy + H, dx:dx + W, :].reshape(R, Cout)
        patches_scr[:, t * Cout:(t + 1) * Cout] = patch
    acc2 = jnp.dot(patches_scr[:, :K2], w2p_ref[...],
                   preferred_element_type=jnp.float32)

    # ---------------- BN2 + ReLU --------------------------------------------------------
    mean2 = jnp.mean(acc2, axis=0, keepdims=True)
    var2 = jnp.mean((acc2 - mean2) ** 2, axis=0, keepdims=True)
    scale2 = g2_ref[...] * jax.lax.rsqrt(var2 + EPS)
    shift2 = be2_ref[...] - mean2 * scale2
    h2 = jnp.maximum(acc2 * scale2 + shift2, 0.0)

    # ---------------- MaxPool2d(2, stride=2) --------------------------------------------
    # H-pair max directly on the value (leading-dim reshape is layout-free),
    # then W-pair max via a half-size scratch and two strided reads.
    h2_5d = h2.reshape(N, Ho, 2, W, Cout)
    hrow = jnp.maximum(h2_5d[:, :, 0, :, :], h2_5d[:, :, 1, :, :])   # (N, Ho, W, Cout)
    hrow_scr[...] = hrow
    left = hrow_scr[:, :, pl.ds(0, Wo, 2), :]
    right = hrow_scr[:, :, pl.ds(1, Wo, 2), :]
    out_ref[...] = jnp.maximum(left, right).astype(out_ref.dtype)


def _pack_conv_weight(w):
    # (3, 3, Cin, Cout) HWIO -> (9*Cin, Cout); row order (dy, dx, ci) matches the
    # im2col column order used inside the kernel.
    kh, kw, ci, co = w.shape
    return w.reshape(kh * kw * ci, co).astype(jnp.float32)


def init_params(key, in_channels, out_channels):
    k = jax.random.split(key, 4)
    scale1 = 1.0 / jnp.sqrt(in_channels * 9.0)
    scale2 = 1.0 / jnp.sqrt(out_channels * 9.0)
    return {
        "w1": jax.random.normal(k[0], (3, 3, in_channels, out_channels), jnp.float32) * scale1,
        "b1": jax.random.normal(k[1], (out_channels,), jnp.float32) * scale1,
        "g1": jnp.ones((out_channels,), jnp.float32),
        "be1": jnp.zeros((out_channels,), jnp.float32),
        "w2": jax.random.normal(k[2], (3, 3, out_channels, out_channels), jnp.float32) * scale2,
        "b2": jax.random.normal(k[3], (out_channels,), jnp.float32) * scale2,
        "g2": jnp.ones((out_channels,), jnp.float32),
        "be2": jnp.zeros((out_channels,), jnp.float32),
    }


@jax.jit
def encoder_block_forward(x_nchw, params):
    """EncoderBlock.forward: returns (pooled, identity), both NCHW."""
    N, Cin, H, W = x_nchw.shape
    # TODO(synk): MaxPool2d floor-mode for odd H/W (drops last row/col) not handled.
    assert H % 2 == 0 and W % 2 == 0
    Cout = params["w1"].shape[-1]
    Ho, Wo = H // 2, W // 2
    Cmax = max(Cin, Cout)

    # layout plumbing in XLA, outside the kernel
    x = jnp.transpose(x_nchw, (0, 2, 3, 1)).astype(jnp.float32)
    x_pad = jnp.pad(x, ((0, 0), (1, 1), (1, 1), (0, 0)))
    w1p = _pack_conv_weight(params["w1"])
    w2p = _pack_conv_weight(params["w2"])
    vec = lambda v: v.reshape(1, Cout).astype(jnp.float32)

    full = lambda shape: pl.BlockSpec(shape, lambda i, s=shape: (0,) * len(s))

    pooled_nhwc = pl.pallas_call(
        encoder_block_kernel,
        out_shape=jax.ShapeDtypeStruct((N, Ho, Wo, Cout), jnp.float32),
        grid=(1,),
        in_specs=[
            full((N, H + 2, W + 2, Cin)),
            full((9 * Cin, Cout)),
            full((1, Cout)), full((1, Cout)),
            full((9 * Cout, Cout)),
            full((1, Cout)), full((1, Cout)),
        ],
        out_specs=full((N, Ho, Wo, Cout)),
        scratch_shapes=[
            pltpu.VMEM((N * H * W, 9 * Cmax), jnp.float32),     # shared im2col slab
            pltpu.VMEM((N, H + 2, W + 2, Cout), jnp.float32),   # padded h1
            pltpu.VMEM((N, Ho, W, Cout), jnp.float32),          # H-pooled rows
        ],
        compiler_params=pltpu.CompilerParams(
            dimension_semantics=("arbitrary",)),
    )(x_pad, w1p, vec(params["g1"]), vec(params["be1"]),
      w2p, vec(params["g2"]), vec(params["be2"]))

    pooled_nchw = jnp.transpose(pooled_nhwc, (0, 3, 1, 2))
    return pooled_nchw, x_nchw


def reference_forward(x_nchw, params):
    """Pure-JAX reference of the same forward (includes the conv biases)."""
    x = jnp.transpose(x_nchw, (0, 2, 3, 1)).astype(jnp.float32)
    N, H, W, _ = x.shape

    def conv(h, w, b):
        y = jax.lax.conv_general_dilated(
            h, w, window_strides=(1, 1), padding="SAME",
            dimension_numbers=("NHWC", "HWIO", "NHWC"))
        return y + b.reshape(1, 1, 1, -1)

    def bn(h, g, be):
        m = jnp.mean(h, axis=(0, 1, 2), keepdims=True)
        v = jnp.mean((h - m) ** 2, axis=(0, 1, 2), keepdims=True)
        return (h - m) * jax.lax.rsqrt(v + EPS) * g.reshape(1, 1, 1, -1) + be.reshape(1, 1, 1, -1)

    h = jnp.maximum(bn(conv(x, params["w1"], params["b1"]), params["g1"], params["be1"]), 0.0)
    h = jnp.maximum(bn(conv(h, params["w2"], params["b2"]), params["g2"], params["be2"]), 0.0)
    C = h.shape[-1]
    pool = jnp.max(h.reshape(N, H // 2, 2, W // 2, 2, C), axis=(2, 4))
    return jnp.transpose(pool, (0, 3, 1, 2)), x_nchw


if __name__ == "__main__":
    key = jax.random.PRNGKey(0)
    k_x, k_p = jax.random.split(key)

    N, Cin, Cout, H, W = 2, 4, 8, 16, 16
    x = jax.random.normal(k_x, (N, Cin, H, W), jnp.float32)
    params = init_params(k_p, Cin, Cout)

    pooled, identity = encoder_block_forward(x, params)
    pooled = jax.block_until_ready(pooled)
    identity = jax.block_until_ready(identity)

    assert pooled.shape == (N, Cout, H // 2, W // 2)
    assert identity.shape == (N, Cin, H, W)

    ref_pooled, ref_identity = reference_forward(x, params)
    assert jnp.allclose(pooled, ref_pooled, rtol=1e-4, atol=1e-4), \
        float(jnp.max(jnp.abs(pooled - ref_pooled)))
    assert jnp.allclose(identity, ref_identity)

    print("KERNEL_OK")
</pallas_src>

<mosaic_0001>
module attributes {stable_mosaic.version = 11 : i64} {
  func.func @encoder_block_kernel(%arg0: i32, %arg1: memref<2x18x18x4xf32, #tpu.memory_space<vmem>>, %arg2: memref<36x8xf32, #tpu.memory_space<vmem>>, %arg3: memref<1x8xf32, #tpu.memory_space<vmem>>, %arg4: memref<1x8xf32, #tpu.memory_space<vmem>>, %arg5: memref<72x8xf32, #tpu.memory_space<vmem>>, %arg6: memref<1x8xf32, #tpu.memory_space<vmem>>, %arg7: memref<1x8xf32, #tpu.memory_space<vmem>>, %arg8: memref<2x8x8x8xf32, #tpu.memory_space<vmem>>, %arg9: memref<512x72xf32, #tpu.memory_space<vmem>>, %arg10: memref<2x18x18x8xf32, #tpu.memory_space<vmem>>, %arg11: memref<2x8x16x8xf32, #tpu.memory_space<vmem>>) attributes {dimension_semantics = [#tpu.dimension_semantics<arbitrary>], iteration_bounds = array<i64: 1>, scalar_prefetch = 0 : i64, scratch_operands = 3 : i64, tpu.core_type = #tpu.core_type<tc>, window_params = [{pipeline_mode = #tpu.pipeline_mode<synchronous>, transform_indices = @transform_0, window_bounds = array<i64: 2, 18, 18, 4>}, {pipeline_mode = #tpu.pipeline_mode<synchronous>, transform_indices = @transform_1, window_bounds = array<i64: 36, 8>}, {pipeline_mode = #tpu.pipeline_mode<synchronous>, transform_indices = @transform_2, window_bounds = array<i64: 1, 8>}, {pipeline_mode = #tpu.pipeline_mode<synchronous>, transform_indices = @transform_3, window_bounds = array<i64: 1, 8>}, {pipeline_mode = #tpu.pipeline_mode<synchronous>, transform_indices = @transform_4, window_bounds = array<i64: 72, 8>}, {pipeline_mode = #tpu.pipeline_mode<synchronous>, transform_indices = @transform_5, window_bounds = array<i64: 1, 8>}, {pipeline_mode = #tpu.pipeline_mode<synchronous>, transform_indices = @transform_6, window_bounds = array<i64: 1, 8>}, {pipeline_mode = #tpu.pipeline_mode<synchronous>, transform_indices = @transform_7, window_bounds = array<i64: 2, 8, 8, 8>}]} {
    %c0 = arith.constant 0 : index
    %c0_0 = arith.constant 0 : index
    %c0_1 = arith.constant 0 : index
    %c0_2 = arith.constant 0 : index
    %0 = vector.load %arg1[%c0, %c0_0, %c0_1, %c0_2] : memref<2x18x18x4xf32, #tpu.memory_space<vmem>>, vector<2x16x16x4xf32>
    %1 = vector.shape_cast %0 : vector<2x16x16x4xf32> to vector<512x4xf32>
    %c0_3 = arith.constant 0 : index
    %c0_4 = arith.constant 0 : index
    %2 = vector.load %arg9[%c0_3, %c0_4] : memref<512x72xf32, #tpu.memory_space<vmem>>, vector<512x4xf32>
    tpu.vector_store %arg9[%c0_3, %c0_4], %1 {strides = array<i32>} : memref<512x72xf32, #tpu.memory_space<vmem>>, vector<512x4xf32>,
    %c0_5 = arith.constant 0 : index
    %c0_6 = arith.constant 0 : index
    %c1 = arith.constant 1 : index
    %c0_7 = arith.constant 0 : index
    %3 = vector.load %arg1[%c0_5, %c0_6, %c1, %c0_7] : memref<2x18x18x4xf32, #tpu.memory_space<vmem>>, vector<2x16x16x4xf32>
    %4 = vector.shape_cast %3 : vector<2x16x16x4xf32> to vector<512x4xf32>
    %c0_8 = arith.constant 0 : index
    %c4 = arith.constant 4 : index
    %5 = vector.load %arg9[%c0_8, %c4] : memref<512x72xf32, #tpu.memory_space<vmem>>, vector<512x4xf32>
    tpu.vector_store %arg9[%c0_8, %c4], %4 {strides = array<i32>} : memref<512x72xf32, #tpu.memory_space<vmem>>, vector<512x4xf32>,
    %c0_9 = arith.constant 0 : index
    %c0_10 = arith.constant 0 : index
    %c2 = arith.constant 2 : index
    %c0_11 = arith.constant 0 : index
    %6 = vector.load %arg1[%c0_9, %c0_10, %c2, %c0_11] : memref<2x18x18x4xf32, #tpu.memory_space<vmem>>, vector<2x16x16x4xf32>
    %7 = vector.shape_cast %6 : vector<2x16x16x4xf32> to vector<512x4xf32>
    %c0_12 = arith.constant 0 : index
    %c8 = arith.constant 8 : index
    %8 = vector.load %arg9[%c0_12, %c8] : memref<512x72xf32, #tpu.memory_space<vmem>>, vector<512x4xf32>
    tpu.vector_store %arg9[%c0_12, %c8], %7 {strides = array<i32>} : memref<512x72xf32, #tpu.memory_space<vmem>>, vector<512x4xf32>,
    %c0_13 = arith.constant 0 : index
    %c1_14 = arith.constant 1 : index
    %c0_15 = arith.constant 0 : index
    %c0_16 = arith.constant 0 : index
    %9 = vector.load %arg1[%c0_13, %c1_14, %c0_15, %c0_16] : memref<2x18x18x4xf32, #tpu.memory_space<vmem>>, vector<2x16x16x4xf32>
    %10 = vector.shape_cast %9 : vector<2x16x16x4xf32> to vector<512x4xf32>
    %c0_17 = arith.constant 0 : index
    %c12 = arith.constant 12 : index
    %11 = vector.load %arg9[%c0_17, %c12] : memref<512x72xf32, #tpu.memory_space<vmem>>, vector<512x4xf32>
    tpu.vector_store %arg9[%c0_17, %c12], %10 {strides = array<i32>} : memref<512x72xf32, #tpu.memory_space<vmem>>, vector<512x4xf32>,
    %c0_18 = arith.constant 0 : index
    %c1_19 = arith.constant 1 : index
    %c1_20 = arith.constant 1 : index
    %c0_21 = arith.constant 0 : index
    %12 = vector.load %arg1[%c0_18, %c1_19, %c1_20, %c0_21] : memref<2x18x18x4xf32, #tpu.memory_space<vmem>>, vector<2x16x16x4xf32>
    %13 = vector.shape_cast %12 : vector<2x16x16x4xf32> to vector<512x4xf32>
    %c0_22 = arith.constant 0 : index
    %c16 = arith.constant 16 : index
    %14 = vector.load %arg9[%c0_22, %c16] : memref<512x72xf32, #tpu.memory_space<vmem>>, vector<512x4xf32>
    tpu.vector_store %arg9[%c0_22, %c16], %13 {strides = array<i32>} : memref<512x72xf32, #tpu.memory_space<vmem>>, vector<512x4xf32>,
    %c0_23 = arith.constant 0 : index
    %c1_24 = arith.constant 1 : index
    %c2_25 = arith.constant 2 : index
    %c0_26 = arith.constant 0 : index
    %15 = vector.load %arg1[%c0_23, %c1_24, %c2_25, %c0_26] : memref<2x18x18x4xf32, #tpu.memory_space<vmem>>, vector<2x16x16x4xf32>
    %16 = vector.shape_cast %15 : vector<2x16x16x4xf32> to vector<512x4xf32>
    %c0_27 = arith.constant 0 : index
    %c20 = arith.constant 20 : index
    %17 = vector.load %arg9[%c0_27, %c20] : memref<512x72xf32, #tpu.memory_space<vmem>>, vector<512x4xf32>
    tpu.vector_store %arg9[%c0_27, %c20], %16 {strides = array<i32>} : memref<512x72xf32, #tpu.memory_space<vmem>>, vector<512x4xf32>,
    %c0_28 = arith.constant 0 : index
    %c2_29 = arith.constant 2 : index
    %c0_30 = arith.constant 0 : index
    %c0_31 = arith.constant 0 : index
    %18 = vector.load %arg1[%c0_28, %c2_29, %c0_30, %c0_31] : memref<2x18x18x4xf32, #tpu.memory_space<vmem>>, vector<2x16x16x4xf32>
    %19 = vector.shape_cast %18 : vector<2x16x16x4xf32> to vector<512x4xf32>
    %c0_32 = arith.constant 0 : index
    %c24 = arith.constant 24 : index
    %20 = vector.load %arg9[%c0_32, %c24] : memref<512x72xf32, #tpu.memory_space<vmem>>, vector<512x4xf32>
    tpu.vector_store %arg9[%c0_32, %c24], %19 {strides = array<i32>} : memref<512x72xf32, #tpu.memory_space<vmem>>, vector<512x4xf32>,
    %c0_33 = arith.constant 0 : index
    %c2_34 = arith.constant 2 : index
    %c1_35 = arith.constant 1 : index
    %c0_36 = arith.constant 0 : index
    %21 = vector.load %arg1[%c0_33, %c2_34, %c1_35, %c0_36] : memref<2x18x18x4xf32, #tpu.memory_space<vmem>>, vector<2x16x16x4xf32>
    %22 = vector.shape_cast %21 : vector<2x16x16x4xf32> to vector<512x4xf32>
    %c0_37 = arith.constant 0 : index
    %c28 = arith.constant 28 : index
    %23 = vector.load %arg9[%c0_37, %c28] : memref<512x72xf32, #tpu.memory_space<vmem>>, vector<512x4xf32>
    tpu.vector_store %arg9[%c0_37, %c28], %22 {strides = array<i32>} : memref<512x72xf32, #tpu.memory_space<vmem>>, vector<512x4xf32>,
    %c0_38 = arith.constant 0 : index
    %c2_39 = arith.constant 2 : index
    %c2_40 = arith.constant 2 : index
    %c0_41 = arith.constant 0 : index
    %24 = vector.load %arg1[%c0_38, %c2_39, %c2_40, %c0_41] : memref<2x18x18x4xf32, #tpu.memory_space<vmem>>, vector<2x16x16x4xf32>
    %25 = vector.shape_cast %24 : vector<2x16x16x4xf32> to vector<512x4xf32>
    %c0_42 = arith.constant 0 : index
    %c32 = arith.constant 32 : index
    %26 = vector.load %arg9[%c0_42, %c32] : memref<512x72xf32, #tpu.memory_space<vmem>>, vector<512x4xf32>
    tpu.vector_store %arg9[%c0_42, %c32], %25 {strides = array<i32>} : memref<512x72xf32, #tpu.memory_space<vmem>>, vector<512x4xf32>,
    %c0_43 = arith.constant 0 : index
    %c0_44 = arith.constant 0 : index
    %27 = vector.load %arg9[%c0_43, %c0_44] : memref<512x72xf32, #tpu.memory_space<vmem>>, vector<512x36xf32>
    %c0_45 = arith.constant 0 : index
    %c0_46 = arith.constant 0 : index
    %28 = vector.load %arg2[%c0_45, %c0_46] : memref<36x8xf32, #tpu.memory_space<vmem>>, vector<36x8xf32>
    %cst = arith.constant dense<0.000000e+00> : vector<512x8xf32>
    %29 = tpu.matmul %27, %28, %cst {dimension_numbers = #tpu.dot_dimension_numbers<[1], [0], [0], [1], [0, 0, 1, 1], [], []>} : vector<512x36xf32>, vector<36x8xf32>, vector<512x8xf32> -> vector<512x8xf32>
    %cst_47 = arith.constant dense<0.000000e+00> : vector<8xf32>
    %30 = vector.multi_reduction <add>, %29, %cst_47 [0] : vector<512x8xf32> to vector<8xf32>
    %31 = vector.shape_cast %30 : vector<8xf32> to vector<1x8xf32>
    %cst_48 = arith.constant 5.120000e+02 : f32
    %32 = vector.broadcast %cst_48 : f32 to vector<1x8xf32>
    %33 = arith.divf %31, %32 : vector<1x8xf32>
    %34 = vector.broadcast %33 : vector<1x8xf32> to vector<512x8xf32>
    %35 = arith.subf %29, %34 : vector<512x8xf32>
    %36 = arith.mulf %35, %35 : vector<512x8xf32>
    %cst_49 = arith.constant dense<0.000000e+00> : vector<8xf32>
    %37 = vector.multi_reduction <add>, %36, %cst_49 [0] : vector<512x8xf32> to vector<8xf32>
    %38 = vector.shape_cast %37 : vector<8xf32> to vector<1x8xf32>
    %cst_50 = arith.constant 5.120000e+02 : f32
    %39 = vector.broadcast %cst_50 : f32 to vector<1x8xf32>
    %40 = arith.divf %38, %39 : vector<1x8xf32>
    %c0_51 = arith.constant 0 : index
    %c0_52 = arith.constant 0 : index
    %41 = vector.load %arg3[%c0_51, %c0_52] : memref<1x8xf32, #tpu.memory_space<vmem>>, vector<1x8xf32>
    %cst_53 = arith.constant 9.99999974E-6 : f32
    %42 = vector.broadcast %cst_53 : f32 to vector<1x8xf32>
    %43 = arith.addf %40, %42 : vector<1x8xf32>
    %44 = math.rsqrt %43 : vector<1x8xf32>
    %45 = arith.mulf %41, %44 : vector<1x8xf32>
    %c0_54 = arith.constant 0 : index
    %c0_55 = arith.constant 0 : index
    %46 = vector.load %arg4[%c0_54, %c0_55] : memref<1x8xf32, #tpu.memory_space<vmem>>, vector<1x8xf32>
    %47 = arith.mulf %33, %45 : vector<1x8xf32>
    %48 = arith.subf %46, %47 : vector<1x8xf32>
    %49 = vector.broadcast %45 : vector<1x8xf32> to vector<512x8xf32>
    %50 = arith.mulf %29, %49 : vector<512x8xf32>
    %51 = vector.broadcast %48 : vector<1x8xf32> to vector<512x8xf32>
    %52 = arith.addf %50, %51 : vector<512x8xf32>
    %cst_56 = arith.constant 0.000000e+00 : f32
    %53 = vector.broadcast %cst_56 : f32 to vector<512x8xf32>
    %54 = arith.maximumf %52, %53 : vector<512x8xf32>
    %cst_57 = arith.constant 0.000000e+00 : f32
    %55 = vector.broadcast %cst_57 : f32 to vector<2x1x18x8xf32>
    %c0_58 = arith.constant 0 : index
    %c0_59 = arith.constant 0 : index
    %c0_60 = arith.constant 0 : index
    %c0_61 = arith.constant 0 : index
    %56 = vector.load %arg10[%c0_58, %c0_59, %c0_60, %c0_61] : memref<2x18x18x8xf32, #tpu.memory_space<vmem>>, vector<2x1x18x8xf32>
    tpu.vector_store %arg10[%c0_58, %c0_59, %c0_60, %c0_61], %55 {strides = array<i32>} : memref<2x18x18x8xf32, #tpu.memory_space<vmem>>, vector<2x1x18x8xf32>,
    %cst_62 = arith.constant 0.000000e+00 : f32
    %57 = vector.broadcast %cst_62 : f32 to vector<2x1x18x8xf32>
    %c0_63 = arith.constant 0 : index
    %c17 = arith.constant 17 : index
    %c0_64 = arith.constant 0 : index
    %c0_65 = arith.constant 0 : index
    %58 = vector.load %arg10[%c0_63, %c17, %c0_64, %c0_65] : memref<2x18x18x8xf32, #tpu.memory_space<vmem>>, vector<2x1x18x8xf32>
    tpu.vector_store %arg10[%c0_63, %c17, %c0_64, %c0_65], %57 {strides = array<i32>} : memref<2x18x18x8xf32, #tpu.memory_space<vmem>>, vector<2x1x18x8xf32>,
    %cst_66 = arith.constant 0.000000e+00 : f32
    %59 = vector.broadcast %cst_66 : f32 to vector<2x16x1x8xf32>
    %c0_67 = arith.constant 0 : index
    %c1_68 = arith.constant 1 : index
    %c0_69 = arith.constant 0 : index
    %c0_70 = arith.constant 0 : index
    %60 = vector.load %arg10[%c0_67, %c1_68, %c0_69, %c0_70] : memref<2x18x18x8xf32, #tpu.memory_space<vmem>>, vector<2x16x1x8xf32>
    tpu.vector_store %arg10[%c0_67, %c1_68, %c0_69, %c0_70], %59 {strides = array<i32>} : memref<2x18x18x8xf32, #tpu.memory_space<vmem>>, vector<2x16x1x8xf32>,
    %cst_71 = arith.constant 0.000000e+00 : f32
    %61 = vector.broadcast %cst_71 : f32 to vector<2x16x1x8xf32>
    %c0_72 = arith.constant 0 : index
    %c1_73 = arith.constant 1 : index
    %c17_74 = arith.constant 17 : index
    %c0_75 = arith.constant 0 : index
    %62 = vector.load %arg10[%c0_72, %c1_73, %c17_74, %c0_75] : memref<2x18x18x8xf32, #tpu.memory_space<vmem>>, vector<2x16x1x8xf32>
    tpu.vector_store %arg10[%c0_72, %c1_73, %c17_74, %c0_75], %61 {strides = array<i32>} : memref<2x18x18x8xf32, #tpu.memory_space<vmem>>, vector<2x16x1x8xf32>,
    %63 = vector.shape_cast %54 : vector<512x8xf32> to vector<2x16x16x8xf32>
    %c0_76 = arith.constant 0 : index
    %c1_77 = arith.constant 1 : index
    %c1_78 = arith.constant 1 : index
    %c0_79 = arith.constant 0 : index
    %64 = vector.load %arg10[%c0_76, %c1_77, %c1_78, %c0_79] : memref<2x18x18x8xf32, #tpu.memory_space<vmem>>, vector<2x16x16x8xf32>
    tpu.vector_store %arg10[%c0_76, %c1_77, %c1_78, %c0_79], %63 {strides = array<i32>} : memref<2x18x18x8xf32, #tpu.memory_space<vmem>>, vector<2x16x16x8xf32>,
    %c0_80 = arith.constant 0 : index
    %c0_81 = arith.constant 0 : index
    %c0_82 = arith.constant 0 : index
    %c0_83 = arith.constant 0 : index
    %65 = vector.load %arg10[%c0_80, %c0_81, %c0_82, %c0_83] : memref<2x18x18x8xf32, #tpu.memory_space<vmem>>, vector<2x16x16x8xf32>
    %66 = vector.shape_cast %65 : vector<2x16x16x8xf32> to vector<512x8xf32>
    %c0_84 = arith.constant 0 : index
    %c0_85 = arith.constant 0 : index
    %67 = vector.load %arg9[%c0_84, %c0_85] : memref<512x72xf32, #tpu.memory_space<vmem>>, vector<512x8xf32>
    tpu.vector_store %arg9[%c0_84, %c0_85], %66 {strides = array<i32>} : memref<512x72xf32, #tpu.memory_space<vmem>>, vector<512x8xf32>,
    %c0_86 = arith.constant 0 : index
    %c0_87 = arith.constant 0 : index
    %c1_88 = arith.constant 1 : index
    %c0_89 = arith.constant 0 : index
    %68 = vector.load %arg10[%c0_86, %c0_87, %c1_88, %c0_89] : memref<2x18x18x8xf32, #tpu.memory_space<vmem>>, vector<2x16x16x8xf32>
    %69 = vector.shape_cast %68 : vector<2x16x16x8xf32> to vector<512x8xf32>
    %c0_90 = arith.constant 0 : index
    %c8_91 = arith.constant 8 : index
    %70 = vector.load %arg9[%c0_90, %c8_91] : memref<512x72xf32, #tpu.memory_space<vmem>>, vector<512x8xf32>
    tpu.vector_store %arg9[%c0_90, %c8_91], %69 {strides = array<i32>} : memref<512x72xf32, #tpu.memory_space<vmem>>, vector<512x8xf32>,
    %c0_92 = arith.constant 0 : index
    %c0_93 = arith.constant 0 : index
    %c2_94 = arith.constant 2 : index
    %c0_95 = arith.constant 0 : index
    %71 = vector.load %arg10[%c0_92, %c0_93, %c2_94, %c0_95] : memref<2x18x18x8xf32, #tpu.memory_space<vmem>>, vector<2x16x16x8xf32>
    %72 = vector.shape_cast %71 : vector<2x16x16x8xf32> to vector<512x8xf32>
    %c0_96 = arith.constant 0 : index
    %c16_97 = arith.constant 16 : index
    %73 = vector.load %arg9[%c0_96, %c16_97] : memref<512x72xf32, #tpu.memory_space<vmem>>, vector<512x8xf32>
    tpu.vector_store %arg9[%c0_96, %c16_97], %72 {strides = array<i32>} : memref<512x72xf32, #tpu.memory_space<vmem>>, vector<512x8xf32>,
    %c0_98 = arith.constant 0 : index
    %c1_99 = arith.constant 1 : index
    %c0_100 = arith.constant 0 : index
    %c0_101 = arith.constant 0 : index
    %74 = vector.load %arg10[%c0_98, %c1_99, %c0_100, %c0_101] : memref<2x18x18x8xf32, #tpu.memory_space<vmem>>, vector<2x16x16x8xf32>
    %75 = vector.shape_cast %74 : vector<2x16x16x8xf32> to vector<512x8xf32>
    %c0_102 = arith.constant 0 : index
    %c24_103 = arith.constant 24 : index
    %76 = vector.load %arg9[%c0_102, %c24_103] : memref<512x72xf32, #tpu.memory_space<vmem>>, vector<512x8xf32>
    tpu.vector_store %arg9[%c0_102, %c24_103], %75 {strides = array<i32>} : memref<512x72xf32, #tpu.memory_space<vmem>>, vector<512x8xf32>,
    %c0_104 = arith.constant 0 : index
    %c1_105 = arith.constant 1 : index
    %c1_106 = arith.constant 1 : index
    %c0_107 = arith.constant 0 : index
    %77 = vector.load %arg10[%c0_104, %c1_105, %c1_106, %c0_107] : memref<2x18x18x8xf32, #tpu.memory_space<vmem>>, vector<2x16x16x8xf32>
    %78 = vector.shape_cast %77 : vector<2x16x16x8xf32> to vector<512x8xf32>
    %c0_108 = arith.constant 0 : index
    %c32_109 = arith.constant 32 : index
    %79 = vector.load %arg9[%c0_108, %c32_109] : memref<512x72xf32, #tpu.memory_space<vmem>>, vector<512x8xf32>
    tpu.vector_store %arg9[%c0_108, %c32_109], %78 {strides = array<i32>} : memref<512x72xf32, #tpu.memory_space<vmem>>, vector<512x8xf32>,
    %c0_110 = arith.constant 0 : index
    %c1_111 = arith.constant 1 : index
    %c2_112 = arith.constant 2 : index
    %c0_113 = arith.constant 0 : index
    %80 = vector.load %arg10[%c0_110, %c1_111, %c2_112, %c0_113] : memref<2x18x18x8xf32, #tpu.memory_space<vmem>>, vector<2x16x16x8xf32>
    %81 = vector.shape_cast %80 : vector<2x16x16x8xf32> to vector<512x8xf32>
    %c0_114 = arith.constant 0 : index
    %c40 = arith.constant 40 : index
    %82 = vector.load %arg9[%c0_114, %c40] : memref<512x72xf32, #tpu.memory_space<vmem>>, vector<512x8xf32>
    tpu.vector_store %arg9[%c0_114, %c40], %81 {strides = array<i32>} : memref<512x72xf32, #tpu.memory_space<vmem>>, vector<512x8xf32>,
    %c0_115 = arith.constant 0 : index
    %c2_116 = arith.constant 2 : index
    %c0_117 = arith.constant 0 : index
    %c0_118 = arith.constant 0 : index
    %83 = vector.load %arg10[%c0_115, %c2_116, %c0_117, %c0_118] : memref<2x18x18x8xf32, #tpu.memory_space<vmem>>, vector<2x16x16x8xf32>
    %84 = vector.shape_cast %83 : vector<2x16x16x8xf32> to vector<512x8xf32>
    %c0_119 = arith.constant 0 : index
    %c48 = arith.constant 48 : index
    %85 = vector.load %arg9[%c0_119, %c48] : memref<512x72xf32, #tpu.memory_space<vmem>>, vector<512x8xf32>
    tpu.vector_store %arg9[%c0_119, %c48], %84 {strides = array<i32>} : memref<512x72xf32, #tpu.memory_space<vmem>>, vector<512x8xf32>,
    %c0_120 = arith.constant 0 : index
    %c2_121 = arith.constant 2 : index
    %c1_122 = arith.constant 1 : index
    %c0_123 = arith.constant 0 : index
    %86 = vector.load %arg10[%c0_120, %c2_121, %c1_122, %c0_123] : memref<2x18x18x8xf32, #tpu.memory_space<vmem>>, vector<2x16x16x8xf32>
    %87 = vector.shape_cast %86 : vector<2x16x16x8xf32> to vector<512x8xf32>
    %c0_124 = arith.constant 0 : index
    %c56 = arith.constant 56 : index
    %88 = vector.load %arg9[%c0_124, %c56] : memref<512x72xf32, #tpu.memory_space<vmem>>, vector<512x8xf32>
    tpu.vector_store %arg9[%c0_124, %c56], %87 {strides = array<i32>} : memref<512x72xf32, #tpu.memory_space<vmem>>, vector<512x8xf32>,
    %c0_125 = arith.constant 0 : index
    %c2_126 = arith.constant 2 : index
    %c2_127 = arith.constant 2 : index
    %c0_128 = arith.constant 0 : index
    %89 = vector.load %arg10[%c0_125, %c2_126, %c2_127, %c0_128] : memref<2x18x18x8xf32, #tpu.memory_space<vmem>>, vector<2x16x16x8xf32>
    %90 = vector.shape_cast %89 : vector<2x16x16x8xf32> to vector<512x8xf32>
    %c0_129 = arith.constant 0 : index
    %c64 = arith.constant 64 : index
    %91 = vector.load %arg9[%c0_129, %c64] : memref<512x72xf32, #tpu.memory_space<vmem>>, vector<512x8xf32>
    tpu.vector_store %arg9[%c0_129, %c64], %90 {strides = array<i32>} : memref<512x72xf32, #tpu.memory_space<vmem>>, vector<512x8xf32>,
    %c0_130 = arith.constant 0 : index
    %c0_131 = arith.constant 0 : index
    %92 = vector.load %arg9[%c0_130, %c0_131] : memref<512x72xf32, #tpu.memory_space<vmem>>, vector<512x72xf32>
    %c0_132 = arith.constant 0 : index
    %c0_133 = arith.constant 0 : index
    %93 = vector.load %arg5[%c0_132, %c0_133] : memref<72x8xf32, #tpu.memory_space<vmem>>, vector<72x8xf32>
    %cst_134 = arith.constant dense<0.000000e+00> : vector<512x8xf32>
    %94 = tpu.matmul %92, %93, %cst_134 {dimension_numbers = #tpu.dot_dimension_numbers<[1], [0], [0], [1], [0, 0, 1, 1], [], []>} : vector<512x72xf32>, vector<72x8xf32>, vector<512x8xf32> -> vector<512x8xf32>
    %cst_135 = arith.constant dense<0.000000e+00> : vector<8xf32>
    %95 = vector.multi_reduction <add>, %94, %cst_135 [0] : vector<512x8xf32> to vector<8xf32>
    %96 = vector.shape_cast %95 : vector<8xf32> to vector<1x8xf32>
    %cst_136 = arith.constant 5.120000e+02 : f32
    %97 = vector.broadcast %cst_136 : f32 to vector<1x8xf32>
    %98 = arith.divf %96, %97 : vector<1x8xf32>
    %99 = vector.broadcast %98 : vector<1x8xf32> to vector<512x8xf32>
    %100 = arith.subf %94, %99 : vector<512x8xf32>
    %101 = arith.mulf %100, %100 : vector<512x8xf32>
    %cst_137 = arith.constant dense<0.000000e+00> : vector<8xf32>
    %102 = vector.multi_reduction <add>, %101, %cst_137 [0] : vector<512x8xf32> to vector<8xf32>
    %103 = vector.shape_cast %102 : vector<8xf32> to vector<1x8xf32>
    %cst_138 = arith.constant 5.120000e+02 : f32
    %104 = vector.broadcast %cst_138 : f32 to vector<1x8xf32>
    %105 = arith.divf %103, %104 : vector<1x8xf32>
    %c0_139 = arith.constant 0 : index
    %c0_140 = arith.constant 0 : index
    %106 = vector.load %arg6[%c0_139, %c0_140] : memref<1x8xf32, #tpu.memory_space<vmem>>, vector<1x8xf32>
    %cst_141 = arith.constant 9.99999974E-6 : f32
    %107 = vector.broadcast %cst_141 : f32 to vector<1x8xf32>
    %108 = arith.addf %105, %107 : vector<1x8xf32>
    %109 = math.rsqrt %108 : vector<1x8xf32>
    %110 = arith.mulf %106, %109 : vector<1x8xf32>
    %c0_142 = arith.constant 0 : index
    %c0_143 = arith.constant 0 : index
    %111 = vector.load %arg7[%c0_142, %c0_143] : memref<1x8xf32, #tpu.memory_space<vmem>>, vector<1x8xf32>
    %112 = arith.mulf %98, %110 : vector<1x8xf32>
    %113 = arith.subf %111, %112 : vector<1x8xf32>
    %114 = vector.broadcast %110 : vector<1x8xf32> to vector<512x8xf32>
    %115 = arith.mulf %94, %114 : vector<512x8xf32>
    %116 = vector.broadcast %113 : vector<1x8xf32> to vector<512x8xf32>
    %117 = arith.addf %115, %116 : vector<512x8xf32>
    %cst_144 = arith.constant 0.000000e+00 : f32
    %118 = vector.broadcast %cst_144 : f32 to vector<512x8xf32>
    %119 = arith.maximumf %117, %118 : vector<512x8xf32>
    %120 = vector.shape_cast %119 : vector<512x8xf32> to vector<2x8x2x16x8xf32>
    %121 = vector.extract_strided_slice %120 {offsets = [0, 0, 0, 0, 0], sizes = [2, 8, 1, 16, 8], strides = [1, 1, 1, 1, 1]} : vector<2x8x2x16x8xf32> to vector<2x8x1x16x8xf32>
    %122 = vector.shape_cast %121 : vector<2x8x1x16x8xf32> to vector<2x8x16x8xf32>
    %123 = vector.extract_strided_slice %120 {offsets = [0, 0, 1, 0, 0], sizes = [2, 8, 1, 16, 8], strides = [1, 1, 1, 1, 1]} : vector<2x8x2x16x8xf32> to vector<2x8x1x16x8xf32>
    %124 = vector.shape_cast %123 : vector<2x8x1x16x8xf32> to vector<2x8x16x8xf32>
    %125 = arith.maximumf %122, %124 : vector<2x8x16x8xf32>
    %c0_145 = arith.constant 0 : index
    %c0_146 = arith.constant 0 : index
    %c0_147 = arith.constant 0 : index
    %c0_148 = arith.constant 0 : index
    %126 = vector.load %arg11[%c0_145, %c0_146, %c0_147, %c0_148] : memref<2x8x16x8xf32, #tpu.memory_space<vmem>>, vector<2x8x16x8xf32>
    tpu.vector_store %arg11[%c0_145, %c0_146, %c0_147, %c0_148], %125 {strides = array<i32>} : memref<2x8x16x8xf32, #tpu.memory_space<vmem>>, vector<2x8x16x8xf32>,
    %c0_149 = arith.constant 0 : index
    %c0_150 = arith.constant 0 : index
    %c0_151 = arith.constant 0 : index
    %c0_152 = arith.constant 0 : index
    %127 = tpu.strided_load %arg11[%c0_149, %c0_150, %c0_151, %c0_152] {strides = array<i32: 1, 1, 2, 1>} : memref<2x8x16x8xf32, #tpu.memory_space<vmem>>, vector<2x8x8x8xf32>
    %c0_153 = arith.constant 0 : index
    %c0_154 = arith.constant 0 : index
    %c1_155 = arith.constant 1 : index
    %c0_156 = arith.constant 0 : index
    %128 = tpu.strided_load %arg11[%c0_153, %c0_154, %c1_155, %c0_156] {strides = array<i32: 1, 1, 2, 1>} : memref<2x8x16x8xf32, #tpu.memory_space<vmem>>, vector<2x8x8x8xf32>
    %129 = arith.maximumf %127, %128 : vector<2x8x8x8xf32>
    %c0_157 = arith.constant 0 : index
    %c0_158 = arith.constant 0 : index
    %c0_159 = arith.constant 0 : index
    %c0_160 = arith.constant 0 : index
    %130 = vector.load %arg8[%c0_157, %c0_158, %c0_159, %c0_160] : memref<2x8x8x8xf32, #tpu.memory_space<vmem>>, vector<2x8x8x8xf32>
    tpu.vector_store %arg8[%c0_157, %c0_158, %c0_159, %c0_160], %129 {strides = array<i32>} : memref<2x8x8x8xf32, #tpu.memory_space<vmem>>, vector<2x8x8x8xf32>,
    return
  }
  func.func @transform_0(%arg0: i32) -> (i32, i32, i32, i32) {
    %c0_i32 = arith.constant 0 : i32
    %c0_i32_0 = arith.constant 0 : i32
    %c0_i32_1 = arith.constant 0 : i32
    %c0_i32_2 = arith.constant 0 : i32
    %c0_i32_3 = arith.constant 0 : i32
    return %c0_i32, %c0_i32_0, %c0_i32_1, %c0_i32_2 : i32, i32, i32, i32
  }
  func.func @transform_1(%arg0: i32) -> (i32, i32) {
    %c0_i32 = arith.constant 0 : i32
    %c0_i32_0 = arith.constant 0 : i32
    %c0_i32_1 = arith.constant 0 : i32
    return %c0_i32, %c0_i32_0 : i32, i32
  }
  func.func @transform_2(%arg0: i32) -> (i32, i32) {
    %c0_i32 = arith.constant 0 : i32
    %c0_i32_0 = arith.constant 0 : i32
    %c0_i32_1 = arith.constant 0 : i32
    return %c0_i32, %c0_i32_0 : i32, i32
  }
  func.func @transform_3(%arg0: i32) -> (i32, i32) {
    %c0_i32 = arith.constant 0 : i32
    %c0_i32_0 = arith.constant 0 : i32
    %c0_i32_1 = arith.constant 0 : i32
    return %c0_i32, %c0_i32_0 : i32, i32
  }
  func.func @transform_4(%arg0: i32) -> (i32, i32) {
    %c0_i32 = arith.constant 0 : i32
    %c0_i32_0 = arith.constant 0 : i32
    %c0_i32_1 = arith.constant 0 : i32
    return %c0_i32, %c0_i32_0 : i32, i32
  }
  func.func @transform_5(%arg0: i32) -> (i32, i32) {
    %c0_i32 = arith.constant 0 : i32
    %c0_i32_0 = arith.constant 0 : i32
    %c0_i32_1 = arith.constant 0 : i32
    return %c0_i32, %c0_i32_0 : i32, i32
  }
  func.func @transform_6(%arg0: i32) -> (i32, i32) {
    %c0_i32 = arith.constant 0 : i32
    %c0_i32_0 = arith.constant 0 : i32
    %c0_i32_1 = arith.constant 0 : i32
    return %c0_i32, %c0_i32_0 : i32, i32
  }
  func.func @transform_7(%arg0: i32) -> (i32, i32, i32, i32) {
    %c0_i32 = arith.constant 0 : i32
    %c0_i32_0 = arith.constant 0 : i32
    %c0_i32_1 = arith.constant 0 : i32
    %c0_i32_2 = arith.constant 0 : i32
    %c0_i32_3 = arith.constant 0 : i32
    return %c0_i32, %c0_i32_0, %c0_i32_1, %c0_i32_2 : i32, i32, i32, i32
  }
}

</mosaic_0001>

<bundles_post_ra>
// kernel: encoder_block_forward.1
= control target key start
LH: loop header
LB: loop body
LE: loop exit
PB: predicated region body
PF: predicated region fallthrough
CT: control target
= control target key end

     0   :  { %s9478_s28 = smov 4   ;;  %vm90_vm0 = vcmask 31744   ;;  %vm475_vm1 = vcmask 64544   ;;  %s9479_s20 = smov 8   ;;  %vm860_vm2 = vcmask 97344   ;;  %vm1246_vm3 = vcmask 130144   ;;  %s16078_s0 = inlined_call_operand.vmem [shape: f32[2,18,18,4], index: 0, kind: input, shape index: {}]   ;;  %s16079_s1 = inlined_call_operand.vmem [shape: f32[36,8], index: 1, kind: input, shape index: {}]   ;;  %s16080_s2 = inlined_call_operand.vmem [shape: f32[1,8], index: 2, kind: input, shape index: {}]   ;;  %s16081_s3 = inlined_call_operand.vmem [shape: f32[1,8], index: 3, kind: input, shape index: {}]   ;;  %s16082_s4 = inlined_call_operand.vmem [shape: f32[72,8], index: 4, kind: input, shape index: {}]   ;;  %s16083_s5 = inlined_call_operand.vmem [shape: f32[1,8], index: 5, kind: input, shape index: {}]   ;;  %s16084_s6 = inlined_call_operand.vmem [shape: f32[1,8], index: 6, kind: input, shape index: {}]   ;;  %s16085_s7 = inlined_call_operand.vmem [shape: f32[2,8,8,8], index: 7, kind: output, shape index: {}]  }
   0x1   :  { %v157_v0 = vld [vmem:[%s16078_s0 + $0x19] sm:$0xff]  ;;  %v155_v1 = vld [vmem:[%s16078_s0 + $0x1] sm:$0xff]  ;;  %v159_v2 = vld [vmem:[%s16078_s0 + $0x31] sm:$0xff]  ;;  %s9480_s12 = smov 12   ;;  %s9481_s27 = smov 16   ;;  %vm1631_vm4 = vcmask 162944  }
   0x2   :  { %287 = vrot.lane.b32.xlu1 %v157_v0, %s9478_s28  ;;  %283 = vrot.lane.b32.xlu0 %v155_v1, %s9478_s28  ;;  %v158_v3 = vld [vmem:[%s16078_s0 + $0x21] sm:$0xff]  ;;  %v156_v4 = vld [vmem:[%s16078_s0 + $0x9] sm:$0xff]  ;;  %s9482_s29 = smov 20   ;;  %vm2016_vm5 = vcmask 195744   ;;  %s9483_s13 = smov 24   ;;  %vm2402_vm6 = vcmask 228544  }
   0x3   :  { %291 = vrot.lane.b32.xlu2 %v159_v2, %s9478_s28  ;;  %v160_v5 = vld [vmem:[%s16078_s0 + $0x39] sm:$0xff]  ;;  %v162_v6 = vld [vmem:[%s16078_s0 + $0x51] sm:$0xff]  ;;  %v161_v7 = vld [vmem:[%s16078_s0 + $0x49] sm:$0xff]  ;;  %s9484_s25 = smov 28   ;;  %vm2787_vm7 = vcmask 261344   ;;  %s9485_s18 = smov 32  }
   0x4   :  { %v163_v8 = vld [vmem:[%s16078_s0 + $0x61] sm:$0xff]  ;;  %v165_v9 = vld [vmem:[%s16078_s0 + $0x79] sm:$0xff]  ;;  %v164_v10 = vld [vmem:[%s16078_s0 + $0x69] sm:$0xff]  ;;  %vm3499_vm8 = vcmask 1043456   ;;  %vm3172_vm9 = vcmask 294144   ;;  %vm3306_vm10 = vcmask 293888  }
   0x5   :  { %v166_v11 = vld [vmem:[%s16078_s0 + $0x81] sm:$0xff]  ;;  %v168_v12 = vld [vmem:[%s16078_s0 + $0x99] sm:$0xff]  ;;  %v167_v13 = vld [vmem:[%s16078_s0 + $0x91] sm:$0xff]  ;;  %vm3712_vm11 = vcmask 64512  }
   0x6   :  { %v169_v14 = vld [vmem:[%s16078_s0 + $0xa9] sm:$0xff]  ;;  %v171_v15 = vld [vmem:[%s16078_s0 + $0xc1] sm:$0xff]  ;;  %v170_v16 = vld [vmem:[%s16078_s0 + $0xb1] sm:$0xff] }
   0x7   :  { %v172_v17 = vld [vmem:[%s16078_s0 + $0xc9] sm:$0xff]  ;;  %v174_v18 = vld [vmem:[%s16078_s0 + $0xe1] sm:$0xff]  ;;  %v173_v19 = vld [vmem:[%s16078_s0 + $0xd9] sm:$0xff] }
   0x8   :  { %v175_v20 = vld [vmem:[%s16078_s0 + $0xf1] sm:$0xff]  ;;  %v177_v21 = vld [vmem:[%s16078_s0 + $0x109] sm:$0xff]  ;;  %v176_v22 = vld [vmem:[%s16078_s0 + $0xf9] sm:$0xff] }
   0x9   :  { %v178_v23 = vld [vmem:[%s16078_s0 + $0x111] sm:$0xff]  ;;  %v180_v24 = vld [vmem:[%s16078_s0 + $0x129] sm:$0xff]  ;;  %v179_v25 = vld [vmem:[%s16078_s0 + $0x121] sm:$0xff] }
   0xa   :  { %289 = vrot.lane.b32.xlu1 %v158_v3, %s9478_s28  ;;  %285 = vrot.lane.b32.xlu0 %v156_v4, %s9478_s28  ;;  %v181_v26 = vld [vmem:[%s16078_s0 + $0x139] sm:$0xff]  ;;  %v183_v27 = vld [vmem:[%s16078_s0 + $0x151] sm:$0xff] }
   0xb   :  { %293 = vrot.lane.b32.xlu2 %v160_v5, %s9478_s28  ;;  %v182_v28 = vld [vmem:[%s16078_s0 + $0x141] sm:$0xff]  ;;  %v184_v29 = vld [vmem:[%s16078_s0 + $0x159] sm:$0xff]  ;;  %v186_v30 = vld [vmem:[%s16078_s0 + $0x171] sm:$0xff] }
   0xc   :  { %v185_v31 = vld [vmem:[%s16078_s0 + $0x169] sm:$0xff]  ;;  %v187_v32 = vld [vmem:[%s16078_s0 + $0x1b1] sm:$0xff]  ;;  %v188_v35 = vld [vmem:[%s16078_s0 + $0x1b9] sm:$0xff] }
   0xd   :  { %v9666_v33 = vld [vmem:[%s16078_s0 + $0x18] sm:$0xff]  ;;  %v189_v34 = vld [vmem:[%s16078_s0 + $0x1c9] sm:$0xff]  ;;  %v9692_v38 = vld [vmem:[%s16078_s0 + $0x20] sm:$0xff] }
   0xe   :  { %93 = vst.msk [vmem:[#allocation2 + $0x10] sm:$0xff] %vm90_vm0, %v9666_v33  ;;  %v190_v36 = vld [vmem:[%s16078_s0 + $0x1d1] sm:$0xff]  ;;  %v26_v39 = vld [vmem:[%s16078_s0] sm:$0xff]  ;;  %v192_v41 = vld [vmem:[%s16078_s0 + $0x1e9] sm:$0xff] }
   0xf   :  { %v9685_v37 = vld [vmem:[%s16078_s0 + $0x30] sm:$0xff]  ;;  %94 = vst.msk [vmem:[#allocation2 + $0x18] sm:$0xff] %vm90_vm0, %v9692_v38  ;;  %v191_v42 = vld [vmem:[%s16078_s0 + $0x1e1] sm:$0xff]  ;;  %v193_v43 = vld [vmem:[%s16078_s0 + $0x1f9] sm:$0xff] }
  0x10   :  { %95 = vst.msk [vmem:[#allocation2 + $0x20] sm:$0xff] %vm90_vm0, %v9685_v37  ;;  %v9716_v44 = vld [vmem:[%s16078_s0 + $0x38] sm:$0xff]  ;;  %v9723_v45 = vld [vmem:[%s16078_s0 + $0x50] sm:$0xff]  ;;  %v27_v46 = vld [vmem:[%s16078_s0 + $0x8] sm:$0xff] }
  0x11   :  { %91 = vst.msk [vmem:[#allocation2] sm:$0xff] %vm90_vm0, %v26_v39  ;;  %v195_v48 = vld [vmem:[%s16078_s0 + $0x211] sm:$0xff]  ;;  %v194_v49 = vld [vmem:[%s16078_s0 + $0x201] sm:$0xff]  ;;  %v196_v50 = vld [vmem:[%s16078_s0 + $0x219] sm:$0xff] }
  0x12   :  { %297 = vrot.lane.b32.xlu1 %v162_v6, %s9478_s28  ;;  %295 = vrot.lane.b32.xlu0 %v161_v7, %s9478_s28  ;;  %96 = vst.msk [vmem:[#allocation2 + $0x28] sm:$0xff] %vm90_vm0, %v9716_v44  ;;  %v9747_v51 = vld [vmem:[%s16078_s0 + $0x60] sm:$0xff]  ;;  %v9754_v52 = vld [vmem:[%s16078_s0 + $0x78] sm:$0xff] }
  0x13   :  { %299 = vrot.lane.b32.xlu2 %v163_v8, %s9478_s28  ;;  %98 = vst.msk [vmem:[#allocation2 + $0x38] sm:$0xff] %vm90_vm0, %v9723_v45  ;;  %v9759_v53 = vld [vmem:[%s16078_s0 + $0x48] sm:$0xff]  ;;  %v198_v55 = vld [vmem:[%s16078_s0 + $0x231] sm:$0xff]  ;;  %v9781_v58 = vld [vmem:[%s16078_s0 + $0x80] sm:$0xff] }
  0x14   :  { %92 = vst.msk [vmem:[#allocation2 + $0x8] sm:$0xff] %vm90_vm0, %v27_v46  ;;  %v197_v56 = vld [vmem:[%s16078_s0 + $0x229] sm:$0xff]  ;;  %v199_v57 = vld [vmem:[%s16078_s0 + $0x241] sm:$0xff]  ;;  %v9788_v59 = vld [vmem:[%s16078_s0 + $0x98] sm:$0xff] }
  0x15   :  { %99 = vst.msk [vmem:[#allocation2 + $0x40] sm:$0xff] %vm90_vm0, %v9747_v51  ;;  %v9797_v62 = vld [vmem:[%s16078_s0 + $0x68] sm:$0xff]  ;;  %v201_v0 = vld [vmem:[%s16078_s0 + $0x259] sm:$0xff]  ;;  %v9833_v7 = vld [vmem:[%s16078_s0 + $0x90] sm:$0xff] }
  0x16   :  { %101 = vst.msk [vmem:[#allocation2 + $0x50] sm:$0xff] %vm90_vm0, %v9754_v52  ;;  %v200_v1 = vld [vmem:[%s16078_s0 + $0x249] sm:$0xff]  ;;  %v202_v2 = vld [vmem:[%s16078_s0 + $0x261] sm:$0xff] }
  0x17   :  { %97 = vst.msk [vmem:[#allocation2 + $0x30] sm:$0xff] %vm90_vm0, %v9759_v53  ;;  %v9817_v3 = vld [vmem:[%s16078_s0 + $0xa8] sm:$0xff]  ;;  %v9824_v4 = vld [vmem:[%s16078_s0 + $0xc0] sm:$0xff] }
  0x18   :  { %102 = vst.msk [vmem:[#allocation2 + $0x58] sm:$0xff] %vm90_vm0, %v9781_v58  ;;  %v213_v39 = vld [vmem:[%s16078_s0 + $0x2e9] sm:$0xff] }
  0x19   :  { %104 = vst.msk [vmem:[#allocation2 + $0x68] sm:$0xff] %vm90_vm0, %v9788_v59 }
  0x1a   :  { %303 = vrot.lane.b32.xlu1 %v165_v9, %s9478_s28  ;;  %301 = vrot.lane.b32.xlu0 %v164_v10, %s9478_s28  ;;  %100 = vst.msk [vmem:[#allocation2 + $0x48] sm:$0xff] %vm90_vm0, %v9797_v62  ;;  %v204_v9 = vld [vmem:[%s16078_s0 + $0x279] sm:$0xff]  ;;  %v203_v10 = vld [vmem:[%s16078_s0 + $0x271] sm:$0xff] }
  0x1b   :  { %305 = vrot.lane.b32.xlu2 %v166_v11, %s9478_s28  ;;  %105 = vst.msk [vmem:[#allocation2 + $0x70] sm:$0xff] %vm90_vm0, %v9817_v3  ;;  %v205_v11 = vld [vmem:[%s16078_s0 + $0x289] sm:$0xff] }
  0x1c   :  { %107 = vst.msk [vmem:[#allocation2 + $0x80] sm:$0xff] %vm90_vm0, %v9824_v4 }
  0x1d   :  { %103 = vst.msk [vmem:[#allocation2 + $0x60] sm:$0xff] %vm90_vm0, %v9833_v7 }
  0x22   :  { %309 = vrot.lane.b32.xlu1 %v168_v12, %s9478_s28  ;;  %307 = vrot.lane.b32.xlu0 %v167_v13, %s9478_s28  ;;  %v9853_v12 = vld [vmem:[%s16078_s0 + $0xc8] sm:$0xff]  ;;  %v9860_v13 = vld [vmem:[%s16078_s0 + $0xe0] sm:$0xff] }
  0x23   :  { %311 = vrot.lane.b32.xlu2 %v169_v14, %s9478_s28  ;;  %108 = vst.msk [vmem:[#allocation2 + $0x88] sm:$0xff] %vm90_vm0, %v9853_v12 }
  0x24   :  { %110 = vst.msk [vmem:[#allocation2 + $0x98] sm:$0xff] %vm90_vm0, %v9860_v13 }
  0x2a   :  { %315 = vrot.lane.b32.xlu1 %v171_v15, %s9478_s28  ;;  %313 = vrot.lane.b32.xlu0 %v170_v16, %s9478_s28  ;;  %v9869_v16 = vld [vmem:[%s16078_s0 + $0xb0] sm:$0xff] }
  0x2b   :  { %317 = vrot.lane.b32.xlu2 %v172_v17, %s9478_s28  ;;  %106 = vst.msk [vmem:[#allocation2 + $0x78] sm:$0xff] %vm90_vm0, %v9869_v16 }
  0x32   :  { %321 = vrot.lane.b32.xlu1 %v174_v18, %s9478_s28  ;;  %319 = vrot.lane.b32.xlu0 %v173_v19, %s9478_s28  ;;  %v207_v18 = vld [vmem:[%s16078_s0 + $0x2a1] sm:$0xff]  ;;  %v206_v19 = vld [vmem:[%s16078_s0 + $0x291] sm:$0xff] }
  0x33   :  { %323 = vrot.lane.b32.xlu2 %v175_v20, %s9478_s28  ;;  %v208_v20 = vld [vmem:[%s16078_s0 + $0x2a9] sm:$0xff] }
  0x3a   :  { %327 = vrot.lane.b32.xlu1 %v177_v21, %s9478_s28  ;;  %325 = vrot.lane.b32.xlu0 %v176_v22, %s9478_s28  ;;  %v9889_v21 = vld [vmem:[%s16078_s0 + $0xf0] sm:$0xff]  ;;  %v9896_v22 = vld [vmem:[%s16078_s0 + $0x108] sm:$0xff] }
  0x3b   :  { %329 = vrot.lane.b32.xlu2 %v178_v23, %s9478_s28  ;;  %111 = vst.msk [vmem:[#allocation2 + $0xa0] sm:$0xff] %vm90_vm0, %v9889_v21 }
  0x3c   :  { %113 = vst.msk [vmem:[#allocation2 + $0xb0] sm:$0xff] %vm90_vm0, %v9896_v22 }
  0x42   :  { %333 = vrot.lane.b32.xlu1 %v180_v24, %s9478_s28  ;;  %331 = vrot.lane.b32.xlu0 %v179_v25, %s9478_s28  ;;  %v9905_v25 = vld [vmem:[%s16078_s0 + $0xd8] sm:$0xff] }
  0x43   :  { %335 = vrot.lane.b32.xlu2 %v181_v26, %s9478_s28  ;;  %109 = vst.msk [vmem:[#allocation2 + $0x90] sm:$0xff] %vm90_vm0, %v9905_v25 }
  0x4a   :  { %339 = vrot.lane.b32.xlu1 %v183_v27, %s9478_s28  ;;  %337 = vrot.lane.b32.xlu0 %v182_v28, %s9478_s28  ;;  %v210_v27 = vld [vmem:[%s16078_s0 + $0x2c1] sm:$0xff]  ;;  %v209_v28 = vld [vmem:[%s16078_s0 + $0x2b9] sm:$0xff] }
  0x4b   :  { %341 = vrot.lane.b32.xlu2 %v184_v29, %s9478_s28  ;;  %v211_v29 = vld [vmem:[%s16078_s0 + $0x2d1] sm:$0xff] }
  0x52   :  { %345 = vrot.lane.b32.xlu1 %v186_v30, %s9478_s28  ;;  %343 = vrot.lane.b32.xlu0 %v185_v31, %s9478_s28  ;;  %v9925_v30 = vld [vmem:[%s16078_s0 + $0x110] sm:$0xff]  ;;  %v9932_v31 = vld [vmem:[%s16078_s0 + $0x128] sm:$0xff] }
  0x53   :  { %347 = vrot.lane.b32.xlu2 %v187_v32, %s9478_s28  ;;  %114 = vst.msk [vmem:[#allocation2 + $0xb8] sm:$0xff] %vm90_vm0, %v9925_v30 }
  0x54   :  { %116 = vst.msk [vmem:[#allocation2 + $0xc8] sm:$0xff] %vm90_vm0, %v9932_v31 }
  0x5a   :  { %351 = vrot.lane.b32.xlu1 %v189_v34, %s9478_s28  ;;  %349 = vrot.lane.b32.xlu0 %v188_v35, %s9478_s28  ;;  %v9941_v35 = vld [vmem:[%s16078_s0 + $0xf8] sm:$0xff] }
  0x5b   :  { %353 = vrot.lane.b32.xlu2 %v190_v36, %s9478_s28  ;;  %112 = vst.msk [vmem:[#allocation2 + $0xa8] sm:$0xff] %vm90_vm0, %v9941_v35 }
  0x5d   :  { %v292_v40 = vpop.permute.xlu2 %291 }
  0x5e   :  { %480 = vst.msk [vmem:[#allocation2 + $0x20] sm:$0xff] %vm475_vm1, %v292_v40  ;;  %v212_v40 = vld [vmem:[%s16078_s0 + $0x2d9] sm:$0xff] }
  0x62   :  { %357 = vrot.lane.b32.xlu1 %v192_v41, %s9478_s28  ;;  %355 = vrot.lane.b32.xlu0 %v191_v42, %s9478_s28  ;;  %v214_v41 = vld [vmem:[%s16078_s0 + $0x2f1] sm:$0xff] }
  0x63   :  { %359 = vrot.lane.b32.xlu2 %v193_v43, %s9478_s28  ;;  %v9961_v42 = vld [vmem:[%s16078_s0 + $0x138] sm:$0xff]  ;;  %v9968_v43 = vld [vmem:[%s16078_s0 + $0x150] sm:$0xff] }
  0x64   :  { %117 = vst.msk [vmem:[#allocation2 + $0xd0] sm:$0xff] %vm90_vm0, %v9961_v42 }
  0x65   :  { %v294_v47 = vpop.permute.xlu2 %293  ;;  %119 = vst.msk [vmem:[#allocation2 + $0xe0] sm:$0xff] %vm90_vm0, %v9968_v43 }
  0x66   :  { %481 = vst.msk [vmem:[#allocation2 + $0x28] sm:$0xff] %vm475_vm1, %v294_v47 }
  0x6a   :  { %363 = vrot.lane.b32.xlu1 %v195_v48, %s9478_s28  ;;  %361 = vrot.lane.b32.xlu0 %v194_v49, %s9478_s28  ;;  %v9977_v48 = vld [vmem:[%s16078_s0 + $0x120] sm:$0xff] }
  0x6b   :  { %365 = vrot.lane.b32.xlu2 %v196_v50, %s9478_s28  ;;  %v216_v50 = vld [vmem:[%s16078_s0 + $0x309] sm:$0xff]  ;;  %115 = vst.msk [vmem:[#allocation2 + $0xc0] sm:$0xff] %vm90_vm0, %v9977_v48 }
  0x6d   :  { %v300_v54 = vpop.permute.xlu2 %299 }
  0x6e   :  { %484 = vst.msk [vmem:[#allocation2 + $0x40] sm:$0xff] %vm475_vm1, %v300_v54  ;;  %v215_v54 = vld [vmem:[%s16078_s0 + $0x301] sm:$0xff] }
  0x72   :  { %369 = vrot.lane.b32.xlu1 %v198_v55, %s9478_s28  ;;  %367 = vrot.lane.b32.xlu0 %v197_v56, %s9478_s28  ;;  %v217_v55 = vld [vmem:[%s16078_s0 + $0x319] sm:$0xff] }
  0x73   :  { %371 = vrot.lane.b32.xlu2 %v199_v57, %s9478_s28  ;;  %v9997_v56 = vld [vmem:[%s16078_s0 + $0x158] sm:$0xff]  ;;  %v10004_v57 = vld [vmem:[%s16078_s0 + $0x170] sm:$0xff] }
  0x74   :  { %v288_v60 = vpop.permute.xlu1 %287  ;;  %v284_v61 = vpop.permute.xlu0 %283  ;;  %120 = vst.msk [vmem:[#allocation2 + $0xe8] sm:$0xff] %vm90_vm0, %v9997_v56 }
  0x75   :  { %478 = vst.msk [vmem:[#allocation2 + $0x10] sm:$0xff] %vm475_vm1, %v288_v60  ;;  %v306_v63 = vpop.permute.xlu2 %305 }
  0x76   :  { %476 = vst.msk [vmem:[#allocation2] sm:$0xff] %vm475_vm1, %v284_v61 }
  0x77   :  { %487 = vst.msk [vmem:[#allocation2 + $0x58] sm:$0xff] %vm475_vm1, %v306_v63  ;;  %v10013_v63 = vld [vmem:[%s16078_s0 + $0x140] sm:$0xff] }
  0x78   :  { %122 = vst.msk [vmem:[#allocation2 + $0xf8] sm:$0xff] %vm90_vm0, %v10004_v57 }
  0x79   :  { %118 = vst.msk [vmem:[#allocation2 + $0xd8] sm:$0xff] %vm90_vm0, %v10013_v63 }
  0x7a   :  { %375 = vrot.lane.b32.xlu1 %v201_v0, %s9478_s28  ;;  %373 = vrot.lane.b32.xlu0 %v200_v1, %s9478_s28  ;;  %v540_v1 = vld [vmem:[%s16078_s0 + $0x2] sm:$0xff] }
  0x7b   :  { %377 = vrot.lane.b32.xlu2 %v202_v2, %s9478_s28  ;;  %v218_v2 = vld [vmem:[%s16078_s0 + $0x321] sm:$0xff] }
  0x7c   :  { %v290_v5 = vpop.permute.xlu1 %289  ;;  %v286_v6 = vpop.permute.xlu0 %285 }
  0x7d   :  { %479 = vst.msk [vmem:[#allocation2 + $0x18] sm:$0xff] %vm475_vm1, %v290_v5  ;;  %v312_v8 = vpop.permute.xlu2 %311  ;;  %v541_v5 = vld [vmem:[%s16078_s0 + $0xa] sm:$0xff] }
  0x7e   :  { %477 = vst.msk [vmem:[#allocation2 + $0x8] sm:$0xff] %vm475_vm1, %v286_v6  ;;  %v58_v6 = vld [vmem:[%s16078_s0 + $0x1b0] sm:$0xff] }
  0x7f   :  { %490 = vst.msk [vmem:[#allocation2 + $0x70] sm:$0xff] %vm475_vm1, %v312_v8  ;;  %v10037_v8 = vld [vmem:[%s16078_s0 + $0x1c8] sm:$0xff] }
  0x80   :  { %123 = vst.msk [vmem:[#allocation2 + $0x100] sm:$0xff] %vm90_vm0, %v58_v6  ;;  %v553_v6 = vld [vmem:[%s16078_s0 + $0x9a] sm:$0xff] }
  0x81   :  { %125 = vst.msk [vmem:[#allocation2 + $0x110] sm:$0xff] %vm90_vm0, %v10037_v8 }
  0x82   :  { %381 = vrot.lane.b32.xlu1 %v204_v9, %s9478_s28  ;;  %379 = vrot.lane.b32.xlu0 %v203_v10, %s9478_s28 }
  0x83   :  { %383 = vrot.lane.b32.xlu2 %v205_v11, %s9478_s28  ;;  %v10046_v11 = vld [vmem:[%s16078_s0 + $0x168] sm:$0xff] }
  0x84   :  { %v298_v14 = vpop.permute.xlu1 %297  ;;  %v296_v15 = vpop.permute.xlu0 %295  ;;  %121 = vst.msk [vmem:[#allocation2 + $0xf0] sm:$0xff] %vm90_vm0, %v10046_v11 }
  0x85   :  { %483 = vst.msk [vmem:[#allocation2 + $0x38] sm:$0xff] %vm475_vm1, %v298_v14  ;;  %v318_v17 = vpop.permute.xlu2 %317 }
  0x86   :  { %482 = vst.msk [vmem:[#allocation2 + $0x30] sm:$0xff] %vm475_vm1, %v296_v15  ;;  %v543_v15 = vld [vmem:[%s16078_s0 + $0x22] sm:$0xff] }
  0x87   :  { %493 = vst.msk [vmem:[#allocation2 + $0x88] sm:$0xff] %vm475_vm1, %v318_v17  ;;  %v542_v17 = vld [vmem:[%s16078_s0 + $0x1a] sm:$0xff] }
  0x8a   :  { %387 = vrot.lane.b32.xlu1 %v207_v18, %s9478_s28  ;;  %385 = vrot.lane.b32.xlu0 %v206_v19, %s9478_s28  ;;  %v544_v18 = vld [vmem:[%s16078_s0 + $0x32] sm:$0xff] }
  0x8b   :  { %389 = vrot.lane.b32.xlu2 %v208_v20, %s9478_s28  ;;  %v10066_v19 = vld [vmem:[%s16078_s0 + $0x1d0] sm:$0xff]  ;;  %v10073_v20 = vld [vmem:[%s16078_s0 + $0x1e8] sm:$0xff] }
  0x8c   :  { %v304_v23 = vpop.permute.xlu1 %303  ;;  %v302_v24 = vpop.permute.xlu0 %301  ;;  %126 = vst.msk [vmem:[#allocation2 + $0x118] sm:$0xff] %vm90_vm0, %v10066_v19 }
  0x8d   :  { %486 = vst.msk [vmem:[#allocation2 + $0x50] sm:$0xff] %vm475_vm1, %v304_v23  ;;  %v324_v26 = vpop.permute.xlu2 %323 }
  0x8e   :  { %485 = vst.msk [vmem:[#allocation2 + $0x48] sm:$0xff] %vm475_vm1, %v302_v24 }
  0x8f   :  { %496 = vst.msk [vmem:[#allocation2 + $0xa0] sm:$0xff] %vm475_vm1, %v324_v26  ;;  %v59_v26 = vld [vmem:[%s16078_s0 + $0x1b8] sm:$0xff] }
  0x90   :  { %128 = vst.msk [vmem:[#allocation2 + $0x128] sm:$0xff] %vm90_vm0, %v10073_v20 }
  0x91   :  { %124 = vst.msk [vmem:[#allocation2 + $0x108] sm:$0xff] %vm90_vm0, %v59_v26  ;;  %v556_v26 = vld [vmem:[%s16078_s0 + $0xc2] sm:$0xff] }
  0x92   :  { %393 = vrot.lane.b32.xlu1 %v210_v27, %s9478_s28  ;;  %391 = vrot.lane.b32.xlu0 %v209_v28, %s9478_s28  ;;  %v546_v28 = vld [vmem:[%s16078_s0 + $0x4a] sm:$0xff] }
  0x93   :  { %395 = vrot.lane.b32.xlu2 %v211_v29, %s9478_s28  ;;  %v545_v29 = vld [vmem:[%s16078_s0 + $0x3a] sm:$0xff] }
  0x94   :  { %v310_v32 = vpop.permute.xlu1 %309  ;;  %v308_v34 = vpop.permute.xlu0 %307 }
  0x95   :  { %489 = vst.msk [vmem:[#allocation2 + $0x68] sm:$0xff] %vm475_vm1, %v310_v32  ;;  %v330_v36 = vpop.permute.xlu2 %329  ;;  %v547_v32 = vld [vmem:[%s16078_s0 + $0x52] sm:$0xff] }
  0x96   :  { %488 = vst.msk [vmem:[#allocation2 + $0x60] sm:$0xff] %vm475_vm1, %v308_v34  ;;  %v10099_v34 = vld [vmem:[%s16078_s0 + $0x1f8] sm:$0xff] }
  0x97   :  { %499 = vst.msk [vmem:[#allocation2 + $0xb8] sm:$0xff] %vm475_vm1, %v330_v36  ;;  %v10106_v36 = vld [vmem:[%s16078_s0 + $0x210] sm:$0xff] }
  0x98   :  { %129 = vst.msk [vmem:[#allocation2 + $0x130] sm:$0xff] %vm90_vm0, %v10099_v34 }
  0x99   :  { %131 = vst.msk [vmem:[#allocation2 + $0x140] sm:$0xff] %vm90_vm0, %v10106_v36 }
  0x9a   :  { %399 = vrot.lane.b32.xlu1 %v213_v39, %s9478_s28  ;;  %397 = vrot.lane.b32.xlu0 %v212_v40, %s9478_s28 }
  0x9b   :  { %401 = vrot.lane.b32.xlu2 %v214_v41, %s9478_s28  ;;  %v10115_v41 = vld [vmem:[%s16078_s0 + $0x1e0] sm:$0xff] }
  0x9c   :  { %v316_v46 = vpop.permute.xlu1 %315  ;;  %v314_v47 = vpop.permute.xlu0 %313  ;;  %127 = vst.msk [vmem:[#allocation2 + $0x120] sm:$0xff] %vm90_vm0, %v10115_v41 }
  0x9d   :  { %492 = vst.msk [vmem:[#allocation2 + $0x80] sm:$0xff] %vm475_vm1, %v316_v46  ;;  %v336_v49 = vpop.permute.xlu2 %335 }
  0x9e   :  { %491 = vst.msk [vmem:[#allocation2 + $0x78] sm:$0xff] %vm475_vm1, %v314_v47  ;;  %v549_v47 = vld [vmem:[%s16078_s0 + $0x6a] sm:$0xff] }
  0x9f   :  { %502 = vst.msk [vmem:[#allocation2 + $0xd0] sm:$0xff] %vm475_vm1, %v336_v49  ;;  %v548_v49 = vld [vmem:[%s16078_s0 + $0x62] sm:$0xff] }
  0xa2   :  { %405 = vrot.lane.b32.xlu1 %v216_v50, %s9478_s28  ;;  %403 = vrot.lane.b32.xlu0 %v215_v54, %s9478_s28  ;;  %v550_v50 = vld [vmem:[%s16078_s0 + $0x7a] sm:$0xff] }
  0xa3   :  { %407 = vrot.lane.b32.xlu2 %v217_v55, %s9478_s28  ;;  %v10135_v54 = vld [vmem:[%s16078_s0 + $0x218] sm:$0xff]  ;;  %v10142_v55 = vld [vmem:[%s16078_s0 + $0x230] sm:$0xff] }
  0xa4   :  { %v322_v60 = vpop.permute.xlu1 %321  ;;  %v320_v61 = vpop.permute.xlu0 %319  ;;  %132 = vst.msk [vmem:[#allocation2 + $0x148] sm:$0xff] %vm90_vm0, %v10135_v54 }
  0xa5   :  { %495 = vst.msk [vmem:[#allocation2 + $0x98] sm:$0xff] %vm475_vm1, %v322_v60  ;;  %v342_v0 = vpop.permute.xlu2 %341 }
  0xa6   :  { %494 = vst.msk [vmem:[#allocation2 + $0x90] sm:$0xff] %vm475_vm1, %v320_v61 }
  0xa7   :  { %505 = vst.msk [vmem:[#allocation2 + $0xe8] sm:$0xff] %vm475_vm1, %v342_v0  ;;  %v10151_v0 = vld [vmem:[%s16078_s0 + $0x200] sm:$0xff] }
  0xa8   :  { %134 = vst.msk [vmem:[#allocation2 + $0x158] sm:$0xff] %vm90_vm0, %v10142_v55 }
  0xa9   :  { %130 = vst.msk [vmem:[#allocation2 + $0x138] sm:$0xff] %vm90_vm0, %v10151_v0 }
  0xaa   :  { %668 = vrot.lane.b32.xlu1 %v540_v1, %s9479_s20  ;;  %409 = vrot.lane.b32.xlu0 %v218_v2, %s9478_s28  ;;  %v552_v2 = vld [vmem:[%s16078_s0 + $0x92] sm:$0xff] }
  0xab   :  { %670 = vrot.lane.b32.xlu2 %v541_v5, %s9479_s20  ;;  %v551_v5 = vld [vmem:[%s16078_s0 + $0x82] sm:$0xff] }
  0xac   :  { %v328_v9 = vpop.permute.xlu1 %327  ;;  %v326_v10 = vpop.permute.xlu0 %325 }
  0xad   :  { %498 = vst.msk [vmem:[#allocation2 + $0xb0] sm:$0xff] %vm475_vm1, %v328_v9  ;;  %v348_v14 = vpop.permute.xlu2 %347  ;;  %v10171_v9 = vld [vmem:[%s16078_s0 + $0x240] sm:$0xff] }
  0xae   :  { %497 = vst.msk [vmem:[#allocation2 + $0xa8] sm:$0xff] %vm475_vm1, %v326_v10  ;;  %v10178_v10 = vld [vmem:[%s16078_s0 + $0x258] sm:$0xff] }
  0xaf   :  { %508 = vst.msk [vmem:[#allocation2 + $0x100] sm:$0xff] %vm475_vm1, %v348_v14 }
  0xb0   :  { %135 = vst.msk [vmem:[#allocation2 + $0x160] sm:$0xff] %vm90_vm0, %v10171_v9 }
  0xb1   :  { %137 = vst.msk [vmem:[#allocation2 + $0x170] sm:$0xff] %vm90_vm0, %v10178_v10 }
  0xb2   :  { %674 = vrot.lane.b32.xlu1 %v543_v15, %s9479_s20  ;;  %672 = vrot.lane.b32.xlu0 %v542_v17, %s9479_s20  ;;  %v10187_v17 = vld [vmem:[%s16078_s0 + $0x228] sm:$0xff] }
  0xb3   :  { %676 = vrot.lane.b32.xlu2 %v544_v18, %s9479_s20  ;;  %133 = vst.msk [vmem:[#allocation2 + $0x150] sm:$0xff] %vm90_vm0, %v10187_v17 }
  0xb4   :  { %v334_v23 = vpop.permute.xlu1 %333  ;;  %v332_v24 = vpop.permute.xlu0 %331 }
  0xb5   :  { %501 = vst.msk [vmem:[#allocation2 + $0xc8] sm:$0xff] %vm475_vm1, %v334_v23  ;;  %v354_v27 = vpop.permute.xlu2 %353  ;;  %v555_v23 = vld [vmem:[%s16078_s0 + $0xb2] sm:$0xff] }
  0xb6   :  { %500 = vst.msk [vmem:[#allocation2 + $0xc0] sm:$0xff] %vm475_vm1, %v332_v24  ;;  %v554_v24 = vld [vmem:[%s16078_s0 + $0xaa] sm:$0xff] }
  0xb7   :  { %511 = vst.msk [vmem:[#allocation2 + $0x118] sm:$0xff] %vm475_vm1, %v354_v27  ;;  %v10207_v27 = vld [vmem:[%s16078_s0 + $0x260] sm:$0xff] }
  0xb8   :  { %138 = vst.msk [vmem:[#allocation2 + $0x178] sm:$0xff] %vm90_vm0, %v10207_v27 }
  0xba   :  { %680 = vrot.lane.b32.xlu1 %v546_v28, %s9479_s20  ;;  %678 = vrot.lane.b32.xlu0 %v545_v29, %s9479_s20  ;;  %v10214_v28 = vld [vmem:[%s16078_s0 + $0x278] sm:$0xff] }
  0xbb   :  { %682 = vrot.lane.b32.xlu2 %v547_v32, %s9479_s20  ;;  %140 = vst.msk [vmem:[#allocation2 + $0x188] sm:$0xff] %vm90_vm0, %v10214_v28 }
  0xbc   :  { %v340_v39 = vpop.permute.xlu1 %339  ;;  %v338_v40 = vpop.permute.xlu0 %337 }
  0xbd   :  { %504 = vst.msk [vmem:[#allocation2 + $0xe0] sm:$0xff] %vm475_vm1, %v340_v39  ;;  %v360_v46 = vpop.permute.xlu2 %359  ;;  %v10223_v39 = vld [vmem:[%s16078_s0 + $0x248] sm:$0xff] }
  0xbe   :  { %503 = vst.msk [vmem:[#allocation2 + $0xd8] sm:$0xff] %vm475_vm1, %v338_v40 }
  0xbf   :  { %514 = vst.msk [vmem:[#allocation2 + $0x130] sm:$0xff] %vm475_vm1, %v360_v46  ;;  %v558_v46 = vld [vmem:[%s16078_s0 + $0xda] sm:$0xff] }
  0xc0   :  { %136 = vst.msk [vmem:[#allocation2 + $0x168] sm:$0xff] %vm90_vm0, %v10223_v39 }
  0xc2   :  { %686 = vrot.lane.b32.xlu1 %v549_v47, %s9479_s20  ;;  %684 = vrot.lane.b32.xlu0 %v548_v49, %s9479_s20  ;;  %v557_v47 = vld [vmem:[%s16078_s0 + $0xca] sm:$0xff]  ;;  %v559_v49 = vld [vmem:[%s16078_s0 + $0xe2] sm:$0xff] }
  0xc3   :  { %688 = vrot.lane.b32.xlu2 %v550_v50, %s9479_s20  ;;  %v10243_v50 = vld [vmem:[%s16078_s0 + $0x288] sm:$0xff] }
  0xc4   :  { %v346_v60 = vpop.permute.xlu1 %345  ;;  %v344_v61 = vpop.permute.xlu0 %343  ;;  %141 = vst.msk [vmem:[#allocation2 + $0x190] sm:$0xff] %vm90_vm0, %v10243_v50 }
  0xc5   :  { %507 = vst.msk [vmem:[#allocation2 + $0xf8] sm:$0xff] %vm475_vm1, %v346_v60  ;;  %v366_v1 = vpop.permute.xlu2 %365  ;;  %v10250_v60 = vld [vmem:[%s16078_s0 + $0x2a0] sm:$0xff] }
  0xc6   :  { %506 = vst.msk [vmem:[#allocation2 + $0xf0] sm:$0xff] %vm475_vm1, %v344_v61 }
  0xc7   :  { %517 = vst.msk [vmem:[#allocation2 + $0x148] sm:$0xff] %vm475_vm1, %v366_v1 }
  0xc8   :  { %143 = vst.msk [vmem:[#allocation2 + $0x1a0] sm:$0xff] %vm90_vm0, %v10250_v60 }
  0xca   :  { %692 = vrot.lane.b32.xlu1 %v552_v2, %s9479_s20  ;;  %690 = vrot.lane.b32.xlu0 %v551_v5, %s9479_s20  ;;  %v10259_v2 = vld [vmem:[%s16078_s0 + $0x270] sm:$0xff] }
  0xcb   :  { %694 = vrot.lane.b32.xlu2 %v553_v6, %s9479_s20  ;;  %v561_v6 = vld [vmem:[%s16078_s0 + $0xfa] sm:$0xff]  ;;  %139 = vst.msk [vmem:[#allocation2 + $0x180] sm:$0xff] %vm90_vm0, %v10259_v2 }
  0xcc   :  { %v352_v14 = vpop.permute.xlu1 %351  ;;  %v350_v15 = vpop.permute.xlu0 %349 }
  0xcd   :  { %510 = vst.msk [vmem:[#allocation2 + $0x110] sm:$0xff] %vm475_vm1, %v352_v14  ;;  %v372_v18 = vpop.permute.xlu2 %371  ;;  %v560_v14 = vld [vmem:[%s16078_s0 + $0xf2] sm:$0xff] }
  0xce   :  { %509 = vst.msk [vmem:[#allocation2 + $0x108] sm:$0xff] %vm475_vm1, %v350_v15  ;;  %v562_v15 = vld [vmem:[%s16078_s0 + $0x10a] sm:$0xff] }
  0xcf   :  { %520 = vst.msk [vmem:[#allocation2 + $0x160] sm:$0xff] %vm475_vm1, %v372_v18  ;;  %v10279_v18 = vld [vmem:[%s16078_s0 + $0x2a8] sm:$0xff] }
  0xd0   :  { %144 = vst.msk [vmem:[#allocation2 + $0x1a8] sm:$0xff] %vm90_vm0, %v10279_v18 }
  0xd2   :  { %698 = vrot.lane.b32.xlu1 %v555_v23, %s9479_s20  ;;  %696 = vrot.lane.b32.xlu0 %v554_v24, %s9479_s20  ;;  %v10286_v23 = vld [vmem:[%s16078_s0 + $0x2c0] sm:$0xff] }
  0xd3   :  { %700 = vrot.lane.b32.xlu2 %v556_v26, %s9479_s20  ;;  %146 = vst.msk [vmem:[#allocation2 + $0x1b8] sm:$0xff] %vm90_vm0, %v10286_v23 }
  0xd4   :  { %v358_v29 = vpop.permute.xlu1 %357  ;;  %v356_v32 = vpop.permute.xlu0 %355 }
  0xd5   :  { %513 = vst.msk [vmem:[#allocation2 + $0x128] sm:$0xff] %vm475_vm1, %v358_v29  ;;  %v378_v40 = vpop.permute.xlu2 %377  ;;  %v10295_v29 = vld [vmem:[%s16078_s0 + $0x290] sm:$0xff] }
  0xd6   :  { %512 = vst.msk [vmem:[#allocation2 + $0x120] sm:$0xff] %vm475_vm1, %v356_v32 }
  0xd7   :  { %523 = vst.msk [vmem:[#allocation2 + $0x178] sm:$0xff] %vm475_vm1, %v378_v40  ;;  %v564_v40 = vld [vmem:[%s16078_s0 + $0x122] sm:$0xff] }
  0xd8   :  { %142 = vst.msk [vmem:[#allocation2 + $0x198] sm:$0xff] %vm90_vm0, %v10295_v29 }
  0xda   :  { %704 = vrot.lane.b32.xlu1 %v558_v46, %s9479_s20  ;;  %702 = vrot.lane.b32.xlu0 %v557_v47, %s9479_s20  ;;  %v563_v46 = vld [vmem:[%s16078_s0 + $0x112] sm:$0xff]  ;;  %v565_v47 = vld [vmem:[%s16078_s0 + $0x12a] sm:$0xff] }
  0xdb   :  { %706 = vrot.lane.b32.xlu2 %v559_v49, %s9479_s20  ;;  %v10315_v49 = vld [vmem:[%s16078_s0 + $0x2d0] sm:$0xff] }
  0xdc   :  { %v364_v61 = vpop.permute.xlu1 %363  ;;  %v362_v1 = vpop.permute.xlu0 %361  ;;  %147 = vst.msk [vmem:[#allocation2 + $0x1c0] sm:$0xff] %vm90_vm0, %v10315_v49 }
  0xdd   :  { %516 = vst.msk [vmem:[#allocation2 + $0x140] sm:$0xff] %vm475_vm1, %v364_v61  ;;  %v384_v5 = vpop.permute.xlu2 %383  ;;  %v10322_v61 = vld [vmem:[%s16078_s0 + $0x2e8] sm:$0xff] }
  0xde   :  { %515 = vst.msk [vmem:[#allocation2 + $0x138] sm:$0xff] %vm475_vm1, %v362_v1 }
  0xdf   :  { %526 = vst.msk [vmem:[#allocation2 + $0x190] sm:$0xff] %vm475_vm1, %v384_v5 }
  0xe0   :  { %149 = vst.msk [vmem:[#allocation2 + $0x1d0] sm:$0xff] %vm90_vm0, %v10322_v61 }
  0xe2   :  { %710 = vrot.lane.b32.xlu1 %v561_v6, %s9479_s20  ;;  %708 = vrot.lane.b32.xlu0 %v560_v14, %s9479_s20  ;;  %v10331_v6 = vld [vmem:[%s16078_s0 + $0x2b8] sm:$0xff] }
  0xe3   :  { %712 = vrot.lane.b32.xlu2 %v562_v15, %s9479_s20  ;;  %v567_v15 = vld [vmem:[%s16078_s0 + $0x142] sm:$0xff]  ;;  %145 = vst.msk [vmem:[#allocation2 + $0x1b0] sm:$0xff] %vm90_vm0, %v10331_v6 }
  0xe4   :  { %v370_v24 = vpop.permute.xlu1 %369  ;;  %v368_v26 = vpop.permute.xlu0 %367 }
  0xe5   :  { %519 = vst.msk [vmem:[#allocation2 + $0x158] sm:$0xff] %vm475_vm1, %v370_v24  ;;  %v390_v32 = vpop.permute.xlu2 %389  ;;  %v566_v24 = vld [vmem:[%s16078_s0 + $0x13a] sm:$0xff] }
  0xe6   :  { %518 = vst.msk [vmem:[#allocation2 + $0x150] sm:$0xff] %vm475_vm1, %v368_v26  ;;  %v568_v26 = vld [vmem:[%s16078_s0 + $0x152] sm:$0xff] }
  0xe7   :  { %529 = vst.msk [vmem:[#allocation2 + $0x1a8] sm:$0xff] %vm475_vm1, %v390_v32  ;;  %v10351_v32 = vld [vmem:[%s16078_s0 + $0x2f0] sm:$0xff] }
  0xe8   :  { %150 = vst.msk [vmem:[#allocation2 + $0x1d8] sm:$0xff] %vm90_vm0, %v10351_v32 }
  0xea   :  { %716 = vrot.lane.b32.xlu1 %v564_v40, %s9479_s20  ;;  %714 = vrot.lane.b32.xlu0 %v563_v46, %s9479_s20  ;;  %v10358_v40 = vld [vmem:[%s16078_s0 + $0x308] sm:$0xff] }
  0xeb   :  { %718 = vrot.lane.b32.xlu2 %v565_v47, %s9479_s20  ;;  %16201 = vst [vmem:[#allocation5_spill] sm:$0xff] %v10358_v40 }
  0xec   :  { %v376_v1 = vpop.permute.xlu1 %375  ;;  %v374_v5 = vpop.permute.xlu0 %373  ;;  %152 = vst.msk [vmem:[#allocation2 + $0x1e8] sm:$0xff] %vm90_vm0, %v10358_v40  ;;  %v578_v40 = vld [vmem:[%s16078_s0 + $0x1fa] sm:$0xff] }
  0xed   :  { %522 = vst.msk [vmem:[#allocation2 + $0x170] sm:$0xff] %vm475_vm1, %v376_v1  ;;  %v396_v14 = vpop.permute.xlu2 %395  ;;  %v10367_v1 = vld [vmem:[%s16078_s0 + $0x2d8] sm:$0xff] }
  0xee   :  { %521 = vst.msk [vmem:[#allocation2 + $0x168] sm:$0xff] %vm475_vm1, %v374_v5 }
  0xef   :  { %532 = vst.msk [vmem:[#allocation2 + $0x1c0] sm:$0xff] %vm475_vm1, %v396_v14  ;;  %v570_v14 = vld [vmem:[%s16078_s0 + $0x16a] sm:$0xff] }
  0xf0   :  { %148 = vst.msk [vmem:[#allocation2 + $0x1c8] sm:$0xff] %vm90_vm0, %v10367_v1 }
  0xf2   :  { %722 = vrot.lane.b32.xlu1 %v567_v15, %s9479_s20  ;;  %720 = vrot.lane.b32.xlu0 %v566_v24, %s9479_s20  ;;  %v569_v15 = vld [vmem:[%s16078_s0 + $0x15a] sm:$0xff]  ;;  %v571_v24 = vld [vmem:[%s16078_s0 + $0x172] sm:$0xff] }
  0xf3   :  { %724 = vrot.lane.b32.xlu2 %v568_v26, %s9479_s20  ;;  %v10387_v26 = vld [vmem:[%s16078_s0 + $0x318] sm:$0xff] }
  0xf4   :  { %v382_v46 = vpop.permute.xlu1 %381  ;;  %v380_v47 = vpop.permute.xlu0 %379  ;;  %16202 = vst [vmem:[#allocation6_spill] sm:$0xff] %v10387_v26 }
  0xf5   :  { %525 = vst.msk [vmem:[#allocation2 + $0x188] sm:$0xff] %vm475_vm1, %v382_v46  ;;  %v402_v5 = vpop.permute.xlu2 %401  ;;  %v10394_v46 = vld [vmem:[%s16078_s0 + $0x300] sm:$0xff] }
  0xf6   :  { %524 = vst.msk [vmem:[#allocation2 + $0x180] sm:$0xff] %vm475_vm1, %v380_v47 }
  0xf7   :  { %535 = vst.msk [vmem:[#allocation2 + $0x1d8] sm:$0xff] %vm475_vm1, %v402_v5 }
  0xf8   :  { %153 = vst.msk [vmem:[#allocation2 + $0x1f0] sm:$0xff] %vm90_vm0, %v10387_v26  ;;  %v572_v26 = vld [vmem:[%s16078_s0 + $0x1b2] sm:$0xff] }
  0xf9   :  { %16203 = vst [vmem:[#allocation7_spill] sm:$0xff] %v10394_v46 }
  0xfa   :  { %728 = vrot.lane.b32.xlu1 %v570_v14, %s9479_s20  ;;  %726 = vrot.lane.b32.xlu0 %v569_v15, %s9479_s20  ;;  %151 = vst.msk [vmem:[#allocation2 + $0x1e0] sm:$0xff] %vm90_vm0, %v10394_v46  ;;  %v573_v15 = vld [vmem:[%s16078_s0 + $0x1ba] sm:$0xff] }
  0xfb   :  { %730 = vrot.lane.b32.xlu2 %v571_v24, %s9479_s20  ;;  %v574_v24 = vld [vmem:[%s16078_s0 + $0x1ca] sm:$0xff] }
  0xfc   :  { %v388_v47 = vpop.permute.xlu1 %387  ;;  %v386_v5 = vpop.permute.xlu0 %385 }
  0xfd   :  { %528 = vst.msk [vmem:[#allocation2 + $0x1a0] sm:$0xff] %vm475_vm1, %v388_v47  ;;  %v408_v14 = vpop.permute.xlu2 %407  ;;  %v10416_v47 = vld [vmem:[%s16078_s0 + $0x320] sm:$0xff] }
  0xfe   :  { %527 = vst.msk [vmem:[#allocation2 + $0x198] sm:$0xff] %vm475_vm1, %v386_v5 }
  0xff   :  { %538 = vst.msk [vmem:[#allocation2 + $0x1f0] sm:$0xff] %vm475_vm1, %v408_v14 }
 0x100   :  { %16204 = vst [vmem:[#allocation8_spill] sm:$0xff] %v10416_v47 }
 0x101   :  { %154 = vst.msk [vmem:[#allocation2 + $0x1f8] sm:$0xff] %vm90_vm0, %v10416_v47  ;;  %vm4332_vm0 = vcmask 58368  }
 0x102   :  { %734 = vrot.lane.b32.xlu1 %v573_v15, %s9479_s20  ;;  %732 = vrot.lane.b32.xlu0 %v572_v26, %s9479_s20  ;;  %v576_v26 = vld [vmem:[%s16078_s0 + $0x1e2] sm:$0xff]  ;;  %v575_v15 = vld [vmem:[%s16078_s0 + $0x1d2] sm:$0xff] }
 0x103   :  { %736 = vrot.lane.b32.xlu2 %v574_v24, %s9479_s20  ;;  %v577_v24 = vld [vmem:[%s16078_s0 + $0x1ea] sm:$0xff] }
 0x104   :  { %v394_v5 = vpop.permute.xlu1 %393  ;;  %v392_v46 = vpop.permute.xlu0 %391 }
 0x105   :  { %531 = vst.msk [vmem:[#allocation2 + $0x1b8] sm:$0xff] %vm475_vm1, %v394_v5  ;;  %v671_v14 = vpop.permute.xlu2 %670 }
 0x106   :  { %530 = vst.msk [vmem:[#allocation2 + $0x1b0] sm:$0xff] %vm475_vm1, %v392_v46 }
 0x107   :  { %862 = vst.msk [vmem:[#allocation2 + $0x8] sm:$0xff] %vm860_vm2, %v671_v14  ;;  %v579_v14 = vld [vmem:[%s16078_s0 + $0x202] sm:$0xff] }
 0x10a   :  { %740 = vrot.lane.b32.xlu1 %v576_v26, %s9479_s20  ;;  %738 = vrot.lane.b32.xlu0 %v575_v15, %s9479_s20  ;;  %v580_v26 = vld [vmem:[%s16078_s0 + $0x212] sm:$0xff] }
 0x10b   :  { %742 = vrot.lane.b32.xlu2 %v577_v24, %s9479_s20 }
 0x10c   :  { %v400_v46 = vpop.permute.xlu1 %399  ;;  %v398_v5 = vpop.permute.xlu0 %397 }
 0x10d   :  { %534 = vst.msk [vmem:[#allocation2 + $0x1d0] sm:$0xff] %vm475_vm1, %v400_v46  ;;  %v677_v47 = vpop.permute.xlu2 %676 }
 0x10e   :  { %533 = vst.msk [vmem:[#allocation2 + $0x1c8] sm:$0xff] %vm475_vm1, %v398_v5  ;;  %v581_v5 = vld [vmem:[%s16078_s0 + $0x21a] sm:$0xff] }
 0x10f   :  { %865 = vst.msk [vmem:[#allocation2 + $0x20] sm:$0xff] %vm860_vm2, %v677_v47  ;;  %v582_v47 = vld [vmem:[%s16078_s0 + $0x22a] sm:$0xff] }
 0x112   :  { %746 = vrot.lane.b32.xlu1 %v579_v14, %s9479_s20  ;;  %744 = vrot.lane.b32.xlu0 %v578_v40, %s9479_s20  ;;  %v583_v40 = vld [vmem:[%s16078_s0 + $0x232] sm:$0xff] }
 0x113   :  { %748 = vrot.lane.b32.xlu2 %v580_v26, %s9479_s20 }
 0x114   :  { %v406_v15 = vpop.permute.xlu1 %405  ;;  %v404_v24 = vpop.permute.xlu0 %403 }
 0x115   :  { %537 = vst.msk [vmem:[#allocation2 + $0x1e8] sm:$0xff] %vm475_vm1, %v406_v15  ;;  %v683_v46 = vpop.permute.xlu2 %682 }
 0x116   :  { %536 = vst.msk [vmem:[#allocation2 + $0x1e0] sm:$0xff] %vm475_vm1, %v404_v24  ;;  %v585_v24 = vld [vmem:[%s16078_s0 + $0x24a] sm:$0xff] }
 0x117   :  { %868 = vst.msk [vmem:[#allocation2 + $0x38] sm:$0xff] %vm860_vm2, %v683_v46  ;;  %v584_v46 = vld [vmem:[%s16078_s0 + $0x242] sm:$0xff] }
 0x11a   :  { %752 = vrot.lane.b32.xlu1 %v582_v47, %s9479_s20  ;;  %750 = vrot.lane.b32.xlu0 %v581_v5, %s9479_s20  ;;  %v586_v47 = vld [vmem:[%s16078_s0 + $0x25a] sm:$0xff] }
 0x11b   :  { %754 = vrot.lane.b32.xlu2 %v583_v40, %s9479_s20 }
 0x11c   :  { %v669_v14 = vpop.permute.xlu1 %668  ;;  %v410_v26 = vpop.permute.xlu0 %409 }
 0x11d   :  { %861 = vst.msk [vmem:[#allocation2] sm:$0xff] %vm860_vm2, %v669_v14  ;;  %v689_v15 = vpop.permute.xlu2 %688 }
 0x11e   :  { %539 = vst.msk [vmem:[#allocation2 + $0x1f8] sm:$0xff] %vm475_vm1, %v410_v26  ;;  %v588_v26 = vld [vmem:[%s16078_s0 + $0x272] sm:$0xff]  ;;  %vm4345_vm1 = vcmask 57344  }
 0x11f   :  { %871 = vst.msk [vmem:[#allocation2 + $0x50] sm:$0xff] %vm860_vm2, %v689_v15  ;;  %v587_v15 = vld [vmem:[%s16078_s0 + $0x262] sm:$0xff] }
 0x122   :  { %758 = vrot.lane.b32.xlu1 %v585_v24, %s9479_s20  ;;  %756 = vrot.lane.b32.xlu0 %v584_v46, %s9479_s20  ;;  %v589_v24 = vld [vmem:[%s16078_s0 + $0x27a] sm:$0xff] }
 0x123   :  { %760 = vrot.lane.b32.xlu2 %v586_v47, %s9479_s20 }
 0x124   :  { %v675_v5 = vpop.permute.xlu1 %674  ;;  %v673_v40 = vpop.permute.xlu0 %672 }
 0x125   :  { %864 = vst.msk [vmem:[#allocation2 + $0x18] sm:$0xff] %vm860_vm2, %v675_v5  ;;  %v695_v14 = vpop.permute.xlu2 %694 }
 0x126   :  { %863 = vst.msk [vmem:[#allocation2 + $0x10] sm:$0xff] %vm860_vm2, %v673_v40  ;;  %v591_v40 = vld [vmem:[%s16078_s0 + $0x292] sm:$0xff] }
 0x127   :  { %874 = vst.msk [vmem:[#allocation2 + $0x68] sm:$0xff] %vm860_vm2, %v695_v14  ;;  %v590_v14 = vld [vmem:[%s16078_s0 + $0x28a] sm:$0xff] }
 0x12a   :  { %764 = vrot.lane.b32.xlu1 %v588_v26, %s9479_s20  ;;  %762 = vrot.lane.b32.xlu0 %v587_v15, %s9479_s20  ;;  %v592_v26 = vld [vmem:[%s16078_s0 + $0x2a2] sm:$0xff] }
 0x12b   :  { %766 = vrot.lane.b32.xlu2 %v589_v24, %s9479_s20 }
 0x12c   :  { %v681_v46 = vpop.permute.xlu1 %680  ;;  %v679_v47 = vpop.permute.xlu0 %678 }
 0x12d   :  { %867 = vst.msk [vmem:[#allocation2 + $0x30] sm:$0xff] %vm860_vm2, %v681_v46  ;;  %v701_v5 = vpop.permute.xlu2 %700 }
 0x12e   :  { %866 = vst.msk [vmem:[#allocation2 + $0x28] sm:$0xff] %vm860_vm2, %v679_v47  ;;  %v594_v47 = vld [vmem:[%s16078_s0 + $0x2ba] sm:$0xff] }
 0x12f   :  { %877 = vst.msk [vmem:[#allocation2 + $0x80] sm:$0xff] %vm860_vm2, %v701_v5  ;;  %v593_v5 = vld [vmem:[%s16078_s0 + $0x2aa] sm:$0xff] }
 0x132   :  { %770 = vrot.lane.b32.xlu1 %v591_v40, %s9479_s20  ;;  %768 = vrot.lane.b32.xlu0 %v590_v14, %s9479_s20  ;;  %v595_v40 = vld [vmem:[%s16078_s0 + $0x2c2] sm:$0xff] }
 0x133   :  { %772 = vrot.lane.b32.xlu2 %v592_v26, %s9479_s20 }
 0x134   :  { %v687_v15 = vpop.permute.xlu1 %686  ;;  %v685_v24 = vpop.permute.xlu0 %684 }
 0x135   :  { %870 = vst.msk [vmem:[#allocation2 + $0x48] sm:$0xff] %vm860_vm2, %v687_v15  ;;  %v707_v46 = vpop.permute.xlu2 %706 }
 0x136   :  { %869 = vst.msk [vmem:[#allocation2 + $0x40] sm:$0xff] %vm860_vm2, %v685_v24  ;;  %v597_v24 = vld [vmem:[%s16078_s0 + $0x2da] sm:$0xff] }
 0x137   :  { %880 = vst.msk [vmem:[#allocation2 + $0x98] sm:$0xff] %vm860_vm2, %v707_v46  ;;  %v596_v46 = vld [vmem:[%s16078_s0 + $0x2d2] sm:$0xff] }
 0x13a   :  { %776 = vrot.lane.b32.xlu1 %v594_v47, %s9479_s20  ;;  %774 = vrot.lane.b32.xlu0 %v593_v5, %s9479_s20  ;;  %v598_v47 = vld [vmem:[%s16078_s0 + $0x2ea] sm:$0xff] }
 0x13b   :  { %778 = vrot.lane.b32.xlu2 %v595_v40, %s9479_s20 }
 0x13c   :  { %v693_v14 = vpop.permute.xlu1 %692  ;;  %v691_v26 = vpop.permute.xlu0 %690 }
 0x13d   :  { %873 = vst.msk [vmem:[#allocation2 + $0x60] sm:$0xff] %vm860_vm2, %v693_v14  ;;  %v713_v15 = vpop.permute.xlu2 %712 }
 0x13e   :  { %872 = vst.msk [vmem:[#allocation2 + $0x58] sm:$0xff] %vm860_vm2, %v691_v26  ;;  %v600_v26 = vld [vmem:[%s16078_s0 + $0x302] sm:$0xff] }
 0x13f   :  { %883 = vst.msk [vmem:[#allocation2 + $0xb0] sm:$0xff] %vm860_vm2, %v713_v15  ;;  %v599_v15 = vld [vmem:[%s16078_s0 + $0x2f2] sm:$0xff] }
 0x142   :  { %782 = vrot.lane.b32.xlu1 %v597_v24, %s9479_s20  ;;  %780 = vrot.lane.b32.xlu0 %v596_v46, %s9479_s20  ;;  %v601_v24 = vld [vmem:[%s16078_s0 + $0x30a] sm:$0xff] }
 0x143   :  { %784 = vrot.lane.b32.xlu2 %v598_v47, %s9479_s20 }
 0x144   :  { %v699_v5 = vpop.permute.xlu1 %698  ;;  %v697_v40 = vpop.permute.xlu0 %696 }
 0x145   :  { %876 = vst.msk [vmem:[#allocation2 + $0x78] sm:$0xff] %vm860_vm2, %v699_v5  ;;  %v719_v14 = vpop.permute.xlu2 %718 }
 0x146   :  { %875 = vst.msk [vmem:[#allocation2 + $0x70] sm:$0xff] %vm860_vm2, %v697_v40  ;;  %v603_v40 = vld [vmem:[%s16078_s0 + $0x322] sm:$0xff] }
 0x147   :  { %886 = vst.msk [vmem:[#allocation2 + $0xc8] sm:$0xff] %vm860_vm2, %v719_v14  ;;  %v602_v14 = vld [vmem:[%s16078_s0 + $0x31a] sm:$0xff] }
 0x14a   :  { %788 = vrot.lane.b32.xlu1 %v600_v26, %s9479_s20  ;;  %786 = vrot.lane.b32.xlu0 %v599_v15, %s9479_s20 }
 0x14b   :  { %790 = vrot.lane.b32.xlu2 %v601_v24, %s9479_s20 }
 0x14c   :  { %v705_v46 = vpop.permute.xlu1 %704  ;;  %v703_v47 = vpop.permute.xlu0 %702 }
 0x14d   :  { %879 = vst.msk [vmem:[#allocation2 + $0x90] sm:$0xff] %vm860_vm2, %v705_v46  ;;  %v725_v5 = vpop.permute.xlu2 %724 }
 0x14e   :  { %878 = vst.msk [vmem:[#allocation2 + $0x88] sm:$0xff] %vm860_vm2, %v703_v47 }
 0x14f   :  { %889 = vst.msk [vmem:[#allocation2 + $0xe0] sm:$0xff] %vm860_vm2, %v725_v5  ;;  %v8961_v5 = vld [vmem:[%s16078_s0 + $0x180] sm:$0xff] }
 0x152   :  { %794 = vrot.lane.b32.xlu1 %v603_v40, %s9479_s20  ;;  %792 = vrot.lane.b32.xlu0 %v602_v14, %s9479_s20  ;;  %v8962_v40 = vld [vmem:[%s16078_s0 + $0x188] sm:$0xff] }
 0x153   :  { %1054 = vrot.lane.b32.xlu2 %v9666_v33, %s9480_s12 }
 0x154   :  { %v711_v26 = vpop.permute.xlu1 %710  ;;  %v709_v15 = vpop.permute.xlu0 %708 }
 0x155   :  { %882 = vst.msk [vmem:[#allocation2 + $0xa8] sm:$0xff] %vm860_vm2, %v711_v26  ;;  %v731_v24 = vpop.permute.xlu2 %730 }
 0x156   :  { %881 = vst.msk [vmem:[#allocation2 + $0xa0] sm:$0xff] %vm860_vm2, %v709_v15  ;;  %v16205_v15 = vld [vmem:[#allocation5_spill] sm:$0xff] }
 0x157   :  { %892 = vst.msk [vmem:[#allocation2 + $0xf8] sm:$0xff] %vm860_vm2, %v731_v24 }
 0x15a   :  { %1058 = vrot.lane.b32.xlu1 %v9685_v37, %s9480_s12  ;;  %1056 = vrot.lane.b32.xlu0 %v9692_v38, %s9480_s12 }
 0x15b   :  { %1060 = vrot.lane.b32.xlu2 %v9716_v44, %s9480_s12 }
 0x15c   :  { %v717_v46 = vpop.permute.xlu1 %716  ;;  %v715_v47 = vpop.permute.xlu0 %714 }
 0x15d   :  { %885 = vst.msk [vmem:[#allocation2 + $0xc0] sm:$0xff] %vm860_vm2, %v717_v46  ;;  %v737_v33 = vpop.permute.xlu2 %736  ;;  %v16207_v46 = vld [vmem:[#allocation6_spill] sm:$0xff] }
 0x15e   :  { %884 = vst.msk [vmem:[#allocation2 + $0xb8] sm:$0xff] %vm860_vm2, %v715_v47  ;;  %v8993_v47 = vld [vmem:[%s16078_s0 + $0x330] sm:$0xff] }
 0x15f   :  { %895 = vst.msk [vmem:[#allocation2 + $0x110] sm:$0xff] %vm860_vm2, %v737_v33  ;;  %v8994_v33 = vld [vmem:[%s16078_s0 + $0x338] sm:$0xff] }
 0x162   :  { %1064 = vrot.lane.b32.xlu1 %v9723_v45, %s9480_s12  ;;  %1062 = vrot.lane.b32.xlu0 %v9759_v53, %s9480_s12 }
 0x163   :  { %1066 = vrot.lane.b32.xlu2 %v9747_v51, %s9480_s12 }
 0x164   :  { %v723_v37 = vpop.permute.xlu1 %722  ;;  %v721_v38 = vpop.permute.xlu0 %720 }
 0x165   :  { %888 = vst.msk [vmem:[#allocation2 + $0xd8] sm:$0xff] %vm860_vm2, %v723_v37  ;;  %v743_v44 = vpop.permute.xlu2 %742  ;;  %v16208_v37 = vld [vmem:[#allocation8_spill] sm:$0xff] }
 0x166   :  { %887 = vst.msk [vmem:[#allocation2 + $0xd0] sm:$0xff] %vm860_vm2, %v721_v38 }
 0x167   :  { %898 = vst.msk [vmem:[#allocation2 + $0x128] sm:$0xff] %vm860_vm2, %v743_v44 }
 0x16a   :  { %1070 = vrot.lane.b32.xlu1 %v9754_v52, %s9480_s12  ;;  %1068 = vrot.lane.b32.xlu0 %v9797_v62, %s9480_s12 }
 0x16b   :  { %1072 = vrot.lane.b32.xlu2 %v9781_v58, %s9480_s12 }
 0x16c   :  { %v729_v45 = vpop.permute.xlu1 %728  ;;  %v727_v53 = vpop.permute.xlu0 %726 }
 0x16d   :  { %891 = vst.msk [vmem:[#allocation2 + $0xf0] sm:$0xff] %vm860_vm2, %v729_v45  ;;  %v749_v51 = vpop.permute.xlu2 %748 }
 0x16e   :  { %890 = vst.msk [vmem:[#allocation2 + $0xe8] sm:$0xff] %vm860_vm2, %v727_v53  ;;  %v8996_v53 = vld [vmem:[%s16078_s0 + $0x21] sm:$0xff] }
 0x16f   :  { %901 = vst.msk [vmem:[#allocation2 + $0x140] sm:$0xff] %vm860_vm2, %v749_v51  ;;  %v8995_v51 = vld [vmem:[%s16078_s0 + $0x19] sm:$0xff] }
 0x172   :  { %1076 = vrot.lane.b32.xlu1 %v9788_v59, %s9480_s12  ;;  %1074 = vrot.lane.b32.xlu0 %v9833_v7, %s9480_s12 }
 0x173   :  { %1078 = vrot.lane.b32.xlu2 %v9817_v3, %s9480_s12 }
 0x174   :  { %v735_v52 = vpop.permute.xlu1 %734  ;;  %v733_v62 = vpop.permute.xlu0 %732 }
 0x175   :  { %894 = vst.msk [vmem:[#allocation2 + $0x108] sm:$0xff] %vm860_vm2, %v735_v52  ;;  %v755_v58 = vpop.permute.xlu2 %754  ;;  %v8997_v52 = vld [vmem:[%s16078_s0 + $0x31] sm:$0xff] }
 0x176   :  { %893 = vst.msk [vmem:[#allocation2 + $0x100] sm:$0xff] %vm860_vm2, %v733_v62 }
 0x177   :  { %904 = vst.msk [vmem:[#allocation2 + $0x158] sm:$0xff] %vm860_vm2, %v755_v58 }
 0x17a   :  { %1082 = vrot.lane.b32.xlu1 %v9824_v4, %s9480_s12  ;;  %1080 = vrot.lane.b32.xlu0 %v9869_v16, %s9480_s12 }
 0x17b   :  { %1084 = vrot.lane.b32.xlu2 %v9853_v12, %s9480_s12 }
 0x17c   :  { %v741_v59 = vpop.permute.xlu1 %740  ;;  %v739_v7 = vpop.permute.xlu0 %738 }
 0x17d   :  { %897 = vst.msk [vmem:[#allocation2 + $0x120] sm:$0xff] %vm860_vm2, %v741_v59  ;;  %v761_v3 = vpop.permute.xlu2 %760 }
 0x17e   :  { %896 = vst.msk [vmem:[#allocation2 + $0x118] sm:$0xff] %vm860_vm2, %v739_v7  ;;  %v8999_v7 = vld [vmem:[%s16078_s0 + $0x49] sm:$0xff] }
 0x17f   :  { %907 = vst.msk [vmem:[#allocation2 + $0x170] sm:$0xff] %vm860_vm2, %v761_v3  ;;  %v8998_v3 = vld [vmem:[%s16078_s0 + $0x39] sm:$0xff] }
 0x182   :  { %1088 = vrot.lane.b32.xlu1 %v9860_v13, %s9480_s12  ;;  %1086 = vrot.lane.b32.xlu0 %v9905_v25, %s9480_s12 }
 0x183   :  { %1090 = vrot.lane.b32.xlu2 %v9889_v21, %s9480_s12 }
 0x184   :  { %v747_v4 = vpop.permute.xlu1 %746  ;;  %v745_v16 = vpop.permute.xlu0 %744 }
 0x185   :  { %900 = vst.msk [vmem:[#allocation2 + $0x138] sm:$0xff] %vm860_vm2, %v747_v4  ;;  %v767_v12 = vpop.permute.xlu2 %766  ;;  %v9000_v4 = vld [vmem:[%s16078_s0 + $0x51] sm:$0xff] }
 0x186   :  { %899 = vst.msk [vmem:[#allocation2 + $0x130] sm:$0xff] %vm860_vm2, %v745_v16 }
 0x187   :  { %910 = vst.msk [vmem:[#allocation2 + $0x188] sm:$0xff] %vm860_vm2, %v767_v12 }
 0x18a   :  { %1094 = vrot.lane.b32.xlu1 %v9896_v22, %s9480_s12  ;;  %1092 = vrot.lane.b32.xlu0 %v9941_v35, %s9480_s12 }
 0x18b   :  { %1096 = vrot.lane.b32.xlu2 %v9925_v30, %s9480_s12 }
 0x18c   :  { %v753_v13 = vpop.permute.xlu1 %752  ;;  %v751_v25 = vpop.permute.xlu0 %750 }
 0x18d   :  { %903 = vst.msk [vmem:[#allocation2 + $0x150] sm:$0xff] %vm860_vm2, %v753_v13  ;;  %v773_v21 = vpop.permute.xlu2 %772 }
 0x18e   :  { %902 = vst.msk [vmem:[#allocation2 + $0x148] sm:$0xff] %vm860_vm2, %v751_v25  ;;  %v9002_v25 = vld [vmem:[%s16078_s0 + $0x69] sm:$0xff] }
 0x18f   :  { %913 = vst.msk [vmem:[#allocation2 + $0x1a0] sm:$0xff] %vm860_vm2, %v773_v21  ;;  %v9001_v21 = vld [vmem:[%s16078_s0 + $0x61] sm:$0xff] }
 0x192   :  { %1100 = vrot.lane.b32.xlu1 %v9932_v31, %s9480_s12  ;;  %1098 = vrot.lane.b32.xlu0 %v9977_v48, %s9480_s12 }
 0x193   :  { %1102 = vrot.lane.b32.xlu2 %v9961_v42, %s9480_s12 }
 0x194   :  { %v759_v22 = vpop.permute.xlu1 %758  ;;  %v757_v35 = vpop.permute.xlu0 %756 }
 0x195   :  { %906 = vst.msk [vmem:[#allocation2 + $0x168] sm:$0xff] %vm860_vm2, %v759_v22  ;;  %v779_v30 = vpop.permute.xlu2 %778  ;;  %v9003_v22 = vld [vmem:[%s16078_s0 + $0x79] sm:$0xff] }
 0x196   :  { %905 = vst.msk [vmem:[#allocation2 + $0x160] sm:$0xff] %vm860_vm2, %v757_v35 }
 0x197   :  { %916 = vst.msk [vmem:[#allocation2 + $0x1b8] sm:$0xff] %vm860_vm2, %v779_v30 }
 0x19a   :  { %1106 = vrot.lane.b32.xlu1 %v9968_v43, %s9480_s12  ;;  %1104 = vrot.lane.b32.xlu0 %v10013_v63, %s9480_s12 }
 0x19b   :  { %1108 = vrot.lane.b32.xlu2 %v9997_v56, %s9480_s12 }
 0x19c   :  { %v765_v31 = vpop.permute.xlu1 %764  ;;  %v763_v48 = vpop.permute.xlu0 %762 }
 0x19d   :  { %909 = vst.msk [vmem:[#allocation2 + $0x180] sm:$0xff] %vm860_vm2, %v765_v31  ;;  %v785_v42 = vpop.permute.xlu2 %784 }
 0x19e   :  { %908 = vst.msk [vmem:[#allocation2 + $0x178] sm:$0xff] %vm860_vm2, %v763_v48  ;;  %v9005_v48 = vld [vmem:[%s16078_s0 + $0x91] sm:$0xff] }
 0x19f   :  { %919 = vst.msk [vmem:[#allocation2 + $0x1d0] sm:$0xff] %vm860_vm2, %v785_v42  ;;  %v9004_v42 = vld [vmem:[%s16078_s0 + $0x81] sm:$0xff] }
 0x1a2   :  { %1112 = vrot.lane.b32.xlu1 %v10004_v57, %s9480_s12  ;;  %1110 = vrot.lane.b32.xlu0 %v10046_v11, %s9480_s12 }
 0x1a3   :  { %1114 = vrot.lane.b32.xlu2 %v8961_v5, %s9480_s12  ;;  %v9006_v5 = vld [vmem:[%s16078_s0 + $0x99] sm:$0xff] }
 0x1a4   :  { %v771_v43 = vpop.permute.xlu1 %770  ;;  %v769_v63 = vpop.permute.xlu0 %768 }
 0x1a5   :  { %912 = vst.msk [vmem:[#allocation2 + $0x198] sm:$0xff] %vm860_vm2, %v771_v43  ;;  %v791_v56 = vpop.permute.xlu2 %790 }
 0x1a6   :  { %911 = vst.msk [vmem:[#allocation2 + $0x190] sm:$0xff] %vm860_vm2, %v769_v63 }
 0x1a7   :  { %922 = vst.msk [vmem:[#allocation2 + $0x1e8] sm:$0xff] %vm860_vm2, %v791_v56 }
 0x1aa   :  { %1118 = vrot.lane.b32.xlu1 %v10037_v8, %s9480_s12  ;;  %1116 = vrot.lane.b32.xlu0 %v8962_v40, %s9480_s12  ;;  %v9008_v40 = vld [vmem:[%s16078_s0 + $0xb1] sm:$0xff] }
 0x1ab   :  { %1120 = vrot.lane.b32.xlu2 %v10066_v19, %s9480_s12 }
 0x1ac   :  { %v777_v57 = vpop.permute.xlu1 %776  ;;  %v775_v11 = vpop.permute.xlu0 %774 }
 0x1ad   :  { %915 = vst.msk [vmem:[#allocation2 + $0x1b0] sm:$0xff] %vm860_vm2, %v777_v57  ;;  %v1055_v14 = vpop.permute.xlu2 %1054  ;;  %v9007_v57 = vld [vmem:[%s16078_s0 + $0xa9] sm:$0xff] }
 0x1ae   :  { %914 = vst.msk [vmem:[#allocation2 + $0x1a8] sm:$0xff] %vm860_vm2, %v775_v11  ;;  %v9009_v11 = vld [vmem:[%s16078_s0 + $0xc1] sm:$0xff] }
 0x1af   :  { %1247 = vst.msk [vmem:[#allocation2] sm:$0xff] %vm1246_vm3, %v1055_v14 }
 0x1b2   :  { %1124 = vrot.lane.b32.xlu1 %v10073_v20, %s9480_s12  ;;  %1122 = vrot.lane.b32.xlu0 %v10115_v41, %s9480_s12 }
 0x1b3   :  { %1126 = vrot.lane.b32.xlu2 %v10099_v34, %s9480_s12 }
 0x1b4   :  { %v783_v8 = vpop.permute.xlu1 %782  ;;  %v781_v26 = vpop.permute.xlu0 %780 }
 0x1b5   :  { %918 = vst.msk [vmem:[#allocation2 + $0x1c8] sm:$0xff] %vm860_vm2, %v783_v8  ;;  %v1061_v19 = vpop.permute.xlu2 %1060 }
 0x1b6   :  { %917 = vst.msk [vmem:[#allocation2 + $0x1c0] sm:$0xff] %vm860_vm2, %v781_v26 }
 0x1b7   :  { %1250 = vst.msk [vmem:[#allocation2 + $0x18] sm:$0xff] %vm1246_vm3, %v1061_v19  ;;  %v9011_v19 = vld [vmem:[%s16078_s0 + $0xd9] sm:$0xff] }
 0x1ba   :  { %1130 = vrot.lane.b32.xlu1 %v10106_v36, %s9480_s12  ;;  %1128 = vrot.lane.b32.xlu0 %v10151_v0, %s9480_s12 }
 0x1bb   :  { %1132 = vrot.lane.b32.xlu2 %v10135_v54, %s9480_s12 }
 0x1bc   :  { %v789_v20 = vpop.permute.xlu1 %788  ;;  %v787_v41 = vpop.permute.xlu0 %786 }
 0x1bd   :  { %921 = vst.msk [vmem:[#allocation2 + $0x1e0] sm:$0xff] %vm860_vm2, %v789_v20  ;;  %v1067_v34 = vpop.permute.xlu2 %1066  ;;  %v9010_v20 = vld [vmem:[%s16078_s0 + $0xc9] sm:$0xff] }
 0x1be   :  { %920 = vst.msk [vmem:[#allocation2 + $0x1d8] sm:$0xff] %vm860_vm2, %v787_v41  ;;  %v9012_v41 = vld [vmem:[%s16078_s0 + $0xe1] sm:$0xff] }
 0x1bf   :  { %1253 = vst.msk [vmem:[#allocation2 + $0x30] sm:$0xff] %vm1246_vm3, %v1067_v34 }
 0x1c2   :  { %1136 = vrot.lane.b32.xlu1 %v10142_v55, %s9480_s12  ;;  %1134 = vrot.lane.b32.xlu0 %v10187_v17, %s9480_s12 }
 0x1c3   :  { %1138 = vrot.lane.b32.xlu2 %v10171_v9, %s9480_s12 }
 0x1c4   :  { %v795_v36 = vpop.permute.xlu1 %794  ;;  %v793_v0 = vpop.permute.xlu0 %792 }
 0x1c5   :  { %924 = vst.msk [vmem:[#allocation2 + $0x1f8] sm:$0xff] %vm860_vm2, %v795_v36  ;;  %v1073_v54 = vpop.permute.xlu2 %1072 }
 0x1c6   :  { %923 = vst.msk [vmem:[#allocation2 + $0x1f0] sm:$0xff] %vm860_vm2, %v793_v0  ;;  %vm4922_vm2 = vcmask 130112  }
 0x1c7   :  { %1256 = vst.msk [vmem:[#allocation2 + $0x48] sm:$0xff] %vm1246_vm3, %v1073_v54  ;;  %v9014_v54 = vld [vmem:[%s16078_s0 + $0xf9] sm:$0xff] }
 0x1ca   :  { %1142 = vrot.lane.b32.xlu1 %v10178_v10, %s9480_s12  ;;  %1140 = vrot.lane.b32.xlu0 %v10223_v39, %s9480_s12 }
 0x1cb   :  { %1144 = vrot.lane.b32.xlu2 %v10207_v27, %s9480_s12 }
 0x1cc   :  { %v1059_v55 = vpop.permute.xlu1 %1058  ;;  %v1057_v17 = vpop.permute.xlu0 %1056 }
 0x1cd   :  { %1249 = vst.msk [vmem:[#allocation2 + $0x10] sm:$0xff] %vm1246_vm3, %v1059_v55  ;;  %v1079_v9 = vpop.permute.xlu2 %1078  ;;  %v9013_v55 = vld [vmem:[%s16078_s0 + $0xf1] sm:$0xff] }
 0x1ce   :  { %1248 = vst.msk [vmem:[#allocation2 + $0x8] sm:$0xff] %vm1246_vm3, %v1057_v17  ;;  %v9015_v17 = vld [vmem:[%s16078_s0 + $0x109] sm:$0xff] }
 0x1cf   :  { %1259 = vst.msk [vmem:[#allocation2 + $0x60] sm:$0xff] %vm1246_vm3, %v1079_v9 }
 0x1d2   :  { %1148 = vrot.lane.b32.xlu1 %v10214_v28, %s9480_s12  ;;  %1146 = vrot.lane.b32.xlu0 %v10259_v2, %s9480_s12 }
 0x1d3   :  { %1150 = vrot.lane.b32.xlu2 %v10243_v50, %s9480_s12 }
 0x1d4   :  { %v1065_v10 = vpop.permute.xlu1 %1064  ;;  %v1063_v39 = vpop.permute.xlu0 %1062 }
 0x1d5   :  { %1252 = vst.msk [vmem:[#allocation2 + $0x28] sm:$0xff] %vm1246_vm3, %v1065_v10  ;;  %v1085_v27 = vpop.permute.xlu2 %1084 }
 0x1d6   :  { %1251 = vst.msk [vmem:[#allocation2 + $0x20] sm:$0xff] %vm1246_vm3, %v1063_v39 }
 0x1d7   :  { %1262 = vst.msk [vmem:[#allocation2 + $0x78] sm:$0xff] %vm1246_vm3, %v1085_v27  ;;  %v9017_v27 = vld [vmem:[%s16078_s0 + $0x121] sm:$0xff] }
 0x1da   :  { %1154 = vrot.lane.b32.xlu1 %v10250_v60, %s9480_s12  ;;  %1152 = vrot.lane.b32.xlu0 %v10295_v29, %s9480_s12 }
 0x1db   :  { %1156 = vrot.lane.b32.xlu2 %v10279_v18, %s9480_s12 }
 0x1dc   :  { %v1071_v28 = vpop.permute.xlu1 %1070  ;;  %v1069_v2 = vpop.permute.xlu0 %1068 }
 0x1dd   :  { %1255 = vst.msk [vmem:[#allocation2 + $0x40] sm:$0xff] %vm1246_vm3, %v1071_v28  ;;  %v1091_v50 = vpop.permute.xlu2 %1090  ;;  %v9016_v28 = vld [vmem:[%s16078_s0 + $0x111] sm:$0xff] }
 0x1de   :  { %1254 = vst.msk [vmem:[#allocation2 + $0x38] sm:$0xff] %vm1246_vm3, %v1069_v2  ;;  %v9018_v2 = vld [vmem:[%s16078_s0 + $0x129] sm:$0xff] }
 0x1df   :  { %1265 = vst.msk [vmem:[#allocation2 + $0x90] sm:$0xff] %vm1246_vm3, %v1091_v50 }
 0x1e2   :  { %1160 = vrot.lane.b32.xlu1 %v10286_v23, %s9480_s12  ;;  %1158 = vrot.lane.b32.xlu0 %v10331_v6, %s9480_s12 }
 0x1e3   :  { %1162 = vrot.lane.b32.xlu2 %v10315_v49, %s9480_s12 }
 0x1e4   :  { %v1077_v60 = vpop.permute.xlu1 %1076  ;;  %v1075_v29 = vpop.permute.xlu0 %1074 }
 0x1e5   :  { %1258 = vst.msk [vmem:[#allocation2 + $0x58] sm:$0xff] %vm1246_vm3, %v1077_v60  ;;  %v1097_v18 = vpop.permute.xlu2 %1096 }
 0x1e6   :  { %1257 = vst.msk [vmem:[#allocation2 + $0x50] sm:$0xff] %vm1246_vm3, %v1075_v29 }
 0x1e7   :  { %1268 = vst.msk [vmem:[#allocation2 + $0xa8] sm:$0xff] %vm1246_vm3, %v1097_v18  ;;  %v9020_v18 = vld [vmem:[%s16078_s0 + $0x141] sm:$0xff] }
 0x1ea   :  { %1166 = vrot.lane.b32.xlu1 %v10322_v61, %s9480_s12  ;;  %1164 = vrot.lane.b32.xlu0 %v10367_v1, %s9480_s12  ;;  %v16206_v61 = vld [vmem:[#allocation7_spill] sm:$0xff] }
 0x1eb   :  { %1168 = vrot.lane.b32.xlu2 %v10351_v32, %s9480_s12 }
 0x1ec   :  { %v1083_v23 = vpop.permute.xlu1 %1082  ;;  %v1081_v6 = vpop.permute.xlu0 %1080 }
 0x1ed   :  { %1261 = vst.msk [vmem:[#allocation2 + $0x70] sm:$0xff] %vm1246_vm3, %v1083_v23  ;;  %v1103_v49 = vpop.permute.xlu2 %1102  ;;  %v9019_v23 = vld [vmem:[%s16078_s0 + $0x139] sm:$0xff] }
 0x1ee   :  { %1260 = vst.msk [vmem:[#allocation2 + $0x68] sm:$0xff] %vm1246_vm3, %v1081_v6  ;;  %v9021_v6 = vld [vmem:[%s16078_s0 + $0x151] sm:$0xff] }
 0x1ef   :  { %1271 = vst.msk [vmem:[#allocation2 + $0xc0] sm:$0xff] %vm1246_vm3, %v1103_v49 }
 0x1f2   :  { %1172 = vrot.lane.b32.xlu1 %v16205_v15, %s9480_s12  ;;  %1170 = vrot.lane.b32.xlu0 %v16206_v61, %s9480_s12 }
 0x1f3   :  { %1174 = vrot.lane.b32.xlu2 %v16207_v46, %s9480_s12  ;;  %v9024_v46 = vld [vmem:[%s16078_s0 + $0x171] sm:$0xff] }
 0x1f4   :  { %v1089_v24 = vpop.permute.xlu1 %1088  ;;  %v1087_v1 = vpop.permute.xlu0 %1086 }
 0x1f5   :  { %1264 = vst.msk [vmem:[#allocation2 + $0x88] sm:$0xff] %vm1246_vm3, %v1089_v24  ;;  %v1109_v32 = vpop.permute.xlu2 %1108  ;;  %v9023_v24 = vld [vmem:[%s16078_s0 + $0x169] sm:$0xff] }
 0x1f6   :  { %1263 = vst.msk [vmem:[#allocation2 + $0x80] sm:$0xff] %vm1246_vm3, %v1087_v1  ;;  %v9022_v1 = vld [vmem:[%s16078_s0 + $0x159] sm:$0xff] }
 0x1f7   :  { %1274 = vst.msk [vmem:[#allocation2 + $0xd8] sm:$0xff] %vm1246_vm3, %v1109_v32 }
 0x1fa   :  { %1178 = vrot.lane.b32.xlu1 %v8993_v47, %s9480_s12  ;;  %1176 = vrot.lane.b32.xlu0 %v16208_v37, %s9480_s12  ;;  %v9026_v37 = vld [vmem:[%s16078_s0 + $0x189] sm:$0xff] }
 0x1fb   :  { %1180 = vrot.lane.b32.xlu2 %v8994_v33, %s9480_s12 }
 0x1fc   :  { %v1095_v38 = vpop.permute.xlu1 %1094  ;;  %v1093_v44 = vpop.permute.xlu0 %1092 }
 0x1fd   :  { %1267 = vst.msk [vmem:[#allocation2 + $0xa0] sm:$0xff] %vm1246_vm3, %v1095_v38  ;;  %v1115_v45 = vpop.permute.xlu2 %1114  ;;  %v9025_v38 = vld [vmem:[%s16078_s0 + $0x181] sm:$0xff] }
 0x1fe   :  { %1266 = vst.msk [vmem:[#allocation2 + $0x98] sm:$0xff] %vm1246_vm3, %v1093_v44  ;;  %v9027_v44 = vld [vmem:[%s16078_s0 + $0x1c9] sm:$0xff] }
 0x1ff   :  { %1277 = vst.msk [vmem:[#allocation2 + $0xf0] sm:$0xff] %vm1246_vm3, %v1115_v45 }
 0x202   :  { %1441 = vrot.lane.b32.xlu1 %v8996_v53, %s9481_s27  ;;  %1439 = vrot.lane.b32.xlu0 %v8995_v51, %s9481_s27 }
 0x203   :  { %1443 = vrot.lane.b32.xlu2 %v8997_v52, %s9481_s27  ;;  %v9029_v52 = vld [vmem:[%s16078_s0 + $0x1e1] sm:$0xff] }
 0x204   :  { %v1101_v62 = vpop.permute.xlu1 %1100  ;;  %v1099_v58 = vpop.permute.xlu0 %1098 }
 0x205   :  { %1270 = vst.msk [vmem:[#allocation2 + $0xb8] sm:$0xff] %vm1246_vm3, %v1101_v62  ;;  %v1121_v59 = vpop.permute.xlu2 %1120  ;;  %v9028_v62 = vld [vmem:[%s16078_s0 + $0x1d1] sm:$0xff] }
 0x206   :  { %1269 = vst.msk [vmem:[#allocation2 + $0xb0] sm:$0xff] %vm1246_vm3, %v1099_v58  ;;  %v9030_v58 = vld [vmem:[%s16078_s0 + $0x1e9] sm:$0xff] }
 0x207   :  { %1280 = vst.msk [vmem:[#allocation2 + $0x108] sm:$0xff] %vm1246_vm3, %v1121_v59 }
 0x20a   :  { %1447 = vrot.lane.b32.xlu1 %v8999_v7, %s9481_s27  ;;  %1445 = vrot.lane.b32.xlu0 %v8998_v3, %s9481_s27 }
 0x20b   :  { %1449 = vrot.lane.b32.xlu2 %v9000_v4, %s9481_s27  ;;  %v9032_v4 = vld [vmem:[%s16078_s0 + $0x201] sm:$0xff] }
 0x20c   :  { %v1107_v16 = vpop.permute.xlu1 %1106  ;;  %v1105_v12 = vpop.permute.xlu0 %1104 }
 0x20d   :  { %1273 = vst.msk [vmem:[#allocation2 + $0xd0] sm:$0xff] %vm1246_vm3, %v1107_v16  ;;  %v1127_v13 = vpop.permute.xlu2 %1126  ;;  %v9031_v16 = vld [vmem:[%s16078_s0 + $0x1f9] sm:$0xff] }
 0x20e   :  { %1272 = vst.msk [vmem:[#allocation2 + $0xc8] sm:$0xff] %vm1246_vm3, %v1105_v12  ;;  %v9033_v12 = vld [vmem:[%s16078_s0 + $0x211] sm:$0xff] }
 0x20f   :  { %1283 = vst.msk [vmem:[#allocation2 + $0x120] sm:$0xff] %vm1246_vm3, %v1127_v13 }
 0x212   :  { %1453 = vrot.lane.b32.xlu1 %v9002_v25, %s9481_s27  ;;  %1451 = vrot.lane.b32.xlu0 %v9001_v21, %s9481_s27 }
 0x213   :  { %1455 = vrot.lane.b32.xlu2 %v9003_v22, %s9481_s27  ;;  %v9035_v22 = vld [vmem:[%s16078_s0 + $0x229] sm:$0xff] }
 0x214   :  { %v1113_v35 = vpop.permute.xlu1 %1112  ;;  %v1111_v30 = vpop.permute.xlu0 %1110 }
 0x215   :  { %1276 = vst.msk [vmem:[#allocation2 + $0xe8] sm:$0xff] %vm1246_vm3, %v1113_v35  ;;  %v1133_v31 = vpop.permute.xlu2 %1132  ;;  %v9034_v35 = vld [vmem:[%s16078_s0 + $0x219] sm:$0xff] }
 0x216   :  { %1275 = vst.msk [vmem:[#allocation2 + $0xe0] sm:$0xff] %vm1246_vm3, %v1111_v30  ;;  %v9036_v30 = vld [vmem:[%s16078_s0 + $0x231] sm:$0xff] }
 0x217   :  { %1286 = vst.msk [vmem:[#allocation2 + $0x138] sm:$0xff] %vm1246_vm3, %v1133_v31 }
 0x21a   :  { %1459 = vrot.lane.b32.xlu1 %v9005_v48, %s9481_s27  ;;  %1457 = vrot.lane.b32.xlu0 %v9004_v42, %s9481_s27 }
 0x21b   :  { %1461 = vrot.lane.b32.xlu2 %v9006_v5, %s9481_s27  ;;  %v9038_v5 = vld [vmem:[%s16078_s0 + $0x249] sm:$0xff] }
 0x21c   :  { %v1119_v43 = vpop.permute.xlu1 %1118  ;;  %v1117_v63 = vpop.permute.xlu0 %1116 }
 0x21d   :  { %1279 = vst.msk [vmem:[#allocation2 + $0x100] sm:$0xff] %vm1246_vm3, %v1119_v43  ;;  %v1139_v56 = vpop.permute.xlu2 %1138  ;;  %v9037_v43 = vld [vmem:[%s16078_s0 + $0x241] sm:$0xff] }
 0x21e   :  { %1278 = vst.msk [vmem:[#allocation2 + $0xf8] sm:$0xff] %vm1246_vm3, %v1117_v63  ;;  %v9039_v63 = vld [vmem:[%s16078_s0 + $0x259] sm:$0xff] }
 0x21f   :  { %1289 = vst.msk [vmem:[#allocation2 + $0x150] sm:$0xff] %vm1246_vm3, %v1139_v56 }
 0x222   :  { %1465 = vrot.lane.b32.xlu1 %v9008_v40, %s9481_s27  ;;  %1463 = vrot.lane.b32.xlu0 %v9007_v57, %s9481_s27 }
 0x223   :  { %1467 = vrot.lane.b32.xlu2 %v9009_v11, %s9481_s27  ;;  %v9041_v11 = vld [vmem:[%s16078_s0 + $0x271] sm:$0xff] }
 0x224   :  { %v1125_v14 = vpop.permute.xlu1 %1124  ;;  %v1123_v8 = vpop.permute.xlu0 %1122 }
 0x225   :  { %1282 = vst.msk [vmem:[#allocation2 + $0x118] sm:$0xff] %vm1246_vm3, %v1125_v14  ;;  %v1145_v26 = vpop.permute.xlu2 %1144  ;;  %v9040_v14 = vld [vmem:[%s16078_s0 + $0x261] sm:$0xff] }
 0x226   :  { %1281 = vst.msk [vmem:[#allocation2 + $0x110] sm:$0xff] %vm1246_vm3, %v1123_v8  ;;  %v9042_v8 = vld [vmem:[%s16078_s0 + $0x279] sm:$0xff] }
 0x227   :  { %1292 = vst.msk [vmem:[#allocation2 + $0x168] sm:$0xff] %vm1246_vm3, %v1145_v26 }
 0x22a   :  { %1471 = vrot.lane.b32.xlu1 %v9011_v19, %s9481_s27  ;;  %1469 = vrot.lane.b32.xlu0 %v9010_v20, %s9481_s27 }
 0x22b   :  { %1473 = vrot.lane.b32.xlu2 %v9012_v41, %s9481_s27  ;;  %v9044_v41 = vld [vmem:[%s16078_s0 + $0x291] sm:$0xff] }
 0x22c   :  { %v1131_v34 = vpop.permute.xlu1 %1130  ;;  %v1129_v36 = vpop.permute.xlu0 %1128 }
 0x22d   :  { %1285 = vst.msk [vmem:[#allocation2 + $0x130] sm:$0xff] %vm1246_vm3, %v1131_v34  ;;  %v1151_v0 = vpop.permute.xlu2 %1150  ;;  %v9043_v34 = vld [vmem:[%s16078_s0 + $0x289] sm:$0xff] }
 0x22e   :  { %1284 = vst.msk [vmem:[#allocation2 + $0x128] sm:$0xff] %vm1246_vm3, %v1129_v36  ;;  %v9045_v36 = vld [vmem:[%s16078_s0 + $0x2a1] sm:$0xff] }
 0x22f   :  { %1295 = vst.msk [vmem:[#allocation2 + $0x180] sm:$0xff] %vm1246_vm3, %v1151_v0 }
 0x232   :  { %1477 = vrot.lane.b32.xlu1 %v9014_v54, %s9481_s27  ;;  %1475 = vrot.lane.b32.xlu0 %v9013_v55, %s9481_s27 }
 0x233   :  { %1479 = vrot.lane.b32.xlu2 %v9015_v17, %s9481_s27  ;;  %v9047_v17 = vld [vmem:[%s16078_s0 + $0x2b9] sm:$0xff] }
 0x234   :  { %v1137_v9 = vpop.permute.xlu1 %1136  ;;  %v1135_v10 = vpop.permute.xlu0 %1134 }
 0x235   :  { %1288 = vst.msk [vmem:[#allocation2 + $0x148] sm:$0xff] %vm1246_vm3, %v1137_v9  ;;  %v1157_v39 = vpop.permute.xlu2 %1156  ;;  %v9046_v9 = vld [vmem:[%s16078_s0 + $0x2a9] sm:$0xff] }
 0x236   :  { %1287 = vst.msk [vmem:[#allocation2 + $0x140] sm:$0xff] %vm1246_vm3, %v1135_v10  ;;  %v9048_v10 = vld [vmem:[%s16078_s0 + $0x2c1] sm:$0xff] }
 0x237   :  { %1298 = vst.msk [vmem:[#allocation2 + $0x198] sm:$0xff] %vm1246_vm3, %v1157_v39 }
 0x23a   :  { %1483 = vrot.lane.b32.xlu1 %v9017_v27, %s9481_s27  ;;  %1481 = vrot.lane.b32.xlu0 %v9016_v28, %s9481_s27 }
 0x23b   :  { %1485 = vrot.lane.b32.xlu2 %v9018_v2, %s9481_s27  ;;  %v9050_v2 = vld [vmem:[%s16078_s0 + $0x2d9] sm:$0xff] }
 0x23c   :  { %v1143_v50 = vpop.permute.xlu1 %1142  ;;  %v1141_v60 = vpop.permute.xlu0 %1140 }
 0x23d   :  { %1291 = vst.msk [vmem:[#allocation2 + $0x160] sm:$0xff] %vm1246_vm3, %v1143_v50  ;;  %v1163_v29 = vpop.permute.xlu2 %1162  ;;  %v9049_v50 = vld [vmem:[%s16078_s0 + $0x2d1] sm:$0xff] }
 0x23e   :  { %1290 = vst.msk [vmem:[#allocation2 + $0x158] sm:$0xff] %vm1246_vm3, %v1141_v60  ;;  %v9051_v60 = vld [vmem:[%s16078_s0 + $0x2e9] sm:$0xff] }
 0x23f   :  { %1301 = vst.msk [vmem:[#allocation2 + $0x1b0] sm:$0xff] %vm1246_vm3, %v1163_v29 }
 0x242   :  { %1489 = vrot.lane.b32.xlu1 %v9020_v18, %s9481_s27  ;;  %1487 = vrot.lane.b32.xlu0 %v9019_v23, %s9481_s27 }
 0x243   :  { %1491 = vrot.lane.b32.xlu2 %v9021_v6, %s9481_s27  ;;  %v9053_v6 = vld [vmem:[%s16078_s0 + $0x301] sm:$0xff] }
 0x244   :  { %v1149_v49 = vpop.permute.xlu1 %1148  ;;  %v1147_v15 = vpop.permute.xlu0 %1146 }
 0x245   :  { %1294 = vst.msk [vmem:[#allocation2 + $0x178] sm:$0xff] %vm1246_vm3, %v1149_v49  ;;  %v1169_v61 = vpop.permute.xlu2 %1168  ;;  %v9052_v49 = vld [vmem:[%s16078_s0 + $0x2f1] sm:$0xff] }
 0x246   :  { %1293 = vst.msk [vmem:[#allocation2 + $0x170] sm:$0xff] %vm1246_vm3, %v1147_v15  ;;  %v9054_v15 = vld [vmem:[%s16078_s0 + $0x309] sm:$0xff] }
 0x247   :  { %1304 = vst.msk [vmem:[#allocation2 + $0x1c8] sm:$0xff] %vm1246_vm3, %v1169_v61 }
 0x24a   :  { %1495 = vrot.lane.b32.xlu1 %v9023_v24, %s9481_s27  ;;  %1493 = vrot.lane.b32.xlu0 %v9022_v1, %s9481_s27 }
 0x24b   :  { %1497 = vrot.lane.b32.xlu2 %v9024_v46, %s9481_s27  ;;  %v9056_v46 = vld [vmem:[%s16078_s0 + $0x321] sm:$0xff] }
 0x24c   :  { %v1155_v32 = vpop.permute.xlu1 %1154  ;;  %v1153_v47 = vpop.permute.xlu0 %1152 }
 0x24d   :  { %1297 = vst.msk [vmem:[#allocation2 + $0x190] sm:$0xff] %vm1246_vm3, %v1155_v32  ;;  %v1175_v33 = vpop.permute.xlu2 %1174  ;;  %v9055_v32 = vld [vmem:[%s16078_s0 + $0x319] sm:$0xff] }
 0x24e   :  { %1296 = vst.msk [vmem:[#allocation2 + $0x188] sm:$0xff] %vm1246_vm3, %v1153_v47  ;;  %v9057_v47 = vld [vmem:[%s16078_s0 + $0x331] sm:$0xff] }
 0x24f   :  { %1307 = vst.msk [vmem:[#allocation2 + $0x1e0] sm:$0xff] %vm1246_vm3, %v1175_v33 }
 0x252   :  { %1501 = vrot.lane.b32.xlu1 %v9026_v37, %s9481_s27  ;;  %1499 = vrot.lane.b32.xlu0 %v9025_v38, %s9481_s27 }
 0x253   :  { %1503 = vrot.lane.b32.xlu2 %v9027_v44, %s9481_s27  ;;  %v9059_v44 = vld [vmem:[%s16078_s0 + $0x1a] sm:$0xff] }
 0x254   :  { %v1161_v45 = vpop.permute.xlu1 %1160  ;;  %v1159_v53 = vpop.permute.xlu0 %1158 }
 0x255   :  { %1300 = vst.msk [vmem:[#allocation2 + $0x1a8] sm:$0xff] %vm1246_vm3, %v1161_v45  ;;  %v1181_v51 = vpop.permute.xlu2 %1180  ;;  %v9058_v45 = vld [vmem:[%s16078_s0 + $0x339] sm:$0xff] }
 0x256   :  { %1299 = vst.msk [vmem:[#allocation2 + $0x1a0] sm:$0xff] %vm1246_vm3, %v1159_v53  ;;  %v9060_v53 = vld [vmem:[%s16078_s0 + $0x22] sm:$0xff] }
 0x257   :  { %1310 = vst.msk [vmem:[#allocation2 + $0x1f8] sm:$0xff] %vm1246_vm3, %v1181_v51 }
 0x25a   :  { %1507 = vrot.lane.b32.xlu1 %v9029_v52, %s9481_s27  ;;  %1505 = vrot.lane.b32.xlu0 %v9028_v62, %s9481_s27 }
 0x25b   :  { %1509 = vrot.lane.b32.xlu2 %v9030_v58, %s9481_s27  ;;  %v9062_v58 = vld [vmem:[%s16078_s0 + $0x3a] sm:$0xff] }
 0x25c   :  { %v1167_v59 = vpop.permute.xlu1 %1166  ;;  %v1165_v7 = vpop.permute.xlu0 %1164 }
 0x25d   :  { %1303 = vst.msk [vmem:[#allocation2 + $0x1c0] sm:$0xff] %vm1246_vm3, %v1167_v59  ;;  %v1444_v3 = vpop.permute.xlu2 %1443  ;;  %v9061_v59 = vld [vmem:[%s16078_s0 + $0x32] sm:$0xff] }
 0x25e   :  { %1302 = vst.msk [vmem:[#allocation2 + $0x1b8] sm:$0xff] %vm1246_vm3, %v1165_v7  ;;  %v9063_v7 = vld [vmem:[%s16078_s0 + $0x4a] sm:$0xff] }
 0x25f   :  { %1634 = vst.msk [vmem:[#allocation2 + $0x10] sm:$0xff] %vm1631_vm4, %v1444_v3 }
 0x262   :  { %1513 = vrot.lane.b32.xlu1 %v9032_v4, %s9481_s27  ;;  %1511 = vrot.lane.b32.xlu0 %v9031_v16, %s9481_s27 }
 0x263   :  { %1515 = vrot.lane.b32.xlu2 %v9033_v12, %s9481_s27  ;;  %v9065_v12 = vld [vmem:[%s16078_s0 + $0x62] sm:$0xff] }
 0x264   :  { %v1173_v13 = vpop.permute.xlu1 %1172  ;;  %v1171_v25 = vpop.permute.xlu0 %1170 }
 0x265   :  { %1306 = vst.msk [vmem:[#allocation2 + $0x1d8] sm:$0xff] %vm1246_vm3, %v1173_v13  ;;  %v1450_v21 = vpop.permute.xlu2 %1449  ;;  %v9064_v13 = vld [vmem:[%s16078_s0 + $0x52] sm:$0xff] }
 0x266   :  { %1305 = vst.msk [vmem:[#allocation2 + $0x1d0] sm:$0xff] %vm1246_vm3, %v1171_v25  ;;  %v9066_v25 = vld [vmem:[%s16078_s0 + $0x6a] sm:$0xff] }
 0x267   :  { %1637 = vst.msk [vmem:[#allocation2 + $0x28] sm:$0xff] %vm1631_vm4, %v1450_v21 }
 0x26a   :  { %1519 = vrot.lane.b32.xlu1 %v9035_v22, %s9481_s27  ;;  %1517 = vrot.lane.b32.xlu0 %v9034_v35, %s9481_s27 }
 0x26b   :  { %1521 = vrot.lane.b32.xlu2 %v9036_v30, %s9481_s27  ;;  %v9068_v30 = vld [vmem:[%s16078_s0 + $0x82] sm:$0xff] }
 0x26c   :  { %v1179_v31 = vpop.permute.xlu1 %1178  ;;  %v1177_v48 = vpop.permute.xlu0 %1176 }
 0x26d   :  { %1309 = vst.msk [vmem:[#allocation2 + $0x1f0] sm:$0xff] %vm1246_vm3, %v1179_v31  ;;  %v1456_v42 = vpop.permute.xlu2 %1455  ;;  %v9067_v31 = vld [vmem:[%s16078_s0 + $0x7a] sm:$0xff] }
 0x26e   :  { %1308 = vst.msk [vmem:[#allocation2 + $0x1e8] sm:$0xff] %vm1246_vm3, %v1177_v48  ;;  %v9069_v48 = vld [vmem:[%s16078_s0 + $0x92] sm:$0xff]  ;;  %vm5307_vm3 = vcmask 195712  }
 0x26f   :  { %1640 = vst.msk [vmem:[#allocation2 + $0x40] sm:$0xff] %vm1631_vm4, %v1456_v42 }
 0x272   :  { %1525 = vrot.lane.b32.xlu1 %v9038_v5, %s9481_s27  ;;  %1523 = vrot.lane.b32.xlu0 %v9037_v43, %s9481_s27 }
 0x273   :  { %1527 = vrot.lane.b32.xlu2 %v9039_v63, %s9481_s27  ;;  %v9071_v63 = vld [vmem:[%s16078_s0 + $0xaa] sm:$0xff] }
 0x274   :  { %v1442_v56 = vpop.permute.xlu1 %1441  ;;  %v1440_v40 = vpop.permute.xlu0 %1439 }
 0x275   :  { %1633 = vst.msk [vmem:[#allocation2 + $0x8] sm:$0xff] %vm1631_vm4, %v1442_v56  ;;  %v1462_v57 = vpop.permute.xlu2 %1461  ;;  %v9070_v56 = vld [vmem:[%s16078_s0 + $0x9a] sm:$0xff] }
 0x276   :  { %1632 = vst.msk [vmem:[#allocation2] sm:$0xff] %vm1631_vm4, %v1440_v40  ;;  %v9072_v40 = vld [vmem:[%s16078_s0 + $0xb2] sm:$0xff] }
 0x277   :  { %1643 = vst.msk [vmem:[#allocation2 + $0x58] sm:$0xff] %vm1631_vm4, %v1462_v57 }
 0x27a   :  { %1531 = vrot.lane.b32.xlu1 %v9041_v11, %s9481_s27  ;;  %1529 = vrot.lane.b32.xlu0 %v9040_v14, %s9481_s27 }
 0x27b   :  { %1533 = vrot.lane.b32.xlu2 %v9042_v8, %s9481_s27  ;;  %v9074_v8 = vld [vmem:[%s16078_s0 + $0xca] sm:$0xff] }
 0x27c   :  { %v1448_v26 = vpop.permute.xlu1 %1447  ;;  %v1446_v19 = vpop.permute.xlu0 %1445 }
 0x27d   :  { %1636 = vst.msk [vmem:[#allocation2 + $0x20] sm:$0xff] %vm1631_vm4, %v1448_v26  ;;  %v1468_v20 = vpop.permute.xlu2 %1467  ;;  %v9073_v26 = vld [vmem:[%s16078_s0 + $0xc2] sm:$0xff] }
 0x27e   :  { %1635 = vst.msk [vmem:[#allocation2 + $0x18] sm:$0xff] %vm1631_vm4, %v1446_v19  ;;  %v9075_v19 = vld [vmem:[%s16078_s0 + $0xda] sm:$0xff] }
 0x27f   :  { %1646 = vst.msk [vmem:[#allocation2 + $0x70] sm:$0xff] %vm1631_vm4, %v1468_v20 }
 0x282   :  { %1537 = vrot.lane.b32.xlu1 %v9044_v41, %s9481_s27  ;;  %1535 = vrot.lane.b32.xlu0 %v9043_v34, %s9481_s27 }
 0x283   :  { %1539 = vrot.lane.b32.xlu2 %v9045_v36, %s9481_s27  ;;  %v9077_v36 = vld [vmem:[%s16078_s0 + $0xf2] sm:$0xff] }
 0x284   :  { %v1454_v0 = vpop.permute.xlu1 %1453  ;;  %v1452_v54 = vpop.permute.xlu0 %1451 }
 0x285   :  { %1639 = vst.msk [vmem:[#allocation2 + $0x38] sm:$0xff] %vm1631_vm4, %v1454_v0  ;;  %v1474_v55 = vpop.permute.xlu2 %1473  ;;  %v9076_v0 = vld [vmem:[%s16078_s0 + $0xe2] sm:$0xff] }
 0x286   :  { %1638 = vst.msk [vmem:[#allocation2 + $0x30] sm:$0xff] %vm1631_vm4, %v1452_v54  ;;  %v9078_v54 = vld [vmem:[%s16078_s0 + $0xfa] sm:$0xff] }
 0x287   :  { %1649 = vst.msk [vmem:[#allocation2 + $0x88] sm:$0xff] %vm1631_vm4, %v1474_v55 }
 0x28a   :  { %1543 = vrot.lane.b32.xlu1 %v9047_v17, %s9481_s27  ;;  %1541 = vrot.lane.b32.xlu0 %v9046_v9, %s9481_s27 }
 0x28b   :  { %1545 = vrot.lane.b32.xlu2 %v9048_v10, %s9481_s27  ;;  %v9080_v10 = vld [vmem:[%s16078_s0 + $0x112] sm:$0xff] }
 0x28c   :  { %v1460_v39 = vpop.permute.xlu1 %1459  ;;  %v1458_v27 = vpop.permute.xlu0 %1457 }
 0x28d   :  { %1642 = vst.msk [vmem:[#allocation2 + $0x50] sm:$0xff] %vm1631_vm4, %v1460_v39  ;;  %v1480_v28 = vpop.permute.xlu2 %1479  ;;  %v9079_v39 = vld [vmem:[%s16078_s0 + $0x10a] sm:$0xff] }
 0x28e   :  { %1641 = vst.msk [vmem:[#allocation2 + $0x48] sm:$0xff] %vm1631_vm4, %v1458_v27  ;;  %v9081_v27 = vld [vmem:[%s16078_s0 + $0x122] sm:$0xff] }
 0x28f   :  { %1652 = vst.msk [vmem:[#allocation2 + $0xa0] sm:$0xff] %vm1631_vm4, %v1480_v28 }
 0x292   :  { %1549 = vrot.lane.b32.xlu1 %v9050_v2, %s9481_s27  ;;  %1547 = vrot.lane.b32.xlu0 %v9049_v50, %s9481_s27 }
 0x293   :  { %1551 = vrot.lane.b32.xlu2 %v9051_v60, %s9481_s27  ;;  %v9083_v60 = vld [vmem:[%s16078_s0 + $0x13a] sm:$0xff] }
 0x294   :  { %v1466_v29 = vpop.permute.xlu1 %1465  ;;  %v1464_v18 = vpop.permute.xlu0 %1463 }
 0x295   :  { %1645 = vst.msk [vmem:[#allocation2 + $0x68] sm:$0xff] %vm1631_vm4, %v1466_v29  ;;  %v1486_v23 = vpop.permute.xlu2 %1485  ;;  %v9082_v29 = vld [vmem:[%s16078_s0 + $0x12a] sm:$0xff] }
 0x296   :  { %1644 = vst.msk [vmem:[#allocation2 + $0x60] sm:$0xff] %vm1631_vm4, %v1464_v18  ;;  %v9084_v18 = vld [vmem:[%s16078_s0 + $0x142] sm:$0xff] }
 0x297   :  { %1655 = vst.msk [vmem:[#allocation2 + $0xb8] sm:$0xff] %vm1631_vm4, %v1486_v23 }
 0x29a   :  { %1555 = vrot.lane.b32.xlu1 %v9053_v6, %s9481_s27  ;;  %1553 = vrot.lane.b32.xlu0 %v9052_v49, %s9481_s27 }
 0x29b   :  { %1557 = vrot.lane.b32.xlu2 %v9054_v15, %s9481_s27  ;;  %v9086_v15 = vld [vmem:[%s16078_s0 + $0x15a] sm:$0xff] }
 0x29c   :  { %v1472_v61 = vpop.permute.xlu1 %1471  ;;  %v1470_v24 = vpop.permute.xlu0 %1469 }
 0x29d   :  { %1648 = vst.msk [vmem:[#allocation2 + $0x80] sm:$0xff] %vm1631_vm4, %v1472_v61  ;;  %v1492_v1 = vpop.permute.xlu2 %1491  ;;  %v9085_v61 = vld [vmem:[%s16078_s0 + $0x152] sm:$0xff] }
 0x29e   :  { %1647 = vst.msk [vmem:[#allocation2 + $0x78] sm:$0xff] %vm1631_vm4, %v1470_v24  ;;  %v9087_v24 = vld [vmem:[%s16078_s0 + $0x16a] sm:$0xff] }
 0x29f   :  { %1658 = vst.msk [vmem:[#allocation2 + $0xd0] sm:$0xff] %vm1631_vm4, %v1492_v1 }
 0x2a2   :  { %1561 = vrot.lane.b32.xlu1 %v9056_v46, %s9481_s27  ;;  %1559 = vrot.lane.b32.xlu0 %v9055_v32, %s9481_s27 }
 0x2a3   :  { %1563 = vrot.lane.b32.xlu2 %v9057_v47, %s9481_s27  ;;  %v9089_v47 = vld [vmem:[%s16078_s0 + $0x182] sm:$0xff] }
 0x2a4   :  { %v1478_v33 = vpop.permute.xlu1 %1477  ;;  %v1476_v37 = vpop.permute.xlu0 %1475 }
 0x2a5   :  { %1651 = vst.msk [vmem:[#allocation2 + $0x98] sm:$0xff] %vm1631_vm4, %v1478_v33  ;;  %v1498_v38 = vpop.permute.xlu2 %1497  ;;  %v9088_v33 = vld [vmem:[%s16078_s0 + $0x172] sm:$0xff] }
 0x2a6   :  { %1650 = vst.msk [vmem:[#allocation2 + $0x90] sm:$0xff] %vm1631_vm4, %v1476_v37  ;;  %v9090_v37 = vld [vmem:[%s16078_s0 + $0x18a] sm:$0xff] }
 0x2a7   :  { %1661 = vst.msk [vmem:[#allocation2 + $0xe8] sm:$0xff] %vm1631_vm4, %v1498_v38 }
 0x2aa   :  { %1824 = vrot.lane.b32.xlu1 %v9059_v44, %s9482_s29  ;;  %1565 = vrot.lane.b32.xlu0 %v9058_v45, %s9481_s27 }
 0x2ab   :  { %1826 = vrot.lane.b32.xlu2 %v9060_v53, %s9482_s29  ;;  %v9092_v53 = vld [vmem:[%s16078_s0 + $0x1d2] sm:$0xff] }
 0x2ac   :  { %v1484_v51 = vpop.permute.xlu1 %1483  ;;  %v1482_v52 = vpop.permute.xlu0 %1481 }
 0x2ad   :  { %1654 = vst.msk [vmem:[#allocation2 + $0xb0] sm:$0xff] %vm1631_vm4, %v1484_v51  ;;  %v1504_v62 = vpop.permute.xlu2 %1503  ;;  %v9091_v51 = vld [vmem:[%s16078_s0 + $0x1ca] sm:$0xff] }
 0x2ae   :  { %1653 = vst.msk [vmem:[#allocation2 + $0xa8] sm:$0xff] %vm1631_vm4, %v1482_v52  ;;  %v9093_v52 = vld [vmem:[%s16078_s0 + $0x1e2] sm:$0xff] }
 0x2af   :  { %1664 = vst.msk [vmem:[#allocation2 + $0x100] sm:$0xff] %vm1631_vm4, %v1504_v62 }
 0x2b2   :  { %1830 = vrot.lane.b32.xlu1 %v9062_v58, %s9482_s29  ;;  %1828 = vrot.lane.b32.xlu0 %v9061_v59, %s9482_s29 }
 0x2b3   :  { %1832 = vrot.lane.b32.xlu2 %v9063_v7, %s9482_s29  ;;  %v9095_v7 = vld [vmem:[%s16078_s0 + $0x1fa] sm:$0xff] }
 0x2b4   :  { %v1490_v3 = vpop.permute.xlu1 %1489  ;;  %v1488_v4 = vpop.permute.xlu0 %1487 }
 0x2b5   :  { %1657 = vst.msk [vmem:[#allocation2 + $0xc8] sm:$0xff] %vm1631_vm4, %v1490_v3  ;;  %v1510_v16 = vpop.permute.xlu2 %1509  ;;  %v9094_v3 = vld [vmem:[%s16078_s0 + $0x1ea] sm:$0xff] }
 0x2b6   :  { %1656 = vst.msk [vmem:[#allocation2 + $0xc0] sm:$0xff] %vm1631_vm4, %v1488_v4  ;;  %v9096_v4 = vld [vmem:[%s16078_s0 + $0x202] sm:$0xff] }
 0x2b7   :  { %1667 = vst.msk [vmem:[#allocation2 + $0x118] sm:$0xff] %vm1631_vm4, %v1510_v16 }
 0x2ba   :  { %1836 = vrot.lane.b32.xlu1 %v9065_v12, %s9482_s29  ;;  %1834 = vrot.lane.b32.xlu0 %v9064_v13, %s9482_s29 }
 0x2bb   :  { %1838 = vrot.lane.b32.xlu2 %v9066_v25, %s9482_s29  ;;  %v9098_v25 = vld [vmem:[%s16078_s0 + $0x21a] sm:$0xff] }
 0x2bc   :  { %v1496_v21 = vpop.permute.xlu1 %1495  ;;  %v1494_v22 = vpop.permute.xlu0 %1493 }
 0x2bd   :  { %1660 = vst.msk [vmem:[#allocation2 + $0xe0] sm:$0xff] %vm1631_vm4, %v1496_v21  ;;  %v1516_v35 = vpop.permute.xlu2 %1515  ;;  %v9097_v21 = vld [vmem:[%s16078_s0 + $0x212] sm:$0xff] }
 0x2be   :  { %1659 = vst.msk [vmem:[#allocation2 + $0xd8] sm:$0xff] %vm1631_vm4, %v1494_v22  ;;  %v9099_v22 = vld [vmem:[%s16078_s0 + $0x22a] sm:$0xff] }
 0x2bf   :  { %1670 = vst.msk [vmem:[#allocation2 + $0x130] sm:$0xff] %vm1631_vm4, %v1516_v35 }
 0x2c2   :  { %1842 = vrot.lane.b32.xlu1 %v9068_v30, %s9482_s29  ;;  %1840 = vrot.lane.b32.xlu0 %v9067_v31, %s9482_s29 }
 0x2c3   :  { %1844 = vrot.lane.b32.xlu2 %v9069_v48, %s9482_s29  ;;  %v9101_v48 = vld [vmem:[%s16078_s0 + $0x242] sm:$0xff] }
 0x2c4   :  { %v1502_v42 = vpop.permute.xlu1 %1501  ;;  %v1500_v5 = vpop.permute.xlu0 %1499 }
 0x2c5   :  { %1663 = vst.msk [vmem:[#allocation2 + $0xf8] sm:$0xff] %vm1631_vm4, %v1502_v42  ;;  %v1522_v43 = vpop.permute.xlu2 %1521  ;;  %v9100_v42 = vld [vmem:[%s16078_s0 + $0x232] sm:$0xff] }
 0x2c6   :  { %1662 = vst.msk [vmem:[#allocation2 + $0xf0] sm:$0xff] %vm1631_vm4, %v1500_v5  ;;  %v9102_v5 = vld [vmem:[%s16078_s0 + $0x24a] sm:$0xff] }
 0x2c7   :  { %1673 = vst.msk [vmem:[#allocation2 + $0x148] sm:$0xff] %vm1631_vm4, %v1522_v43 }
 0x2ca   :  { %1848 = vrot.lane.b32.xlu1 %v9071_v63, %s9482_s29  ;;  %1846 = vrot.lane.b32.xlu0 %v9070_v56, %s9482_s29 }
 0x2cb   :  { %1850 = vrot.lane.b32.xlu2 %v9072_v40, %s9482_s29  ;;  %v9104_v40 = vld [vmem:[%s16078_s0 + $0x262] sm:$0xff] }
 0x2cc   :  { %v1508_v57 = vpop.permute.xlu1 %1507  ;;  %v1506_v11 = vpop.permute.xlu0 %1505 }
 0x2cd   :  { %1666 = vst.msk [vmem:[#allocation2 + $0x110] sm:$0xff] %vm1631_vm4, %v1508_v57  ;;  %v1528_v14 = vpop.permute.xlu2 %1527  ;;  %v9103_v57 = vld [vmem:[%s16078_s0 + $0x25a] sm:$0xff] }
 0x2ce   :  { %1665 = vst.msk [vmem:[#allocation2 + $0x108] sm:$0xff] %vm1631_vm4, %v1506_v11  ;;  %v9105_v11 = vld [vmem:[%s16078_s0 + $0x272] sm:$0xff] }
 0x2cf   :  { %1676 = vst.msk [vmem:[#allocation2 + $0x160] sm:$0xff] %vm1631_vm4, %v1528_v14 }
 0x2d2   :  { %1854 = vrot.lane.b32.xlu1 %v9074_v8, %s9482_s29  ;;  %1852 = vrot.lane.b32.xlu0 %v9073_v26, %s9482_s29 }
 0x2d3   :  { %1856 = vrot.lane.b32.xlu2 %v9075_v19, %s9482_s29  ;;  %v9107_v19 = vld [vmem:[%s16078_s0 + $0x28a] sm:$0xff] }
 0x2d4   :  { %v1514_v20 = vpop.permute.xlu1 %1513  ;;  %v1512_v41 = vpop.permute.xlu0 %1511 }
 0x2d5   :  { %1669 = vst.msk [vmem:[#allocation2 + $0x128] sm:$0xff] %vm1631_vm4, %v1514_v20  ;;  %v1534_v34 = vpop.permute.xlu2 %1533  ;;  %v9106_v20 = vld [vmem:[%s16078_s0 + $0x27a] sm:$0xff] }
 0x2d6   :  { %1668 = vst.msk [vmem:[#allocation2 + $0x120] sm:$0xff] %vm1631_vm4, %v1512_v41  ;;  %v9108_v41 = vld [vmem:[%s16078_s0 + $0x292] sm:$0xff] }
 0x2d7   :  { %1679 = vst.msk [vmem:[#allocation2 + $0x178] sm:$0xff] %vm1631_vm4, %v1534_v34 }
 0x2da   :  { %1860 = vrot.lane.b32.xlu1 %v9077_v36, %s9482_s29  ;;  %1858 = vrot.lane.b32.xlu0 %v9076_v0, %s9482_s29 }
 0x2db   :  { %1862 = vrot.lane.b32.xlu2 %v9078_v54, %s9482_s29  ;;  %v9110_v54 = vld [vmem:[%s16078_s0 + $0x2aa] sm:$0xff] }
 0x2dc   :  { %v1520_v55 = vpop.permute.xlu1 %1519  ;;  %v1518_v17 = vpop.permute.xlu0 %1517 }
 0x2dd   :  { %1672 = vst.msk [vmem:[#allocation2 + $0x140] sm:$0xff] %vm1631_vm4, %v1520_v55  ;;  %v1540_v9 = vpop.permute.xlu2 %1539  ;;  %v9109_v55 = vld [vmem:[%s16078_s0 + $0x2a2] sm:$0xff] }
 0x2de   :  { %1671 = vst.msk [vmem:[#allocation2 + $0x138] sm:$0xff] %vm1631_vm4, %v1518_v17  ;;  %v9111_v17 = vld [vmem:[%s16078_s0 + $0x2ba] sm:$0xff] }
 0x2df   :  { %1682 = vst.msk [vmem:[#allocation2 + $0x190] sm:$0xff] %vm1631_vm4, %v1540_v9 }
 0x2e2   :  { %1866 = vrot.lane.b32.xlu1 %v9080_v10, %s9482_s29  ;;  %1864 = vrot.lane.b32.xlu0 %v9079_v39, %s9482_s29 }
 0x2e3   :  { %1868 = vrot.lane.b32.xlu2 %v9081_v27, %s9482_s29  ;;  %v9113_v27 = vld [vmem:[%s16078_s0 + $0x2d2] sm:$0xff] }
 0x2e4   :  { %v1526_v28 = vpop.permute.xlu1 %1525  ;;  %v1524_v2 = vpop.permute.xlu0 %1523 }
 0x2e5   :  { %1675 = vst.msk [vmem:[#allocation2 + $0x158] sm:$0xff] %vm1631_vm4, %v1526_v28  ;;  %v1546_v50 = vpop.permute.xlu2 %1545  ;;  %v9112_v28 = vld [vmem:[%s16078_s0 + $0x2c2] sm:$0xff] }
 0x2e6   :  { %1674 = vst.msk [vmem:[#allocation2 + $0x150] sm:$0xff] %vm1631_vm4, %v1524_v2  ;;  %v9114_v2 = vld [vmem:[%s16078_s0 + $0x2da] sm:$0xff] }
 0x2e7   :  { %1685 = vst.msk [vmem:[#allocation2 + $0x1a8] sm:$0xff] %vm1631_vm4, %v1546_v50 }
 0x2ea   :  { %1872 = vrot.lane.b32.xlu1 %v9083_v60, %s9482_s29  ;;  %1870 = vrot.lane.b32.xlu0 %v9082_v29, %s9482_s29 }
 0x2eb   :  { %1874 = vrot.lane.b32.xlu2 %v9084_v18, %s9482_s29  ;;  %v9116_v18 = vld [vmem:[%s16078_s0 + $0x2f2] sm:$0xff] }
 0x2ec   :  { %v1532_v23 = vpop.permute.xlu1 %1531  ;;  %v1530_v6 = vpop.permute.xlu0 %1529 }
 0x2ed   :  { %1678 = vst.msk [vmem:[#allocation2 + $0x170] sm:$0xff] %vm1631_vm4, %v1532_v23  ;;  %v1552_v49 = vpop.permute.xlu2 %1551  ;;  %v9115_v23 = vld [vmem:[%s16078_s0 + $0x2ea] sm:$0xff] }
 0x2ee   :  { %1677 = vst.msk [vmem:[#allocation2 + $0x168] sm:$0xff] %vm1631_vm4, %v1530_v6  ;;  %v9117_v6 = vld [vmem:[%s16078_s0 + $0x302] sm:$0xff] }
 0x2ef   :  { %1688 = vst.msk [vmem:[#allocation2 + $0x1c0] sm:$0xff] %vm1631_vm4, %v1552_v49 }
 0x2f2   :  { %1878 = vrot.lane.b32.xlu1 %v9086_v15, %s9482_s29  ;;  %1876 = vrot.lane.b32.xlu0 %v9085_v61, %s9482_s29 }
 0x2f3   :  { %1880 = vrot.lane.b32.xlu2 %v9087_v24, %s9482_s29  ;;  %v9119_v24 = vld [vmem:[%s16078_s0 + $0x31a] sm:$0xff] }
 0x2f4   :  { %v1538_v1 = vpop.permute.xlu1 %1537  ;;  %v1536_v46 = vpop.permute.xlu0 %1535 }
 0x2f5   :  { %1681 = vst.msk [vmem:[#allocation2 + $0x188] sm:$0xff] %vm1631_vm4, %v1538_v1  ;;  %v1558_v32 = vpop.permute.xlu2 %1557  ;;  %v9118_v1 = vld [vmem:[%s16078_s0 + $0x30a] sm:$0xff] }
 0x2f6   :  { %1680 = vst.msk [vmem:[#allocation2 + $0x180] sm:$0xff] %vm1631_vm4, %v1536_v46  ;;  %v9120_v46 = vld [vmem:[%s16078_s0 + $0x322] sm:$0xff] }
 0x2f7   :  { %1691 = vst.msk [vmem:[#allocation2 + $0x1d8] sm:$0xff] %vm1631_vm4, %v1558_v32 }
 0x2fa   :  { %1884 = vrot.lane.b32.xlu1 %v9089_v47, %s9482_s29  ;;  %1882 = vrot.lane.b32.xlu0 %v9088_v33, %s9482_s29 }
 0x2fb   :  { %1886 = vrot.lane.b32.xlu2 %v9090_v37, %s9482_s29  ;;  %v9122_v37 = vld [vmem:[%s16078_s0 + $0x33a] sm:$0xff] }
 0x2fc   :  { %v1544_v38 = vpop.permute.xlu1 %1543  ;;  %v1542_v44 = vpop.permute.xlu0 %1541 }
 0x2fd   :  { %1684 = vst.msk [vmem:[#allocation2 + $0x1a0] sm:$0xff] %vm1631_vm4, %v1544_v38  ;;  %v1564_v45 = vpop.permute.xlu2 %1563  ;;  %v9121_v38 = vld [vmem:[%s16078_s0 + $0x332] sm:$0xff] }
 0x2fe   :  { %1683 = vst.msk [vmem:[#allocation2 + $0x198] sm:$0xff] %vm1631_vm4, %v1542_v44  ;;  %v9123_v44 = vld [vmem:[%s16078_s0 + $0x30] sm:$0xff] }
 0x2ff   :  { %1694 = vst.msk [vmem:[#allocation2 + $0x1f0] sm:$0xff] %vm1631_vm4, %v1564_v45 }
 0x302   :  { %1890 = vrot.lane.b32.xlu1 %v9092_v53, %s9482_s29  ;;  %1888 = vrot.lane.b32.xlu0 %v9091_v51, %s9482_s29 }
 0x303   :  { %1892 = vrot.lane.b32.xlu2 %v9093_v52, %s9482_s29  ;;  %v9125_v52 = vld [vmem:[%s16078_s0 + $0x48] sm:$0xff] }
 0x304   :  { %v1550_v62 = vpop.permute.xlu1 %1549  ;;  %v1548_v58 = vpop.permute.xlu0 %1547 }
 0x305   :  { %1687 = vst.msk [vmem:[#allocation2 + $0x1b8] sm:$0xff] %vm1631_vm4, %v1550_v62  ;;  %v1827_v59 = vpop.permute.xlu2 %1826  ;;  %v9124_v62 = vld [vmem:[%s16078_s0 + $0x38] sm:$0xff] }
 0x306   :  { %1686 = vst.msk [vmem:[#allocation2 + $0x1b0] sm:$0xff] %vm1631_vm4, %v1548_v58  ;;  %v9126_v58 = vld [vmem:[%s16078_s0 + $0x50] sm:$0xff] }
 0x307   :  { %2018 = vst.msk [vmem:[#allocation2 + $0x8] sm:$0xff] %vm2016_vm5, %v1827_v59 }
 0x30a   :  { %1896 = vrot.lane.b32.xlu1 %v9095_v7, %s9482_s29  ;;  %1894 = vrot.lane.b32.xlu0 %v9094_v3, %s9482_s29 }
 0x30b   :  { %1898 = vrot.lane.b32.xlu2 %v9096_v4, %s9482_s29  ;;  %v9128_v4 = vld [vmem:[%s16078_s0 + $0x68] sm:$0xff] }
 0x30c   :  { %v1556_v16 = vpop.permute.xlu1 %1555  ;;  %v1554_v12 = vpop.permute.xlu0 %1553 }
 0x30d   :  { %1690 = vst.msk [vmem:[#allocation2 + $0x1d0] sm:$0xff] %vm1631_vm4, %v1556_v16  ;;  %v1833_v13 = vpop.permute.xlu2 %1832  ;;  %v9127_v16 = vld [vmem:[%s16078_s0 + $0x60] sm:$0xff] }
 0x30e   :  { %1689 = vst.msk [vmem:[#allocation2 + $0x1c8] sm:$0xff] %vm1631_vm4, %v1554_v12  ;;  %v9129_v12 = vld [vmem:[%s16078_s0 + $0x78] sm:$0xff] }
 0x30f   :  { %2021 = vst.msk [vmem:[#allocation2 + $0x20] sm:$0xff] %vm2016_vm5, %v1833_v13 }
 0x312   :  { %1902 = vrot.lane.b32.xlu1 %v9098_v25, %s9482_s29  ;;  %1900 = vrot.lane.b32.xlu0 %v9097_v21, %s9482_s29 }
 0x313   :  { %1904 = vrot.lane.b32.xlu2 %v9099_v22, %s9482_s29  ;;  %v9131_v22 = vld [vmem:[%s16078_s0 + $0x90] sm:$0xff] }
 0x314   :  { %v1562_v35 = vpop.permute.xlu1 %1561  ;;  %v1560_v30 = vpop.permute.xlu0 %1559 }
 0x315   :  { %1693 = vst.msk [vmem:[#allocation2 + $0x1e8] sm:$0xff] %vm1631_vm4, %v1562_v35  ;;  %v1839_v31 = vpop.permute.xlu2 %1838  ;;  %v9130_v35 = vld [vmem:[%s16078_s0 + $0x80] sm:$0xff] }
 0x316   :  { %1692 = vst.msk [vmem:[#allocation2 + $0x1e0] sm:$0xff] %vm1631_vm4, %v1560_v30  ;;  %v9132_v30 = vld [vmem:[%s16078_s0 + $0x98] sm:$0xff] }
 0x317   :  { %2024 = vst.msk [vmem:[#allocation2 + $0x38] sm:$0xff] %vm2016_vm5, %v1839_v31 }
 0x31a   :  { %1908 = vrot.lane.b32.xlu1 %v9101_v48, %s9482_s29  ;;  %1906 = vrot.lane.b32.xlu0 %v9100_v42, %s9482_s29 }
 0x31b   :  { %1910 = vrot.lane.b32.xlu2 %v9102_v5, %s9482_s29  ;;  %v9134_v5 = vld [vmem:[%s16078_s0 + $0xb0] sm:$0xff] }
 0x31c   :  { %v1825_v43 = vpop.permute.xlu1 %1824  ;;  %v1566_v63 = vpop.permute.xlu0 %1565 }
 0x31d   :  { %2017 = vst.msk [vmem:[#allocation2] sm:$0xff] %vm2016_vm5, %v1825_v43  ;;  %v1845_v56 = vpop.permute.xlu2 %1844  ;;  %v9133_v43 = vld [vmem:[%s16078_s0 + $0xa8] sm:$0xff] }
 0x31e   :  { %1695 = vst.msk [vmem:[#allocation2 + $0x1f8] sm:$0xff] %vm1631_vm4, %v1566_v63  ;;  %v9135_v63 = vld [vmem:[%s16078_s0 + $0xc0] sm:$0xff]  ;;  %vm5692_vm4 = vcmask 261312  }
 0x31f   :  { %2027 = vst.msk [vmem:[#allocation2 + $0x50] sm:$0xff] %vm2016_vm5, %v1845_v56 }
 0x322   :  { %1914 = vrot.lane.b32.xlu1 %v9104_v40, %s9482_s29  ;;  %1912 = vrot.lane.b32.xlu0 %v9103_v57, %s9482_s29 }
 0x323   :  { %1916 = vrot.lane.b32.xlu2 %v9105_v11, %s9482_s29  ;;  %v9137_v11 = vld [vmem:[%s16078_s0 + $0xd8] sm:$0xff] }
 0x324   :  { %v1831_v14 = vpop.permute.xlu1 %1830  ;;  %v1829_v8 = vpop.permute.xlu0 %1828 }
 0x325   :  { %2020 = vst.msk [vmem:[#allocation2 + $0x18] sm:$0xff] %vm2016_vm5, %v1831_v14  ;;  %v1851_v26 = vpop.permute.xlu2 %1850  ;;  %v9136_v14 = vld [vmem:[%s16078_s0 + $0xc8] sm:$0xff] }
 0x326   :  { %2019 = vst.msk [vmem:[#allocation2 + $0x10] sm:$0xff] %vm2016_vm5, %v1829_v8  ;;  %v9138_v8 = vld [vmem:[%s16078_s0 + $0xe0] sm:$0xff] }
 0x327   :  { %2030 = vst.msk [vmem:[#allocation2 + $0x68] sm:$0xff] %vm2016_vm5, %v1851_v26 }
 0x32a   :  { %1920 = vrot.lane.b32.xlu1 %v9107_v19, %s9482_s29  ;;  %1918 = vrot.lane.b32.xlu0 %v9106_v20, %s9482_s29 }
 0x32b   :  { %1922 = vrot.lane.b32.xlu2 %v9108_v41, %s9482_s29  ;;  %v9140_v41 = vld [vmem:[%s16078_s0 + $0xf8] sm:$0xff] }
 0x32c   :  { %v1837_v34 = vpop.permute.xlu1 %1836  ;;  %v1835_v36 = vpop.permute.xlu0 %1834 }
 0x32d   :  { %2023 = vst.msk [vmem:[#allocation2 + $0x30] sm:$0xff] %vm2016_vm5, %v1837_v34  ;;  %v1857_v0 = vpop.permute.xlu2 %1856  ;;  %v9139_v34 = vld [vmem:[%s16078_s0 + $0xf0] sm:$0xff] }
 0x32e   :  { %2022 = vst.msk [vmem:[#allocation2 + $0x28] sm:$0xff] %vm2016_vm5, %v1835_v36  ;;  %v9141_v36 = vld [vmem:[%s16078_s0 + $0x108] sm:$0xff] }
 0x32f   :  { %2033 = vst.msk [vmem:[#allocation2 + $0x80] sm:$0xff] %vm2016_vm5, %v1857_v0 }
 0x332   :  { %1926 = vrot.lane.b32.xlu1 %v9110_v54, %s9482_s29  ;;  %1924 = vrot.lane.b32.xlu0 %v9109_v55, %s9482_s29 }
 0x333   :  { %1928 = vrot.lane.b32.xlu2 %v9111_v17, %s9482_s29  ;;  %v9143_v17 = vld [vmem:[%s16078_s0 + $0x120] sm:$0xff] }
 0x334   :  { %v1843_v9 = vpop.permute.xlu1 %1842  ;;  %v1841_v10 = vpop.permute.xlu0 %1840 }
 0x335   :  { %2026 = vst.msk [vmem:[#allocation2 + $0x48] sm:$0xff] %vm2016_vm5, %v1843_v9  ;;  %v1863_v39 = vpop.permute.xlu2 %1862  ;;  %v9142_v9 = vld [vmem:[%s16078_s0 + $0x110] sm:$0xff] }
 0x336   :  { %2025 = vst.msk [vmem:[#allocation2 + $0x40] sm:$0xff] %vm2016_vm5, %v1841_v10  ;;  %v9144_v10 = vld [vmem:[%s16078_s0 + $0x128] sm:$0xff] }
 0x337   :  { %2036 = vst.msk [vmem:[#allocation2 + $0x98] sm:$0xff] %vm2016_vm5, %v1863_v39 }
 0x33a   :  { %1932 = vrot.lane.b32.xlu1 %v9113_v27, %s9482_s29  ;;  %1930 = vrot.lane.b32.xlu0 %v9112_v28, %s9482_s29 }
 0x33b   :  { %1934 = vrot.lane.b32.xlu2 %v9114_v2, %s9482_s29  ;;  %v9146_v2 = vld [vmem:[%s16078_s0 + $0x140] sm:$0xff] }
 0x33c   :  { %v1849_v50 = vpop.permute.xlu1 %1848  ;;  %v1847_v60 = vpop.permute.xlu0 %1846 }
 0x33d   :  { %2029 = vst.msk [vmem:[#allocation2 + $0x60] sm:$0xff] %vm2016_vm5, %v1849_v50  ;;  %v1869_v29 = vpop.permute.xlu2 %1868  ;;  %v9145_v50 = vld [vmem:[%s16078_s0 + $0x138] sm:$0xff] }
 0x33e   :  { %2028 = vst.msk [vmem:[#allocation2 + $0x58] sm:$0xff] %vm2016_vm5, %v1847_v60  ;;  %v9147_v60 = vld [vmem:[%s16078_s0 + $0x150] sm:$0xff] }
 0x33f   :  { %2039 = vst.msk [vmem:[#allocation2 + $0xb0] sm:$0xff] %vm2016_vm5, %v1869_v29 }
 0x342   :  { %1938 = vrot.lane.b32.xlu1 %v9116_v18, %s9482_s29  ;;  %1936 = vrot.lane.b32.xlu0 %v9115_v23, %s9482_s29 }
 0x343   :  { %1940 = vrot.lane.b32.xlu2 %v9117_v6, %s9482_s29  ;;  %v9149_v6 = vld [vmem:[%s16078_s0 + $0x168] sm:$0xff] }
 0x344   :  { %v1855_v49 = vpop.permute.xlu1 %1854  ;;  %v1853_v15 = vpop.permute.xlu0 %1852 }
 0x345   :  { %2032 = vst.msk [vmem:[#allocation2 + $0x78] sm:$0xff] %vm2016_vm5, %v1855_v49  ;;  %v1875_v61 = vpop.permute.xlu2 %1874  ;;  %v9148_v49 = vld [vmem:[%s16078_s0 + $0x158] sm:$0xff] }
 0x346   :  { %2031 = vst.msk [vmem:[#allocation2 + $0x70] sm:$0xff] %vm2016_vm5, %v1853_v15  ;;  %v9150_v15 = vld [vmem:[%s16078_s0 + $0x170] sm:$0xff] }
 0x347   :  { %2042 = vst.msk [vmem:[#allocation2 + $0xc8] sm:$0xff] %vm2016_vm5, %v1875_v61 }
 0x34a   :  { %1944 = vrot.lane.b32.xlu1 %v9119_v24, %s9482_s29  ;;  %1942 = vrot.lane.b32.xlu0 %v9118_v1, %s9482_s29 }
 0x34b   :  { %1946 = vrot.lane.b32.xlu2 %v9120_v46, %s9482_s29  ;;  %v9152_v46 = vld [vmem:[%s16078_s0 + $0x188] sm:$0xff] }
 0x34c   :  { %v1861_v32 = vpop.permute.xlu1 %1860  ;;  %v1859_v47 = vpop.permute.xlu0 %1858 }
 0x34d   :  { %2035 = vst.msk [vmem:[#allocation2 + $0x90] sm:$0xff] %vm2016_vm5, %v1861_v32  ;;  %v1881_v33 = vpop.permute.xlu2 %1880  ;;  %v9151_v32 = vld [vmem:[%s16078_s0 + $0x180] sm:$0xff] }
 0x34e   :  { %2034 = vst.msk [vmem:[#allocation2 + $0x88] sm:$0xff] %vm2016_vm5, %v1859_v47  ;;  %v9153_v47 = vld [vmem:[%s16078_s0 + $0x198] sm:$0xff] }
 0x34f   :  { %2045 = vst.msk [vmem:[#allocation2 + $0xe0] sm:$0xff] %vm2016_vm5, %v1881_v33 }
 0x352   :  { %1950 = vrot.lane.b32.xlu1 %v9122_v37, %s9482_s29  ;;  %1948 = vrot.lane.b32.xlu0 %v9121_v38, %s9482_s29 }
 0x353   :  { %2210 = vrot.lane.b32.xlu2 %v9123_v44, %s9483_s13  ;;  %v9155_v44 = vld [vmem:[%s16078_s0 + $0x1e0] sm:$0xff] }
 0x354   :  { %v1867_v45 = vpop.permute.xlu1 %1866  ;;  %v1865_v53 = vpop.permute.xlu0 %1864 }
 0x355   :  { %2038 = vst.msk [vmem:[#allocation2 + $0xa8] sm:$0xff] %vm2016_vm5, %v1867_v45  ;;  %v1887_v51 = vpop.permute.xlu2 %1886  ;;  %v9154_v45 = vld [vmem:[%s16078_s0 + $0x1a0] sm:$0xff] }
 0x356   :  { %2037 = vst.msk [vmem:[#allocation2 + $0xa0] sm:$0xff] %vm2016_vm5, %v1865_v53  ;;  %v9156_v53 = vld [vmem:[%s16078_s0 + $0x1e8] sm:$0xff] }
 0x357   :  { %2048 = vst.msk [vmem:[#allocation2 + $0xf8] sm:$0xff] %vm2016_vm5, %v1887_v51 }
 0x35a   :  { %2214 = vrot.lane.b32.xlu1 %v9125_v52, %s9483_s13  ;;  %2212 = vrot.lane.b32.xlu0 %v9124_v62, %s9483_s13 }
 0x35b   :  { %2216 = vrot.lane.b32.xlu2 %v9126_v58, %s9483_s13  ;;  %v9158_v58 = vld [vmem:[%s16078_s0 + $0x200] sm:$0xff] }
 0x35c   :  { %v1873_v59 = vpop.permute.xlu1 %1872  ;;  %v1871_v7 = vpop.permute.xlu0 %1870 }
 0x35d   :  { %2041 = vst.msk [vmem:[#allocation2 + $0xc0] sm:$0xff] %vm2016_vm5, %v1873_v59  ;;  %v1893_v3 = vpop.permute.xlu2 %1892  ;;  %v9157_v59 = vld [vmem:[%s16078_s0 + $0x1f8] sm:$0xff] }
 0x35e   :  { %2040 = vst.msk [vmem:[#allocation2 + $0xb8] sm:$0xff] %vm2016_vm5, %v1871_v7  ;;  %v9159_v7 = vld [vmem:[%s16078_s0 + $0x210] sm:$0xff] }
 0x35f   :  { %2051 = vst.msk [vmem:[#allocation2 + $0x110] sm:$0xff] %vm2016_vm5, %v1893_v3 }
 0x362   :  { %2220 = vrot.lane.b32.xlu1 %v9128_v4, %s9483_s13  ;;  %2218 = vrot.lane.b32.xlu0 %v9127_v16, %s9483_s13 }
 0x363   :  { %2222 = vrot.lane.b32.xlu2 %v9129_v12, %s9483_s13  ;;  %v9161_v12 = vld [vmem:[%s16078_s0 + $0x228] sm:$0xff] }
 0x364   :  { %v1879_v13 = vpop.permute.xlu1 %1878  ;;  %v1877_v25 = vpop.permute.xlu0 %1876 }
 0x365   :  { %2044 = vst.msk [vmem:[#allocation2 + $0xd8] sm:$0xff] %vm2016_vm5, %v1879_v13  ;;  %v1899_v21 = vpop.permute.xlu2 %1898  ;;  %v9160_v13 = vld [vmem:[%s16078_s0 + $0x218] sm:$0xff] }
 0x366   :  { %2043 = vst.msk [vmem:[#allocation2 + $0xd0] sm:$0xff] %vm2016_vm5, %v1877_v25  ;;  %v9162_v25 = vld [vmem:[%s16078_s0 + $0x230] sm:$0xff] }
 0x367   :  { %2054 = vst.msk [vmem:[#allocation2 + $0x128] sm:$0xff] %vm2016_vm5, %v1899_v21 }
 0x36a   :  { %2226 = vrot.lane.b32.xlu1 %v9131_v22, %s9483_s13  ;;  %2224 = vrot.lane.b32.xlu0 %v9130_v35, %s9483_s13 }
 0x36b   :  { %2228 = vrot.lane.b32.xlu2 %v9132_v30, %s9483_s13  ;;  %v9164_v30 = vld [vmem:[%s16078_s0 + $0x248] sm:$0xff] }
 0x36c   :  { %v1885_v31 = vpop.permute.xlu1 %1884  ;;  %v1883_v48 = vpop.permute.xlu0 %1882 }
 0x36d   :  { %2047 = vst.msk [vmem:[#allocation2 + $0xf0] sm:$0xff] %vm2016_vm5, %v1885_v31  ;;  %v1905_v42 = vpop.permute.xlu2 %1904  ;;  %v9163_v31 = vld [vmem:[%s16078_s0 + $0x240] sm:$0xff] }
 0x36e   :  { %2046 = vst.msk [vmem:[#allocation2 + $0xe8] sm:$0xff] %vm2016_vm5, %v1883_v48  ;;  %v9165_v48 = vld [vmem:[%s16078_s0 + $0x258] sm:$0xff] }
 0x36f   :  { %2057 = vst.msk [vmem:[#allocation2 + $0x140] sm:$0xff] %vm2016_vm5, %v1905_v42 }
 0x372   :  { %2232 = vrot.lane.b32.xlu1 %v9134_v5, %s9483_s13  ;;  %2230 = vrot.lane.b32.xlu0 %v9133_v43, %s9483_s13 }
 0x373   :  { %2234 = vrot.lane.b32.xlu2 %v9135_v63, %s9483_s13  ;;  %v9167_v63 = vld [vmem:[%s16078_s0 + $0x270] sm:$0xff] }
 0x374   :  { %v1891_v56 = vpop.permute.xlu1 %1890  ;;  %v1889_v40 = vpop.permute.xlu0 %1888 }
 0x375   :  { %2050 = vst.msk [vmem:[#allocation2 + $0x108] sm:$0xff] %vm2016_vm5, %v1891_v56  ;;  %v1911_v57 = vpop.permute.xlu2 %1910  ;;  %v9166_v56 = vld [vmem:[%s16078_s0 + $0x260] sm:$0xff] }
 0x376   :  { %2049 = vst.msk [vmem:[#allocation2 + $0x100] sm:$0xff] %vm2016_vm5, %v1889_v40  ;;  %v9168_v40 = vld [vmem:[%s16078_s0 + $0x278] sm:$0xff] }
 0x377   :  { %2060 = vst.msk [vmem:[#allocation2 + $0x158] sm:$0xff] %vm2016_vm5, %v1911_v57 }
 0x37a   :  { %2238 = vrot.lane.b32.xlu1 %v9137_v11, %s9483_s13  ;;  %2236 = vrot.lane.b32.xlu0 %v9136_v14, %s9483_s13 }
 0x37b   :  { %2240 = vrot.lane.b32.xlu2 %v9138_v8, %s9483_s13  ;;  %v9170_v8 = vld [vmem:[%s16078_s0 + $0x290] sm:$0xff] }
 0x37c   :  { %v1897_v26 = vpop.permute.xlu1 %1896  ;;  %v1895_v19 = vpop.permute.xlu0 %1894 }
 0x37d   :  { %2053 = vst.msk [vmem:[#allocation2 + $0x120] sm:$0xff] %vm2016_vm5, %v1897_v26  ;;  %v1917_v20 = vpop.permute.xlu2 %1916  ;;  %v9169_v26 = vld [vmem:[%s16078_s0 + $0x288] sm:$0xff] }
 0x37e   :  { %2052 = vst.msk [vmem:[#allocation2 + $0x118] sm:$0xff] %vm2016_vm5, %v1895_v19  ;;  %v9171_v19 = vld [vmem:[%s16078_s0 + $0x2a0] sm:$0xff] }
 0x37f   :  { %2063 = vst.msk [vmem:[#allocation2 + $0x170] sm:$0xff] %vm2016_vm5, %v1917_v20 }
 0x382   :  { %2244 = vrot.lane.b32.xlu1 %v9140_v41, %s9483_s13  ;;  %2242 = vrot.lane.b32.xlu0 %v9139_v34, %s9483_s13 }
 0x383   :  { %2246 = vrot.lane.b32.xlu2 %v9141_v36, %s9483_s13  ;;  %v9173_v36 = vld [vmem:[%s16078_s0 + $0x2b8] sm:$0xff] }
 0x384   :  { %v1903_v0 = vpop.permute.xlu1 %1902  ;;  %v1901_v54 = vpop.permute.xlu0 %1900 }
 0x385   :  { %2056 = vst.msk [vmem:[#allocation2 + $0x138] sm:$0xff] %vm2016_vm5, %v1903_v0  ;;  %v1923_v55 = vpop.permute.xlu2 %1922  ;;  %v9172_v0 = vld [vmem:[%s16078_s0 + $0x2a8] sm:$0xff] }
 0x386   :  { %2055 = vst.msk [vmem:[#allocation2 + $0x130] sm:$0xff] %vm2016_vm5, %v1901_v54  ;;  %v9174_v54 = vld [vmem:[%s16078_s0 + $0x2c0] sm:$0xff] }
 0x387   :  { %2066 = vst.msk [vmem:[#allocation2 + $0x188] sm:$0xff] %vm2016_vm5, %v1923_v55 }
 0x38a   :  { %2250 = vrot.lane.b32.xlu1 %v9143_v17, %s9483_s13  ;;  %2248 = vrot.lane.b32.xlu0 %v9142_v9, %s9483_s13 }
 0x38b   :  { %2252 = vrot.lane.b32.xlu2 %v9144_v10, %s9483_s13  ;;  %v9176_v10 = vld [vmem:[%s16078_s0 + $0x2d8] sm:$0xff] }
 0x38c   :  { %v1909_v39 = vpop.permute.xlu1 %1908  ;;  %v1907_v27 = vpop.permute.xlu0 %1906 }
 0x38d   :  { %2059 = vst.msk [vmem:[#allocation2 + $0x150] sm:$0xff] %vm2016_vm5, %v1909_v39  ;;  %v1929_v28 = vpop.permute.xlu2 %1928  ;;  %v9175_v39 = vld [vmem:[%s16078_s0 + $0x2d0] sm:$0xff] }
 0x38e   :  { %2058 = vst.msk [vmem:[#allocation2 + $0x148] sm:$0xff] %vm2016_vm5, %v1907_v27  ;;  %v9177_v27 = vld [vmem:[%s16078_s0 + $0x2e8] sm:$0xff] }
 0x38f   :  { %2069 = vst.msk [vmem:[#allocation2 + $0x1a0] sm:$0xff] %vm2016_vm5, %v1929_v28 }
 0x392   :  { %2256 = vrot.lane.b32.xlu1 %v9146_v2, %s9483_s13  ;;  %2254 = vrot.lane.b32.xlu0 %v9145_v50, %s9483_s13 }
 0x393   :  { %2258 = vrot.lane.b32.xlu2 %v9147_v60, %s9483_s13  ;;  %v9179_v60 = vld [vmem:[%s16078_s0 + $0x300] sm:$0xff] }
 0x394   :  { %v1915_v29 = vpop.permute.xlu1 %1914  ;;  %v1913_v18 = vpop.permute.xlu0 %1912 }
 0x395   :  { %2062 = vst.msk [vmem:[#allocation2 + $0x168] sm:$0xff] %vm2016_vm5, %v1915_v29  ;;  %v1935_v23 = vpop.permute.xlu2 %1934  ;;  %v9178_v29 = vld [vmem:[%s16078_s0 + $0x2f0] sm:$0xff] }
 0x396   :  { %2061 = vst.msk [vmem:[#allocation2 + $0x160] sm:$0xff] %vm2016_vm5, %v1913_v18  ;;  %v9180_v18 = vld [vmem:[%s16078_s0 + $0x308] sm:$0xff] }
 0x397   :  { %2072 = vst.msk [vmem:[#allocation2 + $0x1b8] sm:$0xff] %vm2016_vm5, %v1935_v23 }
 0x39a   :  { %2262 = vrot.lane.b32.xlu1 %v9149_v6, %s9483_s13  ;;  %2260 = vrot.lane.b32.xlu0 %v9148_v49, %s9483_s13 }
 0x39b   :  { %2264 = vrot.lane.b32.xlu2 %v9150_v15, %s9483_s13  ;;  %v9182_v15 = vld [vmem:[%s16078_s0 + $0x320] sm:$0xff] }
 0x39c   :  { %v1921_v61 = vpop.permute.xlu1 %1920  ;;  %v1919_v24 = vpop.permute.xlu0 %1918 }
 0x39d   :  { %2065 = vst.msk [vmem:[#allocation2 + $0x180] sm:$0xff] %vm2016_vm5, %v1921_v61  ;;  %v1941_v1 = vpop.permute.xlu2 %1940  ;;  %v9181_v61 = vld [vmem:[%s16078_s0 + $0x318] sm:$0xff] }
 0x39e   :  { %2064 = vst.msk [vmem:[#allocation2 + $0x178] sm:$0xff] %vm2016_vm5, %v1919_v24  ;;  %v9183_v24 = vld [vmem:[%s16078_s0 + $0x330] sm:$0xff] }
 0x39f   :  { %2075 = vst.msk [vmem:[#allocation2 + $0x1d0] sm:$0xff] %vm2016_vm5, %v1941_v1 }
 0x3a2   :  { %2268 = vrot.lane.b32.xlu1 %v9152_v46, %s9483_s13  ;;  %2266 = vrot.lane.b32.xlu0 %v9151_v32, %s9483_s13 }
 0x3a3   :  { %2270 = vrot.lane.b32.xlu2 %v9153_v47, %s9483_s13  ;;  %v9185_v47 = vld [vmem:[%s16078_s0 + $0x348] sm:$0xff] }
 0x3a4   :  { %v1927_v33 = vpop.permute.xlu1 %1926  ;;  %v1925_v37 = vpop.permute.xlu0 %1924 }
 0x3a5   :  { %2068 = vst.msk [vmem:[#allocation2 + $0x198] sm:$0xff] %vm2016_vm5, %v1927_v33  ;;  %v1947_v38 = vpop.permute.xlu2 %1946  ;;  %v9184_v33 = vld [vmem:[%s16078_s0 + $0x338] sm:$0xff] }
 0x3a6   :  { %2067 = vst.msk [vmem:[#allocation2 + $0x190] sm:$0xff] %vm2016_vm5, %v1925_v37  ;;  %v9186_v37 = vld [vmem:[%s16078_s0 + $0x350] sm:$0xff] }
 0x3a7   :  { %2078 = vst.msk [vmem:[#allocation2 + $0x1e8] sm:$0xff] %vm2016_vm5, %v1947_v38 }
 0x3aa   :  { %2274 = vrot.lane.b32.xlu1 %v9155_v44, %s9483_s13  ;;  %2272 = vrot.lane.b32.xlu0 %v9154_v45, %s9483_s13 }
 0x3ab   :  { %2276 = vrot.lane.b32.xlu2 %v9156_v53, %s9483_s13  ;;  %v9188_v53 = vld [vmem:[%s16078_s0 + $0x39] sm:$0xff] }
 0x3ac   :  { %v1933_v51 = vpop.permute.xlu1 %1932  ;;  %v1931_v52 = vpop.permute.xlu0 %1930 }
 0x3ad   :  { %2071 = vst.msk [vmem:[#allocation2 + $0x1b0] sm:$0xff] %vm2016_vm5, %v1933_v51  ;;  %v2211_v62 = vpop.permute.xlu2 %2210  ;;  %v9187_v51 = vld [vmem:[%s16078_s0 + $0x31] sm:$0xff] }
 0x3ae   :  { %2070 = vst.msk [vmem:[#allocation2 + $0x1a8] sm:$0xff] %vm2016_vm5, %v1931_v52  ;;  %v9189_v52 = vld [vmem:[%s16078_s0 + $0x49] sm:$0xff] }
 0x3af   :  { %2403 = vst.msk [vmem:[#allocation2] sm:$0xff] %vm2402_vm6, %v2211_v62 }
 0x3b2   :  { %2280 = vrot.lane.b32.xlu1 %v9158_v58, %s9483_s13  ;;  %2278 = vrot.lane.b32.xlu0 %v9157_v59, %s9483_s13 }
 0x3b3   :  { %2282 = vrot.lane.b32.xlu2 %v9159_v7, %s9483_s13  ;;  %v9191_v7 = vld [vmem:[%s16078_s0 + $0x61] sm:$0xff] }
 0x3b4   :  { %v1939_v3 = vpop.permute.xlu1 %1938  ;;  %v1937_v4 = vpop.permute.xlu0 %1936 }
 0x3b5   :  { %2074 = vst.msk [vmem:[#allocation2 + $0x1c8] sm:$0xff] %vm2016_vm5, %v1939_v3  ;;  %v2217_v16 = vpop.permute.xlu2 %2216  ;;  %v9190_v3 = vld [vmem:[%s16078_s0 + $0x51] sm:$0xff] }
 0x3b6   :  { %2073 = vst.msk [vmem:[#allocation2 + $0x1c0] sm:$0xff] %vm2016_vm5, %v1937_v4  ;;  %v9192_v4 = vld [vmem:[%s16078_s0 + $0x69] sm:$0xff] }
 0x3b7   :  { %2406 = vst.msk [vmem:[#allocation2 + $0x18] sm:$0xff] %vm2402_vm6, %v2217_v16 }
 0x3ba   :  { %2286 = vrot.lane.b32.xlu1 %v9161_v12, %s9483_s13  ;;  %2284 = vrot.lane.b32.xlu0 %v9160_v13, %s9483_s13 }
 0x3bb   :  { %2288 = vrot.lane.b32.xlu2 %v9162_v25, %s9483_s13  ;;  %v9194_v25 = vld [vmem:[%s16078_s0 + $0x81] sm:$0xff] }
 0x3bc   :  { %v1945_v21 = vpop.permute.xlu1 %1944  ;;  %v1943_v22 = vpop.permute.xlu0 %1942 }
 0x3bd   :  { %2077 = vst.msk [vmem:[#allocation2 + $0x1e0] sm:$0xff] %vm2016_vm5, %v1945_v21  ;;  %v2223_v35 = vpop.permute.xlu2 %2222  ;;  %v9193_v21 = vld [vmem:[%s16078_s0 + $0x79] sm:$0xff] }
 0x3be   :  { %2076 = vst.msk [vmem:[#allocation2 + $0x1d8] sm:$0xff] %vm2016_vm5, %v1943_v22  ;;  %v9195_v22 = vld [vmem:[%s16078_s0 + $0x91] sm:$0xff] }
 0x3bf   :  { %2409 = vst.msk [vmem:[#allocation2 + $0x30] sm:$0xff] %vm2402_vm6, %v2223_v35 }
 0x3c2   :  { %2292 = vrot.lane.b32.xlu1 %v9164_v30, %s9483_s13  ;;  %2290 = vrot.lane.b32.xlu0 %v9163_v31, %s9483_s13 }
 0x3c3   :  { %2294 = vrot.lane.b32.xlu2 %v9165_v48, %s9483_s13  ;;  %v9197_v48 = vld [vmem:[%s16078_s0 + $0xa9] sm:$0xff] }
 0x3c4   :  { %v1951_v42 = vpop.permute.xlu1 %1950  ;;  %v1949_v5 = vpop.permute.xlu0 %1948 }
 0x3c5   :  { %2080 = vst.msk [vmem:[#allocation2 + $0x1f8] sm:$0xff] %vm2016_vm5, %v1951_v42  ;;  %v2229_v43 = vpop.permute.xlu2 %2228  ;;  %v9196_v42 = vld [vmem:[%s16078_s0 + $0x99] sm:$0xff] }
 0x3c6   :  { %2079 = vst.msk [vmem:[#allocation2 + $0x1f0] sm:$0xff] %vm2016_vm5, %v1949_v5  ;;  %v9198_v5 = vld [vmem:[%s16078_s0 + $0xb1] sm:$0xff]  ;;  %vm6077_vm5 = vcmask 326912  }
 0x3c7   :  { %2412 = vst.msk [vmem:[#allocation2 + $0x48] sm:$0xff] %vm2402_vm6, %v2229_v43 }
 0x3ca   :  { %2298 = vrot.lane.b32.xlu1 %v9167_v63, %s9483_s13  ;;  %2296 = vrot.lane.b32.xlu0 %v9166_v56, %s9483_s13 }
 0x3cb   :  { %2300 = vrot.lane.b32.xlu2 %v9168_v40, %s9483_s13  ;;  %v9200_v40 = vld [vmem:[%s16078_s0 + $0xc9] sm:$0xff] }
 0x3cc   :  { %v2215_v57 = vpop.permute.xlu1 %2214  ;;  %v2213_v11 = vpop.permute.xlu0 %2212 }
 0x3cd   :  { %2405 = vst.msk [vmem:[#allocation2 + $0x10] sm:$0xff] %vm2402_vm6, %v2215_v57  ;;  %v2235_v14 = vpop.permute.xlu2 %2234  ;;  %v9199_v57 = vld [vmem:[%s16078_s0 + $0xc1] sm:$0xff] }
 0x3ce   :  { %2404 = vst.msk [vmem:[#allocation2 + $0x8] sm:$0xff] %vm2402_vm6, %v2213_v11  ;;  %v9201_v11 = vld [vmem:[%s16078_s0 + $0xd9] sm:$0xff] }
 0x3cf   :  { %2415 = vst.msk [vmem:[#allocation2 + $0x60] sm:$0xff] %vm2402_vm6, %v2235_v14 }
 0x3d2   :  { %2304 = vrot.lane.b32.xlu1 %v9170_v8, %s9483_s13  ;;  %2302 = vrot.lane.b32.xlu0 %v9169_v26, %s9483_s13 }
 0x3d3   :  { %2306 = vrot.lane.b32.xlu2 %v9171_v19, %s9483_s13  ;;  %v9203_v19 = vld [vmem:[%s16078_s0 + $0xf1] sm:$0xff] }
 0x3d4   :  { %v2221_v20 = vpop.permute.xlu1 %2220  ;;  %v2219_v41 = vpop.permute.xlu0 %2218 }
 0x3d5   :  { %2408 = vst.msk [vmem:[#allocation2 + $0x28] sm:$0xff] %vm2402_vm6, %v2221_v20  ;;  %v2241_v34 = vpop.permute.xlu2 %2240  ;;  %v9202_v20 = vld [vmem:[%s16078_s0 + $0xe1] sm:$0xff] }
 0x3d6   :  { %2407 = vst.msk [vmem:[#allocation2 + $0x20] sm:$0xff] %vm2402_vm6, %v2219_v41  ;;  %v9204_v41 = vld [vmem:[%s16078_s0 + $0xf9] sm:$0xff] }
 0x3d7   :  { %2418 = vst.msk [vmem:[#allocation2 + $0x78] sm:$0xff] %vm2402_vm6, %v2241_v34 }
 0x3da   :  { %2310 = vrot.lane.b32.xlu1 %v9173_v36, %s9483_s13  ;;  %2308 = vrot.lane.b32.xlu0 %v9172_v0, %s9483_s13 }
 0x3db   :  { %2312 = vrot.lane.b32.xlu2 %v9174_v54, %s9483_s13  ;;  %v9206_v54 = vld [vmem:[%s16078_s0 + $0x111] sm:$0xff] }
 0x3dc   :  { %v2227_v55 = vpop.permute.xlu1 %2226  ;;  %v2225_v17 = vpop.permute.xlu0 %2224 }
 0x3dd   :  { %2411 = vst.msk [vmem:[#allocation2 + $0x40] sm:$0xff] %vm2402_vm6, %v2227_v55  ;;  %v2247_v9 = vpop.permute.xlu2 %2246  ;;  %v9205_v55 = vld [vmem:[%s16078_s0 + $0x109] sm:$0xff] }
 0x3de   :  { %2410 = vst.msk [vmem:[#allocation2 + $0x38] sm:$0xff] %vm2402_vm6, %v2225_v17  ;;  %v9207_v17 = vld [vmem:[%s16078_s0 + $0x121] sm:$0xff] }
 0x3df   :  { %2421 = vst.msk [vmem:[#allocation2 + $0x90] sm:$0xff] %vm2402_vm6, %v2247_v9 }
 0x3e2   :  { %2316 = vrot.lane.b32.xlu1 %v9176_v10, %s9483_s13  ;;  %2314 = vrot.lane.b32.xlu0 %v9175_v39, %s9483_s13 }
 0x3e3   :  { %2318 = vrot.lane.b32.xlu2 %v9177_v27, %s9483_s13  ;;  %v9209_v27 = vld [vmem:[%s16078_s0 + $0x139] sm:$0xff] }
 0x3e4   :  { %v2233_v28 = vpop.permute.xlu1 %2232  ;;  %v2231_v2 = vpop.permute.xlu0 %2230 }
 0x3e5   :  { %2414 = vst.msk [vmem:[#allocation2 + $0x58] sm:$0xff] %vm2402_vm6, %v2233_v28  ;;  %v2253_v50 = vpop.permute.xlu2 %2252  ;;  %v9208_v28 = vld [vmem:[%s16078_s0 + $0x129] sm:$0xff] }
 0x3e6   :  { %2413 = vst.msk [vmem:[#allocation2 + $0x50] sm:$0xff] %vm2402_vm6, %v2231_v2  ;;  %v9210_v2 = vld [vmem:[%s16078_s0 + $0x141] sm:$0xff] }
 0x3e7   :  { %2424 = vst.msk [vmem:[#allocation2 + $0xa8] sm:$0xff] %vm2402_vm6, %v2253_v50 }
 0x3ea   :  { %2322 = vrot.lane.b32.xlu1 %v9179_v60, %s9483_s13  ;;  %2320 = vrot.lane.b32.xlu0 %v9178_v29, %s9483_s13 }
 0x3eb   :  { %2324 = vrot.lane.b32.xlu2 %v9180_v18, %s9483_s13  ;;  %v9212_v18 = vld [vmem:[%s16078_s0 + $0x159] sm:$0xff] }
 0x3ec   :  { %v2239_v23 = vpop.permute.xlu1 %2238  ;;  %v2237_v6 = vpop.permute.xlu0 %2236 }
 0x3ed   :  { %2417 = vst.msk [vmem:[#allocation2 + $0x70] sm:$0xff] %vm2402_vm6, %v2239_v23  ;;  %v2259_v49 = vpop.permute.xlu2 %2258  ;;  %v9211_v23 = vld [vmem:[%s16078_s0 + $0x151] sm:$0xff] }
 0x3ee   :  { %2416 = vst.msk [vmem:[#allocation2 + $0x68] sm:$0xff] %vm2402_vm6, %v2237_v6  ;;  %v9213_v6 = vld [vmem:[%s16078_s0 + $0x169] sm:$0xff] }
 0x3ef   :  { %2427 = vst.msk [vmem:[#allocation2 + $0xc0] sm:$0xff] %vm2402_vm6, %v2259_v49 }
 0x3f2   :  { %2328 = vrot.lane.b32.xlu1 %v9182_v15, %s9483_s13  ;;  %2326 = vrot.lane.b32.xlu0 %v9181_v61, %s9483_s13 }
 0x3f3   :  { %2330 = vrot.lane.b32.xlu2 %v9183_v24, %s9483_s13  ;;  %v9215_v24 = vld [vmem:[%s16078_s0 + $0x181] sm:$0xff] }
 0x3f4   :  { %v2245_v1 = vpop.permute.xlu1 %2244  ;;  %v2243_v46 = vpop.permute.xlu0 %2242 }
 0x3f5   :  { %2420 = vst.msk [vmem:[#allocation2 + $0x88] sm:$0xff] %vm2402_vm6, %v2245_v1  ;;  %v2265_v32 = vpop.permute.xlu2 %2264  ;;  %v9214_v1 = vld [vmem:[%s16078_s0 + $0x171] sm:$0xff] }
 0x3f6   :  { %2419 = vst.msk [vmem:[#allocation2 + $0x80] sm:$0xff] %vm2402_vm6, %v2243_v46  ;;  %v9216_v46 = vld [vmem:[%s16078_s0 + $0x189] sm:$0xff] }
 0x3f7   :  { %2430 = vst.msk [vmem:[#allocation2 + $0xd8] sm:$0xff] %vm2402_vm6, %v2265_v32 }
 0x3fa   :  { %2334 = vrot.lane.b32.xlu1 %v9185_v47, %s9483_s13  ;;  %2332 = vrot.lane.b32.xlu0 %v9184_v33, %s9483_s13 }
 0x3fb   :  { %2336 = vrot.lane.b32.xlu2 %v9186_v37, %s9483_s13  ;;  %v9218_v37 = vld [vmem:[%s16078_s0 + $0x1a1] sm:$0xff] }
 0x3fc   :  { %v2251_v38 = vpop.permute.xlu1 %2250  ;;  %v2249_v44 = vpop.permute.xlu0 %2248 }
 0x3fd   :  { %2423 = vst.msk [vmem:[#allocation2 + $0xa0] sm:$0xff] %vm2402_vm6, %v2251_v38  ;;  %v2271_v45 = vpop.permute.xlu2 %2270  ;;  %v9217_v38 = vld [vmem:[%s16078_s0 + $0x199] sm:$0xff] }
 0x3fe   :  { %2422 = vst.msk [vmem:[#allocation2 + $0x98] sm:$0xff] %vm2402_vm6, %v2249_v44  ;;  %v9219_v44 = vld [vmem:[%s16078_s0 + $0x1e1] sm:$0xff] }
 0x3ff   :  { %2433 = vst.msk [vmem:[#allocation2 + $0xf0] sm:$0xff] %vm2402_vm6, %v2271_v45 }
 0x402   :  { %2597 = vrot.lane.b32.xlu1 %v9188_v53, %s9484_s25  ;;  %2595 = vrot.lane.b32.xlu0 %v9187_v51, %s9484_s25 }
 0x403   :  { %2599 = vrot.lane.b32.xlu2 %v9189_v52, %s9484_s25  ;;  %v9221_v52 = vld [vmem:[%s16078_s0 + $0x1f9] sm:$0xff] }
 0x404   :  { %v2257_v62 = vpop.permute.xlu1 %2256  ;;  %v2255_v58 = vpop.permute.xlu0 %2254 }
 0x405   :  { %2426 = vst.msk [vmem:[#allocation2 + $0xb8] sm:$0xff] %vm2402_vm6, %v2257_v62  ;;  %v2277_v59 = vpop.permute.xlu2 %2276  ;;  %v9220_v62 = vld [vmem:[%s16078_s0 + $0x1e9] sm:$0xff] }
 0x406   :  { %2425 = vst.msk [vmem:[#allocation2 + $0xb0] sm:$0xff] %vm2402_vm6, %v2255_v58  ;;  %v9222_v58 = vld [vmem:[%s16078_s0 + $0x201] sm:$0xff] }
 0x407   :  { %2436 = vst.msk [vmem:[#allocation2 + $0x108] sm:$0xff] %vm2402_vm6, %v2277_v59 }
 0x40a   :  { %2603 = vrot.lane.b32.xlu1 %v9191_v7, %s9484_s25  ;;  %2601 = vrot.lane.b32.xlu0 %v9190_v3, %s9484_s25 }
 0x40b   :  { %2605 = vrot.lane.b32.xlu2 %v9192_v4, %s9484_s25  ;;  %v9224_v4 = vld [vmem:[%s16078_s0 + $0x219] sm:$0xff] }
 0x40c   :  { %v2263_v16 = vpop.permute.xlu1 %2262  ;;  %v2261_v12 = vpop.permute.xlu0 %2260 }
 0x40d   :  { %2429 = vst.msk [vmem:[#allocation2 + $0xd0] sm:$0xff] %vm2402_vm6, %v2263_v16  ;;  %v2283_v13 = vpop.permute.xlu2 %2282  ;;  %v9223_v16 = vld [vmem:[%s16078_s0 + $0x211] sm:$0xff] }
 0x40e   :  { %2428 = vst.msk [vmem:[#allocation2 + $0xc8] sm:$0xff] %vm2402_vm6, %v2261_v12  ;;  %v9225_v12 = vld [vmem:[%s16078_s0 + $0x229] sm:$0xff] }
 0x40f   :  { %2439 = vst.msk [vmem:[#allocation2 + $0x120] sm:$0xff] %vm2402_vm6, %v2283_v13 }
 0x412   :  { %2609 = vrot.lane.b32.xlu1 %v9194_v25, %s9484_s25  ;;  %2607 = vrot.lane.b32.xlu0 %v9193_v21, %s9484_s25 }
 0x413   :  { %2611 = vrot.lane.b32.xlu2 %v9195_v22, %s9484_s25  ;;  %v9227_v22 = vld [vmem:[%s16078_s0 + $0x241] sm:$0xff] }
 0x414   :  { %v2269_v35 = vpop.permute.xlu1 %2268  ;;  %v2267_v30 = vpop.permute.xlu0 %2266 }
 0x415   :  { %2432 = vst.msk [vmem:[#allocation2 + $0xe8] sm:$0xff] %vm2402_vm6, %v2269_v35  ;;  %v2289_v31 = vpop.permute.xlu2 %2288  ;;  %v9226_v35 = vld [vmem:[%s16078_s0 + $0x231] sm:$0xff] }
 0x416   :  { %2431 = vst.msk [vmem:[#allocation2 + $0xe0] sm:$0xff] %vm2402_vm6, %v2267_v30  ;;  %v9228_v30 = vld [vmem:[%s16078_s0 + $0x249] sm:$0xff] }
 0x417   :  { %2442 = vst.msk [vmem:[#allocation2 + $0x138] sm:$0xff] %vm2402_vm6, %v2289_v31 }
 0x41a   :  { %2615 = vrot.lane.b32.xlu1 %v9197_v48, %s9484_s25  ;;  %2613 = vrot.lane.b32.xlu0 %v9196_v42, %s9484_s25 }
 0x41b   :  { %2617 = vrot.lane.b32.xlu2 %v9198_v5, %s9484_s25  ;;  %v9230_v5 = vld [vmem:[%s16078_s0 + $0x261] sm:$0xff] }
 0x41c   :  { %v2275_v43 = vpop.permute.xlu1 %2274  ;;  %v2273_v63 = vpop.permute.xlu0 %2272 }
 0x41d   :  { %2435 = vst.msk [vmem:[#allocation2 + $0x100] sm:$0xff] %vm2402_vm6, %v2275_v43  ;;  %v2295_v56 = vpop.permute.xlu2 %2294  ;;  %v9229_v43 = vld [vmem:[%s16078_s0 + $0x259] sm:$0xff] }
 0x41e   :  { %2434 = vst.msk [vmem:[#allocation2 + $0xf8] sm:$0xff] %vm2402_vm6, %v2273_v63  ;;  %v9231_v63 = vld [vmem:[%s16078_s0 + $0x271] sm:$0xff] }
 0x41f   :  { %2445 = vst.msk [vmem:[#allocation2 + $0x150] sm:$0xff] %vm2402_vm6, %v2295_v56 }
 0x422   :  { %2621 = vrot.lane.b32.xlu1 %v9200_v40, %s9484_s25  ;;  %2619 = vrot.lane.b32.xlu0 %v9199_v57, %s9484_s25 }
 0x423   :  { %2623 = vrot.lane.b32.xlu2 %v9201_v11, %s9484_s25  ;;  %v9233_v11 = vld [vmem:[%s16078_s0 + $0x289] sm:$0xff] }
 0x424   :  { %v2281_v14 = vpop.permute.xlu1 %2280  ;;  %v2279_v8 = vpop.permute.xlu0 %2278 }
 0x425   :  { %2438 = vst.msk [vmem:[#allocation2 + $0x118] sm:$0xff] %vm2402_vm6, %v2281_v14  ;;  %v2301_v26 = vpop.permute.xlu2 %2300  ;;  %v9232_v14 = vld [vmem:[%s16078_s0 + $0x279] sm:$0xff] }
 0x426   :  { %2437 = vst.msk [vmem:[#allocation2 + $0x110] sm:$0xff] %vm2402_vm6, %v2279_v8  ;;  %v9234_v8 = vld [vmem:[%s16078_s0 + $0x291] sm:$0xff] }
 0x427   :  { %2448 = vst.msk [vmem:[#allocation2 + $0x168] sm:$0xff] %vm2402_vm6, %v2301_v26 }
 0x42a   :  { %2627 = vrot.lane.b32.xlu1 %v9203_v19, %s9484_s25  ;;  %2625 = vrot.lane.b32.xlu0 %v9202_v20, %s9484_s25 }
 0x42b   :  { %2629 = vrot.lane.b32.xlu2 %v9204_v41, %s9484_s25  ;;  %v9236_v41 = vld [vmem:[%s16078_s0 + $0x2a9] sm:$0xff] }
 0x42c   :  { %v2287_v34 = vpop.permute.xlu1 %2286  ;;  %v2285_v36 = vpop.permute.xlu0 %2284 }
 0x42d   :  { %2441 = vst.msk [vmem:[#allocation2 + $0x130] sm:$0xff] %vm2402_vm6, %v2287_v34  ;;  %v2307_v0 = vpop.permute.xlu2 %2306  ;;  %v9235_v34 = vld [vmem:[%s16078_s0 + $0x2a1] sm:$0xff] }
 0x42e   :  { %2440 = vst.msk [vmem:[#allocation2 + $0x128] sm:$0xff] %vm2402_vm6, %v2285_v36  ;;  %v9237_v36 = vld [vmem:[%s16078_s0 + $0x2b9] sm:$0xff] }
 0x42f   :  { %2451 = vst.msk [vmem:[#allocation2 + $0x180] sm:$0xff] %vm2402_vm6, %v2307_v0 }
 0x432   :  { %2633 = vrot.lane.b32.xlu1 %v9206_v54, %s9484_s25  ;;  %2631 = vrot.lane.b32.xlu0 %v9205_v55, %s9484_s25 }
 0x433   :  { %2635 = vrot.lane.b32.xlu2 %v9207_v17, %s9484_s25  ;;  %v9239_v17 = vld [vmem:[%s16078_s0 + $0x2d1] sm:$0xff] }
 0x434   :  { %v2293_v9 = vpop.permute.xlu1 %2292  ;;  %v2291_v10 = vpop.permute.xlu0 %2290 }
 0x435   :  { %2444 = vst.msk [vmem:[#allocation2 + $0x148] sm:$0xff] %vm2402_vm6, %v2293_v9  ;;  %v2313_v39 = vpop.permute.xlu2 %2312  ;;  %v9238_v9 = vld [vmem:[%s16078_s0 + $0x2c1] sm:$0xff] }
 0x436   :  { %2443 = vst.msk [vmem:[#allocation2 + $0x140] sm:$0xff] %vm2402_vm6, %v2291_v10  ;;  %v9240_v10 = vld [vmem:[%s16078_s0 + $0x2d9] sm:$0xff] }
 0x437   :  { %2454 = vst.msk [vmem:[#allocation2 + $0x198] sm:$0xff] %vm2402_vm6, %v2313_v39 }
 0x43a   :  { %2639 = vrot.lane.b32.xlu1 %v9209_v27, %s9484_s25  ;;  %2637 = vrot.lane.b32.xlu0 %v9208_v28, %s9484_s25 }
 0x43b   :  { %2641 = vrot.lane.b32.xlu2 %v9210_v2, %s9484_s25  ;;  %v9242_v2 = vld [vmem:[%s16078_s0 + $0x2f1] sm:$0xff] }
 0x43c   :  { %v2299_v50 = vpop.permute.xlu1 %2298  ;;  %v2297_v60 = vpop.permute.xlu0 %2296 }
 0x43d   :  { %2447 = vst.msk [vmem:[#allocation2 + $0x160] sm:$0xff] %vm2402_vm6, %v2299_v50  ;;  %v2319_v29 = vpop.permute.xlu2 %2318  ;;  %v9241_v50 = vld [vmem:[%s16078_s0 + $0x2e9] sm:$0xff] }
 0x43e   :  { %2446 = vst.msk [vmem:[#allocation2 + $0x158] sm:$0xff] %vm2402_vm6, %v2297_v60  ;;  %v9243_v60 = vld [vmem:[%s16078_s0 + $0x301] sm:$0xff] }
 0x43f   :  { %2457 = vst.msk [vmem:[#allocation2 + $0x1b0] sm:$0xff] %vm2402_vm6, %v2319_v29 }
 0x442   :  { %2645 = vrot.lane.b32.xlu1 %v9212_v18, %s9484_s25  ;;  %2643 = vrot.lane.b32.xlu0 %v9211_v23, %s9484_s25 }
 0x443   :  { %2647 = vrot.lane.b32.xlu2 %v9213_v6, %s9484_s25  ;;  %v9245_v6 = vld [vmem:[%s16078_s0 + $0x319] sm:$0xff] }
 0x444   :  { %v2305_v49 = vpop.permute.xlu1 %2304  ;;  %v2303_v15 = vpop.permute.xlu0 %2302 }
 0x445   :  { %2450 = vst.msk [vmem:[#allocation2 + $0x178] sm:$0xff] %vm2402_vm6, %v2305_v49  ;;  %v2325_v61 = vpop.permute.xlu2 %2324  ;;  %v9244_v49 = vld [vmem:[%s16078_s0 + $0x309] sm:$0xff] }
 0x446   :  { %2449 = vst.msk [vmem:[#allocation2 + $0x170] sm:$0xff] %vm2402_vm6, %v2303_v15  ;;  %v9246_v15 = vld [vmem:[%s16078_s0 + $0x321] sm:$0xff] }
 0x447   :  { %2460 = vst.msk [vmem:[#allocation2 + $0x1c8] sm:$0xff] %vm2402_vm6, %v2325_v61 }
 0x44a   :  { %2651 = vrot.lane.b32.xlu1 %v9215_v24, %s9484_s25  ;;  %2649 = vrot.lane.b32.xlu0 %v9214_v1, %s9484_s25 }
 0x44b   :  { %2653 = vrot.lane.b32.xlu2 %v9216_v46, %s9484_s25  ;;  %v9248_v46 = vld [vmem:[%s16078_s0 + $0x339] sm:$0xff] }
 0x44c   :  { %v2311_v32 = vpop.permute.xlu1 %2310  ;;  %v2309_v47 = vpop.permute.xlu0 %2308 }
 0x44d   :  { %2453 = vst.msk [vmem:[#allocation2 + $0x190] sm:$0xff] %vm2402_vm6, %v2311_v32  ;;  %v2331_v33 = vpop.permute.xlu2 %2330  ;;  %v9247_v32 = vld [vmem:[%s16078_s0 + $0x331] sm:$0xff] }
 0x44e   :  { %2452 = vst.msk [vmem:[#allocation2 + $0x188] sm:$0xff] %vm2402_vm6, %v2309_v47  ;;  %v9249_v47 = vld [vmem:[%s16078_s0 + $0x349] sm:$0xff] }
 0x44f   :  { %2463 = vst.msk [vmem:[#allocation2 + $0x1e0] sm:$0xff] %vm2402_vm6, %v2331_v33 }
 0x452   :  { %2657 = vrot.lane.b32.xlu1 %v9218_v37, %s9484_s25  ;;  %2655 = vrot.lane.b32.xlu0 %v9217_v38, %s9484_s25 }
 0x453   :  { %2659 = vrot.lane.b32.xlu2 %v9219_v44, %s9484_s25  ;;  %v9251_v44 = vld [vmem:[%s16078_s0 + $0x32] sm:$0xff] }
 0x454   :  { %v2317_v45 = vpop.permute.xlu1 %2316  ;;  %v2315_v53 = vpop.permute.xlu0 %2314 }
 0x455   :  { %2456 = vst.msk [vmem:[#allocation2 + $0x1a8] sm:$0xff] %vm2402_vm6, %v2317_v45  ;;  %v2337_v51 = vpop.permute.xlu2 %2336  ;;  %v9250_v45 = vld [vmem:[%s16078_s0 + $0x351] sm:$0xff] }
 0x456   :  { %2455 = vst.msk [vmem:[#allocation2 + $0x1a0] sm:$0xff] %vm2402_vm6, %v2315_v53  ;;  %v9252_v53 = vld [vmem:[%s16078_s0 + $0x3a] sm:$0xff] }
 0x457   :  { %2466 = vst.msk [vmem:[#allocation2 + $0x1f8] sm:$0xff] %vm2402_vm6, %v2337_v51 }
 0x45a   :  { %2663 = vrot.lane.b32.xlu1 %v9221_v52, %s9484_s25  ;;  %2661 = vrot.lane.b32.xlu0 %v9220_v62, %s9484_s25 }
 0x45b   :  { %2665 = vrot.lane.b32.xlu2 %v9222_v58, %s9484_s25  ;;  %v9254_v58 = vld [vmem:[%s16078_s0 + $0x52] sm:$0xff] }
 0x45c   :  { %v2323_v59 = vpop.permute.xlu1 %2322  ;;  %v2321_v7 = vpop.permute.xlu0 %2320 }
 0x45d   :  { %2459 = vst.msk [vmem:[#allocation2 + $0x1c0] sm:$0xff] %vm2402_vm6, %v2323_v59  ;;  %v2600_v3 = vpop.permute.xlu2 %2599  ;;  %v9253_v59 = vld [vmem:[%s16078_s0 + $0x4a] sm:$0xff] }
 0x45e   :  { %2458 = vst.msk [vmem:[#allocation2 + $0x1b8] sm:$0xff] %vm2402_vm6, %v2321_v7  ;;  %v9255_v7 = vld [vmem:[%s16078_s0 + $0x62] sm:$0xff] }
 0x45f   :  { %2790 = vst.msk [vmem:[#allocation2 + $0x10] sm:$0xff] %vm2787_vm7, %v2600_v3 }
 0x462   :  { %2669 = vrot.lane.b32.xlu1 %v9224_v4, %s9484_s25  ;;  %2667 = vrot.lane.b32.xlu0 %v9223_v16, %s9484_s25 }
 0x463   :  { %2671 = vrot.lane.b32.xlu2 %v9225_v12, %s9484_s25  ;;  %v9257_v12 = vld [vmem:[%s16078_s0 + $0x7a] sm:$0xff] }
 0x464   :  { %v2329_v13 = vpop.permute.xlu1 %2328  ;;  %v2327_v25 = vpop.permute.xlu0 %2326 }
 0x465   :  { %2462 = vst.msk [vmem:[#allocation2 + $0x1d8] sm:$0xff] %vm2402_vm6, %v2329_v13  ;;  %v2606_v21 = vpop.permute.xlu2 %2605  ;;  %v9256_v13 = vld [vmem:[%s16078_s0 + $0x6a] sm:$0xff] }
 0x466   :  { %2461 = vst.msk [vmem:[#allocation2 + $0x1d0] sm:$0xff] %vm2402_vm6, %v2327_v25  ;;  %v9258_v25 = vld [vmem:[%s16078_s0 + $0x82] sm:$0xff] }
 0x467   :  { %2793 = vst.msk [vmem:[#allocation2 + $0x28] sm:$0xff] %vm2787_vm7, %v2606_v21 }
 0x46a   :  { %2675 = vrot.lane.b32.xlu1 %v9227_v22, %s9484_s25  ;;  %2673 = vrot.lane.b32.xlu0 %v9226_v35, %s9484_s25 }
 0x46b   :  { %2677 = vrot.lane.b32.xlu2 %v9228_v30, %s9484_s25  ;;  %v9260_v30 = vld [vmem:[%s16078_s0 + $0x9a] sm:$0xff] }
 0x46c   :  { %v2335_v31 = vpop.permute.xlu1 %2334  ;;  %v2333_v48 = vpop.permute.xlu0 %2332 }
 0x46d   :  { %2465 = vst.msk [vmem:[#allocation2 + $0x1f0] sm:$0xff] %vm2402_vm6, %v2335_v31  ;;  %v2612_v42 = vpop.permute.xlu2 %2611  ;;  %v9259_v31 = vld [vmem:[%s16078_s0 + $0x92] sm:$0xff] }
 0x46e   :  { %2464 = vst.msk [vmem:[#allocation2 + $0x1e8] sm:$0xff] %vm2402_vm6, %v2333_v48  ;;  %v9261_v48 = vld [vmem:[%s16078_s0 + $0xaa] sm:$0xff]  ;;  %vm6462_vm6 = vcmask 392512  }
 0x46f   :  { %2796 = vst.msk [vmem:[#allocation2 + $0x40] sm:$0xff] %vm2787_vm7, %v2612_v42 }
 0x472   :  { %2681 = vrot.lane.b32.xlu1 %v9230_v5, %s9484_s25  ;;  %2679 = vrot.lane.b32.xlu0 %v9229_v43, %s9484_s25 }
 0x473   :  { %2683 = vrot.lane.b32.xlu2 %v9231_v63, %s9484_s25  ;;  %v9263_v63 = vld [vmem:[%s16078_s0 + $0xc2] sm:$0xff] }
 0x474   :  { %v2598_v56 = vpop.permute.xlu1 %2597  ;;  %v2596_v40 = vpop.permute.xlu0 %2595 }
 0x475   :  { %2789 = vst.msk [vmem:[#allocation2 + $0x8] sm:$0xff] %vm2787_vm7, %v2598_v56  ;;  %v2618_v57 = vpop.permute.xlu2 %2617  ;;  %v9262_v56 = vld [vmem:[%s16078_s0 + $0xb2] sm:$0xff] }
 0x476   :  { %2788 = vst.msk [vmem:[#allocation2] sm:$0xff] %vm2787_vm7, %v2596_v40  ;;  %v9264_v40 = vld [vmem:[%s16078_s0 + $0xca] sm:$0xff] }
 0x477   :  { %2799 = vst.msk [vmem:[#allocation2 + $0x58] sm:$0xff] %vm2787_vm7, %v2618_v57 }
 0x47a   :  { %2687 = vrot.lane.b32.xlu1 %v9233_v11, %s9484_s25  ;;  %2685 = vrot.lane.b32.xlu0 %v9232_v14, %s9484_s25 }
 0x47b   :  { %2689 = vrot.lane.b32.xlu2 %v9234_v8, %s9484_s25  ;;  %v9266_v8 = vld [vmem:[%s16078_s0 + $0xe2] sm:$0xff] }
 0x47c   :  { %v2604_v26 = vpop.permute.xlu1 %2603  ;;  %v2602_v19 = vpop.permute.xlu0 %2601 }
 0x47d   :  { %2792 = vst.msk [vmem:[#allocation2 + $0x20] sm:$0xff] %vm2787_vm7, %v2604_v26  ;;  %v2624_v20 = vpop.permute.xlu2 %2623  ;;  %v9265_v26 = vld [vmem:[%s16078_s0 + $0xda] sm:$0xff] }
 0x47e   :  { %2791 = vst.msk [vmem:[#allocation2 + $0x18] sm:$0xff] %vm2787_vm7, %v2602_v19  ;;  %v9267_v19 = vld [vmem:[%s16078_s0 + $0xf2] sm:$0xff] }
 0x47f   :  { %2802 = vst.msk [vmem:[#allocation2 + $0x70] sm:$0xff] %vm2787_vm7, %v2624_v20 }
 0x482   :  { %2693 = vrot.lane.b32.xlu1 %v9236_v41, %s9484_s25  ;;  %2691 = vrot.lane.b32.xlu0 %v9235_v34, %s9484_s25 }
 0x483   :  { %2695 = vrot.lane.b32.xlu2 %v9237_v36, %s9484_s25  ;;  %v9269_v36 = vld [vmem:[%s16078_s0 + $0x10a] sm:$0xff] }
 0x484   :  { %v2610_v0 = vpop.permute.xlu1 %2609  ;;  %v2608_v54 = vpop.permute.xlu0 %2607 }
 0x485   :  { %2795 = vst.msk [vmem:[#allocation2 + $0x38] sm:$0xff] %vm2787_vm7, %v2610_v0  ;;  %v2630_v55 = vpop.permute.xlu2 %2629  ;;  %v9268_v0 = vld [vmem:[%s16078_s0 + $0xfa] sm:$0xff] }
 0x486   :  { %2794 = vst.msk [vmem:[#allocation2 + $0x30] sm:$0xff] %vm2787_vm7, %v2608_v54  ;;  %v9270_v54 = vld [vmem:[%s16078_s0 + $0x112] sm:$0xff] }
 0x487   :  { %2805 = vst.msk [vmem:[#allocation2 + $0x88] sm:$0xff] %vm2787_vm7, %v2630_v55 }
 0x48a   :  { %2699 = vrot.lane.b32.xlu1 %v9239_v17, %s9484_s25  ;;  %2697 = vrot.lane.b32.xlu0 %v9238_v9, %s9484_s25 }
 0x48b   :  { %2701 = vrot.lane.b32.xlu2 %v9240_v10, %s9484_s25  ;;  %v9272_v10 = vld [vmem:[%s16078_s0 + $0x12a] sm:$0xff] }
 0x48c   :  { %v2616_v39 = vpop.permute.xlu1 %2615  ;;  %v2614_v27 = vpop.permute.xlu0 %2613 }
 0x48d   :  { %2798 = vst.msk [vmem:[#allocation2 + $0x50] sm:$0xff] %vm2787_vm7, %v2616_v39  ;;  %v2636_v28 = vpop.permute.xlu2 %2635  ;;  %v9271_v39 = vld [vmem:[%s16078_s0 + $0x122] sm:$0xff] }
 0x48e   :  { %2797 = vst.msk [vmem:[#allocation2 + $0x48] sm:$0xff] %vm2787_vm7, %v2614_v27  ;;  %v9273_v27 = vld [vmem:[%s16078_s0 + $0x13a] sm:$0xff] }
 0x48f   :  { %2808 = vst.msk [vmem:[#allocation2 + $0xa0] sm:$0xff] %vm2787_vm7, %v2636_v28 }
 0x492   :  { %2705 = vrot.lane.b32.xlu1 %v9242_v2, %s9484_s25  ;;  %2703 = vrot.lane.b32.xlu0 %v9241_v50, %s9484_s25 }
 0x493   :  { %2707 = vrot.lane.b32.xlu2 %v9243_v60, %s9484_s25  ;;  %v9275_v60 = vld [vmem:[%s16078_s0 + $0x152] sm:$0xff] }
 0x494   :  { %v2622_v29 = vpop.permute.xlu1 %2621  ;;  %v2620_v18 = vpop.permute.xlu0 %2619 }
 0x495   :  { %2801 = vst.msk [vmem:[#allocation2 + $0x68] sm:$0xff] %vm2787_vm7, %v2622_v29  ;;  %v2642_v23 = vpop.permute.xlu2 %2641  ;;  %v9274_v29 = vld [vmem:[%s16078_s0 + $0x142] sm:$0xff] }
 0x496   :  { %2800 = vst.msk [vmem:[#allocation2 + $0x60] sm:$0xff] %vm2787_vm7, %v2620_v18  ;;  %v9276_v18 = vld [vmem:[%s16078_s0 + $0x15a] sm:$0xff] }
 0x497   :  { %2811 = vst.msk [vmem:[#allocation2 + $0xb8] sm:$0xff] %vm2787_vm7, %v2642_v23 }
 0x49a   :  { %2711 = vrot.lane.b32.xlu1 %v9245_v6, %s9484_s25  ;;  %2709 = vrot.lane.b32.xlu0 %v9244_v49, %s9484_s25 }
 0x49b   :  { %2713 = vrot.lane.b32.xlu2 %v9246_v15, %s9484_s25  ;;  %v9278_v15 = vld [vmem:[%s16078_s0 + $0x172] sm:$0xff] }
 0x49c   :  { %v2628_v61 = vpop.permute.xlu1 %2627  ;;  %v2626_v24 = vpop.permute.xlu0 %2625 }
 0x49d   :  { %2804 = vst.msk [vmem:[#allocation2 + $0x80] sm:$0xff] %vm2787_vm7, %v2628_v61  ;;  %v2648_v1 = vpop.permute.xlu2 %2647  ;;  %v9277_v61 = vld [vmem:[%s16078_s0 + $0x16a] sm:$0xff] }
 0x49e   :  { %2803 = vst.msk [vmem:[#allocation2 + $0x78] sm:$0xff] %vm2787_vm7, %v2626_v24  ;;  %v9279_v24 = vld [vmem:[%s16078_s0 + $0x182] sm:$0xff] }
 0x49f   :  { %2814 = vst.msk [vmem:[#allocation2 + $0xd0] sm:$0xff] %vm2787_vm7, %v2648_v1 }
 0x4a2   :  { %2717 = vrot.lane.b32.xlu1 %v9248_v46, %s9484_s25  ;;  %2715 = vrot.lane.b32.xlu0 %v9247_v32, %s9484_s25  ;;  %v3305_v32 = vld [vmem:[%s16079_s1 + $0x20] sm:$0xf] }
 0x4a3   :  { %2719 = vrot.lane.b32.xlu2 %v9249_v47, %s9484_s25  ;;  %9315 = vmatpush.msk.msra.mxu0 %vm3499_vm8, %v3305_v32 }
 0x4a4   :  { %v2634_v33 = vpop.permute.xlu1 %2633  ;;  %v2632_v37 = vpop.permute.xlu0 %2631  ;;  %9444 = vmatpush.msk.msra.mxu3 %vm3499_vm8, %v3305_v32  ;;  %vm7233_vm8 = vcmask 523712  }
 0x4a5   :  { %2807 = vst.msk [vmem:[#allocation2 + $0x98] sm:$0xff] %vm2787_vm7, %v2634_v33  ;;  %v2654_v38 = vpop.permute.xlu2 %2653  ;;  %v9281_v33 = vld [vmem:[%s16078_s0 + $0x19a] sm:$0xff] }
 0x4a6   :  { %2806 = vst.msk [vmem:[#allocation2 + $0x90] sm:$0xff] %vm2787_vm7, %v2632_v37  ;;  %v9280_v37 = vld [vmem:[%s16078_s0 + $0x18a] sm:$0xff] }
 0x4a7   :  { %2817 = vst.msk [vmem:[#allocation2 + $0xe8] sm:$0xff] %vm2787_vm7, %v2654_v38  ;;  %v9282_v38 = vld [vmem:[%s16078_s0 + $0x1a2] sm:$0xff] }
 0x4aa   :  { %2980 = vrot.lane.b32.xlu1 %v9251_v44, %s9485_s18  ;;  %2721 = vrot.lane.b32.xlu0 %v9250_v45, %s9484_s25 }
 0x4ab   :  { %2982 = vrot.lane.b32.xlu2 %v9252_v53, %s9485_s18  ;;  %v3304_v53 = vld [vmem:[%s16079_s1 + $0x18] sm:$0xff] }
 0x4ac   :  { %v2640_v51 = vpop.permute.xlu1 %2639  ;;  %v2638_v52 = vpop.permute.xlu0 %2637  ;;  %3515 = vmatpush.msra.mxu0 %v3304_v53  ;;  %9445 = vmatpush.msra.mxu3 %v3304_v53  ;;  %v9297_v53 = vld [vmem:[%s16078_s0 + $0x28a] sm:$0xff] }
 0x4ad   :  { %2810 = vst.msk [vmem:[#allocation2 + $0xb0] sm:$0xff] %vm2787_vm7, %v2640_v51  ;;  %v2660_v62 = vpop.permute.xlu2 %2659  ;;  %v3303_v51 = vld [vmem:[%s16079_s1 + $0x10] sm:$0xff] }
 0x4ae   :  { %2809 = vst.msk [vmem:[#allocation2 + $0xa8] sm:$0xff] %vm2787_vm7, %v2638_v52  ;;  %3516 = vmatpush.msra.mxu0 %v3303_v51  ;;  %9446 = vmatpush.msra.mxu3 %v3303_v51 }
 0x4af   :  { %2820 = vst.msk [vmem:[#allocation2 + $0x100] sm:$0xff] %vm2787_vm7, %v2660_v62  ;;  %v9284_v62 = vld [vmem:[%s16078_s0 + $0x1ea] sm:$0xff] }
 0x4b2   :  { %2986 = vrot.lane.b32.xlu1 %v9254_v58, %s9485_s18  ;;  %2984 = vrot.lane.b32.xlu0 %v9253_v59, %s9485_s18  ;;  %v9283_v58 = vld [vmem:[%s16078_s0 + $0x1e2] sm:$0xff] }
 0x4b3   :  { %2988 = vrot.lane.b32.xlu2 %v9255_v7, %s9485_s18  ;;  %v3302_v59 = vld [vmem:[%s16079_s1 + $0x8] sm:$0xff]  ;;  %v9285_v7 = vld [vmem:[%s16078_s0 + $0x1fa] sm:$0xff] }
 0x4b4   :  { %v2646_v3 = vpop.permute.xlu1 %2645  ;;  %v2644_v4 = vpop.permute.xlu0 %2643  ;;  %3517 = vmatpush.msra.mxu0 %v3302_v59  ;;  %9447 = vmatpush.msra.mxu3 %v3302_v59  ;;  %v9301_v59 = vld [vmem:[%s16078_s0 + $0x2ba] sm:$0xff] }
 0x4b5   :  { %2813 = vst.msk [vmem:[#allocation2 + $0xc8] sm:$0xff] %vm2787_vm7, %v2646_v3  ;;  %v2666_v16 = vpop.permute.xlu2 %2665  ;;  %v3301_v3 = vld [vmem:[%s16079_s1] sm:$0xff] }
 0x4b6   :  { %2812 = vst.msk [vmem:[#allocation2 + $0xc0] sm:$0xff] %vm2787_vm7, %v2644_v4  ;;  %3518 = vmatpush.msra.mxu0 %v3301_v3  ;;  %9448 = vmatpush.msra.mxu3 %v3301_v3 }
 0x4b7   :  { %2823 = vst.msk [vmem:[#allocation2 + $0x118] sm:$0xff] %vm2787_vm7, %v2666_v16 }
 0x4ba   :  { %2992 = vrot.lane.b32.xlu1 %v9257_v12, %s9485_s18  ;;  %2990 = vrot.lane.b32.xlu0 %v9256_v13, %s9485_s18  ;;  %v9286_v13 = vld [vmem:[%s16078_s0 + $0x202] sm:$0xff] }
 0x4bb   :  { %2994 = vrot.lane.b32.xlu2 %v9258_v25, %s9485_s18  ;;  %v9287_v25 = vld [vmem:[%s16078_s0 + $0x212] sm:$0xff] }
 0x4bc   :  { %v2652_v21 = vpop.permute.xlu1 %2651  ;;  %v2650_v22 = vpop.permute.xlu0 %2649 }
 0x4bd   :  { %2816 = vst.msk [vmem:[#allocation2 + $0xe0] sm:$0xff] %vm2787_vm7, %v2652_v21  ;;  %v2672_v35 = vpop.permute.xlu2 %2671 }
 0x4be   :  { %2815 = vst.msk [vmem:[#allocation2 + $0xd8] sm:$0xff] %vm2787_vm7, %v2650_v22 }
 0x4bf   :  { %2826 = vst.msk [vmem:[#allocation2 + $0x130] sm:$0xff] %vm2787_vm7, %v2672_v35 }
 0x4c2   :  { %2998 = vrot.lane.b32.xlu1 %v9260_v30, %s9485_s18  ;;  %2996 = vrot.lane.b32.xlu0 %v9259_v31, %s9485_s18  ;;  %v9289_v30 = vld [vmem:[%s16078_s0 + $0x22a] sm:$0xff]  ;;  %v9290_v31 = vld [vmem:[%s16078_s0 + $0x232] sm:$0xff] }
 0x4c3   :  { %3000 = vrot.lane.b32.xlu2 %v9261_v48, %s9485_s18 }
 0x4c4   :  { %v2658_v42 = vpop.permute.xlu1 %2657  ;;  %v2656_v5 = vpop.permute.xlu0 %2655 }
 0x4c5   :  { %2819 = vst.msk [vmem:[#allocation2 + $0xf8] sm:$0xff] %vm2787_vm7, %v2658_v42  ;;  %v2678_v43 = vpop.permute.xlu2 %2677 }
 0x4c6   :  { %2818 = vst.msk [vmem:[#allocation2 + $0xf0] sm:$0xff] %vm2787_vm7, %v2656_v5  ;;  %v9288_v5 = vld [vmem:[%s16078_s0 + $0x21a] sm:$0xff] }
 0x4c7   :  { %2829 = vst.msk [vmem:[#allocation2 + $0x148] sm:$0xff] %vm2787_vm7, %v2678_v43 }
 0x4ca   :  { %3004 = vrot.lane.b32.xlu1 %v9263_v63, %s9485_s18  ;;  %3002 = vrot.lane.b32.xlu0 %v9262_v56, %s9485_s18 }
 0x4cb   :  { %3006 = vrot.lane.b32.xlu2 %v9264_v40, %s9485_s18  ;;  %v9292_v40 = vld [vmem:[%s16078_s0 + $0x24a] sm:$0xff] }
 0x4cc   :  { %v2664_v57 = vpop.permute.xlu1 %2663  ;;  %v2662_v11 = vpop.permute.xlu0 %2661 }
 0x4cd   :  { %2822 = vst.msk [vmem:[#allocation2 + $0x110] sm:$0xff] %vm2787_vm7, %v2664_v57  ;;  %v2684_v14 = vpop.permute.xlu2 %2683 }
 0x4ce   :  { %2821 = vst.msk [vmem:[#allocation2 + $0x108] sm:$0xff] %vm2787_vm7, %v2662_v11 }
 0x4cf   :  { %2832 = vst.msk [vmem:[#allocation2 + $0x160] sm:$0xff] %vm2787_vm7, %v2684_v14 }
 0x4d2   :  { %3010 = vrot.lane.b32.xlu1 %v9266_v8, %s9485_s18  ;;  %3008 = vrot.lane.b32.xlu0 %v9265_v26, %s9485_s18  ;;  %v9293_v26 = vld [vmem:[%s16078_s0 + $0x25a] sm:$0xff] }
 0x4d3   :  { %3012 = vrot.lane.b32.xlu2 %v9267_v19, %s9485_s18 }
 0x4d4   :  { %v2670_v20 = vpop.permute.xlu1 %2669  ;;  %v2668_v41 = vpop.permute.xlu0 %2667 }
 0x4d5   :  { %2825 = vst.msk [vmem:[#allocation2 + $0x128] sm:$0xff] %vm2787_vm7, %v2670_v20  ;;  %v2690_v34 = vpop.permute.xlu2 %2689 }
 0x4d6   :  { %2824 = vst.msk [vmem:[#allocation2 + $0x120] sm:$0xff] %vm2787_vm7, %v2668_v41 }
 0x4d7   :  { %2835 = vst.msk [vmem:[#allocation2 + $0x178] sm:$0xff] %vm2787_vm7, %v2690_v34 }
 0x4da   :  { %3016 = vrot.lane.b32.xlu1 %v9269_v36, %s9485_s18  ;;  %3014 = vrot.lane.b32.xlu0 %v9268_v0, %s9485_s18  ;;  %v9291_v36 = vld [vmem:[%s16078_s0 + $0x242] sm:$0xff] }
 0x4db   :  { %3018 = vrot.lane.b32.xlu2 %v9270_v54, %s9485_s18 }
 0x4dc   :  { %v2676_v55 = vpop.permute.xlu1 %2675  ;;  %v2674_v17 = vpop.permute.xlu0 %2673 }
 0x4dd   :  { %2828 = vst.msk [vmem:[#allocation2 + $0x140] sm:$0xff] %vm2787_vm7, %v2676_v55  ;;  %v2696_v9 = vpop.permute.xlu2 %2695 }
 0x4de   :  { %2827 = vst.msk [vmem:[#allocation2 + $0x138] sm:$0xff] %vm2787_vm7, %v2674_v17 }
 0x4df   :  { %2838 = vst.msk [vmem:[#allocation2 + $0x190] sm:$0xff] %vm2787_vm7, %v2696_v9  ;;  %v9295_v9 = vld [vmem:[%s16078_s0 + $0x272] sm:$0xff] }
 0x4e2   :  { %3022 = vrot.lane.b32.xlu1 %v9272_v10, %s9485_s18  ;;  %3020 = vrot.lane.b32.xlu0 %v9271_v39, %s9485_s18 }
 0x4e3   :  { %3024 = vrot.lane.b32.xlu2 %v9273_v27, %s9485_s18 }
 0x4e4   :  { %v2682_v28 = vpop.permute.xlu1 %2681  ;;  %v2680_v2 = vpop.permute.xlu0 %2679 }
 0x4e5   :  { %2831 = vst.msk [vmem:[#allocation2 + $0x158] sm:$0xff] %vm2787_vm7, %v2682_v28  ;;  %v2702_v50 = vpop.permute.xlu2 %2701 }
 0x4e6   :  { %2830 = vst.msk [vmem:[#allocation2 + $0x150] sm:$0xff] %vm2787_vm7, %v2680_v2  ;;  %v9296_v2 = vld [vmem:[%s16078_s0 + $0x27a] sm:$0xff] }
 0x4e7   :  { %2841 = vst.msk [vmem:[#allocation2 + $0x1a8] sm:$0xff] %vm2787_vm7, %v2702_v50 }
 0x4ea   :  { %3028 = vrot.lane.b32.xlu1 %v9275_v60, %s9485_s18  ;;  %3026 = vrot.lane.b32.xlu0 %v9274_v29, %s9485_s18 }
 0x4eb   :  { %3030 = vrot.lane.b32.xlu2 %v9276_v18, %s9485_s18 }
 0x4ec   :  { %v2688_v23 = vpop.permute.xlu1 %2687  ;;  %v2686_v6 = vpop.permute.xlu0 %2685 }
 0x4ed   :  { %2834 = vst.msk [vmem:[#allocation2 + $0x170] sm:$0xff] %vm2787_vm7, %v2688_v23  ;;  %v2708_v49 = vpop.permute.xlu2 %2707  ;;  %v9294_v23 = vld [vmem:[%s16078_s0 + $0x262] sm:$0xff] }
 0x4ee   :  { %2833 = vst.msk [vmem:[#allocation2 + $0x168] sm:$0xff] %vm2787_vm7, %v2686_v6 }
 0x4ef   :  { %2844 = vst.msk [vmem:[#allocation2 + $0x1c0] sm:$0xff] %vm2787_vm7, %v2708_v49 }
 0x4f2   :  { %3034 = vrot.lane.b32.xlu1 %v9278_v15, %s9485_s18  ;;  %3032 = vrot.lane.b32.xlu0 %v9277_v61, %s9485_s18 }
 0x4f3   :  { %3036 = vrot.lane.b32.xlu2 %v9279_v24, %s9485_s18  ;;  %v9298_v24 = vld [vmem:[%s16078_s0 + $0x292] sm:$0xff] }
 0x4f4   :  { %v2694_v1 = vpop.permute.xlu1 %2693  ;;  %v2692_v46 = vpop.permute.xlu0 %2691 }
 0x4f5   :  { %2837 = vst.msk [vmem:[#allocation2 + $0x188] sm:$0xff] %vm2787_vm7, %v2694_v1  ;;  %v2714_v47 = vpop.permute.xlu2 %2713 }
 0x4f6   :  { %2836 = vst.msk [vmem:[#allocation2 + $0x180] sm:$0xff] %vm2787_vm7, %v2692_v46 }
 0x4f7   :  { %2847 = vst.msk [vmem:[#allocation2 + $0x1d8] sm:$0xff] %vm2787_vm7, %v2714_v47 }
 0x4fa   :  { %3040 = vrot.lane.b32.xlu1 %v9281_v33, %s9485_s18  ;;  %3038 = vrot.lane.b32.xlu0 %v9280_v37, %s9485_s18  ;;  %v9299_v33 = vld [vmem:[%s16078_s0 + $0x2a2] sm:$0xff] }
 0x4fb   :  { %3042 = vrot.lane.b32.xlu2 %v9282_v38, %s9485_s18 }
 0x4fc   :  { %v2700_v44 = vpop.permute.xlu1 %2699  ;;  %v2698_v45 = vpop.permute.xlu0 %2697 }
 0x4fd   :  { %2840 = vst.msk [vmem:[#allocation2 + $0x1a0] sm:$0xff] %vm2787_vm7, %v2700_v44  ;;  %v2720_v52 = vpop.permute.xlu2 %2719 }
 0x4fe   :  { %2839 = vst.msk [vmem:[#allocation2 + $0x198] sm:$0xff] %vm2787_vm7, %v2698_v45 }
 0x4ff   :  { %2850 = vst.msk [vmem:[#allocation2 + $0x1f0] sm:$0xff] %vm2787_vm7, %v2720_v52 }
 0x502   :  { %3046 = vrot.lane.b32.xlu1 %v9284_v62, %s9485_s18  ;;  %3044 = vrot.lane.b32.xlu0 %v9283_v58, %s9485_s18 }
 0x503   :  { %3048 = vrot.lane.b32.xlu2 %v9285_v7, %s9485_s18 }
 0x504   :  { %v2706_v4 = vpop.permute.xlu1 %2705  ;;  %v2704_v16 = vpop.permute.xlu0 %2703 }
 0x505   :  { %2843 = vst.msk [vmem:[#allocation2 + $0x1b8] sm:$0xff] %vm2787_vm7, %v2706_v4  ;;  %v2983_v12 = vpop.permute.xlu2 %2982 }
 0x506   :  { %2842 = vst.msk [vmem:[#allocation2 + $0x1b0] sm:$0xff] %vm2787_vm7, %v2704_v16  ;;  %v9302_v16 = vld [vmem:[%s16078_s0 + $0x2c2] sm:$0xff] }
 0x507   :  { %3174 = vst.msk [vmem:[#allocation2 + $0x8] sm:$0xff] %vm3172_vm9, %v2983_v12 }
 0x50a   :  { %3050 = vrot.lane.b32.xlu0 %v9286_v13, %s9485_s18  ;;  %3052 = vrot.lane.b32.xlu1 %v9287_v25, %s9485_s18 }
 0x50b   :  { %3054 = vrot.lane.b32.xlu2 %v9288_v5, %s9485_s18 }
 0x50c   :  { %v2712_v21 = vpop.permute.xlu1 %2711  ;;  %v2710_v22 = vpop.permute.xlu0 %2709 }
 0x50d   :  { %2846 = vst.msk [vmem:[#allocation2 + $0x1d0] sm:$0xff] %vm2787_vm7, %v2712_v21  ;;  %v2989_v35 = vpop.permute.xlu2 %2988 }
 0x50e   :  { %2845 = vst.msk [vmem:[#allocation2 + $0x1c8] sm:$0xff] %vm2787_vm7, %v2710_v22  ;;  %v3238_v20 = vld [vmem:[#allocation2 + $0x8] sm:$0xff] }
 0x50f   :  { %3177 = vst.msk [vmem:[#allocation2 + $0x20] sm:$0xff] %vm3172_vm9, %v2989_v35  ;;  %v9300_v22 = vld [vmem:[%s16078_s0 + $0x2aa] sm:$0xff] }
 0x512   :  { %3056 = vrot.lane.b32.xlu0 %v9289_v30, %s9485_s18  ;;  %3058 = vrot.lane.b32.xlu1 %v9290_v31, %s9485_s18 }
 0x513   :  { %3060 = vrot.lane.b32.xlu2 %v9291_v36, %s9485_s18 }
 0x514   :  { %v2718_v48 = vpop.permute.xlu1 %2717  ;;  %v2716_v42 = vpop.permute.xlu0 %2715 }
 0x515   :  { %2849 = vst.msk [vmem:[#allocation2 + $0x1e8] sm:$0xff] %vm2787_vm7, %v2718_v48  ;;  %v2995_v43 = vpop.permute.xlu2 %2994 }
 0x516   :  { %2848 = vst.msk [vmem:[#allocation2 + $0x1e0] sm:$0xff] %vm2787_vm7, %v2716_v42  ;;  %v3241_v29 = vld [vmem:[#allocation2 + $0x20] sm:$0xff] }
 0x517   :  { %3180 = vst.msk [vmem:[#allocation2 + $0x38] sm:$0xff] %vm3172_vm9, %v2995_v43  ;;  %v9304_v42 = vld [vmem:[%s16078_s0 + $0x2da] sm:$0xff] }
 0x51a   :  { %3062 = vrot.lane.b32.xlu0 %v9292_v40, %s9485_s18  ;;  %3064 = vrot.lane.b32.xlu1 %v9293_v26, %s9485_s18  ;;  %v9305_v40 = vld [vmem:[%s16078_s0 + $0x2ea] sm:$0xff] }
 0x51b   :  { %3066 = vrot.lane.b32.xlu2 %v9294_v23, %s9485_s18 }
 0x51c   :  { %v2981_v63 = vpop.permute.xlu1 %2980  ;;  %v2722_v56 = vpop.permute.xlu0 %2721 }
 0x51d   :  { %3173 = vst.msk [vmem:[#allocation2] sm:$0xff] %vm3172_vm9, %v2981_v63  ;;  %v3001_v57 = vpop.permute.xlu2 %3000 }
 0x51e   :  { %2851 = vst.msk [vmem:[#allocation2 + $0x1f8] sm:$0xff] %vm2787_vm7, %v2722_v56  ;;  %v3244_v44 = vld [vmem:[#allocation2 + $0x38] sm:$0xff]  ;;  %vm6848_vm7 = vcmask 458112  }
 0x51f   :  { %3183 = vst.msk [vmem:[#allocation2 + $0x50] sm:$0xff] %vm3172_vm9, %v3001_v57 }
 0x522   :  { %3068 = vrot.lane.b32.xlu0 %v9295_v9, %s9485_s18  ;;  %3070 = vrot.lane.b32.xlu1 %v9296_v2, %s9485_s18 }
 0x523   :  { %3072 = vrot.lane.b32.xlu2 %v9297_v53, %s9485_s18 }
 0x524   :  { %v2987_v11 = vpop.permute.xlu1 %2986  ;;  %v3237_v14 = vld [vmem:[#allocation2] sm:$0xff]  ;;  %v2985_v8 = vpop.permute.xlu0 %2984 }
 0x525   :  { %3176 = vst.msk [vmem:[#allocation2 + $0x18] sm:$0xff] %vm3172_vm9, %v2987_v11  ;;  %9316 = vmatmul.msk.f32.vlgmr.msra.gmra.mxu0 %vm3306_vm10, %v3237_v14  ;;  %v3007_v19 = vpop.permute.xlu2 %3006 }
 0x526   :  { %3175 = vst.msk [vmem:[#allocation2 + $0x10] sm:$0xff] %vm3172_vm9, %v2985_v8  ;;  %v3247_v25 = vld [vmem:[#allocation2 + $0x50] sm:$0xff] }
 0x527   :  { %3186 = vst.msk [vmem:[#allocation2 + $0x68] sm:$0xff] %vm3172_vm9, %v3007_v19  ;;  %v9303_v8 = vld [vmem:[%s16078_s0 + $0x2d2] sm:$0xff] }
 0x52a   :  { %3074 = vrot.lane.b32.xlu0 %v9298_v24, %s9485_s18  ;;  %3076 = vrot.lane.b32.xlu1 %v9299_v33, %s9485_s18 }
 0x52b   :  { %3078 = vrot.lane.b32.xlu2 %v9300_v22, %s9485_s18 }
 0x52c   :  { %v2993_v41 = vpop.permute.xlu1 %2992  ;;  %v2991_v34 = vpop.permute.xlu0 %2990  ;;  %v3240_v27 = vld [vmem:[#allocation2 + $0x18] sm:$0xff] }
 0x52d   :  { %3179 = vst.msk [vmem:[#allocation2 + $0x30] sm:$0xff] %vm3172_vm9, %v2993_v41  ;;  %9317 = vmatmul.msk.f32.gmra.mxu0 %vm3306_vm10, %v3238_v20  ;;  %v3013_v0 = vpop.permute.xlu2 %3012  ;;  %v3239_v54 = vld [vmem:[#allocation2 + $0x10] sm:$0xff]  ;;  %v9307_v41 = vld [vmem:[%s16078_s0 + $0x302] sm:$0xff] }
 0x52e   :  { %3178 = vst.msk [vmem:[#allocation2 + $0x28] sm:$0xff] %vm3172_vm9, %v2991_v34  ;;  %v3250_v11 = vld [vmem:[#allocation2 + $0x68] sm:$0xff] }
 0x52f   :  { %3189 = vst.msk [vmem:[#allocation2 + $0x80] sm:$0xff] %vm3172_vm9, %v3013_v0 }
 0x532   :  { %3080 = vrot.lane.b32.xlu0 %v9301_v59, %s9485_s18  ;;  %3082 = vrot.lane.b32.xlu1 %v9302_v16, %s9485_s18 }
 0x533   :  { %3084 = vrot.lane.b32.xlu2 %v9303_v8, %s9485_s18 }
 0x534   :  { %v2999_v55 = vpop.permute.xlu1 %2998  ;;  %v2997_v17 = vpop.permute.xlu0 %2996  ;;  %v3243_v32 = vld [vmem:[#allocation2 + $0x30] sm:$0xff] }
 0x535   :  { %3182 = vst.msk [vmem:[#allocation2 + $0x48] sm:$0xff] %vm3172_vm9, %v2999_v55  ;;  %9318 = vmatmul.msk.f32.gmra.mxu0 %vm3306_vm10, %v3239_v54  ;;  %v3019_v10 = vpop.permute.xlu2 %3018  ;;  %v3242_v15 = vld [vmem:[#allocation2 + $0x28] sm:$0xff] }
 0x536   :  { %3181 = vst.msk [vmem:[#allocation2 + $0x40] sm:$0xff] %vm3172_vm9, %v2997_v17  ;;  %v9308_v54 = vld [vmem:[%s16078_s0 + $0x30a] sm:$0xff]  ;;  %v3253_v9 = vld [vmem:[#allocation2 + $0x80] sm:$0xff] }
 0x537   :  { %3192 = vst.msk [vmem:[#allocation2 + $0x98] sm:$0xff] %vm3172_vm9, %v3019_v10 }
 0x53a   :  { %3086 = vrot.lane.b32.xlu0 %v9304_v42, %s9485_s18  ;;  %3088 = vrot.lane.b32.xlu1 %v9305_v40, %s9485_s18 }
 0x53c   :  { %v3005_v39 = vpop.permute.xlu1 %3004  ;;  %v3003_v28 = vpop.permute.xlu0 %3002  ;;  %v3246_v3 = vld [vmem:[#allocation2 + $0x48] sm:$0xff] }
 0x53d   :  { %3185 = vst.msk [vmem:[#allocation2 + $0x60] sm:$0xff] %vm3172_vm9, %v3005_v39  ;;  %9319 = vmatmul.msk.f32.gmra.mxu0 %vm3306_vm10, %v3240_v27  ;;  %v3025_v50 = vpop.permute.xlu2 %3024  ;;  %v3245_v62 = vld [vmem:[#allocation2 + $0x40] sm:$0xff]  ;;  %v9306_v39 = vld [vmem:[%s16078_s0 + $0x2f2] sm:$0xff] }
 0x53e   :  { %3184 = vst.msk [vmem:[#allocation2 + $0x58] sm:$0xff] %vm3172_vm9, %v3003_v28  ;;  %3090 = vrot.lane.b32.xlu2 %v9306_v39, %s9485_s18  ;;  %v3256_v24 = vld [vmem:[#allocation2 + $0x98] sm:$0xff] }
 0x53f   :  { %3195 = vst.msk [vmem:[#allocation2 + $0xb0] sm:$0xff] %vm3172_vm9, %v3025_v50 }
 0x542   :  { %3092 = vrot.lane.b32.xlu0 %v9307_v41, %s9485_s18  ;;  %3094 = vrot.lane.b32.xlu1 %v9308_v54, %s9485_s18 }
 0x544   :  { %v3011_v60 = vpop.permute.xlu1 %3010  ;;  %v3009_v18 = vpop.permute.xlu0 %3008  ;;  %v3249_v43 = vld [vmem:[#allocation2 + $0x60] sm:$0xff] }
 0x545   :  { %3188 = vst.msk [vmem:[#allocation2 + $0x78] sm:$0xff] %vm3172_vm9, %v3011_v60  ;;  %9320 = vmatmul.msk.f32.gmra.mxu0 %vm3306_vm10, %v3241_v29  ;;  %v3031_v6 = vpop.permute.xlu2 %3030  ;;  %v3248_v35 = vld [vmem:[#allocation2 + $0x58] sm:$0xff]  ;;  %v9310_v60 = vld [vmem:[%s16078_s0 + $0x322] sm:$0xff] }
 0x546   :  { %3187 = vst.msk [vmem:[#allocation2 + $0x70] sm:$0xff] %vm3172_vm9, %v3009_v18  ;;  %v3259_v59 = vld [vmem:[#allocation2 + $0xb0] sm:$0xff] }
 0x547   :  { %3198 = vst.msk [vmem:[#allocation2 + $0xc8] sm:$0xff] %vm3172_vm9, %v3031_v6 }
 0x54a   :  { %3098 = vrot.lane.b32.xlu0 %v9310_v60, %s9485_s18 }
 0x54c   :  { %v3017_v49 = vpop.permute.xlu1 %3016  ;;  %v3015_v61 = vpop.permute.xlu0 %3014  ;;  %v3252_v36 = vld [vmem:[#allocation2 + $0x78] sm:$0xff] }
 0x54d   :  { %3191 = vst.msk [vmem:[#allocation2 + $0x90] sm:$0xff] %vm3172_vm9, %v3017_v49  ;;  %9321 = vmatmul.msk.f32.gmra.mxu0 %vm3306_vm10, %v3242_v15  ;;  %v3037_v1 = vpop.permute.xlu2 %3036  ;;  %v3251_v19 = vld [vmem:[#allocation2 + $0x70] sm:$0xff] }
 0x54e   :  { %3190 = vst.msk [vmem:[#allocation2 + $0x88] sm:$0xff] %vm3172_vm9, %v3015_v61  ;;  %v9311_v49 = vld [vmem:[%s16078_s0 + $0x332] sm:$0xff] }
 0x54f   :  { %3201 = vst.msk [vmem:[#allocation2 + $0xe0] sm:$0xff] %vm3172_vm9, %v3037_v1  ;;  %3100 = vrot.lane.b32.xlu1 %v9311_v49, %s9485_s18 }
 0x554   :  { %v3023_v46 = vpop.permute.xlu1 %3022  ;;  %v3021_v47 = vpop.permute.xlu0 %3020  ;;  %v3255_v23 = vld [vmem:[#allocation2 + $0x90] sm:$0xff] }
 0x555   :  { %3194 = vst.msk [vmem:[#allocation2 + $0xa8] sm:$0xff] %vm3172_vm9, %v3023_v46  ;;  %9322 = vmatmul.msk.f32.gmra.mxu0 %vm3306_vm10, %v3243_v32  ;;  %v3043_v37 = vpop.permute.xlu2 %3042  ;;  %v3254_v2 = vld [vmem:[#allocation2 + $0x88] sm:$0xff]  ;;  %v9309_v46 = vld [vmem:[%s16078_s0 + $0x31a] sm:$0xff] }
 0x556   :  { %3193 = vst.msk [vmem:[#allocation2 + $0xa0] sm:$0xff] %vm3172_vm9, %v3021_v47  ;;  %3096 = vrot.lane.b32.xlu2 %v9309_v46, %s9485_s18 }
 0x557   :  { %3204 = vst.msk [vmem:[#allocation2 + $0xf8] sm:$0xff] %vm3172_vm9, %v3043_v37 }
 0x55c   :  { %v3029_v38 = vpop.permute.xlu1 %3028  ;;  %v3027_v45 = vpop.permute.xlu0 %3026  ;;  %v3258_v53 = vld [vmem:[#allocation2 + $0xa8] sm:$0xff] }
 0x55d   :  { %3197 = vst.msk [vmem:[#allocation2 + $0xc0] sm:$0xff] %vm3172_vm9, %v3029_v38  ;;  %9323 = vmatmul.msk.f32.gmra.mxu0 %vm3306_vm10, %v3244_v44  ;;  %v3049_v51 = vpop.permute.xlu2 %3048  ;;  %v3257_v37 = vld [vmem:[#allocation2 + $0xa0] sm:$0xff]  ;;  %v9313_v38 = vld [vmem:[%s16078_s0 + $0x34a] sm:$0xff] }
 0x55e   :  { %3196 = vst.msk [vmem:[#allocation2 + $0xb8] sm:$0xff] %vm3172_vm9, %v3027_v45  ;;  %3104 = vrot.lane.b32.xlu0 %v9313_v38, %s9485_s18 }
 0x55f   :  { %3207 = vst.msk [vmem:[#allocation2 + $0x110] sm:$0xff] %vm3172_vm9, %v3049_v51 }
 0x564   :  { %v3035_v52 = vpop.permute.xlu1 %3034  ;;  %v3033_v58 = vpop.permute.xlu0 %3032  ;;  %v3261_v22 = vld [vmem:[#allocation2 + $0xc0] sm:$0xff] }
 0x565   :  { %3200 = vst.msk [vmem:[#allocation2 + $0xd8] sm:$0xff] %vm3172_vm9, %v3035_v52  ;;  %9324 = vmatmul.msk.f32.gmra.mxu0 %vm3306_vm10, %v3245_v62  ;;  %v3055_v12 = vpop.permute.xlu2 %3054  ;;  %v9314_v52 = vld [vmem:[%s16078_s0 + $0x352] sm:$0xff] }
 0x566   :  { %3199 = vst.msk [vmem:[#allocation2 + $0xd0] sm:$0xff] %vm3172_vm9, %v3033_v58  ;;  %v3271_v5 = vld [vmem:[#allocation2 + $0x110] sm:$0xff]  ;;  %3106 = vrot.lane.b32.xlu1 %v9314_v52, %s9485_s18 }
 0x567   :  { %3210 = vst.msk [vmem:[#allocation2 + $0x128] sm:$0xff] %vm3172_vm9, %v3055_v12  ;;  %v3260_v12 = vld [vmem:[#allocation2 + $0xb8] sm:$0xff] }
 0x56c   :  { %v3041_v7 = vpop.permute.xlu1 %3040  ;;  %v3039_v4 = vpop.permute.xlu0 %3038 }
 0x56d   :  { %3203 = vst.msk [vmem:[#allocation2 + $0xf0] sm:$0xff] %vm3172_vm9, %v3041_v7  ;;  %9325 = vmatmul.msk.f32.gmra.mxu0 %vm3306_vm10, %v3246_v3  ;;  %v3061_v14 = vpop.permute.xlu2 %3060  ;;  %v9312_v3 = vld [vmem:[%s16078_s0 + $0x33a] sm:$0xff] }
 0x56e   :  { %3202 = vst.msk [vmem:[#allocation2 + $0xe8] sm:$0xff] %vm3172_vm9, %v3039_v4  ;;  %v3274_v34 = vld [vmem:[#allocation2 + $0x128] sm:$0xff]  ;;  %3102 = vrot.lane.b32.xlu2 %v9312_v3, %s9485_s18 }
 0x56f   :  { %3213 = vst.msk [vmem:[#allocation2 + $0x140] sm:$0xff] %vm3172_vm9, %v3061_v14 }
 0x574   :  { %v3047_v13 = vpop.permute.xlu1 %3046  ;;  %v3045_v21 = vpop.permute.xlu0 %3044 }
 0x575   :  { %3206 = vst.msk [vmem:[#allocation2 + $0x108] sm:$0xff] %vm3172_vm9, %v3047_v13  ;;  %9326 = vmatmul.msk.f32.gmra.mxu0 %vm3306_vm10, %v3247_v25  ;;  %v3067_v10 = vpop.permute.xlu2 %3066  ;;  %v3266_v54 = vld [vmem:[#allocation2 + $0xe8] sm:$0xff] }
 0x576   :  { %3205 = vst.msk [vmem:[#allocation2 + $0x100] sm:$0xff] %vm3172_vm9, %v3045_v21  ;;  %v3277_v18 = vld [vmem:[#allocation2 + $0x140] sm:$0xff] }
 0x577   :  { %3216 = vst.msk [vmem:[#allocation2 + $0x158] sm:$0xff] %vm3172_vm9, %v3067_v10 }
 0x57c   :  { %v3270_v30 = vld [vmem:[#allocation2 + $0x108] sm:$0xff]  ;;  %v3051_v31 = vpop.permute.xlu0 %3050  ;;  %v3053_v48 = vpop.permute.xlu1 %3052 }
 0x57d   :  { %9327 = vmatmul.msk.f32.gmra.mxu0 %vm3306_vm10, %v3248_v35  ;;  %9349 = vmatmul.msk.f32.vlgmr.msra.gmra.mxu3 %vm3306_vm10, %v3270_v30  ;;  %3208 = vst.msk [vmem:[#allocation2 + $0x118] sm:$0xff] %vm3172_vm9, %v3051_v31  ;;  %v3073_v1 = vpop.permute.xlu2 %3072 }
 0x57e   :  { %3209 = vst.msk [vmem:[#allocation2 + $0x120] sm:$0xff] %vm3172_vm9, %v3053_v48  ;;  %v3280_v45 = vld [vmem:[#allocation2 + $0x158] sm:$0xff]  ;;  %v3262_v48 = vld [vmem:[#allocation2 + $0xc8] sm:$0xff] }
 0x57f   :  { %3219 = vst.msk [vmem:[#allocation2 + $0x170] sm:$0xff] %vm3172_vm9, %v3073_v1  ;;  %v3269_v1 = vld [vmem:[#allocation2 + $0x100] sm:$0xff] }
 0x584   :  { %v3057_v63 = vpop.permute.xlu0 %3056  ;;  %v3059_v56 = vpop.permute.xlu1 %3058  ;;  %v3272_v57 = vld [vmem:[#allocation2 + $0x118] sm:$0xff] }
 0x585   :  { %9328 = vmatmul.msk.f32.gmra.mxu0 %vm3306_vm10, %v3249_v43  ;;  %9350 = vmatmul.msk.f32.gmra.mxu3 %vm3306_vm10, %v3271_v5  ;;  %3211 = vst.msk [vmem:[#allocation2 + $0x130] sm:$0xff] %vm3172_vm9, %v3057_v63  ;;  %v3273_v26 = vld [vmem:[#allocation2 + $0x120] sm:$0xff]  ;;  %v3079_v7 = vpop.permute.xlu2 %3078  ;;  %v3263_v63 = vld [vmem:[#allocation2 + $0xd0] sm:$0xff] }
 0x586   :  { %3212 = vst.msk [vmem:[#allocation2 + $0x138] sm:$0xff] %vm3172_vm9, %v3059_v56  ;;  %v3283_v21 = vld [vmem:[#allocation2 + $0x170] sm:$0xff] }
 0x587   :  { %3222 = vst.msk [vmem:[#allocation2 + $0x188] sm:$0xff] %vm3172_vm9, %v3079_v7 }
 0x58c   :  { %v3063_v20 = vpop.permute.xlu0 %3062  ;;  %v3065_v0 = vpop.permute.xlu1 %3064  ;;  %v3275_v17 = vld [vmem:[#allocation2 + $0x130] sm:$0xff] }
 0x58d   :  { %9329 = vmatmul.msk.f32.gmra.mxu0 %vm3306_vm10, %v3250_v11  ;;  %9351 = vmatmul.msk.f32.gmra.mxu3 %vm3306_vm10, %v3272_v57  ;;  %3214 = vst.msk [vmem:[#allocation2 + $0x148] sm:$0xff] %vm3172_vm9, %v3063_v20  ;;  %v3276_v28 = vld [vmem:[#allocation2 + $0x138] sm:$0xff]  ;;  %v3085_v42 = vpop.permute.xlu2 %3084  ;;  %v3265_v20 = vld [vmem:[#allocation2 + $0xe0] sm:$0xff] }
 0x58e   :  { %3215 = vst.msk [vmem:[#allocation2 + $0x150] sm:$0xff] %vm3172_vm9, %v3065_v0  ;;  %v3286_v57 = vld [vmem:[#allocation2 + $0x188] sm:$0xff]  ;;  %v3264_v11 = vld [vmem:[#allocation2 + $0xd8] sm:$0xff] }
 0x58f   :  { %3225 = vst.msk [vmem:[#allocation2 + $0x1a0] sm:$0xff] %vm3172_vm9, %v3085_v42 }
 0x594   :  { %v3069_v50 = vpop.permute.xlu0 %3068  ;;  %v3071_v6 = vpop.permute.xlu1 %3070  ;;  %v3278_v61 = vld [vmem:[#allocation2 + $0x148] sm:$0xff] }
 0x595   :  { %9330 = vmatmul.msk.f32.gmra.mxu0 %vm3306_vm10, %v3251_v19  ;;  %9352 = vmatmul.msk.f32.gmra.mxu3 %vm3306_vm10, %v3273_v26  ;;  %3217 = vst.msk [vmem:[#allocation2 + $0x160] sm:$0xff] %vm3172_vm9, %v3069_v50  ;;  %v3279_v47 = vld [vmem:[#allocation2 + $0x150] sm:$0xff] }
 0x596   :  { %3218 = vst.msk [vmem:[#allocation2 + $0x168] sm:$0xff] %vm3172_vm9, %v3071_v6  ;;  %v3289_v39 = vld [vmem:[#allocation2 + $0x1a0] sm:$0xff] }
 0x598   :  { %v3091_v41 = vpop.permute.xlu2 %3090 }
 0x599   :  { %3228 = vst.msk [vmem:[#allocation2 + $0x1b8] sm:$0xff] %vm3172_vm9, %v3091_v41 }
 0x59c   :  { %v3075_v33 = vpop.permute.xlu0 %3074  ;;  %v3077_v51 = vpop.permute.xlu1 %3076  ;;  %v3281_v58 = vld [vmem:[#allocation2 + $0x160] sm:$0xff] }
 0x59d   :  { %9331 = vmatmul.msk.f32.gmra.mxu0 %vm3306_vm10, %v3252_v36  ;;  %9353 = vmatmul.msk.f32.gmra.mxu3 %vm3306_vm10, %v3274_v34  ;;  %3220 = vst.msk [vmem:[#allocation2 + $0x178] sm:$0xff] %vm3172_vm9, %v3075_v33  ;;  %v3282_v16 = vld [vmem:[#allocation2 + $0x168] sm:$0xff] }
 0x59e   :  { %3221 = vst.msk [vmem:[#allocation2 + $0x180] sm:$0xff] %vm3172_vm9, %v3077_v51 }
 0x5a2   :  { %v12395_v55 = vpop.f32.mrf.mxu0 }
 0x5a3   :  { %v3713_v41 = vsel %vm3712_vm11, %v12395_v55, 0.0 }
 0x5a4   :  { %v3081_v13 = vpop.permute.xlu0 %3080  ;;  %v3083_v35 = vpop.permute.xlu1 %3082  ;;  %v3284_v31 = vld [vmem:[#allocation2 + $0x178] sm:$0xff] }
 0x5a5   :  { %9332 = vmatmul.msk.f32.gmra.mxu0 %vm3306_vm10, %v3253_v9  ;;  %9354 = vmatmul.msk.f32.gmra.mxu3 %vm3306_vm10, %v3275_v17  ;;  %3223 = vst.msk [vmem:[#allocation2 + $0x190] sm:$0xff] %vm3172_vm9, %v3081_v13  ;;  %v3285_v43 = vld [vmem:[#allocation2 + $0x180] sm:$0xff] }
 0x5a6   :  { %3224 = vst.msk [vmem:[#allocation2 + $0x198] sm:$0xff] %vm3172_vm9, %v3083_v35 }
 0x5aa   :  { %v12404_v27 = vpop.f32.mrf.mxu0 }
 0x5ac   :  { %v3087_v56 = vpop.permute.xlu0 %3086  ;;  %v3089_v14 = vpop.permute.xlu1 %3088  ;;  %v3287_v19 = vld [vmem:[#allocation2 + $0x190] sm:$0xff] }
 0x5ad   :  { %9333 = vmatmul.msk.f32.gmra.mxu0 %vm3306_vm10, %v3254_v2  ;;  %9355 = vmatmul.msk.f32.gmra.mxu3 %vm3306_vm10, %v3276_v28  ;;  %3226 = vst.msk [vmem:[#allocation2 + $0x1a8] sm:$0xff] %vm3172_vm9, %v3087_v56  ;;  %v3288_v0 = vld [vmem:[#allocation2 + $0x198] sm:$0xff]  ;;  %v3267_v28 = vld [vmem:[#allocation2 + $0xf0] sm:$0xff] }
 0x5ae   :  { %3227 = vst.msk [vmem:[#allocation2 + $0x1b0] sm:$0xff] %vm3172_vm9, %v3089_v14 }
 0x5b0   :  { %v3097_v6 = vpop.permute.xlu2 %3096 }
 0x5b1   :  { %3231 = vst.msk [vmem:[#allocation2 + $0x1d0] sm:$0xff] %vm3172_vm9, %v3097_v6 }
 0x5b2   :  { %v12413_v29 = vpop.f32.mrf.mxu0 }
 0x5b4   :  { %v3093_v17 = vpop.permute.xlu0 %3092  ;;  %v3095_v2 = vpop.permute.xlu1 %3094 }
 0x5b5   :  { %9334 = vmatmul.msk.f32.gmra.mxu0 %vm3306_vm10, %v3255_v23  ;;  %9356 = vmatmul.msk.f32.gmra.mxu3 %vm3306_vm10, %v3277_v18  ;;  %3229 = vst.msk [vmem:[#allocation2 + $0x1c0] sm:$0xff] %vm3172_vm9, %v3093_v17  ;;  %v3290_v18 = vld [vmem:[#allocation2 + $0x1a8] sm:$0xff]  ;;  %v3268_v23 = vld [vmem:[#allocation2 + $0xf8] sm:$0xff] }
 0x5b6   :  { %3230 = vst.msk [vmem:[#allocation2 + $0x1c8] sm:$0xff] %vm3172_vm9, %v3095_v2 }
 0x5b8   :  { %v3295_v13 = vld [vmem:[#allocation2 + $0x1d0] sm:$0xff] }
 0x5ba   :  { %v12422_v15 = vpop.f32.mrf.mxu0 }
 0x5bb   :  { %v3718_v17 = vsel %vm3712_vm11, %v12422_v15, 0.0 }
 0x5bc   :  { %v3099_v46 = vpop.permute.xlu0 %3098  ;;  %v3293_v51 = vld [vmem:[#allocation2 + $0x1c0] sm:$0xff] }
 0x5bd   :  { %9335 = vmatmul.msk.f32.gmra.mxu0 %vm3306_vm10, %v3256_v24  ;;  %9357 = vmatmul.msk.f32.gmra.mxu3 %vm3306_vm10, %v3278_v61  ;;  %v3291_v24 = vld [vmem:[#allocation2 + $0x1b0] sm:$0xff]  ;;  %3232 = vst.msk [vmem:[#allocation2 + $0x1d8] sm:$0xff] %vm3172_vm9, %v3099_v46  ;;  %v3294_v7 = vld [vmem:[#allocation2 + $0x1c8] sm:$0xff] }
 0x5c1   :  { %v3101_v38 = vpop.permute.xlu1 %3100 }
 0x5c2   :  { %v12431_v32 = vpop.f32.mrf.mxu0  ;;  %3233 = vst.msk [vmem:[#allocation2 + $0x1e0] sm:$0xff] %vm3172_vm9, %v3101_v38 }
 0x5c3   :  { %v3720_v2 = vsel %vm3712_vm11, %v12431_v32, 0.0 }
 0x5c5   :  { %9336 = vmatmul.msk.f32.gmra.mxu0 %vm3306_vm10, %v3257_v37  ;;  %9358 = vmatmul.msk.f32.gmra.mxu3 %vm3306_vm10, %v3279_v47  ;;  %v3292_v37 = vld [vmem:[#allocation2 + $0x1b8] sm:$0xff] }
 0x5c8   :  { %v3103_v52 = vpop.permute.xlu2 %3102 }
 0x5c9   :  { %3234 = vst.msk [vmem:[#allocation2 + $0x1e8] sm:$0xff] %vm3172_vm9, %v3103_v52 }
 0x5ca   :  { %v12440_v44 = vpop.f32.mrf.mxu0 }
 0x5cb   :  { %16209 = vst [vmem:[#allocation5_spill] sm:$0xff] %v12440_v44 }
 0x5cd   :  { %9337 = vmatmul.msk.f32.gmra.mxu0 %vm3306_vm10, %v3258_v53  ;;  %9359 = vmatmul.msk.f32.gmra.mxu3 %vm3306_vm10, %v3280_v45 }
 0x5d0   :  { %v3105_v3 = vpop.permute.xlu0 %3104 }
 0x5d1   :  { %3235 = vst.msk [vmem:[#allocation2 + $0x1f0] sm:$0xff] %vm3172_vm9, %v3105_v3 }
 0x5d2   :  { %v12449_v62 = vpop.f32.mrf.mxu0 }
 0x5d3   :  { %v3724_v46 = vsel %vm3712_vm11, %v12449_v62, 0.0 }
 0x5d5   :  { %9338 = vmatmul.msk.f32.gmra.mxu0 %vm3306_vm10, %v3259_v59  ;;  %9360 = vmatmul.msk.f32.gmra.mxu3 %vm3306_vm10, %v3281_v58 }
 0x5da   :  { %v12458_v4 = vpop.f32.mrf.mxu0 }
 0x5db   :  { %v3726_v38 = vsel %vm3712_vm11, %v12458_v4, 0.0 }
 0x5dd   :  { %9339 = vmatmul.msk.f32.gmra.mxu0 %vm3306_vm10, %v3260_v12  ;;  %9361 = vmatmul.msk.f32.gmra.mxu3 %vm3306_vm10, %v3282_v16 }
 0x5e2   :  { %v12463_v25 = vpop.f32.mrf.mxu0 }
 0x5e5   :  { %9340 = vmatmul.msk.f32.gmra.mxu0 %vm3306_vm10, %v3261_v22  ;;  %9362 = vmatmul.msk.f32.gmra.mxu3 %vm3306_vm10, %v3283_v21  ;;  %v3107_v21 = vpop.permute.xlu1 %3106 }
 0x5e6   :  { %3236 = vst.msk [vmem:[#allocation2 + $0x1f8] sm:$0xff] %vm3172_vm9, %v3107_v21  ;;  %vm7618_vm9 = vcmask 589312  }
 0x5ea   :  { %v12468_v30 = vpop.f32.mrf.mxu0 }
 0x5eb   :  { %v3730_v21 = vsel %vm3712_vm11, %v12468_v30, 0.0 }
 0x5ed   :  { %9341 = vmatmul.msk.f32.gmra.mxu0 %vm3306_vm10, %v3262_v48  ;;  %9363 = vmatmul.msk.f32.gmra.mxu3 %vm3306_vm10, %v3284_v31  ;;  %v3296_v31 = vld [vmem:[#allocation2 + $0x1d8] sm:$0xff] }
 0x5ee   :  { %v3300_v6 = vld [vmem:[#allocation2 + $0x1f8] sm:$0xff] }
 0x5f2   :  { %v12473_v5 = vpop.f32.mrf.mxu0 }
 0x5f5   :  { %9342 = vmatmul.msk.f32.gmra.mxu0 %vm3306_vm10, %v3263_v63  ;;  %9364 = vmatmul.msk.f32.gmra.mxu3 %vm3306_vm10, %v3285_v43  ;;  %v3297_v43 = vld [vmem:[#allocation2 + $0x1e0] sm:$0xff] }
 0x5fa   :  { %v12478_v40 = vpop.f32.mrf.mxu0 }
 0x5fd   :  { %9343 = vmatmul.msk.f32.gmra.mxu0 %vm3306_vm10, %v3264_v11  ;;  %9365 = vmatmul.msk.f32.gmra.mxu3 %vm3306_vm10, %v3286_v57  ;;  %v3298_v57 = vld [vmem:[#allocation2 + $0x1e8] sm:$0xff] }
 0x600   :  { %v12483_v8 = vpop.f32.mrf.mxu3 }
 0x601   :  { %16210 = vst [vmem:[#allocation7_spill] sm:$0xff] %v12483_v8 }
 0x602   :  { %v12485_v26 = vpop.f32.mrf.mxu0 }
 0x605   :  { %9344 = vmatmul.msk.f32.gmra.mxu0 %vm3306_vm10, %v3265_v20  ;;  %9366 = vmatmul.msk.f32.gmra.mxu3 %vm3306_vm10, %v3287_v19  ;;  %v3299_v19 = vld [vmem:[#allocation2 + $0x1f0] sm:$0xff]  ;;  %v3714_v20 = vsel %vm3712_vm11, %v12404_v27, 0.0 }
 0x608   :  { %v12490_v34 = vpop.f32.mrf.mxu3 }
 0x609   :  { %16211 = vst [vmem:[#allocation6_spill] sm:$0xff] %v12490_v34 }
 0x60a   :  { %v12492_v36 = vpop.f32.mrf.mxu0 }
 0x60d   :  { %9345 = vmatmul.msk.f32.gmra.mxu0 %vm3306_vm10, %v3266_v54  ;;  %9367 = vmatmul.msk.f32.gmra.mxu3 %vm3306_vm10, %v3288_v0  ;;  %v3716_v0 = vsel %vm3712_vm11, %v12413_v29, 0.0  ;;  %v3715_v54 = vadd.f32 %v3714_v20, %v3713_v41 }
 0x610   :  { %v12497_v9 = vpop.f32.mrf.mxu3 }
 0x611   :  { %16212 = vst [vmem:[#allocation8_spill] sm:$0xff] %v12497_v9 }
 0x612   :  { %v12499_v10 = vpop.f32.mrf.mxu0 }
 0x613   :  { %16213 = vst [vmem:[#allocation9_spill] sm:$0xff] %v12499_v10 }
 0x615   :  { %9346 = vmatmul.msk.f32.gmra.mxu0 %vm3306_vm10, %v3267_v28  ;;  %9368 = vmatmul.msk.f32.gmra.mxu3 %vm3306_vm10, %v3289_v39  ;;  %v3717_v39 = vadd.f32 %v3716_v0, %v3715_v54  ;;  %v3736_v0 = vsel %vm3712_vm11, %v12485_v26, 0.0 }
 0x618   :  { %v12504_v50 = vpop.f32.mrf.mxu3 }
 0x619   :  { %16214 = vst [vmem:[#allocation10_spill] sm:$0xff] %v12504_v50 }
 0x61a   :  { %v12506_v60 = vpop.f32.mrf.mxu0 }
 0x61b   :  { %16215 = vst [vmem:[#allocation11_spill] sm:$0xff] %v12506_v60 }
 0x61d   :  { %9347 = vmatmul.msk.f32.gmra.mxu0 %vm3306_vm10, %v3268_v23  ;;  %9369 = vmatmul.msk.f32.gmra.mxu3 %vm3306_vm10, %v3290_v18  ;;  %v3719_v18 = vadd.f32 %v3718_v17, %v3717_v39  ;;  %v3738_v39 = vsel %vm3712_vm11, %v12492_v36, 0.0 }
 0x620   :  { %v12511_v49 = vpop.f32.mrf.mxu3 }
 0x622   :  { %v12513_v61 = vpop.f32.mrf.mxu0 }
 0x623   :  { %16216 = vst [vmem:[#allocation12_spill] sm:$0xff] %v12513_v61 }
 0x625   :  { %9348 = vmatmul.msk.f32.gmra.mxu0 %vm3306_vm10, %v3269_v1  ;;  %9370 = vmatmul.msk.f32.gmra.mxu3 %vm3306_vm10, %v3291_v24  ;;  %v3722_v24 = vsel %vm3712_vm11, %v12440_v44, 0.0  ;;  %v3721_v1 = vadd.f32 %v3720_v2, %v3719_v18  ;;  %v3740_v18 = vsel %vm3712_vm11, %v12499_v10, 0.0 }
 0x628   :  { %v12518_v47 = vpop.f32.mrf.mxu3 }
 0x629   :  { %16217 = vst [vmem:[#allocation13_spill] sm:$0xff] %v12518_v47 }
 0x62a   :  { %v12520_v33 = vpop.f32.mrf.mxu0 }
 0x62b   :  { %16218 = vst [vmem:[#allocation14_spill] sm:$0xff] %v12520_v33 }
 0x62d   :  { %9371 = vmatmul.msk.f32.gmra.mxu3 %vm3306_vm10, %v3292_v37  ;;  %v3723_v37 = vadd.f32 %v3722_v24, %v3721_v1  ;;  %v3742_v24 = vsel %vm3712_vm11, %v12506_v60, 0.0 }
 0x630   :  { %v12524_v45 = vpop.f32.mrf.mxu3 }
 0x632   :  { %v12526_v53 = vpop.f32.mrf.mxu0 }
 0x633   :  { %16219 = vst [vmem:[#allocation15_spill] sm:$0xff] %v12526_v53 }
 0x635   :  { %9372 = vmatmul.msk.f32.gmra.mxu3 %vm3306_vm10, %v3293_v51  ;;  %v3725_v51 = vadd.f32 %v3724_v46, %v3723_v37  ;;  %v3744_v37 = vsel %vm3712_vm11, %v12513_v61, 0.0 }
 0x637   :  { %v3727_v3 = vadd.f32 %v3726_v38, %v3725_v51 }
 0x638   :  { %v12530_v58 = vpop.f32.mrf.mxu3 }
 0x63a   :  { %v12532_v59 = vpop.f32.mrf.mxu0 }
 0x63b   :  { %16220 = vst [vmem:[#allocation16_spill] sm:$0xff] %v12532_v59 }
 0x63d   :  { %9373 = vmatmul.msk.f32.gmra.mxu3 %vm3306_vm10, %v3294_v7  ;;  %v3728_v7 = vsel %vm3712_vm11, %v12463_v25, 0.0 }
 0x640   :  { %v12536_v16 = vpop.f32.mrf.mxu3 }
 0x642   :  { %v12538_v12 = vpop.f32.mrf.mxu0 }
 0x643   :  { %16221 = vst [vmem:[#allocation17_spill] sm:$0xff] %v12538_v12 }
 0x645   :  { %9374 = vmatmul.msk.f32.gmra.mxu3 %vm3306_vm10, %v3295_v13 }
 0x648   :  { %v12542_v22 = vpop.f32.mrf.mxu3 }
 0x649   :  { %16222 = vst [vmem:[#allocation18_spill] sm:$0xff] %v12542_v22 }
 0x64a   :  { %v12544_v35 = vpop.f32.mrf.mxu0 }
 0x64b   :  { %16223 = vst [vmem:[#allocation19_spill] sm:$0xff] %v12544_v35 }
 0x64d   :  { %9375 = vmatmul.msk.f32.gmra.mxu3 %vm3306_vm10, %v3296_v31  ;;  %v3729_v31 = vadd.f32 %v3728_v7, %v3727_v3  ;;  %v3746_v7 = vsel %vm3712_vm11, %v12520_v33, 0.0 }
 0x650   :  { %v12547_v48 = vpop.f32.mrf.mxu3 }
 0x652   :  { %v12549_v42 = vpop.f32.mrf.mxu0 }
 0x653   :  { %16224 = vst [vmem:[#allocation20_spill] sm:$0xff] %v12549_v42 }
 0x655   :  { %9376 = vmatmul.msk.f32.gmra.mxu3 %vm3306_vm10, %v3297_v43  ;;  %v3732_v43 = vsel %vm3712_vm11, %v12473_v5, 0.0 }
 0x658   :  { %v12552_v63 = vpop.f32.mrf.mxu3 }
 0x65a   :  { %v12554_v56 = vpop.f32.mrf.mxu0 }
 0x65b   :  { %16225 = vst [vmem:[#allocation21_spill] sm:$0xff] %v12554_v56 }
 0x65d   :  { %9377 = vmatmul.msk.f32.gmra.mxu3 %vm3306_vm10, %v3298_v57  ;;  %v3731_v57 = vadd.f32 %v3730_v21, %v3729_v31  ;;  %v3748_v21 = vsel %vm3712_vm11, %v12526_v53, 0.0 }
 0x65f   :  { %v3733_v20 = vadd.f32 %v3732_v43, %v3731_v57  ;;  %v3750_v43 = vsel %vm3712_vm11, %v12532_v59, 0.0 }
 0x660   :  { %v12557_v11 = vpop.f32.mrf.mxu3 }
 0x661   :  { %16226 = vst [vmem:[#allocation22_spill] sm:$0xff] %v12557_v11 }
 0x662   :  { %v12559_v14 = vpop.f32.mrf.mxu0 }
 0x663   :  { %16227 = vst [vmem:[#allocation23_spill] sm:$0xff] %v12559_v14 }
 0x665   :  { %9378 = vmatmul.msk.f32.gmra.mxu3 %vm3306_vm10, %v3299_v19  ;;  %v3734_v19 = vsel %vm3712_vm11, %v12478_v40, 0.0 }
 0x666   :  { %v3735_v54 = vadd.f32 %v3734_v19, %v3733_v20  ;;  %v3752_v20 = vsel %vm3712_vm11, %v12538_v12, 0.0 }
 0x668   :  { %v12570_v28 = vpop.f32.mrf.mxu3  ;;  %v3737_v2 = vadd.f32 %v3736_v0, %v3735_v54 }
 0x66a   :  { %v12574_v23 = vpop.f32.mrf.mxu0 }
 0x66b   :  { %16228 = vst [vmem:[#allocation24_spill] sm:$0xff] %v12574_v23 }
 0x66d   :  { %9379 = vmatmul.msk.f32.gmra.mxu3 %vm3306_vm10, %v3300_v6  ;;  %v3739_v6 = vadd.f32 %v3738_v39, %v3737_v2  ;;  %v3754_v39 = vsel %vm3712_vm11, %v12544_v35, 0.0  ;;  %vm7756_vm10 = vcmask 588800  }
 0x66f   :  { %v3741_v1 = vadd.f32 %v3740_v18, %v3739_v6  ;;  %v3756_v18 = vsel %vm3712_vm11, %v12549_v42, 0.0 }
 0x670   :  { %v12583_v52 = vpop.f32.mrf.mxu3 }
 0x671   :  { %16229 = vst [vmem:[#allocation25_spill] sm:$0xff] %v12583_v52  ;;  %v3743_v38 = vadd.f32 %v3742_v24, %v3741_v1  ;;  %v3758_v24 = vsel %vm3712_vm11, %v12554_v56, 0.0 }
 0x672   :  { %v12587_v13 = vpop.f32.mrf.mxu0 }
 0x673   :  { %16230 = vst [vmem:[#allocation26_spill] sm:$0xff] %v12587_v13  ;;  %v3745_v3 = vadd.f32 %v3744_v37, %v3743_v38  ;;  %v3760_v38 = vsel %vm3712_vm11, %v12559_v14, 0.0 }
 0x675   :  { %v3747_v31 = vadd.f32 %v3746_v7, %v3745_v3 }
 0x677   :  { %v3749_v57 = vadd.f32 %v3748_v21, %v3747_v31  ;;  %v3762_v21 = vsel %vm3712_vm11, %v12574_v23, 0.0 }
 0x678   :  { %v12595_v41 = vpop.f32.mrf.mxu3 }
 0x679   :  { %v3751_v0 = vadd.f32 %v3750_v43, %v3749_v57  ;;  %v3764_v43 = vsel %vm3712_vm11, %v12587_v13, 0.0 }
 0x67a   :  { %v12599_v17 = vpop.f32.mrf.mxu0 }
 0x67b   :  { %16231 = vst [vmem:[#allocation27_spill] sm:$0xff] %v12599_v17  ;;  %v3753_v2 = vadd.f32 %v3752_v20, %v3751_v0  ;;  %v3766_v20 = vsel %vm3712_vm11, %v12599_v17, 0.0 }
 0x67d   :  { %v3755_v6 = vadd.f32 %v3754_v39, %v3753_v2 }
 0x67f   :  { %v3757_v1 = vadd.f32 %v3756_v18, %v3755_v6 }
 0x680   :  { %v12607_v46 = vpop.f32.mrf.mxu3 }
 0x681   :  { %v3759_v7 = vadd.f32 %v3758_v24, %v3757_v1 }
 0x682   :  { %v12611_v51 = vpop.f32.mrf.mxu0 }
 0x683   :  { %16232 = vst [vmem:[#allocation28_spill] sm:$0xff] %v12611_v51  ;;  %v3761_v31 = vadd.f32 %v3760_v38, %v3759_v7  ;;  %v3768_v2 = vsel %vm3712_vm11, %v12611_v51, 0.0 }
 0x685   :  { %v3763_v57 = vadd.f32 %v3762_v21, %v3761_v31 }
 0x687   :  { %v3765_v0 = vadd.f32 %v3764_v43, %v3763_v57 }
 0x688   :  { %v12619_v19 = vpop.f32.mrf.mxu3 }
 0x689   :  { %v3767_v18 = vadd.f32 %v3766_v20, %v3765_v0 }
 0x68a   :  { %v12623_v54 = vpop.f32.mrf.mxu0 }
 0x68b   :  { %16233 = vst [vmem:[#allocation29_spill] sm:$0xff] %v12623_v54  ;;  %v3770_v24 = vsel %vm3712_vm11, %v12623_v54, 0.0  ;;  %v3769_v1 = vadd.f32 %v3768_v2, %v3767_v18  ;;  %v3778_v2 = vsel %vm3712_vm11, %v12483_v8, 0.0 }
 0x68d   :  { %v3771_v7 = vadd.f32 %v3770_v24, %v3769_v1  ;;  %v3780_v24 = vsel %vm3712_vm11, %v12490_v34, 0.0 }
 0x690   :  { %v12631_v37 = vpop.f32.mrf.mxu3 }
 0x691   :  { %16234 = vst [vmem:[#allocation30_spill] sm:$0xff] %v12631_v37 }
 0x692   :  { %v12635_v3 = vpop.f32.mrf.mxu0 }
 0x693   :  { %16235 = vst [vmem:[#allocation31_spill] sm:$0xff] %v12635_v3  ;;  %v3772_v38 = vsel %vm3712_vm11, %v12635_v3, 0.0 }
 0x694   :  { %v3773_v31 = vadd.f32 %v3772_v38, %v3771_v7  ;;  %v3782_v38 = vsel %vm3712_vm11, %v12497_v9, 0.0 }
 0x698   :  { %v12643_v39 = vpop.f32.mrf.mxu3 }
 0x699   :  { %16236 = vst [vmem:[#allocation32_spill] sm:$0xff] %v12643_v39 }
 0x69a   :  { %v12647_v6 = vpop.f32.mrf.mxu0 }
 0x69b   :  { %16237 = vst [vmem:[#allocation33_spill] sm:$0xff] %v12647_v6  ;;  %v3774_v21 = vsel %vm3712_vm11, %v12647_v6, 0.0 }
 0x69c   :  { %v3775_v57 = vadd.f32 %v3774_v21, %v3773_v31  ;;  %v3784_v21 = vsel %vm3712_vm11, %v12504_v50, 0.0 }
 0x6a0   :  { %v12655_v43 = vpop.f32.mrf.mxu3 }
 0x6a1   :  { %16238 = vst [vmem:[#allocation34_spill] sm:$0xff] %v12655_v43 }
 0x6a2   :  { %v12657_v17 = vpop.f32.mrf.mxu0 }
 0x6a3   :  { %16239 = vst [vmem:[#allocation35_spill] sm:$0xff] %v12657_v17  ;;  %v3776_v20 = vsel %vm3712_vm11, %v12657_v17, 0.0 }
 0x6a4   :  { %v3777_v0 = vadd.f32 %v3776_v20, %v3775_v57  ;;  %v3786_v57 = vsel %vm3712_vm11, %v12511_v49, 0.0 }
 0x6a6   :  { %v3779_v18 = vadd.f32 %v3778_v2, %v3777_v0  ;;  %v3788_v0 = vsel %vm3712_vm11, %v12518_v47, 0.0 }
 0x6a8   :  { %v3781_v1 = vadd.f32 %v3780_v24, %v3779_v18  ;;  %v12665_v3 = vpop.f32.mrf.mxu3  ;;  %v3790_v18 = vsel %vm3712_vm11, %v12524_v45, 0.0 }
 0x6a9   :  { %16240 = vst [vmem:[#allocation36_spill] sm:$0xff] %v12665_v3 }
 0x6aa   :  { %v3783_v7 = vadd.f32 %v3782_v38, %v3781_v1  ;;  %v3792_v1 = vsel %vm3712_vm11, %v12530_v58, 0.0 }
 0x6ac   :  { %v3785_v31 = vadd.f32 %v3784_v21, %v3783_v7  ;;  %v3794_v7 = vsel %vm3712_vm11, %v12536_v16, 0.0 }
 0x6ae   :  { %v3787_v20 = vadd.f32 %v3786_v57, %v3785_v31  ;;  %v3796_v31 = vsel %vm3712_vm11, %v12542_v22, 0.0 }
 0x6b0   :  { %v3789_v2 = vadd.f32 %v3788_v0, %v3787_v20  ;;  %v12675_v34 = vpop.f32.mrf.mxu3  ;;  %v3798_v20 = vsel %vm3712_vm11, %v12547_v48, 0.0 }
 0x6b1   :  { %16241 = vst [vmem:[#allocation37_spill] sm:$0xff] %v12675_v34 }
 0x6b2   :  { %v3791_v24 = vadd.f32 %v3790_v18, %v3789_v2  ;;  %v3800_v2 = vsel %vm3712_vm11, %v12552_v63, 0.0 }
 0x6b4   :  { %v3793_v38 = vadd.f32 %v3792_v1, %v3791_v24  ;;  %v3802_v24 = vsel %vm3712_vm11, %v12557_v11, 0.0 }
 0x6b6   :  { %v3795_v21 = vadd.f32 %v3794_v7, %v3793_v38  ;;  %v3804_v38 = vsel %vm3712_vm11, %v12570_v28, 0.0 }
 0x6b8   :  { %v3797_v57 = vadd.f32 %v3796_v31, %v3795_v21  ;;  %v12685_v47 = vpop.f32.mrf.mxu3  ;;  %v3806_v21 = vsel %vm3712_vm11, %v12583_v52, 0.0 }
 0x6b9   :  { %16242 = vst [vmem:[#allocation38_spill] sm:$0xff] %v12685_v47 }
 0x6ba   :  { %v3799_v0 = vadd.f32 %v3798_v20, %v3797_v57  ;;  %v3808_v57 = vsel %vm3712_vm11, %v12595_v41, 0.0 }
 0x6bc   :  { %v3801_v18 = vadd.f32 %v3800_v2, %v3799_v0  ;;  %v3810_v0 = vsel %vm3712_vm11, %v12607_v46, 0.0 }
 0x6be   :  { %v3803_v1 = vadd.f32 %v3802_v24, %v3801_v18  ;;  %v3812_v18 = vsel %vm3712_vm11, %v12619_v19, 0.0 }
 0x6c0   :  { %v3805_v7 = vadd.f32 %v3804_v38, %v3803_v1  ;;  %v12695_v22 = vpop.f32.mrf.mxu3  ;;  %v3814_v1 = vsel %vm3712_vm11, %v12631_v37, 0.0 }
 0x6c1   :  { %16243 = vst [vmem:[#allocation39_spill] sm:$0xff] %v12695_v22 }
 0x6c2   :  { %v3807_v31 = vadd.f32 %v3806_v21, %v3805_v7  ;;  %v3816_v7 = vsel %vm3712_vm11, %v12643_v39, 0.0  ;;  %v3824_v39 = vsel %vm3712_vm11, %v12685_v47, 0.0 }
 0x6c4   :  { %v3809_v20 = vadd.f32 %v3808_v57, %v3807_v31  ;;  %v3818_v31 = vsel %vm3712_vm11, %v12655_v43, 0.0 }
 0x6c6   :  { %v3811_v2 = vadd.f32 %v3810_v0, %v3809_v20  ;;  %v3820_v0 = vsel %vm3712_vm11, %v12665_v3, 0.0 }
 0x6c8   :  { %v12703_v11 = vpop.f32.mrf.mxu3  ;;  %v3813_v24 = vadd.f32 %v3812_v18, %v3811_v2  ;;  %v3822_v18 = vsel %vm3712_vm11, %v12675_v34, 0.0 }
 0x6c9   :  { %16244 = vst [vmem:[#allocation40_spill] sm:$0xff] %v12703_v11  ;;  %v3828_v3 = vsel %vm3712_vm11, %v12703_v11, 0.0 }
 0x6ca   :  { %v3815_v38 = vadd.f32 %v3814_v1, %v3813_v24 }
 0x6cc   :  { %v3817_v21 = vadd.f32 %v3816_v7, %v3815_v38  ;;  %v3826_v7 = vsel %vm3712_vm11, %v12695_v22, 0.0 }
 0x6ce   :  { %v3819_v57 = vadd.f32 %v3818_v31, %v3817_v21 }
 0x6d0   :  { %v12709_v52 = vpop.f32.mrf.mxu3  ;;  %v3821_v2 = vadd.f32 %v3820_v0, %v3819_v57 }
 0x6d1   :  { %16245 = vst [vmem:[#allocation41_spill] sm:$0xff] %v12709_v52  ;;  %v3830_v0 = vsel %vm3712_vm11, %v12709_v52, 0.0  ;;  %v9486_v52 = vmov 512.0  }
 0x6d2   :  { %v3823_v24 = vadd.f32 %v3822_v18, %v3821_v2  ;;  %9472 = vrcp.f32 %v9486_v52 }
 0x6d4   :  { %v3825_v38 = vadd.f32 %v3824_v39, %v3823_v24 }
 0x6d6   :  { %v3827_v21 = vadd.f32 %v3826_v7, %v3825_v38 }
 0x6d8   :  { %v12715_v20 = vpop.f32.mrf.mxu3  ;;  %v3829_v57 = vadd.f32 %v3828_v3, %v3827_v21 }
 0x6d9   :  { %16246 = vst [vmem:[#allocation42_spill] sm:$0xff] %v12715_v20  ;;  %v3832_v18 = vsel %vm3712_vm11, %v12715_v20, 0.0 }
 0x6da   :  { %v3831_v2 = vadd.f32 %v3830_v0, %v3829_v57  ;;  %v9473_v0 = vpop.eup %9472 }
 0x6db   :  { %v3847_v22 = vmul.f32 512.0, %v9473_v0  ;;  %vm3851_vm12 = vweird.f32 %v9473_v0 }
 0x6dc   :  { %v3833_v24 = vadd.f32 %v3832_v18, %v3831_v2 }
 0x6e0   :  { %v12721_v1 = vpop.f32.mrf.mxu3 }
 0x6e1   :  { %16247 = vst [vmem:[#allocation43_spill] sm:$0xff] %v12721_v1  ;;  %v3834_v39 = vsel %vm3712_vm11, %v12721_v1, 0.0  ;;  %v3848_v1 = vsub.f32 1.0, %v3847_v22 }
 0x6e2   :  { %v3835_v7 = vadd.f32 %v3834_v39, %v3833_v24 }
 0x6e3   :  { %v3849_v18 = vmul.f32 %v9473_v0, %v3848_v1 }
 0x6e5   :  { %v3850_v37 = vadd.f32 %v9473_v0, %v3849_v18 }
 0x6e7   :  { %v12743_v39 = vsel %vm3851_vm12, %v9473_v0, %v3850_v37 }
 0x6e8   :  { %v12727_v31 = vpop.f32.mrf.mxu3  ;;  %16249 = vst [vmem:[#allocation45_spill] sm:$0xff] %v12743_v39 }
 0x6e9   :  { %16248 = vst [vmem:[#allocation44_spill] sm:$0xff] %v12727_v31  ;;  %v3836_v38 = vsel %vm3712_vm11, %v12727_v31, 0.0 }
 0x6ea   :  { %v3837_v21 = vadd.f32 %v3836_v38, %v3835_v7 }
 0x6f0   :  { %v12737_v47 = vpop.f32.mrf.mxu3 }
 0x6f1   :  { %v3838_v3 = vsel %vm3712_vm11, %v12737_v47, 0.0 }
 0x6f2   :  { %v3839_v11 = vadd.f32 %v3838_v3, %v3837_v21 }
 0x6f4   :  { %v3840_v57 = vrot.slane %v3839_v11, 4 }
 0x6f6   :  { %v3841_v20 = vadd.f32 %v3840_v57, %v3839_v11 }
 0x6f8   :  { %v3842_v34 = vrot.slane %v3841_v20, 2 }
 0x6fa   :  { %v3843_v2 = vadd.f32 %v3842_v34, %v3841_v20 }
 0x6fc   :  { %v3844_v43 = vrot.slane %v3843_v2, 1 }
 0x6fe   :  { %v3845_v31 = vadd.f32 %v3844_v43, %v3843_v2 }
 0x700   :  { %v12746_v24 = vmul.f32 %v12743_v39, %v3845_v31 }
 0x702   :  { %v3854_v52 = vsub.f32 %v12395_v55, %v12746_v24  ;;  %v3855_v11 = vsub.f32 %v12404_v27, %v12746_v24  ;;  %v3856_v22 = vsub.f32 %v12413_v29, %v12746_v24  ;;  %v3857_v34 = vsub.f32 %v12422_v15, %v12746_v24 }
 0x703   :  { %v3858_v37 = vsub.f32 %v12431_v32, %v12746_v24  ;;  %v3859_v31 = vsub.f32 %v12440_v44, %v12746_v24  ;;  %v3860_v57 = vsub.f32 %v12449_v62, %v12746_v24 }
 0x704   :  { %v3918_v20 = vmul.f32 %v3854_v52, %v3854_v52  ;;  %v3919_v1 = vmul.f32 %v3855_v11, %v3855_v11  ;;  %v3920_v43 = vmul.f32 %v3856_v22, %v3856_v22  ;;  %v3921_v38 = vmul.f32 %v3857_v34, %v3857_v34 }
 0x705   :  { %v3922_v0 = vmul.f32 %v3858_v37, %v3858_v37  ;;  %v3861_v52 = vsub.f32 %v12458_v4, %v12746_v24  ;;  %v3923_v11 = vmul.f32 %v3859_v31, %v3859_v31  ;;  %v3862_v34 = vsub.f32 %v12463_v25, %v12746_v24 }
 0x706   :  { %v3982_v7 = vsel %vm3712_vm11, %v3918_v20, 0.0  ;;  %v3983_v3 = vsel %vm3712_vm11, %v3919_v1, 0.0  ;;  %v3985_v2 = vsel %vm3712_vm11, %v3920_v43, 0.0  ;;  %v3987_v22 = vsel %vm3712_vm11, %v3921_v38, 0.0 }
 0x707   :  { %v3984_v21 = vadd.f32 %v3983_v3, %v3982_v7  ;;  %v3924_v20 = vmul.f32 %v3860_v57, %v3860_v57  ;;  %v3989_v1 = vsel %vm3712_vm11, %v3922_v0, 0.0  ;;  %v3863_v37 = vsub.f32 %v12468_v30, %v12746_v24 }
 0x708   :  { %v3925_v3 = vmul.f32 %v3861_v52, %v3861_v52  ;;  %v3991_v43 = vsel %vm3712_vm11, %v3923_v11, 0.0  ;;  %v3864_v31 = vsub.f32 %v12473_v5, %v12746_v24  ;;  %v3865_v57 = vsub.f32 %v12478_v40, %v12746_v24 }
 0x709   :  { %v3986_v18 = vadd.f32 %v3985_v2, %v3984_v21  ;;  %v3926_v2 = vmul.f32 %v3862_v34, %v3862_v34  ;;  %v3993_v38 = vsel %vm3712_vm11, %v3924_v20, 0.0  ;;  %v3866_v52 = vsub.f32 %v12485_v26, %v12746_v24 }
 0x70a   :  { %v3867_v34 = vsub.f32 %v12492_v36, %v12746_v24 }
 0x70b   :  { %v3988_v44 = vadd.f32 %v3987_v22, %v3986_v18  ;;  %v3927_v22 = vmul.f32 %v3863_v37, %v3863_v37  ;;  %v3997_v11 = vsel %vm3712_vm11, %v3926_v2, 0.0  ;;  %v3868_v37 = vsub.f32 %v12499_v10, %v12746_v24 }
 0x70d   :  { %v3990_v7 = vadd.f32 %v3989_v1, %v3988_v44  ;;  %v3995_v44 = vsel %vm3712_vm11, %v3925_v3, 0.0  ;;  %v3928_v1 = vmul.f32 %v3864_v31, %v3864_v31  ;;  %v3999_v20 = vsel %vm3712_vm11, %v3927_v22, 0.0 }
 0x70e   :  { %v3869_v31 = vsub.f32 %v12506_v60, %v12746_v24 }
 0x70f   :  { %v3992_v21 = vadd.f32 %v3991_v43, %v3990_v7  ;;  %v3929_v43 = vmul.f32 %v3865_v57, %v3865_v57  ;;  %v4001_v3 = vsel %vm3712_vm11, %v3928_v1, 0.0  ;;  %v3870_v57 = vsub.f32 %v12513_v61, %v12746_v24 }
 0x711   :  { %v3994_v18 = vadd.f32 %v3993_v38, %v3992_v21  ;;  %v3930_v38 = vmul.f32 %v3866_v52, %v3866_v52  ;;  %v4003_v2 = vsel %vm3712_vm11, %v3929_v43, 0.0  ;;  %v3871_v52 = vsub.f32 %v12520_v33, %v12746_v24 }
 0x713   :  { %v3996_v0 = vadd.f32 %v3995_v44, %v3994_v18  ;;  %v3931_v44 = vmul.f32 %v3867_v34, %v3867_v34  ;;  %v4005_v22 = vsel %vm3712_vm11, %v3930_v38, 0.0  ;;  %v3872_v34 = vsub.f32 %v12526_v53, %v12746_v24 }
 0x715   :  { %v3998_v7 = vadd.f32 %v3997_v11, %v3996_v0  ;;  %v3932_v11 = vmul.f32 %v3868_v37, %v3868_v37  ;;  %v4007_v1 = vsel %vm3712_vm11, %v3931_v44, 0.0  ;;  %v3873_v37 = vsub.f32 %v12532_v59, %v12746_v24 }
 0x717   :  { %v4000_v21 = vadd.f32 %v3999_v20, %v3998_v7  ;;  %v3933_v20 = vmul.f32 %v3869_v31, %v3869_v31  ;;  %v4009_v43 = vsel %vm3712_vm11, %v3932_v11, 0.0  ;;  %v3874_v31 = vsub.f32 %v12538_v12, %v12746_v24 }
 0x719   :  { %v4002_v18 = vadd.f32 %v4001_v3, %v4000_v21  ;;  %v3934_v3 = vmul.f32 %v3870_v57, %v3870_v57  ;;  %v4011_v38 = vsel %vm3712_vm11, %v3933_v20, 0.0  ;;  %v3875_v57 = vsub.f32 %v12544_v35, %v12746_v24 }
 0x71b   :  { %v4004_v0 = vadd.f32 %v4003_v2, %v4002_v18  ;;  %v3935_v2 = vmul.f32 %v3871_v52, %v3871_v52  ;;  %v4013_v44 = vsel %vm3712_vm11, %v3934_v3, 0.0  ;;  %v3876_v52 = vsub.f32 %v12549_v42, %v12746_v24 }
 0x71d   :  { %v4006_v7 = vadd.f32 %v4005_v22, %v4004_v0  ;;  %v3936_v22 = vmul.f32 %v3872_v34, %v3872_v34  ;;  %v4015_v11 = vsel %vm3712_vm11, %v3935_v2, 0.0  ;;  %v3877_v34 = vsub.f32 %v12554_v56, %v12746_v24 }
 0x71f   :  { %v4008_v21 = vadd.f32 %v4007_v1, %v4006_v7  ;;  %v3937_v1 = vmul.f32 %v3873_v37, %v3873_v37  ;;  %v4017_v20 = vsel %vm3712_vm11, %v3936_v22, 0.0  ;;  %v3878_v37 = vsub.f32 %v12559_v14, %v12746_v24 }
 0x721   :  { %v4010_v18 = vadd.f32 %v4009_v43, %v4008_v21  ;;  %v3938_v43 = vmul.f32 %v3874_v31, %v3874_v31  ;;  %v4019_v3 = vsel %vm3712_vm11, %v3937_v1, 0.0  ;;  %v3879_v31 = vsub.f32 %v12574_v23, %v12746_v24 }
 0x723   :  { %v4012_v0 = vadd.f32 %v4011_v38, %v4010_v18  ;;  %v3939_v38 = vmul.f32 %v3875_v57, %v3875_v57  ;;  %v4021_v2 = vsel %vm3712_vm11, %v3938_v43, 0.0  ;;  %v3880_v57 = vsub.f32 %v12587_v13, %v12746_v24 }
 0x724   :  { %v3943_v14 = vmul.f32 %v3879_v31, %v3879_v31 }
 0x725   :  { %v4014_v7 = vadd.f32 %v4013_v44, %v4012_v0  ;;  %v3940_v44 = vmul.f32 %v3876_v52, %v3876_v52  ;;  %v4023_v22 = vsel %vm3712_vm11, %v3939_v38, 0.0 }
 0x727   :  { %v4016_v21 = vadd.f32 %v4015_v11, %v4014_v7  ;;  %v3941_v11 = vmul.f32 %v3877_v34, %v3877_v34  ;;  %v4025_v1 = vsel %vm3712_vm11, %v3940_v44, 0.0  ;;  %v3882_v34 = vsub.f32 %v12611_v51, %v12746_v24 }
 0x728   :  { %v4031_v44 = vsel %vm3712_vm11, %v3943_v14, 0.0 }
 0x729   :  { %v4018_v18 = vadd.f32 %v4017_v20, %v4016_v21  ;;  %v3942_v20 = vmul.f32 %v3878_v37, %v3878_v37  ;;  %v4027_v43 = vsel %vm3712_vm11, %v3941_v11, 0.0  ;;  %v3883_v37 = vsub.f32 %v12623_v54, %v12746_v24 }
 0x72b   :  { %v4020_v0 = vadd.f32 %v4019_v3, %v4018_v18  ;;  %v16250_v3 = vld [vmem:[#allocation27_spill] sm:$0xff]  ;;  %v4029_v38 = vsel %vm3712_vm11, %v3942_v20, 0.0 }
 0x72c   :  { %v3881_v52 = vsub.f32 %v16250_v3, %v12746_v24  ;;  %v3946_v3 = vmul.f32 %v3882_v34, %v3882_v34  ;;  %v3887_v34 = vsub.f32 %v12483_v8, %v12746_v24 }
 0x72d   :  { %v4022_v7 = vadd.f32 %v4021_v2, %v4020_v0  ;;  %v3944_v2 = vmul.f32 %v3880_v57, %v3880_v57  ;;  %v3885_v57 = vsub.f32 %v12647_v6, %v12746_v24 }
 0x72e   :  { %v4037_v14 = vsel %vm3712_vm11, %v3946_v3, 0.0 }
 0x72f   :  { %v4024_v21 = vadd.f32 %v4023_v22, %v4022_v7  ;;  %v3945_v22 = vmul.f32 %v3881_v52, %v3881_v52  ;;  %v4033_v11 = vsel %vm3712_vm11, %v3944_v2, 0.0  ;;  %v3886_v52 = vsub.f32 %v12657_v17, %v12746_v24 }
 0x731   :  { %v4026_v18 = vadd.f32 %v4025_v1, %v4024_v21  ;;  %v16251_v1 = vld [vmem:[#allocation31_spill] sm:$0xff]  ;;  %v4035_v20 = vsel %vm3712_vm11, %v3945_v22, 0.0  ;;  %v3950_v6 = vmul.f32 %v3886_v52, %v3886_v52  ;;  %v3891_v52 = vsub.f32 %v12511_v49, %v12746_v24 }
 0x732   :  { %v3884_v31 = vsub.f32 %v16251_v1, %v12746_v24 }
 0x733   :  { %v4028_v0 = vadd.f32 %v4027_v43, %v4026_v18  ;;  %v3947_v43 = vmul.f32 %v3883_v37, %v3883_v37 }
 0x735   :  { %v4030_v7 = vadd.f32 %v4029_v38, %v4028_v0  ;;  %v3948_v38 = vmul.f32 %v3884_v31, %v3884_v31  ;;  %v4039_v2 = vsel %vm3712_vm11, %v3947_v43, 0.0  ;;  %v3889_v31 = vsub.f32 %v12497_v9, %v12746_v24 }
 0x736   :  { %v4045_v43 = vsel %vm3712_vm11, %v3950_v6, 0.0 }
 0x737   :  { %v4032_v21 = vadd.f32 %v4031_v44, %v4030_v7  ;;  %v3949_v44 = vmul.f32 %v3885_v57, %v3885_v57  ;;  %v4041_v22 = vsel %vm3712_vm11, %v3948_v38, 0.0  ;;  %v3890_v57 = vsub.f32 %v12504_v50, %v12746_v24 }
 0x739   :  { %v4034_v18 = vadd.f32 %v4033_v11, %v4032_v21  ;;  %v16252_v11 = vld [vmem:[#allocation6_spill] sm:$0xff]  ;;  %v4043_v3 = vsel %vm3712_vm11, %v3949_v44, 0.0  ;;  %v3954_v9 = vmul.f32 %v3890_v57, %v3890_v57  ;;  %v3895_v57 = vsub.f32 %v12536_v16, %v12746_v24 }
 0x73a   :  { %v3888_v37 = vsub.f32 %v16252_v11, %v12746_v24 }
 0x73b   :  { %v4036_v0 = vadd.f32 %v4035_v20, %v4034_v18  ;;  %v3951_v20 = vmul.f32 %v3887_v34, %v3887_v34 }
 0x73d   :  { %v4038_v7 = vadd.f32 %v4037_v14, %v4036_v0  ;;  %v3952_v14 = vmul.f32 %v3888_v37, %v3888_v37  ;;  %v4047_v38 = vsel %vm3712_vm11, %v3951_v20, 0.0  ;;  %v3893_v37 = vsub.f32 %v12524_v45, %v12746_v24 }
 0x73e   :  { %v4053_v20 = vsel %vm3712_vm11, %v3954_v9, 0.0 }
 0x73f   :  { %v4040_v21 = vadd.f32 %v4039_v2, %v4038_v7  ;;  %v3953_v2 = vmul.f32 %v3889_v31, %v3889_v31  ;;  %v4049_v44 = vsel %vm3712_vm11, %v3952_v14, 0.0  ;;  %v3894_v31 = vsub.f32 %v12530_v58, %v12746_v24 }
 0x741   :  { %v4042_v18 = vadd.f32 %v4041_v22, %v4040_v21  ;;  %v16253_v22 = vld [vmem:[#allocation13_spill] sm:$0xff]  ;;  %v4051_v6 = vsel %vm3712_vm11, %v3953_v2, 0.0  ;;  %v3958_v50 = vmul.f32 %v3894_v31, %v3894_v31 }
 0x742   :  { %v3892_v34 = vsub.f32 %v16253_v22, %v12746_v24 }
 0x743   :  { %v4044_v0 = vadd.f32 %v4043_v3, %v4042_v18  ;;  %v3955_v3 = vmul.f32 %v3891_v52, %v3891_v52 }
 0x745   :  { %v4046_v7 = vadd.f32 %v4045_v43, %v4044_v0  ;;  %v3956_v43 = vmul.f32 %v3892_v34, %v3892_v34  ;;  %v4055_v14 = vsel %vm3712_vm11, %v3955_v3, 0.0  ;;  %v3897_v34 = vsub.f32 %v12547_v48, %v12746_v24 }
 0x746   :  { %v4061_v3 = vsel %vm3712_vm11, %v3958_v50, 0.0 }
 0x747   :  { %v4048_v21 = vadd.f32 %v4047_v38, %v4046_v7  ;;  %v3957_v38 = vmul.f32 %v3893_v37, %v3893_v37  ;;  %v4057_v2 = vsel %vm3712_vm11, %v3956_v43, 0.0  ;;  %v3898_v37 = vsub.f32 %v12552_v63, %v12746_v24 }
 0x748   :  { %v3961_v11 = vmul.f32 %v3897_v34, %v3897_v34  ;;  %v3902_v34 = vsub.f32 %v12595_v41, %v12746_v24 }
 0x749   :  { %v4050_v18 = vadd.f32 %v4049_v44, %v4048_v21  ;;  %v16254_v44 = vld [vmem:[#allocation18_spill] sm:$0xff]  ;;  %v4059_v9 = vsel %vm3712_vm11, %v3957_v38, 0.0 }
 0x74a   :  { %v3896_v52 = vsub.f32 %v16254_v44, %v12746_v24  ;;  %v4067_v50 = vsel %vm3712_vm11, %v3961_v11, 0.0 }
 0x74b   :  { %v4052_v0 = vadd.f32 %v4051_v6, %v4050_v18  ;;  %v3959_v6 = vmul.f32 %v3895_v57, %v3895_v57  ;;  %v3900_v57 = vsub.f32 %v12570_v28, %v12746_v24 }
 0x74d   :  { %v4054_v7 = vadd.f32 %v4053_v20, %v4052_v0  ;;  %v3960_v20 = vmul.f32 %v3896_v52, %v3896_v52  ;;  %v4063_v43 = vsel %vm3712_vm11, %v3959_v6, 0.0 }
 0x74f   :  { %v4056_v21 = vadd.f32 %v4055_v14, %v4054_v7  ;;  %v16255_v14 = vld [vmem:[#allocation22_spill] sm:$0xff]  ;;  %v4065_v38 = vsel %vm3712_vm11, %v3960_v20, 0.0 }
 0x750   :  { %v3899_v31 = vsub.f32 %v16255_v14, %v12746_v24 }
 0x751   :  { %v4058_v18 = vadd.f32 %v4057_v2, %v4056_v21  ;;  %v3962_v2 = vmul.f32 %v3898_v37, %v3898_v37  ;;  %v3903_v37 = vsub.f32 %v12607_v46, %v12746_v24 }
 0x752   :  { %v3963_v8 = vmul.f32 %v3899_v31, %v3899_v31  ;;  %v3904_v31 = vsub.f32 %v12619_v19, %v12746_v24 }
 0x753   :  { %v4060_v0 = vadd.f32 %v4059_v9, %v4058_v18  ;;  %v16256_v9 = vld [vmem:[#allocation25_spill] sm:$0xff]  ;;  %v4069_v6 = vsel %vm3712_vm11, %v3962_v2, 0.0  ;;  %v3967_v17 = vmul.f32 %v3903_v37, %v3903_v37 }
 0x754   :  { %v3901_v52 = vsub.f32 %v16256_v9, %v12746_v24  ;;  %v4071_v20 = vsel %vm3712_vm11, %v3963_v8, 0.0  ;;  %v3968_v1 = vmul.f32 %v3904_v31, %v3904_v31 }
 0x755   :  { %v4062_v7 = vadd.f32 %v4061_v3, %v4060_v0  ;;  %v3964_v3 = vmul.f32 %v3900_v57, %v3900_v57 }
 0x757   :  { %v4064_v21 = vadd.f32 %v4063_v43, %v4062_v7  ;;  %v3965_v43 = vmul.f32 %v3901_v52, %v3901_v52  ;;  %v4073_v11 = vsel %vm3712_vm11, %v3964_v3, 0.0  ;;  %v4079_v3 = vsel %vm3712_vm11, %v3967_v17, 0.0 }
 0x759   :  { %v4066_v18 = vadd.f32 %v4065_v38, %v4064_v21  ;;  %v3966_v38 = vmul.f32 %v3902_v34, %v3902_v34  ;;  %v4075_v2 = vsel %vm3712_vm11, %v3965_v43, 0.0  ;;  %v4081_v43 = vsel %vm3712_vm11, %v3968_v1, 0.0 }
 0x75b   :  { %v4068_v0 = vadd.f32 %v4067_v50, %v4066_v18  ;;  %v16257_v50 = vld [vmem:[#allocation30_spill] sm:$0xff]  ;;  %v4077_v8 = vsel %vm3712_vm11, %v3966_v38, 0.0 }
 0x75c   :  { %v3905_v57 = vsub.f32 %v16257_v50, %v12746_v24 }
 0x75d   :  { %v4070_v7 = vadd.f32 %v4069_v6, %v4068_v0  ;;  %v16258_v6 = vld [vmem:[#allocation32_spill] sm:$0xff] }
 0x75e   :  { %v3906_v52 = vsub.f32 %v16258_v6, %v12746_v24  ;;  %v3969_v54 = vmul.f32 %v3905_v57, %v3905_v57 }
 0x75f   :  { %v4072_v21 = vadd.f32 %v4071_v20, %v4070_v7  ;;  %v16259_v20 = vld [vmem:[#allocation34_spill] sm:$0xff] }
 0x760   :  { %v3907_v34 = vsub.f32 %v16259_v20, %v12746_v24  ;;  %v3970_v51 = vmul.f32 %v3906_v52, %v3906_v52  ;;  %v4083_v38 = vsel %vm3712_vm11, %v3969_v54, 0.0 }
 0x761   :  { %v4074_v18 = vadd.f32 %v4073_v11, %v4072_v21  ;;  %v16260_v11 = vld [vmem:[#allocation36_spill] sm:$0xff] }
 0x762   :  { %v3908_v37 = vsub.f32 %v16260_v11, %v12746_v24  ;;  %v3971_v13 = vmul.f32 %v3907_v34, %v3907_v34  ;;  %v4085_v17 = vsel %vm3712_vm11, %v3970_v51, 0.0 }
 0x763   :  { %v4076_v0 = vadd.f32 %v4075_v2, %v4074_v18  ;;  %v16261_v2 = vld [vmem:[#allocation37_spill] sm:$0xff] }
 0x764   :  { %v3909_v31 = vsub.f32 %v16261_v2, %v12746_v24  ;;  %v3972_v23 = vmul.f32 %v3908_v37, %v3908_v37  ;;  %v4087_v1 = vsel %vm3712_vm11, %v3971_v13, 0.0 }
 0x765   :  { %v4078_v7 = vadd.f32 %v4077_v8, %v4076_v0  ;;  %v16262_v8 = vld [vmem:[#allocation38_spill] sm:$0xff] }
 0x766   :  { %v3910_v57 = vsub.f32 %v16262_v8, %v12746_v24  ;;  %v3973_v56 = vmul.f32 %v3909_v31, %v3909_v31  ;;  %v4089_v54 = vsel %vm3712_vm11, %v3972_v23, 0.0 }
 0x767   :  { %v4080_v21 = vadd.f32 %v4079_v3, %v4078_v7  ;;  %v16263_v3 = vld [vmem:[#allocation39_spill] sm:$0xff] }
 0x768   :  { %v3911_v52 = vsub.f32 %v16263_v3, %v12746_v24  ;;  %v3974_v42 = vmul.f32 %v3910_v57, %v3910_v57  ;;  %v4091_v51 = vsel %vm3712_vm11, %v3973_v56, 0.0 }
 0x769   :  { %v4082_v18 = vadd.f32 %v4081_v43, %v4080_v21  ;;  %v16264_v43 = vld [vmem:[#allocation40_spill] sm:$0xff] }
 0x76a   :  { %v3912_v34 = vsub.f32 %v16264_v43, %v12746_v24  ;;  %v3975_v35 = vmul.f32 %v3911_v52, %v3911_v52  ;;  %v4093_v13 = vsel %vm3712_vm11, %v3974_v42, 0.0 }
 0x76b   :  { %v4084_v0 = vadd.f32 %v4083_v38, %v4082_v18  ;;  %v16265_v38 = vld [vmem:[#allocation41_spill] sm:$0xff] }
 0x76c   :  { %v3913_v37 = vsub.f32 %v16265_v38, %v12746_v24  ;;  %v3976_v12 = vmul.f32 %v3912_v34, %v3912_v34  ;;  %v4095_v23 = vsel %vm3712_vm11, %v3975_v35, 0.0  ;;  %v3917_v34 = vsub.f32 %v12737_v47, %v12746_v24 }
 0x76d   :  { %v4086_v7 = vadd.f32 %v4085_v17, %v4084_v0  ;;  %v16266_v17 = vld [vmem:[#allocation42_spill] sm:$0xff] }
 0x76e   :  { %v3914_v31 = vsub.f32 %v16266_v17, %v12746_v24  ;;  %v3977_v59 = vmul.f32 %v3913_v37, %v3913_v37  ;;  %v4097_v56 = vsel %vm3712_vm11, %v3976_v12, 0.0  ;;  %v3981_v35 = vmul.f32 %v3917_v34, %v3917_v34 }
 0x76f   :  { %v4088_v21 = vadd.f32 %v4087_v1, %v4086_v7  ;;  %v16267_v1 = vld [vmem:[#allocation43_spill] sm:$0xff] }
 0x770   :  { %v3915_v57 = vsub.f32 %v16267_v1, %v12746_v24  ;;  %v3978_v53 = vmul.f32 %v3914_v31, %v3914_v31  ;;  %v4099_v42 = vsel %vm3712_vm11, %v3977_v59, 0.0  ;;  %v4107_v12 = vsel %vm3712_vm11, %v3981_v35, 0.0 }
 0x771   :  { %v4090_v18 = vadd.f32 %v4089_v54, %v4088_v21  ;;  %v16268_v54 = vld [vmem:[#allocation44_spill] sm:$0xff] }
 0x772   :  { %v3916_v52 = vsub.f32 %v16268_v54, %v12746_v24  ;;  %v4101_v37 = vsel %vm3712_vm11, %v3978_v53, 0.0 }
 0x773   :  { %v4092_v0 = vadd.f32 %v4091_v51, %v4090_v18  ;;  %v3979_v51 = vmul.f32 %v3915_v57, %v3915_v57 }
 0x775   :  { %v4094_v7 = vadd.f32 %v4093_v13, %v4092_v0  ;;  %v3980_v13 = vmul.f32 %v3916_v52, %v3916_v52 }
 0x777   :  { %v4096_v21 = vadd.f32 %v4095_v23, %v4094_v7  ;;  %v4103_v7 = vsel %vm3712_vm11, %v3979_v51, 0.0  ;;  %v4105_v31 = vsel %vm3712_vm11, %v3980_v13, 0.0  ;;  %v9487_v51 = vmov 0.0  }
 0x778   :  { %4330 = vst.msk [vmem:[#allocation3] sm:$0xff] %vm3712_vm11, %v9487_v51 }
 0x779   :  { %v4098_v18 = vadd.f32 %v4097_v56, %v4096_v21  ;;  %4331 = vst.msk [vmem:[#allocation3 + $0x8] sm:$0xff] %vm3712_vm11, %v9487_v51 }
 0x77a   :  { %4334 = vst.msk [vmem:[#allocation3 + $0x1b0] sm:$0xff] %vm3712_vm11, %v9487_v51 }
 0x77b   :  { %v4100_v0 = vadd.f32 %v4099_v42, %v4098_v18  ;;  %4335 = vst.msk [vmem:[#allocation3 + $0x1b8] sm:$0xff] %vm3712_vm11, %v9487_v51 }
 0x77c   :  { %4338 = vst.msk [vmem:[#allocation3 + $0x198] sm:$0xff] %vm3712_vm11, %v9487_v51 }
 0x77d   :  { %v4102_v33 = vadd.f32 %v4101_v37, %v4100_v0  ;;  %4339 = vst.msk [vmem:[#allocation3 + $0x1a0] sm:$0xff] %vm3712_vm11, %v9487_v51 }
 0x77e   :  { %4341 = vst.msk [vmem:[#allocation3 + $0x348] sm:$0xff] %vm3712_vm11, %v9487_v51 }
 0x77f   :  { %v4104_v23 = vadd.f32 %v4103_v7, %v4102_v33  ;;  %4342 = vst.msk [vmem:[#allocation3 + $0x350] sm:$0xff] %vm3712_vm11, %v9487_v51  ;;  %v4116_v33 = vld [vmem:[%s16080_s2] sm:$0x1]  ;;  %s9488_s2 = smov 40  }
 0x780   :  { %v4602_v13 = vld [vmem:[#allocation3 + $0x1] sm:$0xff]  ;;  %4333 = vst.msk [vmem:[#allocation3 + $0x10] sm:$0x3] %vm4332_vm0, %v9487_v51  ;;  %v4129_v7 = vld [vmem:[%s16081_s3] sm:$0x1]  ;;  %s9489_s3 = smov 64  }
 0x781   :  { %v4106_v61 = vadd.f32 %v4105_v31, %v4104_v23  ;;  %4730 = vrot.lane.b32.xlu2 %v4602_v13, %s9479_s20  ;;  %4336 = vst.msk [vmem:[#allocation3 + $0x1c0] sm:$0x3] %vm4332_vm0, %v9487_v51 }
 0x782   :  { %4340 = vst.msk [vmem:[#allocation3 + $0x1a8] sm:$0x3] %vm4332_vm0, %v9487_v51 }
 0x783   :  { %v4108_v21 = vadd.f32 %v4107_v12, %v4106_v61  ;;  %4343 = vst.msk [vmem:[#allocation3 + $0x358] sm:$0x3] %vm4332_vm0, %v9487_v51 }
 0x784   :  { %4348 = vst.msk [vmem:[#allocation3 + $0x48] sm:$0x1] %vm4345_vm1, %v9487_v51 }
 0x785   :  { %v4109_v56 = vrot.slane %v4108_v21, 4  ;;  %4346 = vst.msk [vmem:[#allocation3 + $0x18] sm:$0x1] %vm4345_vm1, %v9487_v51 }
 0x786   :  { %4347 = vst.msk [vmem:[#allocation3 + $0x30] sm:$0x1] %vm4345_vm1, %v9487_v51 }
 0x787   :  { %v4110_v60 = vadd.f32 %v4109_v56, %v4108_v21  ;;  %4349 = vst.msk [vmem:[#allocation3 + $0x60] sm:$0x1] %vm4345_vm1, %v9487_v51 }
 0x788   :  { %4350 = vst.msk [vmem:[#allocation3 + $0x78] sm:$0x1] %vm4345_vm1, %v9487_v51 }
 0x789   :  { %v4111_v57 = vrot.slane %v4110_v60, 2  ;;  %4351 = vst.msk [vmem:[#allocation3 + $0x90] sm:$0x1] %vm4345_vm1, %v9487_v51 }
 0x78a   :  { %4352 = vst.msk [vmem:[#allocation3 + $0xa8] sm:$0x1] %vm4345_vm1, %v9487_v51 }
 0x78b   :  { %v4112_v10 = vadd.f32 %v4111_v57, %v4110_v60  ;;  %v4603_v57 = vld [vmem:[#allocation3 + $0x9] sm:$0xff]  ;;  %4353 = vst.msk [vmem:[#allocation3 + $0xc0] sm:$0x1] %vm4345_vm1, %v9487_v51 }
 0x78c   :  { %4732 = vrot.lane.b32.xlu0 %v4603_v57, %s9479_s20  ;;  %4354 = vst.msk [vmem:[#allocation3 + $0xd8] sm:$0x1] %vm4345_vm1, %v9487_v51 }
 0x78d   :  { %v4113_v59 = vrot.slane %v4112_v10, 1  ;;  %4355 = vst.msk [vmem:[#allocation3 + $0xf0] sm:$0x1] %vm4345_vm1, %v9487_v51 }
 0x78e   :  { %4356 = vst.msk [vmem:[#allocation3 + $0x108] sm:$0x1] %vm4345_vm1, %v9487_v51 }
 0x78f   :  { %v4114_v18 = vadd.f32 %v4113_v59, %v4112_v10  ;;  %4357 = vst.msk [vmem:[#allocation3 + $0x120] sm:$0x1] %vm4345_vm1, %v9487_v51 }
 0x790   :  { %4358 = vst.msk [vmem:[#allocation3 + $0x138] sm:$0x1] %vm4345_vm1, %v9487_v51 }
 0x791   :  { %v4115_v52 = vmul.f32 %v4114_v18, %v12743_v39  ;;  %4359 = vst.msk [vmem:[#allocation3 + $0x150] sm:$0x1] %vm4345_vm1, %v9487_v51 }
 0x792   :  { %4360 = vst.msk [vmem:[#allocation3 + $0x168] sm:$0x1] %vm4345_vm1, %v9487_v51 }
 0x793   :  { %v4117_v53 = vadd.f32 1e-05, %v4115_v52  ;;  %4361 = vst.msk [vmem:[#allocation3 + $0x180] sm:$0x1] %vm4345_vm1, %v9487_v51 }
 0x794   :  { %4362 = vst.msk [vmem:[#allocation3 + $0x1c8] sm:$0x1] %vm4345_vm1, %v9487_v51 }
 0x795   :  { %9474 = vrsqrt.f32 %v4117_v53  ;;  %vm4124_vm14 = vweird.f32 %v4117_v53  ;;  %4363 = vst.msk [vmem:[#allocation3 + $0x1e0] sm:$0x1] %vm4345_vm1, %v9487_v51 }
 0x796   :  { %4364 = vst.msk [vmem:[#allocation3 + $0x1f8] sm:$0x1] %vm4345_vm1, %v9487_v51 }
 0x797   :  { %4365 = vst.msk [vmem:[#allocation3 + $0x210] sm:$0x1] %vm4345_vm1, %v9487_v51 }
 0x798   :  { %4366 = vst.msk [vmem:[#allocation3 + $0x228] sm:$0x1] %vm4345_vm1, %v9487_v51 }
 0x799   :  { %4367 = vst.msk [vmem:[#allocation3 + $0x240] sm:$0x1] %vm4345_vm1, %v9487_v51 }
 0x79a   :  { %4368 = vst.msk [vmem:[#allocation3 + $0x258] sm:$0x1] %vm4345_vm1, %v9487_v51 }
 0x79b   :  { %v9475_v34 = vpop.eup %9474  ;;  %4369 = vst.msk [vmem:[#allocation3 + $0x270] sm:$0x1] %vm4345_vm1, %v9487_v51 }
 0x79c   :  { %v4119_v42 = vmul.f32 %v9475_v34, %v4117_v53  ;;  %vm4125_vm13 = vweird.f32 %v9475_v34  ;;  %4370 = vst.msk [vmem:[#allocation3 + $0x288] sm:$0x1] %vm4345_vm1, %v9487_v51 }
 0x79d   :  { %vm4126_vm15 = vmor %vm4124_vm14, %vm4125_vm13  ;;  %4371 = vst.msk [vmem:[#allocation3 + $0x2a0] sm:$0x1] %vm4345_vm1, %v9487_v51 }
 0x79e   :  { %v4120_v61 = vmul.f32 %v9475_v34, %v4119_v42  ;;  %v16269_v42 = vld [vmem:[#allocation5_spill] sm:$0xff]  ;;  %4372 = vst.msk [vmem:[#allocation3 + $0x2b8] sm:$0x1] %vm4345_vm1, %v9487_v51 }
 0x79f   :  { %4373 = vst.msk [vmem:[#allocation3 + $0x2d0] sm:$0x1] %vm4345_vm1, %v9487_v51 }
 0x7a0   :  { %v4121_v10 = vmul.f32 0.5, %v4120_v61  ;;  %4374 = vst.msk [vmem:[#allocation3 + $0x2e8] sm:$0x1] %vm4345_vm1, %v9487_v51 }
 0x7a1   :  { %4375 = vst.msk [vmem:[#allocation3 + $0x300] sm:$0x1] %vm4345_vm1, %v9487_v51 }
 0x7a2   :  { %v4122_v60 = vsub.f32 1.5, %v4121_v10  ;;  %4376 = vst.msk [vmem:[#allocation3 + $0x318] sm:$0x1] %vm4345_vm1, %v9487_v51 }
 0x7a3   :  { %4377 = vst.msk [vmem:[#allocation3 + $0x330] sm:$0x1] %vm4345_vm1, %v9487_v51 }
 0x7a4   :  { %v4123_v0 = vmul.f32 %v9475_v34, %v4122_v60  ;;  %4378 = vst.msk [vmem:[#allocation3 + $0x29] sm:$0x1] %vm4345_vm1, %v9487_v51 }
 0x7a5   :  { %4379 = vst.msk [vmem:[#allocation3 + $0x41] sm:$0x1] %vm4345_vm1, %v9487_v51 }
 0x7a6   :  { %v4127_v37 = vsel %vm4126_vm15, %v9475_v34, %v4123_v0  ;;  %4380 = vst.msk [vmem:[#allocation3 + $0x59] sm:$0x1] %vm4345_vm1, %v9487_v51 }
 0x7a7   :  { %v4128_v35 = vmul.f32 %v4127_v37, %v4116_v33  ;;  %4381 = vst.msk [vmem:[#allocation3 + $0x71] sm:$0x1] %vm4345_vm1, %v9487_v51 }
 0x7a8   :  { %4382 = vst.msk [vmem:[#allocation3 + $0x89] sm:$0x1] %vm4345_vm1, %v9487_v51 }
 0x7a9   :  { %v4130_v23 = vmul.f32 %v4128_v35, %v12746_v24  ;;  %v12967_v31 = vperm.slane %v4128_v35, 0  ;;  %4383 = vst.msk [vmem:[#allocation3 + $0xa1] sm:$0x1] %vm4345_vm1, %v9487_v51 }
 0x7aa   :  { %4384 = vst.msk [vmem:[#allocation3 + $0xb9] sm:$0x1] %vm4345_vm1, %v9487_v51 }
 0x7ab   :  { %v4131_v12 = vsub.f32 %v4129_v7, %v4130_v23  ;;  %v4198_v21 = vmul.f32 %v12967_v31, %v12737_v47  ;;  %v4135_v24 = vmul.f32 %v12967_v31, %v12395_v55  ;;  %v4136_v52 = vmul.f32 %v12967_v31, %v12404_v27  ;;  %4385 = vst.msk [vmem:[#allocation3 + $0xd1] sm:$0x1] %vm4345_vm1, %v9487_v51 }
 0x7ac   :  { %v4137_v53 = vmul.f32 %v12967_v31, %v12413_v29  ;;  %v4138_v47 = vmul.f32 %v12967_v31, %v12422_v15  ;;  %v4139_v34 = vmul.f32 %v12967_v31, %v12431_v32  ;;  %v4140_v61 = vmul.f32 %v12967_v31, %v16269_v42  ;;  %4386 = vst.msk [vmem:[#allocation3 + $0xe9] sm:$0x1] %vm4345_vm1, %v9487_v51 }
 0x7ad   :  { %v12973_v56 = vperm.slane %v4131_v12, 0  ;;  %v4141_v10 = vmul.f32 %v12967_v31, %v12449_v62  ;;  %v12994_v55 = vmul.f32 %v12967_v31, %v12458_v4  ;;  %v12998_v27 = vmul.f32 %v12967_v31, %v12463_v25  ;;  %4387 = vst.msk [vmem:[#allocation3 + $0x101] sm:$0x1] %vm4345_vm1, %v9487_v51 }
 0x7ae   :  { %v13002_v29 = vmul.f32 %v12967_v31, %v12468_v30  ;;  %v4172_v15 = vmul.f32 %v12967_v31, %v12511_v49  ;;  %v4173_v32 = vmul.f32 %v12967_v31, %v16253_v22  ;;  %v4174_v62 = vmul.f32 %v12967_v31, %v12524_v45  ;;  %4388 = vst.msk [vmem:[#allocation3 + $0x119] sm:$0x1] %vm4345_vm1, %v9487_v51 }
 0x7af   :  { %v4265_v59 = vadd.f32 %v12973_v56, %v4198_v21  ;;  %v4175_v4 = vmul.f32 %v12967_v31, %v12530_v58  ;;  %v4176_v25 = vmul.f32 %v12967_v31, %v12536_v16  ;;  %v4177_v60 = vmul.f32 %v12967_v31, %v16254_v44  ;;  %4389 = vst.msk [vmem:[#allocation3 + $0x131] sm:$0x1] %vm4345_vm1, %v9487_v51 }
 0x7b0   :  { %v4178_v30 = vmul.f32 %v12967_v31, %v12547_v48  ;;  %v4179_v49 = vmul.f32 %v12967_v31, %v12552_v63  ;;  %v4180_v22 = vmul.f32 %v12967_v31, %v16255_v14  ;;  %v4181_v45 = vmul.f32 %v12967_v31, %v12570_v28  ;;  %4390 = vst.msk [vmem:[#allocation3 + $0x149] sm:$0x1] %vm4345_vm1, %v9487_v51 }
 0x7b1   :  { %v4329_v18 = vmax.f32 %v4265_v59, 0.0  ;;  %v4182_v58 = vmul.f32 %v12967_v31, %v16256_v9  ;;  %v4183_v16 = vmul.f32 %v12967_v31, %v12595_v41  ;;  %v4184_v44 = vmul.f32 %v12967_v31, %v12607_v46  ;;  %4391 = vst.msk [vmem:[#allocation3 + $0x161] sm:$0x1] %vm4345_vm1, %v9487_v51 }
 0x7b2   :  { %v4185_v48 = vmul.f32 %v12967_v31, %v12619_v19  ;;  %v4186_v63 = vmul.f32 %v12967_v31, %v16257_v50  ;;  %v4187_v14 = vmul.f32 %v12967_v31, %v16258_v6  ;;  %v4188_v28 = vmul.f32 %v12967_v31, %v16259_v20  ;;  %4392 = vst.msk [vmem:[#allocation3 + $0x179] sm:$0x1] %vm4345_vm1, %v9487_v51 }
 0x7b3   :  { %4473 = vst.msk [vmem:[#allocation3 + $0x339] sm:$0xff] %vm3712_vm11, %v4329_v18  ;;  %v4189_v9 = vmul.f32 %v12967_v31, %v16260_v11  ;;  %v4190_v41 = vmul.f32 %v12967_v31, %v16261_v2  ;;  %v4191_v46 = vmul.f32 %v12967_v31, %v16262_v8  ;;  %v4192_v19 = vmul.f32 %v12967_v31, %v16263_v3 }
 0x7b4   :  { %v4193_v50 = vmul.f32 %v12967_v31, %v16264_v43  ;;  %v4194_v6 = vmul.f32 %v12967_v31, %v16265_v38  ;;  %v4195_v20 = vmul.f32 %v12967_v31, %v16266_v17  ;;  %v4196_v11 = vmul.f32 %v12967_v31, %v16267_v1  ;;  %4393 = vst.msk [vmem:[#allocation3 + $0x191] sm:$0x1] %vm4345_vm1, %v9487_v51 }
 0x7b5   :  { %v4197_v2 = vmul.f32 %v12967_v31, %v16268_v54  ;;  %v4202_v8 = vadd.f32 %v12973_v56, %v4135_v24  ;;  %v4203_v33 = vadd.f32 %v12973_v56, %v4136_v52  ;;  %v4204_v3 = vadd.f32 %v12973_v56, %v4137_v53  ;;  %4394 = vst.msk [vmem:[#allocation3 + $0x1d9] sm:$0x1] %vm4345_vm1, %v9487_v51 }
 0x7b6   :  { %v4205_v43 = vadd.f32 %v12973_v56, %v4138_v47  ;;  %v4206_v0 = vadd.f32 %v12973_v56, %v4139_v34  ;;  %v4207_v38 = vadd.f32 %v12973_v56, %v4140_v61  ;;  %v4208_v17 = vadd.f32 %v12973_v56, %v4141_v10  ;;  %4395 = vst.msk [vmem:[#allocation3 + $0x1f1] sm:$0x1] %vm4345_vm1, %v9487_v51 }
 0x7b7   :  { %v13064_v13 = vadd.f32 %v12973_v56, %v4172_v15  ;;  %v13067_v1 = vadd.f32 %v12973_v56, %v4173_v32  ;;  %v13070_v54 = vadd.f32 %v12973_v56, %v4174_v62  ;;  %v13073_v37 = vadd.f32 %v12973_v56, %v4175_v4  ;;  %4396 = vst.msk [vmem:[#allocation3 + $0x209] sm:$0x1] %vm4345_vm1, %v9487_v51 }
 0x7b8   :  { %v13076_v35 = vadd.f32 %v12973_v56, %v4176_v25  ;;  %v13079_v7 = vadd.f32 %v12973_v56, %v4177_v60  ;;  %v13082_v23 = vadd.f32 %v12973_v56, %v4178_v30  ;;  %v13085_v12 = vadd.f32 %v12973_v56, %v4179_v49  ;;  %4397 = vst.msk [vmem:[#allocation3 + $0x221] sm:$0x1] %vm4345_vm1, %v9487_v51 }
 0x7b9   :  { %v13088_v21 = vadd.f32 %v12973_v56, %v4180_v22  ;;  %v13091_v57 = vadd.f32 %v12973_v56, %v4181_v45  ;;  %v13094_v59 = vadd.f32 %v12973_v56, %v4182_v58  ;;  %v13097_v18 = vadd.f32 %v12973_v56, %v4183_v16  ;;  %4398 = vst.msk [vmem:[#allocation3 + $0x239] sm:$0x1] %vm4345_vm1, %v9487_v51 }
 0x7ba   :  { %v13100_v24 = vadd.f32 %v12973_v56, %v4184_v44  ;;  %v13103_v52 = vadd.f32 %v12973_v56, %v4185_v48  ;;  %v13106_v53 = vadd.f32 %v12973_v56, %v4186_v63  ;;  %v13109_v47 = vadd.f32 %v12973_v56, %v4187_v14  ;;  %4399 = vst.msk [vmem:[#allocation3 + $0x251] sm:$0x1] %vm4345_vm1, %v9487_v51 }
 0x7bb   :  { %v13112_v34 = vadd.f32 %v12973_v56, %v4188_v28  ;;  %v13115_v42 = vadd.f32 %v12973_v56, %v4189_v9  ;;  %v13118_v61 = vadd.f32 %v12973_v56, %v4190_v41  ;;  %v13121_v10 = vadd.f32 %v12973_v56, %v4191_v46  ;;  %4400 = vst.msk [vmem:[#allocation3 + $0x269] sm:$0x1] %vm4345_vm1, %v9487_v51 }
 0x7bc   :  { %v13124_v15 = vadd.f32 %v12973_v56, %v4192_v19  ;;  %v13127_v32 = vadd.f32 %v12973_v56, %v4193_v50  ;;  %v13130_v62 = vadd.f32 %v12973_v56, %v4194_v6  ;;  %v13133_v4 = vadd.f32 %v12973_v56, %v4195_v20  ;;  %4401 = vst.msk [vmem:[#allocation3 + $0x281] sm:$0x1] %vm4345_vm1, %v9487_v51 }
 0x7bd   :  { %v13136_v25 = vadd.f32 %v12973_v56, %v4196_v11  ;;  %v13139_v60 = vadd.f32 %v12973_v56, %v4197_v2  ;;  %v4266_v30 = vmax.f32 %v4202_v8, 0.0  ;;  %v4209_v49 = vadd.f32 %v12973_v56, %v12994_v55  ;;  %4402 = vst.msk [vmem:[#allocation3 + $0x299] sm:$0x1] %vm4345_vm1, %v9487_v51 }
 0x7be   :  { %v4267_v22 = vmax.f32 %v4203_v33, 0.0  ;;  %v4268_v45 = vmax.f32 %v4204_v3, 0.0  ;;  %v4269_v58 = vmax.f32 %v4205_v43, 0.0  ;;  %v4145_v16 = vmul.f32 %v12967_v31, %v12473_v5  ;;  %v16273_v3 = vld [vmem:[#allocation14_spill] sm:$0xff]  ;;  %4403 = vst.msk [vmem:[#allocation3 + $0x2b1] sm:$0x1] %vm4345_vm1, %v9487_v51 }
 0x7bf   :  { %v4210_v44 = vadd.f32 %v12973_v56, %v12998_v27  ;;  %v4270_v48 = vmax.f32 %v4206_v0, 0.0  ;;  %4410 = vst.msk [vmem:[#allocation3 + $0x19] sm:$0xff] %vm3712_vm11, %v4266_v30  ;;  %v4146_v63 = vmul.f32 %v12967_v31, %v12478_v40  ;;  %v4211_v14 = vadd.f32 %v12973_v56, %v13002_v29  ;;  %v16270_v29 = vld [vmem:[#allocation9_spill] sm:$0xff] }
 0x7c0   :  { %v4271_v28 = vmax.f32 %v4207_v38, 0.0  ;;  %4412 = vst.msk [vmem:[#allocation3 + $0x31] sm:$0xff] %vm3712_vm11, %v4268_v45  ;;  %v4147_v55 = vmul.f32 %v12967_v31, %v12485_v26  ;;  %v4212_v5 = vadd.f32 %v12973_v56, %v4145_v16  ;;  %v4272_v9 = vmax.f32 %v4208_v17, 0.0  ;;  %v16271_v26 = vld [vmem:[#allocation11_spill] sm:$0xff] }
 0x7c1   :  { %4411 = vst.msk [vmem:[#allocation3 + $0x21] sm:$0xff] %vm3712_vm11, %v4267_v22  ;;  %v4148_v27 = vmul.f32 %v12967_v31, %v12492_v36  ;;  %v4213_v41 = vadd.f32 %v12973_v56, %v4146_v63  ;;  %v4273_v40 = vmax.f32 %v4209_v49, 0.0  ;;  %v4149_v46 = vmul.f32 %v12967_v31, %v16270_v29  ;;  %v16272_v36 = vld [vmem:[#allocation12_spill] sm:$0xff]  ;;  %v16274_v17 = vld [vmem:[#allocation15_spill] sm:$0xff]  ;;  %v16276_v63 = vld [vmem:[#allocation17_spill] sm:$0xff] }
 0x7c2   :  { %4413 = vst.msk [vmem:[#allocation3 + $0x39] sm:$0xff] %vm3712_vm11, %v4269_v58  ;;  %v4214_v19 = vadd.f32 %v12973_v56, %v4147_v55  ;;  %v4274_v50 = vmax.f32 %v4210_v44, 0.0  ;;  %v4150_v6 = vmul.f32 %v12967_v31, %v16271_v26  ;;  %v4275_v11 = vmax.f32 %v4211_v14, 0.0  ;;  %v16275_v58 = vld [vmem:[#allocation16_spill] sm:$0xff] }
 0x7c3   :  { %4414 = vst.msk [vmem:[#allocation3 + $0x49] sm:$0xff] %vm3712_vm11, %v4270_v48  ;;  %v4215_v20 = vadd.f32 %v12973_v56, %v4148_v27  ;;  %v4151_v2 = vmul.f32 %v12967_v31, %v16272_v36  ;;  %v4216_v8 = vadd.f32 %v12973_v56, %v4149_v46  ;;  %v4276_v33 = vmax.f32 %v4212_v5, 0.0  ;;  %v16277_v5 = vld [vmem:[#allocation19_spill] sm:$0xff] }
 0x7c4   :  { %4415 = vst.msk [vmem:[#allocation3 + $0x51] sm:$0xff] %vm3712_vm11, %v4271_v28  ;;  %v4152_v43 = vmul.f32 %v12967_v31, %v16273_v3  ;;  %v4217_v0 = vadd.f32 %v12973_v56, %v4150_v6  ;;  %v4277_v38 = vmax.f32 %v4213_v41, 0.0  ;;  %v4153_v30 = vmul.f32 %v12967_v31, %v16274_v17 }
 0x7c5   :  { %4416 = vst.msk [vmem:[#allocation3 + $0x61] sm:$0xff] %vm3712_vm11, %v4272_v9  ;;  %v4218_v49 = vadd.f32 %v12973_v56, %v4151_v2  ;;  %v4278_v22 = vmax.f32 %v4214_v19, 0.0  ;;  %v4154_v16 = vmul.f32 %v12967_v31, %v16275_v58  ;;  %v4279_v48 = vmax.f32 %v4215_v20, 0.0 }
 0x7c6   :  { %4417 = vst.msk [vmem:[#allocation3 + $0x69] sm:$0xff] %vm3712_vm11, %v4273_v40  ;;  %v4219_v44 = vadd.f32 %v12973_v56, %v4152_v43  ;;  %v4155_v14 = vmul.f32 %v12967_v31, %v16276_v63  ;;  %v4220_v28 = vadd.f32 %v12973_v56, %v4153_v30  ;;  %v4280_v55 = vmax.f32 %v4216_v8, 0.0  ;;  %v16278_v40 = vld [vmem:[#allocation20_spill] sm:$0xff] }
 0x7c7   :  { %v4606_v45 = vld [vmem:[#allocation3 + $0x31] sm:$0xff]  ;;  %4418 = vst.msk [vmem:[#allocation3 + $0x79] sm:$0xff] %vm3712_vm11, %v4274_v50  ;;  %v4156_v9 = vmul.f32 %v12967_v31, %v16277_v5  ;;  %v4221_v27 = vadd.f32 %v12973_v56, %v4154_v16  ;;  %v4281_v41 = vmax.f32 %v4217_v0, 0.0  ;;  %v4157_v29 = vmul.f32 %v12967_v31, %v16278_v40  ;;  %v16279_v50 = vld [vmem:[#allocation21_spill] sm:$0xff] }
 0x7c8   :  { %4738 = vrot.lane.b32.xlu0 %v4606_v45, %s9479_s20  ;;  %4419 = vst.msk [vmem:[#allocation3 + $0x81] sm:$0xff] %vm3712_vm11, %v4275_v11  ;;  %v4222_v46 = vadd.f32 %v12973_v56, %v4155_v14  ;;  %v4282_v19 = vmax.f32 %v4218_v49, 0.0  ;;  %v4158_v26 = vmul.f32 %v12967_v31, %v16279_v50  ;;  %v4283_v20 = vmax.f32 %v4219_v44, 0.0  ;;  %v16280_v11 = vld [vmem:[#allocation23_spill] sm:$0xff]  ;;  %v16284_v44 = vld [vmem:[#allocation28_spill] sm:$0xff] }
 0x7c9   :  { %4420 = vst.msk [vmem:[#allocation3 + $0x91] sm:$0xff] %vm3712_vm11, %v4276_v33  ;;  %v4223_v6 = vadd.f32 %v12973_v56, %v4156_v9  ;;  %v4159_v36 = vmul.f32 %v12967_v31, %v16280_v11  ;;  %v4224_v2 = vadd.f32 %v12973_v56, %v4157_v29  ;;  %v4284_v8 = vmax.f32 %v4220_v28, 0.0  ;;  %v16281_v33 = vld [vmem:[#allocation24_spill] sm:$0xff]  ;;  %v16285_v28 = vld [vmem:[#allocation29_spill] sm:$0xff] }
 0x7ca   :  { %4421 = vst.msk [vmem:[#allocation3 + $0x99] sm:$0xff] %vm3712_vm11, %v4277_v38  ;;  %v4160_v3 = vmul.f32 %v12967_v31, %v16281_v33  ;;  %v4225_v43 = vadd.f32 %v12973_v56, %v4158_v26  ;;  %v4285_v0 = vmax.f32 %v4221_v27, 0.0  ;;  %v16282_v38 = vld [vmem:[#allocation26_spill] sm:$0xff]  ;;  %v4286_v49 = vmax.f32 %v4222_v46, 0.0  ;;  %v16286_v27 = vld [vmem:[#allocation31_spill] sm:$0xff]  ;;  %v16287_v46 = vld [vmem:[#allocation33_spill] sm:$0xff] }
 0x7cb   :  { %4422 = vst.msk [vmem:[#allocation3 + $0xa9] sm:$0xff] %vm3712_vm11, %v4278_v22  ;;  %v4161_v17 = vmul.f32 %v12967_v31, %v16282_v38  ;;  %v4226_v30 = vadd.f32 %v12973_v56, %v4159_v36  ;;  %v16283_v22 = vld [vmem:[#allocation27_spill] sm:$0xff]  ;;  %v4287_v16 = vmax.f32 %v4223_v6, 0.0  ;;  %v4288_v14 = vmax.f32 %v4224_v2, 0.0 }
 0x7cc   :  { %4423 = vst.msk [vmem:[#allocation3 + $0xb1] sm:$0xff] %vm3712_vm11, %v4279_v48  ;;  %v4162_v45 = vmul.f32 %v12967_v31, %v16283_v22  ;;  %v4227_v58 = vadd.f32 %v12973_v56, %v4160_v3  ;;  %v4163_v48 = vmul.f32 %v12967_v31, %v16284_v44  ;;  %v4289_v9 = vmax.f32 %v4225_v43, 0.0  ;;  %v16288_v6 = vld [vmem:[#allocation35_spill] sm:$0xff]  ;;  %v16290_v43 = vld [vmem:[#allocation6_spill] sm:$0xff] }
 0x7cd   :  { %4424 = vst.msk [vmem:[#allocation3 + $0xc1] sm:$0xff] %vm3712_vm11, %v4280_v55  ;;  %v4228_v63 = vadd.f32 %v12973_v56, %v4161_v17  ;;  %v4164_v55 = vmul.f32 %v12967_v31, %v16285_v28  ;;  %v4290_v29 = vmax.f32 %v4226_v30, 0.0  ;;  %v16289_v2 = vld [vmem:[#allocation7_spill] sm:$0xff]  ;;  %v16291_v30 = vld [vmem:[#allocation8_spill] sm:$0xff] }
 0x7ce   :  { %4425 = vst.msk [vmem:[#allocation3 + $0xc9] sm:$0xff] %vm3712_vm11, %v4281_v41  ;;  %v4229_v5 = vadd.f32 %v12973_v56, %v4162_v45  ;;  %v4165_v41 = vmul.f32 %v12967_v31, %v16286_v27  ;;  %v4230_v40 = vadd.f32 %v12973_v56, %v4163_v48  ;;  %v4291_v26 = vmax.f32 %v4227_v58, 0.0  ;;  %v16292_v58 = vld [vmem:[#allocation10_spill] sm:$0xff]  ;;  %v4604_v27 = vld [vmem:[#allocation3 + $0x19] sm:$0xff] }
 0x7cf   :  { %4426 = vst.msk [vmem:[#allocation3 + $0xd9] sm:$0xff] %vm3712_vm11, %v4282_v19  ;;  %v4166_v19 = vmul.f32 %v12967_v31, %v16287_v46  ;;  %v4231_v50 = vadd.f32 %v12973_v56, %v4164_v55  ;;  %v4292_v36 = vmax.f32 %v4228_v63, 0.0  ;;  %4734 = vrot.lane.b32.xlu1 %v4604_v27, %s9479_s20  ;;  %v4304_v46 = vmax.f32 %v13067_v1, 0.0  ;;  %v4607_v1 = vld [vmem:[#allocation3 + $0x39] sm:$0xff]  ;;  %v4634_v27 = vld [vmem:[#allocation3 + $0x1b1] sm:$0xff] }
 0x7d0   :  { %4427 = vst.msk [vmem:[#allocation3 + $0xe1] sm:$0xff] %vm3712_vm11, %v4283_v20  ;;  %v4167_v20 = vmul.f32 %v12967_v31, %v16288_v6  ;;  %v4232_v11 = vadd.f32 %v12973_v56, %v4165_v41  ;;  %v4293_v3 = vmax.f32 %v4229_v5, 0.0  ;;  %v4294_v17 = vmax.f32 %v4230_v40, 0.0  ;;  %v4609_v40 = vld [vmem:[#allocation3 + $0x51] sm:$0xff]  ;;  %v4608_v6 = vld [vmem:[#allocation3 + $0x49] sm:$0xff] }
 0x7d1   :  { %4428 = vst.msk [vmem:[#allocation3 + $0xf1] sm:$0xff] %vm3712_vm11, %v4284_v8  ;;  %v4168_v8 = vmul.f32 %v12967_v31, %v16289_v2  ;;  %v4233_v33 = vadd.f32 %v12973_v56, %v4166_v19  ;;  %v4295_v45 = vmax.f32 %v4231_v50, 0.0  ;;  %4744 = vrot.lane.b32.xlu0 %v4609_v40, %s9479_s20  ;;  %v4305_v19 = vmax.f32 %v13070_v54, 0.0  ;;  %v4612_v54 = vld [vmem:[#allocation3 + $0x79] sm:$0xff] }
 0x7d2   :  { %4429 = vst.msk [vmem:[#allocation3 + $0xf9] sm:$0xff] %vm3712_vm11, %v4285_v0  ;;  %v4169_v0 = vmul.f32 %v12967_v31, %v16290_v43  ;;  %v4234_v38 = vadd.f32 %v12973_v56, %v4167_v20  ;;  %v4296_v48 = vmax.f32 %v4232_v11, 0.0  ;;  %v4306_v50 = vmax.f32 %v13073_v37, 0.0  ;;  %v4616_v43 = vld [vmem:[#allocation3 + $0xa9] sm:$0xff] }
 0x7d3   :  { %4430 = vst.msk [vmem:[#allocation3 + $0x109] sm:$0xff] %vm3712_vm11, %v4286_v49  ;;  %v4170_v49 = vmul.f32 %v12967_v31, %v16291_v30  ;;  %v4235_v22 = vadd.f32 %v12973_v56, %v4168_v8  ;;  %v4309_v20 = vmax.f32 %v13082_v23, 0.0  ;;  %v4310_v37 = vmax.f32 %v13085_v12, 0.0 }
 0x7d4   :  { %4431 = vst.msk [vmem:[#allocation3 + $0x111] sm:$0xff] %vm3712_vm11, %v4287_v16  ;;  %v4171_v16 = vmul.f32 %v12967_v31, %v16292_v58  ;;  %v4236_v44 = vadd.f32 %v12973_v56, %v4169_v0  ;;  %v4298_v55 = vmax.f32 %v4234_v38, 0.0  ;;  %v4605_v31 = vld [vmem:[#allocation3 + $0x21] sm:$0xff]  ;;  %v4313_v23 = vmax.f32 %v13094_v59, 0.0  ;;  %v4615_v59 = vld [vmem:[#allocation3 + $0x99] sm:$0xff] }
 0x7d5   :  { %4432 = vst.msk [vmem:[#allocation3 + $0x121] sm:$0xff] %vm3712_vm11, %v4288_v14  ;;  %v4237_v63 = vadd.f32 %v12973_v56, %v4170_v49  ;;  %v4297_v14 = vmax.f32 %v4233_v33, 0.0  ;;  %v4299_v5 = vmax.f32 %v4235_v22, 0.0  ;;  %4736 = vrot.lane.b32.xlu2 %v4605_v31, %s9479_s20  ;;  %v4314_v11 = vmax.f32 %v13097_v18, 0.0  ;;  %v4614_v33 = vld [vmem:[#allocation3 + $0x91] sm:$0xff]  ;;  %v4619_v0 = vld [vmem:[#allocation3 + $0xc9] sm:$0xff] }
 0x7d6   :  { %4433 = vst.msk [vmem:[#allocation3 + $0x129] sm:$0xff] %vm3712_vm11, %v4289_v9  ;;  %v4238_v28 = vadd.f32 %v12973_v56, %v4171_v16  ;;  %v4300_v9 = vmax.f32 %v4236_v44, 0.0  ;;  %v4315_v12 = vmax.f32 %v13100_v24, 0.0  ;;  %v4317_v2 = vmax.f32 %v13106_v53, 0.0  ;;  %v4635_v31 = vld [vmem:[#allocation3 + $0x1b9] sm:$0xff] }
 0x7d7   :  { %4434 = vst.msk [vmem:[#allocation3 + $0x139] sm:$0xff] %vm3712_vm11, %v4290_v29  ;;  %v4301_v41 = vmax.f32 %v4237_v63, 0.0  ;;  %v4303_v29 = vmax.f32 %v13064_v13, 0.0  ;;  %v4308_v13 = vmax.f32 %v13079_v7, 0.0  ;;  %4740 = vrot.lane.b32.xlu1 %v4607_v1, %s9479_s20  ;;  %v4312_v7 = vmax.f32 %v13091_v57, 0.0  ;;  %v4610_v57 = vld [vmem:[#allocation3 + $0x61] sm:$0xff] }
 0x7d8   :  { %4435 = vst.msk [vmem:[#allocation3 + $0x141] sm:$0xff] %vm3712_vm11, %v4291_v26  ;;  %v4302_v56 = vmax.f32 %v4238_v28, 0.0  ;;  %v4307_v26 = vmax.f32 %v13076_v35, 0.0  ;;  %v4311_v35 = vmax.f32 %v13088_v21, 0.0  ;;  %v4316_v21 = vmax.f32 %v13103_v52, 0.0  ;;  %v4622_v49 = vld [vmem:[#allocation3 + $0xf1] sm:$0xff] }
 0x7d9   :  { %4436 = vst.msk [vmem:[#allocation3 + $0x151] sm:$0xff] %vm3712_vm11, %v4292_v36  ;;  %4750 = vrot.lane.b32.xlu0 %v4612_v54, %s9479_s20  ;;  %v4611_v36 = vld [vmem:[#allocation3 + $0x69] sm:$0xff]  ;;  %v4318_v18 = vmax.f32 %v13109_v47, 0.0  ;;  %v4319_v24 = vmax.f32 %v13112_v34, 0.0  ;;  %v4320_v52 = vmax.f32 %v13115_v42, 0.0  ;;  %v4321_v53 = vmax.f32 %v13118_v61, 0.0 }
 0x7da   :  { %4437 = vst.msk [vmem:[#allocation3 + $0x159] sm:$0xff] %vm3712_vm11, %v4293_v3  ;;  %v4322_v8 = vmax.f32 %v13121_v10, 0.0  ;;  %v4323_v47 = vmax.f32 %v13124_v15, 0.0  ;;  %v4324_v34 = vmax.f32 %v13127_v32, 0.0  ;;  %v4613_v42 = vld [vmem:[#allocation3 + $0x81] sm:$0xff]  ;;  %v4325_v3 = vmax.f32 %v13130_v62, 0.0 }
 0x7db   :  { %4438 = vst.msk [vmem:[#allocation3 + $0x169] sm:$0xff] %vm3712_vm11, %v4294_v17  ;;  %v4618_v61 = vld [vmem:[#allocation3 + $0xc1] sm:$0xff]  ;;  %v4326_v10 = vmax.f32 %v13133_v4, 0.0  ;;  %v4327_v15 = vmax.f32 %v13136_v25, 0.0  ;;  %v4328_v32 = vmax.f32 %v13139_v60, 0.0  ;;  %v4617_v4 = vld [vmem:[#allocation3 + $0xb1] sm:$0xff]  ;;  %v4731_v58 = vpop.permute.xlu2 %4730 }
 0x7dc   :  { %4439 = vst.msk [vmem:[#allocation3 + $0x171] sm:$0xff] %vm3712_vm11, %v4295_v45  ;;  %v4477_v62 = vld [vmem:[#allocation3 + $0x20] sm:$0xff]  ;;  %v4624_v38 = vld [vmem:[#allocation3 + $0x109] sm:$0xff]  ;;  %v4625_v44 = vld [vmem:[#allocation3 + $0x111] sm:$0xff] }
 0x7dd   :  { %4440 = vst.msk [vmem:[#allocation3 + $0x181] sm:$0xff] %vm3712_vm11, %v4296_v48  ;;  %4742 = vrot.lane.b32.xlu2 %v4608_v6, %s9479_s20  ;;  %v4621_v25 = vld [vmem:[#allocation3 + $0xe1] sm:$0xff]  ;;  %v4620_v60 = vld [vmem:[#allocation3 + $0xd9] sm:$0xff]  ;;  %v4627_v22 = vld [vmem:[#allocation3 + $0x129] sm:$0xff] }
 0x7de   :  { %4441 = vst.msk [vmem:[#allocation3 + $0x189] sm:$0xff] %vm3712_vm11, %v4297_v14  ;;  %v4480_v17 = vld [vmem:[#allocation3 + $0x48] sm:$0xff]  ;;  %v4623_v30 = vld [vmem:[#allocation3 + $0xf9] sm:$0xff]  ;;  %v13494_v54 = vld [vmem:[#allocation3 + $0x30] sm:$0xff] }
 0x7df   :  { %4442 = vst.msk [vmem:[#allocation3 + $0x1c9] sm:$0xff] %vm3712_vm11, %v4298_v55  ;;  %4746 = vrot.lane.b32.xlu1 %v4610_v57, %s9479_s20  ;;  %v4474_v45 = vld [vmem:[#allocation3] sm:$0xff]  ;;  %v4475_v1 = vld [vmem:[#allocation3 + $0x8] sm:$0xff]  ;;  %v13518_v57 = vld [vmem:[#allocation3 + $0x38] sm:$0xff] }
 0x7e0   :  { %4443 = vst.msk [vmem:[#allocation3 + $0x1d1] sm:$0xff] %vm3712_vm11, %v4299_v5  ;;  %v4626_v16 = vld [vmem:[#allocation3 + $0x121] sm:$0xff]  ;;  %v4630_v48 = vld [vmem:[#allocation3 + $0x151] sm:$0xff]  ;;  %v4628_v14 = vld [vmem:[#allocation3 + $0x139] sm:$0xff] }
 0x7e1   :  { %4444 = vst.msk [vmem:[#allocation3 + $0x1e1] sm:$0xff] %vm3712_vm11, %v4300_v9  ;;  %4756 = vrot.lane.b32.xlu0 %v4615_v59, %s9479_s20  ;;  %v4629_v63 = vld [vmem:[#allocation3 + $0x141] sm:$0xff]  ;;  %v4631_v5 = vld [vmem:[#allocation3 + $0x159] sm:$0xff] }
 0x7e2   :  { %4445 = vst.msk [vmem:[#allocation3 + $0x1e9] sm:$0xff] %vm3712_vm11, %v4301_v41  ;;  %v4632_v55 = vld [vmem:[#allocation3 + $0x169] sm:$0xff]  ;;  %v5005_v39 = vld [vmem:[#allocation3 + $0xda] sm:$0xff] }
 0x7e3   :  { %4446 = vst.msk [vmem:[#allocation3 + $0x1f9] sm:$0xff] %vm3712_vm11, %v4302_v56  ;;  %v4633_v28 = vld [vmem:[#allocation3 + $0x171] sm:$0xff] }
 0x7e4   :  { %4447 = vst.msk [vmem:[#allocation3 + $0x201] sm:$0xff] %vm3712_vm11, %v4303_v29 }
 0x7e5   :  { %4448 = vst.msk [vmem:[#allocation3 + $0x211] sm:$0xff] %vm3712_vm11, %v4304_v46  ;;  %4748 = vrot.lane.b32.xlu2 %v4611_v36, %s9479_s20  ;;  %v13514_v36 = vld [vmem:[#allocation3 + $0xb0] sm:$0xff] }
 0x7e6   :  { %4449 = vst.msk [vmem:[#allocation3 + $0x219] sm:$0xff] %vm3712_vm11, %v4305_v19  ;;  %v4636_v9 = vld [vmem:[#allocation3 + $0x1c9] sm:$0xff] }
 0x7e7   :  { %4450 = vst.msk [vmem:[#allocation3 + $0x229] sm:$0xff] %vm3712_vm11, %v4306_v50  ;;  %4752 = vrot.lane.b32.xlu1 %v4613_v42, %s9479_s20  ;;  %v4637_v56 = vld [vmem:[#allocation3 + $0x1d1] sm:$0xff] }
 0x7e8   :  { %4451 = vst.msk [vmem:[#allocation3 + $0x231] sm:$0xff] %vm3712_vm11, %v4307_v26  ;;  %v4638_v40 = vld [vmem:[#allocation3 + $0x1e1] sm:$0xff]  ;;  %v13544_v42 = vld [vmem:[#allocation3 + $0xf8] sm:$0xff] }
 0x7e9   :  { %4452 = vst.msk [vmem:[#allocation3 + $0x241] sm:$0xff] %vm3712_vm11, %v4308_v13  ;;  %4762 = vrot.lane.b32.xlu0 %v4618_v61, %s9479_s20  ;;  %v4639_v41 = vld [vmem:[#allocation3 + $0x1e9] sm:$0xff] }
 0x7ea   :  { %4453 = vst.msk [vmem:[#allocation3 + $0x249] sm:$0xff] %vm3712_vm11, %v4309_v20  ;;  %v4640_v26 = vld [vmem:[#allocation3 + $0x1f9] sm:$0xff]  ;;  %v13491_v20 = vld [vmem:[#allocation3 + $0x68] sm:$0xff] }
 0x7eb   :  { %4454 = vst.msk [vmem:[#allocation3 + $0x259] sm:$0xff] %vm3712_vm11, %v4310_v37  ;;  %v4641_v50 = vld [vmem:[#allocation3 + $0x201] sm:$0xff] }
 0x7ec   :  { %4455 = vst.msk [vmem:[#allocation3 + $0x261] sm:$0xff] %vm3712_vm11, %v4311_v35  ;;  %v4642_v29 = vld [vmem:[#allocation3 + $0x211] sm:$0xff] }
 0x7ed   :  { %4456 = vst.msk [vmem:[#allocation3 + $0x271] sm:$0xff] %vm3712_vm11, %v4312_v7  ;;  %4754 = vrot.lane.b32.xlu2 %v4614_v33, %s9479_s20  ;;  %v4643_v35 = vld [vmem:[#allocation3 + $0x219] sm:$0xff] }
 0x7ee   :  { %4457 = vst.msk [vmem:[#allocation3 + $0x279] sm:$0xff] %vm3712_vm11, %v4313_v23  ;;  %v4644_v37 = vld [vmem:[#allocation3 + $0x229] sm:$0xff]  ;;  %v13541_v33 = vld [vmem:[#allocation3 + $0x98] sm:$0xff] }
 0x7ef   :  { %4458 = vst.msk [vmem:[#allocation3 + $0x289] sm:$0xff] %vm3712_vm11, %v4314_v11  ;;  %4758 = vrot.lane.b32.xlu1 %v4616_v43, %s9479_s20  ;;  %v4645_v13 = vld [vmem:[#allocation3 + $0x231] sm:$0xff] }
 0x7f0   :  { %4459 = vst.msk [vmem:[#allocation3 + $0x291] sm:$0xff] %vm3712_vm11, %v4315_v12  ;;  %v13507_v12 = vld [vmem:[#allocation3 + $0x18] sm:$0xff] }
 0x7f1   :  { %4460 = vst.msk [vmem:[#allocation3 + $0x2a1] sm:$0xff] %vm3712_vm11, %v4316_v21  ;;  %4768 = vrot.lane.b32.xlu0 %v4621_v25, %s9479_s20  ;;  %v13510_v21 = vld [vmem:[#allocation3 + $0x50] sm:$0xff]  ;;  %v13564_v25 = vld [vmem:[#allocation3 + $0x120] sm:$0xff] }
 0x7f2   :  { %4461 = vst.msk [vmem:[#allocation3 + $0x2a9] sm:$0xff] %vm3712_vm11, %v4317_v2  ;;  %v4648_v23 = vld [vmem:[#allocation3 + $0x259] sm:$0xff]  ;;  %v4647_v59 = vld [vmem:[#allocation3 + $0x249] sm:$0xff] }
 0x7f3   :  { %4462 = vst.msk [vmem:[#allocation3 + $0x2b9] sm:$0xff] %vm3712_vm11, %v4318_v18  ;;  %v13522_v2 = vld [vmem:[#allocation3 + $0x78] sm:$0xff]  ;;  %v4646_v18 = vld [vmem:[#allocation3 + $0x241] sm:$0xff] }
 0x7f4   :  { %4463 = vst.msk [vmem:[#allocation3 + $0x2c1] sm:$0xff] %vm3712_vm11, %v4319_v24  ;;  %v13526_v24 = vld [vmem:[#allocation3 + $0xd8] sm:$0xff] }
 0x7f5   :  { %4464 = vst.msk [vmem:[#allocation3 + $0x2d1] sm:$0xff] %vm3712_vm11, %v4320_v52  ;;  %4760 = vrot.lane.b32.xlu2 %v4617_v4, %s9479_s20  ;;  %v4651_v52 = vld [vmem:[#allocation3 + $0x279] sm:$0xff]  ;;  %v4650_v61 = vld [vmem:[#allocation3 + $0x271] sm:$0xff] }
 0x7f6   :  { %4465 = vst.msk [vmem:[#allocation3 + $0x2d9] sm:$0xff] %vm3712_vm11, %v4321_v53 }
 0x7f7   :  { %4466 = vst.msk [vmem:[#allocation3 + $0x2e9] sm:$0xff] %vm3712_vm11, %v4322_v8  ;;  %4764 = vrot.lane.b32.xlu1 %v4619_v0, %s9479_s20  ;;  %v13570_v0 = vld [vmem:[#allocation3 + $0xe0] sm:$0xff] }
 0x7f8   :  { %4467 = vst.msk [vmem:[#allocation3 + $0x2f1] sm:$0xff] %vm3712_vm11, %v4323_v47 }
 0x7f9   :  { %4468 = vst.msk [vmem:[#allocation3 + $0x301] sm:$0xff] %vm3712_vm11, %v4324_v34  ;;  %4774 = vrot.lane.b32.xlu0 %v4624_v38, %s9479_s20  ;;  %v13538_v34 = vld [vmem:[#allocation3 + $0x60] sm:$0xff] }
 0x7fa   :  { %4469 = vst.msk [vmem:[#allocation3 + $0x309] sm:$0xff] %vm3712_vm11, %v4325_v3  ;;  %v13548_v3 = vld [vmem:[#allocation3 + $0x80] sm:$0xff] }
 0x7fb   :  { %4470 = vst.msk [vmem:[#allocation3 + $0x319] sm:$0xff] %vm3712_vm11, %v4326_v10  ;;  %v4649_v10 = vld [vmem:[#allocation3 + $0x261] sm:$0xff] }
 0x7fc   :  { %4471 = vst.msk [vmem:[#allocation3 + $0x321] sm:$0xff] %vm3712_vm11, %v4327_v15  ;;  %v13552_v15 = vld [vmem:[#allocation3 + $0xc0] sm:$0xff] }
 0x7fd   :  { %4472 = vst.msk [vmem:[#allocation3 + $0x331] sm:$0xff] %vm3712_vm11, %v4328_v32  ;;  %4766 = vrot.lane.b32.xlu2 %v4620_v60, %s9479_s20  ;;  %v4654_v32 = vld [vmem:[#allocation3 + $0x2a1] sm:$0xff] }
 0x7fe   :  { %4541 = vst.msk [vmem:[#allocation2 + $0x18] sm:$0xff] %vm3712_vm11, %v4477_v62  ;;  %v4733_v19 = vpop.permute.xlu0 %4732  ;;  %v13567_v60 = vld [vmem:[#allocation3 + $0xa8] sm:$0xff]  ;;  %v13574_v38 = vld [vmem:[#allocation3 + $0x140] sm:$0xff] }
 0x7ff   :  { %4544 = vst.msk [vmem:[#allocation2 + $0x30] sm:$0xff] %vm3712_vm11, %v4480_v17  ;;  %4770 = vrot.lane.b32.xlu1 %v4622_v49, %s9479_s20  ;;  %v4653_v17 = vld [vmem:[#allocation3 + $0x291] sm:$0xff]  ;;  %v13578_v49 = vld [vmem:[#allocation3 + $0xc8] sm:$0xff] }
 0x800   :  { %4538 = vst.msk [vmem:[#allocation2] sm:$0xff] %vm3712_vm11, %v4474_v45 }
 0x801   :  { %4780 = vrot.lane.b32.xlu0 %v4627_v22, %s9479_s20  ;;  %4923 = vst.msk [vmem:[#allocation2] sm:$0xff] %vm4922_vm2, %v4731_v58  ;;  %v4657_v22 = vld [vmem:[#allocation3 + $0x2c1] sm:$0xff] }
 0x802   :  { %4404 = vst.msk [vmem:[#allocation3 + $0x2c9] sm:$0x1] %vm4345_vm1, %v9487_v51 }
 0x803   :  { %4405 = vst.msk [vmem:[#allocation3 + $0x2e1] sm:$0x1] %vm4345_vm1, %v9487_v51 }
 0x804   :  { %4406 = vst.msk [vmem:[#allocation3 + $0x2f9] sm:$0x1] %vm4345_vm1, %v9487_v51 }
 0x805   :  { %4772 = vrot.lane.b32.xlu2 %v4623_v30, %s9479_s20  ;;  %4407 = vst.msk [vmem:[#allocation3 + $0x311] sm:$0x1] %vm4345_vm1, %v9487_v51  ;;  %v4652_v30 = vld [vmem:[#allocation3 + $0x289] sm:$0xff] }
 0x806   :  { %4408 = vst.msk [vmem:[#allocation3 + $0x329] sm:$0x1] %vm4345_vm1, %v9487_v51 }
 0x807   :  { %4776 = vrot.lane.b32.xlu1 %v4625_v44, %s9479_s20  ;;  %4409 = vst.msk [vmem:[#allocation3 + $0x341] sm:$0x1] %vm4345_vm1, %v9487_v51  ;;  %v13504_v51 = vld [vmem:[#allocation3 + $0x90] sm:$0xff]  ;;  %v13590_v44 = vld [vmem:[#allocation3 + $0x108] sm:$0xff] }
 0x808   :  { %4539 = vst.msk [vmem:[#allocation2 + $0x8] sm:$0xff] %vm3712_vm11, %v4475_v1 }
 0x809   :  { %4786 = vrot.lane.b32.xlu0 %v4630_v48, %s9479_s20  ;;  %4924 = vst.msk [vmem:[#allocation2 + $0x8] sm:$0xff] %vm4922_vm2, %v4733_v19  ;;  %v13593_v48 = vld [vmem:[#allocation3 + $0x168] sm:$0xff]  ;;  %v4659_v19 = vld [vmem:[#allocation3 + $0x2d9] sm:$0xff] }
 0x80a   :  { %4547 = vst.msk [vmem:[#allocation2 + $0x48] sm:$0xff] %vm3712_vm11, %v13491_v20 }
 0x80b   :  { %4542 = vst.msk [vmem:[#allocation2 + $0x20] sm:$0xff] %vm3712_vm11, %v13494_v54 }
 0x80c   :  { %4550 = vst.msk [vmem:[#allocation2 + $0x60] sm:$0xff] %vm3712_vm11, %v13504_v51 }
 0x80d   :  { %4778 = vrot.lane.b32.xlu2 %v4626_v16, %s9479_s20  ;;  %4540 = vst.msk [vmem:[#allocation2 + $0x10] sm:$0xff] %vm3712_vm11, %v13507_v12 }
 0x80e   :  { %4545 = vst.msk [vmem:[#allocation2 + $0x38] sm:$0xff] %vm3712_vm11, %v13510_v21 }
 0x80f   :  { %4782 = vrot.lane.b32.xlu1 %v4628_v14, %s9479_s20  ;;  %4553 = vst.msk [vmem:[#allocation2 + $0x78] sm:$0xff] %vm3712_vm11, %v13514_v36  ;;  %v13600_v14 = vld [vmem:[#allocation3 + $0x128] sm:$0xff] }
 0x810   :  { %4543 = vst.msk [vmem:[#allocation2 + $0x28] sm:$0xff] %vm3712_vm11, %v13518_v57 }
 0x811   :  { %4792 = vrot.lane.b32.xlu0 %v4633_v28, %s9479_s20  ;;  %4548 = vst.msk [vmem:[#allocation2 + $0x50] sm:$0xff] %vm3712_vm11, %v13522_v2  ;;  %v4656_v28 = vld [vmem:[#allocation3 + $0x2b9] sm:$0xff] }
 0x812   :  { %4556 = vst.msk [vmem:[#allocation2 + $0x90] sm:$0xff] %vm3712_vm11, %v13526_v24 }
 0x813   :  { %4546 = vst.msk [vmem:[#allocation2 + $0x40] sm:$0xff] %vm3712_vm11, %v13538_v34 }
 0x814   :  { %4551 = vst.msk [vmem:[#allocation2 + $0x68] sm:$0xff] %vm3712_vm11, %v13541_v33 }
 0x815   :  { %4784 = vrot.lane.b32.xlu2 %v4629_v63, %s9479_s20  ;;  %4559 = vst.msk [vmem:[#allocation2 + $0xa8] sm:$0xff] %vm3712_vm11, %v13544_v42  ;;  %v13596_v63 = vld [vmem:[#allocation3 + $0xf0] sm:$0xff] }
 0x816   :  { %4549 = vst.msk [vmem:[#allocation2 + $0x58] sm:$0xff] %vm3712_vm11, %v13548_v3 }
 0x817   :  { %4788 = vrot.lane.b32.xlu1 %v4631_v5, %s9479_s20  ;;  %4554 = vst.msk [vmem:[#allocation2 + $0x80] sm:$0xff] %vm3712_vm11, %v13552_v15  ;;  %v4660_v5 = vld [vmem:[#allocation3 + $0x2e9] sm:$0xff] }
 0x818   :  { %4562 = vst.msk [vmem:[#allocation2 + $0xc0] sm:$0xff] %vm3712_vm11, %v13564_v25 }
 0x819   :  { %4798 = vrot.lane.b32.xlu0 %v4636_v9, %s9479_s20  ;;  %4552 = vst.msk [vmem:[#allocation2 + $0x70] sm:$0xff] %vm3712_vm11, %v13567_v60  ;;  %v4507_v9 = vld [vmem:[#allocation3 + $0x1b8] sm:$0xff] }
 0x81a   :  { %4557 = vst.msk [vmem:[#allocation2 + $0x98] sm:$0xff] %vm3712_vm11, %v13570_v0 }
 0x81b   :  { %4565 = vst.msk [vmem:[#allocation2 + $0xd8] sm:$0xff] %vm3712_vm11, %v13574_v38 }
 0x81c   :  { %4555 = vst.msk [vmem:[#allocation2 + $0x88] sm:$0xff] %vm3712_vm11, %v13578_v49 }
 0x81d   :  { %4790 = vrot.lane.b32.xlu2 %v4632_v55, %s9479_s20  ;;  %4560 = vst.msk [vmem:[#allocation2 + $0xb0] sm:$0xff] %vm3712_vm11, %v13590_v44  ;;  %v4655_v55 = vld [vmem:[#allocation3 + $0x2a9] sm:$0xff] }
 0x81e   :  { %4568 = vst.msk [vmem:[#allocation2 + $0xf0] sm:$0xff] %vm3712_vm11, %v13593_v48 }
 0x81f   :  { %4794 = vrot.lane.b32.xlu1 %v4634_v27, %s9479_s20  ;;  %4558 = vst.msk [vmem:[#allocation2 + $0xa0] sm:$0xff] %vm3712_vm11, %v13596_v63 }
 0x820   :  { %4563 = vst.msk [vmem:[#allocation2 + $0xc8] sm:$0xff] %vm3712_vm11, %v13600_v14 }
 0x821   :  { %4804 = vrot.lane.b32.xlu0 %v4639_v41, %s9479_s20  ;;  %4571 = vst.msk [vmem:[#allocation2 + $0x108] sm:$0xff] %vm3712_vm11, %v4507_v9  ;;  %v13695_v9 = vld [vmem:[#allocation3 + $0x290] sm:$0xff] }
 0x822   :  { %4589 = vst.msk [vmem:[#allocation2 + $0x198] sm:$0xff] %vm3712_vm11, %v13695_v9 }
 0x825   :  { %4796 = vrot.lane.b32.xlu2 %v4635_v31, %s9479_s20 }
 0x827   :  { %4800 = vrot.lane.b32.xlu1 %v4637_v56, %s9479_s20  ;;  %v13616_v56 = vld [vmem:[#allocation3 + $0x150] sm:$0xff] }
 0x828   :  { %4566 = vst.msk [vmem:[#allocation2 + $0xe0] sm:$0xff] %vm3712_vm11, %v13616_v56 }
 0x829   :  { %4810 = vrot.lane.b32.xlu0 %v4642_v29, %s9479_s20  ;;  %v13619_v29 = vld [vmem:[#allocation3 + $0x1e0] sm:$0xff] }
 0x82a   :  { %4574 = vst.msk [vmem:[#allocation2 + $0x120] sm:$0xff] %vm3712_vm11, %v13619_v29 }
 0x82d   :  { %4802 = vrot.lane.b32.xlu2 %v4638_v40, %s9479_s20  ;;  %v13613_v40 = vld [vmem:[#allocation3 + $0x110] sm:$0xff] }
 0x82e   :  { %4561 = vst.msk [vmem:[#allocation2 + $0xb8] sm:$0xff] %vm3712_vm11, %v13613_v40 }
 0x82f   :  { %v4737_v46 = vpop.permute.xlu2 %4736  ;;  %4806 = vrot.lane.b32.xlu1 %v4640_v26, %s9479_s20  ;;  %v13627_v26 = vld [vmem:[#allocation3 + $0x170] sm:$0xff] }
 0x830   :  { %4926 = vst.msk [vmem:[#allocation2 + $0x18] sm:$0xff] %vm4922_vm2, %v4737_v46  ;;  %v13623_v46 = vld [vmem:[#allocation3 + $0x138] sm:$0xff] }
 0x831   :  { %4816 = vrot.lane.b32.xlu0 %v4645_v13, %s9479_s20  ;;  %v4663_v13 = vld [vmem:[#allocation3 + $0x309] sm:$0xff]  ;;  %4564 = vst.msk [vmem:[#allocation2 + $0xd0] sm:$0xff] %vm3712_vm11, %v13623_v46 }
 0x832   :  { %4569 = vst.msk [vmem:[#allocation2 + $0xf8] sm:$0xff] %vm3712_vm11, %v13627_v26 }
 0x835   :  { %4808 = vrot.lane.b32.xlu2 %v4641_v50, %s9479_s20  ;;  %v4658_v50 = vld [vmem:[#allocation3 + $0x2d1] sm:$0xff] }
 0x837   :  { %v4743_v6 = vpop.permute.xlu2 %4742  ;;  %4812 = vrot.lane.b32.xlu1 %v4643_v35, %s9479_s20  ;;  %v13639_v35 = vld [vmem:[#allocation3 + $0x200] sm:$0xff] }
 0x838   :  { %4929 = vst.msk [vmem:[#allocation2 + $0x30] sm:$0xff] %vm4922_vm2, %v4743_v6 }
 0x839   :  { %4822 = vrot.lane.b32.xlu0 %v4648_v23, %s9479_s20  ;;  %v13645_v23 = vld [vmem:[#allocation3 + $0x1c8] sm:$0xff]  ;;  %4577 = vst.msk [vmem:[#allocation2 + $0x138] sm:$0xff] %vm3712_vm11, %v13639_v35 }
 0x83a   :  { %v4739_v7 = vpop.permute.xlu0 %4738  ;;  %4572 = vst.msk [vmem:[#allocation2 + $0x110] sm:$0xff] %vm3712_vm11, %v13645_v23 }
 0x83b   :  { %4927 = vst.msk [vmem:[#allocation2 + $0x20] sm:$0xff] %vm4922_vm2, %v4739_v7  ;;  %v13642_v7 = vld [vmem:[#allocation3 + $0x158] sm:$0xff] }
 0x83c   :  { %4567 = vst.msk [vmem:[#allocation2 + $0xe8] sm:$0xff] %vm3712_vm11, %v13642_v7 }
 0x83d   :  { %4814 = vrot.lane.b32.xlu2 %v4644_v37, %s9479_s20 }
 0x83f   :  { %v4749_v11 = vpop.permute.xlu2 %4748  ;;  %4818 = vrot.lane.b32.xlu1 %v4646_v18, %s9479_s20  ;;  %v4662_v18 = vld [vmem:[#allocation3 + $0x301] sm:$0xff] }
 0x840   :  { %4932 = vst.msk [vmem:[#allocation2 + $0x48] sm:$0xff] %vm4922_vm2, %v4749_v11  ;;  %v4987_v11 = vld [vmem:[#allocation3 + $0x2] sm:$0xff] }
 0x841   :  { %4828 = vrot.lane.b32.xlu0 %v4651_v52, %s9479_s20  ;;  %v4735_v8 = vpop.permute.xlu1 %4734  ;;  %v4661_v52 = vld [vmem:[#allocation3 + $0x2f1] sm:$0xff] }
 0x842   :  { %4925 = vst.msk [vmem:[#allocation2 + $0x10] sm:$0xff] %vm4922_vm2, %v4735_v8 }
 0x843   :  { %v4745_v47 = vpop.permute.xlu0 %4744 }
 0x844   :  { %4930 = vst.msk [vmem:[#allocation2 + $0x38] sm:$0xff] %vm4922_vm2, %v4745_v47 }
 0x845   :  { %4820 = vrot.lane.b32.xlu2 %v4647_v59, %s9479_s20  ;;  %v13649_v59 = vld [vmem:[#allocation3 + $0x228] sm:$0xff] }
 0x846   :  { %4580 = vst.msk [vmem:[#allocation2 + $0x150] sm:$0xff] %vm3712_vm11, %v13649_v59 }
 0x847   :  { %v4755_v53 = vpop.permute.xlu2 %4754  ;;  %4824 = vrot.lane.b32.xlu1 %v4649_v10, %s9479_s20  ;;  %v13665_v10 = vld [vmem:[#allocation3 + $0x248] sm:$0xff] }
 0x848   :  { %4935 = vst.msk [vmem:[#allocation2 + $0x60] sm:$0xff] %vm4922_vm2, %v4755_v53  ;;  %v13653_v53 = vld [vmem:[#allocation3 + $0x1e8] sm:$0xff] }
 0x849   :  { %4834 = vrot.lane.b32.xlu0 %v4654_v32, %s9479_s20  ;;  %v4741_v4 = vpop.permute.xlu1 %4740  ;;  %4575 = vst.msk [vmem:[#allocation2 + $0x128] sm:$0xff] %vm3712_vm11, %v13653_v53  ;;  %v13668_v32 = vld [vmem:[#allocation3 + $0x1d0] sm:$0xff] }
 0x84a   :  { %4928 = vst.msk [vmem:[#allocation2 + $0x28] sm:$0xff] %vm4922_vm2, %v4741_v4  ;;  %v13675_v4 = vld [vmem:[#allocation3 + $0x270] sm:$0xff] }
 0x84b   :  { %v4751_v43 = vpop.permute.xlu0 %4750  ;;  %4583 = vst.msk [vmem:[#allocation2 + $0x168] sm:$0xff] %vm3712_vm11, %v13665_v10 }
 0x84c   :  { %4933 = vst.msk [vmem:[#allocation2 + $0x50] sm:$0xff] %vm4922_vm2, %v4751_v43  ;;  %v4665_v43 = vld [vmem:[#allocation3 + $0x321] sm:$0xff] }
 0x84d   :  { %4826 = vrot.lane.b32.xlu2 %v4650_v61, %s9479_s20  ;;  %4573 = vst.msk [vmem:[#allocation2 + $0x118] sm:$0xff] %vm3712_vm11, %v13668_v32 }
 0x84e   :  { %4586 = vst.msk [vmem:[#allocation2 + $0x180] sm:$0xff] %vm3712_vm11, %v13675_v4 }
 0x84f   :  { %v4761_v62 = vpop.permute.xlu2 %4760  ;;  %4830 = vrot.lane.b32.xlu1 %v4652_v30, %s9479_s20  ;;  %v13679_v30 = vld [vmem:[#allocation3 + $0x1f8] sm:$0xff] }
 0x850   :  { %4938 = vst.msk [vmem:[#allocation2 + $0x78] sm:$0xff] %vm4922_vm2, %v4761_v62  ;;  %v13671_v62 = vld [vmem:[#allocation3 + $0x210] sm:$0xff] }
 0x851   :  { %4840 = vrot.lane.b32.xlu0 %v4657_v22, %s9479_s20  ;;  %v4747_v58 = vpop.permute.xlu1 %4746  ;;  %v4990_v22 = vld [vmem:[#allocation3 + $0x22] sm:$0xff]  ;;  %4578 = vst.msk [vmem:[#allocation2 + $0x140] sm:$0xff] %vm3712_vm11, %v13671_v62 }
 0x852   :  { %4931 = vst.msk [vmem:[#allocation2 + $0x40] sm:$0xff] %vm4922_vm2, %v4747_v58 }
 0x853   :  { %v4757_v16 = vpop.permute.xlu0 %4756  ;;  %4576 = vst.msk [vmem:[#allocation2 + $0x130] sm:$0xff] %vm3712_vm11, %v13679_v30 }
 0x854   :  { %4936 = vst.msk [vmem:[#allocation2 + $0x68] sm:$0xff] %vm4922_vm2, %v4757_v16 }
 0x855   :  { %4832 = vrot.lane.b32.xlu2 %v4653_v17, %s9479_s20  ;;  %v4664_v17 = vld [vmem:[#allocation3 + $0x319] sm:$0xff] }
 0x857   :  { %v4767_v45 = vpop.permute.xlu2 %4766  ;;  %4836 = vrot.lane.b32.xlu1 %v4655_v55, %s9479_s20  ;;  %v13692_v55 = vld [vmem:[#allocation3 + $0x230] sm:$0xff] }
 0x858   :  { %4941 = vst.msk [vmem:[#allocation2 + $0x90] sm:$0xff] %vm4922_vm2, %v4767_v45 }
 0x859   :  { %4846 = vrot.lane.b32.xlu0 %v4660_v5, %s9479_s20  ;;  %v4753_v27 = vpop.permute.xlu1 %4752  ;;  %v4988_v5 = vld [vmem:[#allocation3 + $0xa] sm:$0xff]  ;;  %4581 = vst.msk [vmem:[#allocation2 + $0x158] sm:$0xff] %vm3712_vm11, %v13692_v55 }
 0x85a   :  { %4934 = vst.msk [vmem:[#allocation2 + $0x58] sm:$0xff] %vm4922_vm2, %v4753_v27  ;;  %v4989_v27 = vld [vmem:[#allocation3 + $0x1a] sm:$0xff] }
 0x85b   :  { %v4763_v41 = vpop.permute.xlu0 %4762 }
 0x85c   :  { %4939 = vst.msk [vmem:[#allocation2 + $0x80] sm:$0xff] %vm4922_vm2, %v4763_v41  ;;  %v13702_v41 = vld [vmem:[#allocation3 + $0x258] sm:$0xff] }
 0x85d   :  { %4838 = vrot.lane.b32.xlu2 %v4656_v28, %s9479_s20  ;;  %v4506_v28 = vld [vmem:[#allocation3 + $0x1b0] sm:$0xff]  ;;  %4584 = vst.msk [vmem:[#allocation2 + $0x170] sm:$0xff] %vm3712_vm11, %v13702_v41 }
 0x85e   :  { %4570 = vst.msk [vmem:[#allocation2 + $0x100] sm:$0xff] %vm3712_vm11, %v4506_v28  ;;  %v13750_v28 = vld [vmem:[#allocation3 + $0x2c0] sm:$0xff] }
 0x85f   :  { %v4773_v31 = vpop.permute.xlu2 %4772  ;;  %4842 = vrot.lane.b32.xlu1 %v4658_v50, %s9479_s20  ;;  %4593 = vst.msk [vmem:[#allocation2 + $0x1b8] sm:$0xff] %vm3712_vm11, %v13750_v28 }
 0x860   :  { %4944 = vst.msk [vmem:[#allocation2 + $0xa8] sm:$0xff] %vm4922_vm2, %v4773_v31  ;;  %v13698_v31 = vld [vmem:[#allocation3 + $0x218] sm:$0xff] }
 0x861   :  { %4852 = vrot.lane.b32.xlu0 %v4663_v13, %s9479_s20  ;;  %v4759_v1 = vpop.permute.xlu1 %4758  ;;  %4579 = vst.msk [vmem:[#allocation2 + $0x148] sm:$0xff] %vm3712_vm11, %v13698_v31 }
 0x862   :  { %4937 = vst.msk [vmem:[#allocation2 + $0x70] sm:$0xff] %vm4922_vm2, %v4759_v1  ;;  %v13714_v1 = vld [vmem:[#allocation3 + $0x2b8] sm:$0xff] }
 0x863   :  { %v4769_v37 = vpop.permute.xlu0 %4768  ;;  %4592 = vst.msk [vmem:[#allocation2 + $0x1b0] sm:$0xff] %vm3712_vm11, %v13714_v1 }
 0x864   :  { %4942 = vst.msk [vmem:[#allocation2 + $0x98] sm:$0xff] %vm4922_vm2, %v4769_v37  ;;  %v13717_v37 = vld [vmem:[#allocation3 + $0x240] sm:$0xff] }
 0x865   :  { %4844 = vrot.lane.b32.xlu2 %v4659_v19, %s9479_s20  ;;  %v4993_v19 = vld [vmem:[#allocation3 + $0x4a] sm:$0xff]  ;;  %4582 = vst.msk [vmem:[#allocation2 + $0x160] sm:$0xff] %vm3712_vm11, %v13717_v37 }
 0x867   :  { %v4779_v6 = vpop.permute.xlu2 %4778  ;;  %4848 = vrot.lane.b32.xlu1 %v4661_v52, %s9479_s20  ;;  %v4992_v52 = vld [vmem:[#allocation3 + $0x3a] sm:$0xff] }
 0x868   :  { %4947 = vst.msk [vmem:[#allocation2 + $0xc0] sm:$0xff] %vm4922_vm2, %v4779_v6 }
 0x869   :  { %5115 = vrot.lane.b32.xlu0 %v4987_v11, %s9481_s27  ;;  %v4765_v47 = vpop.permute.xlu1 %4764  ;;  %v13720_v11 = vld [vmem:[#allocation3 + $0x278] sm:$0xff] }
 0x86a   :  { %4940 = vst.msk [vmem:[#allocation2 + $0x88] sm:$0xff] %vm4922_vm2, %v4765_v47  ;;  %v13728_v47 = vld [vmem:[#allocation3 + $0x260] sm:$0xff] }
 0x86b   :  { %v4775_v61 = vpop.permute.xlu0 %4774  ;;  %4587 = vst.msk [vmem:[#allocation2 + $0x188] sm:$0xff] %vm3712_vm11, %v13720_v11 }
 0x86c   :  { %4945 = vst.msk [vmem:[#allocation2 + $0xb0] sm:$0xff] %vm4922_vm2, %v4775_v61  ;;  %v4996_v61 = vld [vmem:[#allocation3 + $0x6a] sm:$0xff] }
 0x86d   :  { %4850 = vrot.lane.b32.xlu2 %v4662_v18, %s9479_s20  ;;  %v13724_v18 = vld [vmem:[#allocation3 + $0x2d8] sm:$0xff]  ;;  %4585 = vst.msk [vmem:[#allocation2 + $0x178] sm:$0xff] %vm3712_vm11, %v13728_v47 }
 0x86e   :  { %4595 = vst.msk [vmem:[#allocation2 + $0x1c8] sm:$0xff] %vm3712_vm11, %v13724_v18 }
 0x86f   :  { %v4785_v8 = vpop.permute.xlu2 %4784  ;;  %4854 = vrot.lane.b32.xlu1 %v4664_v17, %s9479_s20 }
 0x870   :  { %4950 = vst.msk [vmem:[#allocation2 + $0xd8] sm:$0xff] %vm4922_vm2, %v4785_v8  ;;  %v4991_v8 = vld [vmem:[#allocation3 + $0x32] sm:$0xff] }
 0x871   :  { %5121 = vrot.lane.b32.xlu0 %v4990_v22, %s9481_s27  ;;  %v4771_v58 = vpop.permute.xlu1 %4770 }
 0x872   :  { %4943 = vst.msk [vmem:[#allocation2 + $0xa0] sm:$0xff] %vm4922_vm2, %v4771_v58  ;;  %v13743_v58 = vld [vmem:[#allocation3 + $0x300] sm:$0xff] }
 0x873   :  { %v4781_v16 = vpop.permute.xlu0 %4780  ;;  %4598 = vst.msk [vmem:[#allocation2 + $0x1e0] sm:$0xff] %vm3712_vm11, %v13743_v58 }
 0x874   :  { %4948 = vst.msk [vmem:[#allocation2 + $0xc8] sm:$0xff] %vm4922_vm2, %v4781_v16  ;;  %v13746_v16 = vld [vmem:[#allocation3 + $0x288] sm:$0xff] }
 0x875   :  { %4856 = vrot.lane.b32.xlu2 %v4665_v43, %s9479_s20  ;;  %4588 = vst.msk [vmem:[#allocation2 + $0x190] sm:$0xff] %vm3712_vm11, %v13746_v16  ;;  %s9490_s20 = smov 56  }
 0x877   :  { %v4791_v45 = vpop.permute.xlu2 %4790  ;;  %5117 = vrot.lane.b32.xlu1 %v4988_v5, %s9481_s27  ;;  %v4995_v5 = vld [vmem:[#allocation3 + $0x62] sm:$0xff] }
 0x878   :  { %4953 = vst.msk [vmem:[#allocation2 + $0xf0] sm:$0xff] %vm4922_vm2, %v4791_v45  ;;  %v13740_v45 = vld [vmem:[#allocation3 + $0x2a0] sm:$0xff] }
 0x879   :  { %5127 = vrot.lane.b32.xlu0 %v4993_v19, %s9481_s27  ;;  %v4777_v13 = vpop.permute.xlu1 %4776  ;;  %4590 = vst.msk [vmem:[#allocation2 + $0x1a0] sm:$0xff] %vm3712_vm11, %v13740_v45  ;;  %v13754_v19 = vld [vmem:[#allocation3 + $0x320] sm:$0xff] }
 0x87a   :  { %4946 = vst.msk [vmem:[#allocation2 + $0xb8] sm:$0xff] %vm4922_vm2, %v4777_v13 }
 0x87b   :  { %v4787_v6 = vpop.permute.xlu0 %4786  ;;  %16293 = vst [vmem:[#allocation13_spill] sm:$0xff] %v13754_v19 }
 0x87c   :  { %4951 = vst.msk [vmem:[#allocation2 + $0xe0] sm:$0xff] %vm4922_vm2, %v4787_v6 }
 0x87d   :  { %5119 = vrot.lane.b32.xlu2 %v4989_v27, %s9481_s27  ;;  %v4994_v27 = vld [vmem:[#allocation3 + $0x52] sm:$0xff]  ;;  %4601 = vst.msk [vmem:[#allocation2 + $0x1f8] sm:$0xff] %vm3712_vm11, %v13754_v19 }
 0x87f   :  { %v4797_v50 = vpop.permute.xlu2 %4796  ;;  %5123 = vrot.lane.b32.xlu1 %v4991_v8, %s9481_s27  ;;  %v13766_v8 = vld [vmem:[#allocation3 + $0x2a8] sm:$0xff] }
 0x880   :  { %4956 = vst.msk [vmem:[#allocation2 + $0x108] sm:$0xff] %vm4922_vm2, %v4797_v50  ;;  %v4999_v50 = vld [vmem:[#allocation3 + $0x92] sm:$0xff] }
 0x881   :  { %5133 = vrot.lane.b32.xlu0 %v4996_v61, %s9481_s27  ;;  %v4783_v17 = vpop.permute.xlu1 %4782  ;;  %v13769_v61 = vld [vmem:[#allocation3 + $0x2e8] sm:$0xff]  ;;  %4591 = vst.msk [vmem:[#allocation2 + $0x1a8] sm:$0xff] %vm3712_vm11, %v13766_v8 }
 0x882   :  { %4949 = vst.msk [vmem:[#allocation2 + $0xd0] sm:$0xff] %vm4922_vm2, %v4783_v17  ;;  %v13776_v17 = vld [vmem:[#allocation3 + $0x308] sm:$0xff] }
 0x883   :  { %v4793_v22 = vpop.permute.xlu0 %4792  ;;  %4596 = vst.msk [vmem:[#allocation2 + $0x1d0] sm:$0xff] %vm3712_vm11, %v13769_v61 }
 0x884   :  { %4954 = vst.msk [vmem:[#allocation2 + $0xf8] sm:$0xff] %vm4922_vm2, %v4793_v22  ;;  %v4998_v22 = vld [vmem:[#allocation3 + $0x82] sm:$0xff] }
 0x885   :  { %5125 = vrot.lane.b32.xlu2 %v4992_v52, %s9481_s27  ;;  %4599 = vst.msk [vmem:[#allocation2 + $0x1e8] sm:$0xff] %vm3712_vm11, %v13776_v17 }
 0x887   :  { %v4803_v43 = vpop.permute.xlu2 %4802  ;;  %5129 = vrot.lane.b32.xlu1 %v4994_v27, %s9481_s27  ;;  %v13780_v27 = vld [vmem:[#allocation3 + $0x2f0] sm:$0xff] }
 0x888   :  { %4959 = vst.msk [vmem:[#allocation2 + $0x120] sm:$0xff] %vm4922_vm2, %v4803_v43  ;;  %v13772_v43 = vld [vmem:[#allocation3 + $0x2d0] sm:$0xff] }
 0x889   :  { %5139 = vrot.lane.b32.xlu0 %v4999_v50, %s9481_s27  ;;  %v4789_v6 = vpop.permute.xlu1 %4788  ;;  %16294 = vst [vmem:[#allocation18_spill] sm:$0xff] %v13780_v27  ;;  %v5002_v50 = vld [vmem:[#allocation3 + $0xb2] sm:$0xff] }
 0x88a   :  { %4952 = vst.msk [vmem:[#allocation2 + $0xe8] sm:$0xff] %vm4922_vm2, %v4789_v6 }
 0x88b   :  { %v4799_v52 = vpop.permute.xlu0 %4798  ;;  %4594 = vst.msk [vmem:[#allocation2 + $0x1c0] sm:$0xff] %vm3712_vm11, %v13772_v43 }
 0x88c   :  { %4957 = vst.msk [vmem:[#allocation2 + $0x110] sm:$0xff] %vm4922_vm2, %v4799_v52 }
 0x88d   :  { %5131 = vrot.lane.b32.xlu2 %v4995_v5, %s9481_s27  ;;  %v4997_v5 = vld [vmem:[#allocation3 + $0x7a] sm:$0xff]  ;;  %4597 = vst.msk [vmem:[#allocation2 + $0x1d8] sm:$0xff] %vm3712_vm11, %v13780_v27 }
 0x88f   :  { %v4809_v13 = vpop.permute.xlu2 %4808  ;;  %5135 = vrot.lane.b32.xlu1 %v4997_v5, %s9481_s27  ;;  %v5001_v5 = vld [vmem:[#allocation3 + $0xaa] sm:$0xff] }
 0x890   :  { %4962 = vst.msk [vmem:[#allocation2 + $0x138] sm:$0xff] %vm4922_vm2, %v4809_v13 }
 0x891   :  { %5145 = vrot.lane.b32.xlu0 %v5002_v50, %s9481_s27  ;;  %v4795_v6 = vpop.permute.xlu1 %4794  ;;  %v5000_v50 = vld [vmem:[#allocation3 + $0x9a] sm:$0xff] }
 0x892   :  { %4955 = vst.msk [vmem:[#allocation2 + $0x100] sm:$0xff] %vm4922_vm2, %v4795_v6  ;;  %v5004_v6 = vld [vmem:[#allocation3 + $0xca] sm:$0xff] }
 0x893   :  { %v4805_v52 = vpop.permute.xlu0 %4804 }
 0x894   :  { %4960 = vst.msk [vmem:[#allocation2 + $0x128] sm:$0xff] %vm4922_vm2, %v4805_v52  ;;  %v5003_v52 = vld [vmem:[#allocation3 + $0xc2] sm:$0xff] }
 0x895   :  { %5137 = vrot.lane.b32.xlu2 %v4998_v22, %s9481_s27  ;;  %v13792_v22 = vld [vmem:[#allocation3 + $0x318] sm:$0xff] }
 0x896   :  { %16295 = vst [vmem:[#allocation22_spill] sm:$0xff] %v13792_v22 }
 0x897   :  { %v4815_v13 = vpop.permute.xlu2 %4814  ;;  %4600 = vst.msk [vmem:[#allocation2 + $0x1f0] sm:$0xff] %vm3712_vm11, %v13792_v22  ;;  %5141 = vrot.lane.b32.xlu1 %v5000_v50, %s9481_s27 }
 0x898   :  { %4965 = vst.msk [vmem:[#allocation2 + $0x150] sm:$0xff] %vm4922_vm2, %v4815_v13 }
 0x899   :  { %5151 = vrot.lane.b32.xlu0 %v5005_v39, %s9481_s27  ;;  %v4801_v19 = vpop.permute.xlu1 %4800 }
 0x89a   :  { %4958 = vst.msk [vmem:[#allocation2 + $0x118] sm:$0xff] %vm4922_vm2, %v4801_v19  ;;  %v5007_v19 = vld [vmem:[#allocation3 + $0xf2] sm:$0xff] }
 0x89b   :  { %v4811_v27 = vpop.permute.xlu0 %4810 }
 0x89c   :  { %4963 = vst.msk [vmem:[#allocation2 + $0x140] sm:$0xff] %vm4922_vm2, %v4811_v27  ;;  %v5006_v27 = vld [vmem:[#allocation3 + $0xe2] sm:$0xff] }
 0x89d   :  { %5143 = vrot.lane.b32.xlu2 %v5001_v5, %s9481_s27  ;;  %v5008_v5 = vld [vmem:[#allocation3 + $0xfa] sm:$0xff] }
 0x89f   :  { %v4821_v13 = vpop.permute.xlu2 %4820  ;;  %5147 = vrot.lane.b32.xlu1 %v5003_v52, %s9481_s27 }
 0x8a0   :  { %4968 = vst.msk [vmem:[#allocation2 + $0x168] sm:$0xff] %vm4922_vm2, %v4821_v13  ;;  %v5011_v13 = vld [vmem:[#allocation3 + $0x122] sm:$0xff] }
 0x8a1   :  { %5157 = vrot.lane.b32.xlu0 %v5008_v5, %s9481_s27  ;;  %v4807_v39 = vpop.permute.xlu1 %4806 }
 0x8a2   :  { %4961 = vst.msk [vmem:[#allocation2 + $0x130] sm:$0xff] %vm4922_vm2, %v4807_v39  ;;  %v5014_v39 = vld [vmem:[#allocation3 + $0x142] sm:$0xff] }
 0x8a3   :  { %v4817_v22 = vpop.permute.xlu0 %4816 }
 0x8a4   :  { %4966 = vst.msk [vmem:[#allocation2 + $0x158] sm:$0xff] %vm4922_vm2, %v4817_v22  ;;  %v5009_v22 = vld [vmem:[#allocation3 + $0x10a] sm:$0xff] }
 0x8a5   :  { %5149 = vrot.lane.b32.xlu2 %v5004_v6, %s9481_s27 }
 0x8a7   :  { %v4827_v50 = vpop.permute.xlu2 %4826  ;;  %5153 = vrot.lane.b32.xlu1 %v5006_v27, %s9481_s27 }
 0x8a8   :  { %4971 = vst.msk [vmem:[#allocation2 + $0x180] sm:$0xff] %vm4922_vm2, %v4827_v50  ;;  %v5010_v50 = vld [vmem:[#allocation3 + $0x112] sm:$0xff] }
 0x8a9   :  { %5163 = vrot.lane.b32.xlu0 %v5011_v13, %s9481_s27  ;;  %v4813_v52 = vpop.permute.xlu1 %4812 }
 0x8aa   :  { %4964 = vst.msk [vmem:[#allocation2 + $0x148] sm:$0xff] %vm4922_vm2, %v4813_v52  ;;  %v5012_v52 = vld [vmem:[#allocation3 + $0x12a] sm:$0xff] }
 0x8ab   :  { %v4823_v5 = vpop.permute.xlu0 %4822 }
 0x8ac   :  { %4969 = vst.msk [vmem:[#allocation2 + $0x170] sm:$0xff] %vm4922_vm2, %v4823_v5  ;;  %v5017_v5 = vld [vmem:[#allocation3 + $0x16a] sm:$0xff] }
 0x8ad   :  { %5155 = vrot.lane.b32.xlu2 %v5007_v19, %s9481_s27 }
 0x8af   :  { %v4833_v6 = vpop.permute.xlu2 %4832  ;;  %5159 = vrot.lane.b32.xlu1 %v5009_v22, %s9481_s27 }
 0x8b0   :  { %4974 = vst.msk [vmem:[#allocation2 + $0x198] sm:$0xff] %vm4922_vm2, %v4833_v6  ;;  %v5013_v6 = vld [vmem:[#allocation3 + $0x13a] sm:$0xff] }
 0x8b1   :  { %5169 = vrot.lane.b32.xlu0 %v5014_v39, %s9481_s27  ;;  %v4819_v27 = vpop.permute.xlu1 %4818 }
 0x8b2   :  { %4967 = vst.msk [vmem:[#allocation2 + $0x160] sm:$0xff] %vm4922_vm2, %v4819_v27  ;;  %v5016_v27 = vld [vmem:[#allocation3 + $0x15a] sm:$0xff] }
 0x8b3   :  { %v4829_v13 = vpop.permute.xlu0 %4828 }
 0x8b4   :  { %4972 = vst.msk [vmem:[#allocation2 + $0x188] sm:$0xff] %vm4922_vm2, %v4829_v13  ;;  %v5015_v13 = vld [vmem:[#allocation3 + $0x152] sm:$0xff] }
 0x8b5   :  { %5161 = vrot.lane.b32.xlu2 %v5010_v50, %s9481_s27 }
 0x8b7   :  { %v4839_v19 = vpop.permute.xlu2 %4838  ;;  %5165 = vrot.lane.b32.xlu1 %v5012_v52, %s9481_s27 }
 0x8b8   :  { %4977 = vst.msk [vmem:[#allocation2 + $0x1b0] sm:$0xff] %vm4922_vm2, %v4839_v19  ;;  %v5020_v19 = vld [vmem:[#allocation3 + $0x1ba] sm:$0xff] }
 0x8b9   :  { %5175 = vrot.lane.b32.xlu0 %v5017_v5, %s9481_s27  ;;  %v4825_v22 = vpop.permute.xlu1 %4824 }
 0x8ba   :  { %4970 = vst.msk [vmem:[#allocation2 + $0x178] sm:$0xff] %vm4922_vm2, %v4825_v22  ;;  %v5018_v22 = vld [vmem:[#allocation3 + $0x172] sm:$0xff] }
 0x8bb   :  { %v4835_v39 = vpop.permute.xlu0 %4834 }
 0x8bc   :  { %4975 = vst.msk [vmem:[#allocation2 + $0x1a0] sm:$0xff] %vm4922_vm2, %v4835_v39  ;;  %v5023_v39 = vld [vmem:[#allocation3 + $0x1e2] sm:$0xff] }
 0x8bd   :  { %5167 = vrot.lane.b32.xlu2 %v5013_v6, %s9481_s27 }
 0x8bf   :  { %v4845_v50 = vpop.permute.xlu2 %4844  ;;  %5171 = vrot.lane.b32.xlu1 %v5015_v13, %s9481_s27 }
 0x8c0   :  { %4980 = vst.msk [vmem:[#allocation2 + $0x1c8] sm:$0xff] %vm4922_vm2, %v4845_v50  ;;  %v5019_v50 = vld [vmem:[#allocation3 + $0x1b2] sm:$0xff] }
 0x8c1   :  { %5181 = vrot.lane.b32.xlu0 %v5020_v19, %s9481_s27  ;;  %v4831_v52 = vpop.permute.xlu1 %4830 }
 0x8c2   :  { %4973 = vst.msk [vmem:[#allocation2 + $0x190] sm:$0xff] %vm4922_vm2, %v4831_v52  ;;  %v5021_v52 = vld [vmem:[#allocation3 + $0x1ca] sm:$0xff] }
 0x8c3   :  { %v4841_v5 = vpop.permute.xlu0 %4840 }
 0x8c4   :  { %4978 = vst.msk [vmem:[#allocation2 + $0x1b8] sm:$0xff] %vm4922_vm2, %v4841_v5  ;;  %v5026_v5 = vld [vmem:[#allocation3 + $0x202] sm:$0xff] }
 0x8c5   :  { %5173 = vrot.lane.b32.xlu2 %v5016_v27, %s9481_s27 }
 0x8c7   :  { %v4851_v6 = vpop.permute.xlu2 %4850  ;;  %5177 = vrot.lane.b32.xlu1 %v5018_v22, %s9481_s27 }
 0x8c8   :  { %4983 = vst.msk [vmem:[#allocation2 + $0x1e0] sm:$0xff] %vm4922_vm2, %v4851_v6  ;;  %v5022_v6 = vld [vmem:[#allocation3 + $0x1d2] sm:$0xff] }
 0x8c9   :  { %5187 = vrot.lane.b32.xlu0 %v5023_v39, %s9481_s27  ;;  %v4837_v19 = vpop.permute.xlu1 %4836 }
 0x8ca   :  { %4976 = vst.msk [vmem:[#allocation2 + $0x1a8] sm:$0xff] %vm4922_vm2, %v4837_v19  ;;  %v5024_v19 = vld [vmem:[#allocation3 + $0x1ea] sm:$0xff] }
 0x8cb   :  { %v4847_v13 = vpop.permute.xlu0 %4846 }
 0x8cc   :  { %4981 = vst.msk [vmem:[#allocation2 + $0x1d0] sm:$0xff] %vm4922_vm2, %v4847_v13  ;;  %v5029_v13 = vld [vmem:[#allocation3 + $0x22a] sm:$0xff] }
 0x8cd   :  { %5179 = vrot.lane.b32.xlu2 %v5019_v50, %s9481_s27 }
 0x8cf   :  { %v4857_v27 = vpop.permute.xlu2 %4856  ;;  %5183 = vrot.lane.b32.xlu1 %v5021_v52, %s9481_s27 }
 0x8d0   :  { %4986 = vst.msk [vmem:[#allocation2 + $0x1f8] sm:$0xff] %vm4922_vm2, %v4857_v27  ;;  %v5025_v27 = vld [vmem:[#allocation3 + $0x1fa] sm:$0xff] }
 0x8d1   :  { %5193 = vrot.lane.b32.xlu0 %v5026_v5, %s9481_s27  ;;  %v4843_v22 = vpop.permute.xlu1 %4842 }
 0x8d2   :  { %4979 = vst.msk [vmem:[#allocation2 + $0x1c0] sm:$0xff] %vm4922_vm2, %v4843_v22  ;;  %v5027_v22 = vld [vmem:[#allocation3 + $0x212] sm:$0xff] }
 0x8d3   :  { %v4853_v39 = vpop.permute.xlu0 %4852 }
 0x8d4   :  { %4984 = vst.msk [vmem:[#allocation2 + $0x1e8] sm:$0xff] %vm4922_vm2, %v4853_v39  ;;  %v5032_v39 = vld [vmem:[#allocation3 + $0x24a] sm:$0xff] }
 0x8d5   :  { %5185 = vrot.lane.b32.xlu2 %v5022_v6, %s9481_s27 }
 0x8d7   :  { %v5120_v50 = vpop.permute.xlu2 %5119  ;;  %5189 = vrot.lane.b32.xlu1 %v5024_v19, %s9481_s27 }
 0x8d8   :  { %5310 = vst.msk [vmem:[#allocation2 + $0x10] sm:$0xff] %vm5307_vm3, %v5120_v50  ;;  %v5028_v50 = vld [vmem:[#allocation3 + $0x21a] sm:$0xff] }
 0x8d9   :  { %5199 = vrot.lane.b32.xlu0 %v5029_v13, %s9481_s27  ;;  %v4849_v52 = vpop.permute.xlu1 %4848 }
 0x8da   :  { %4982 = vst.msk [vmem:[#allocation2 + $0x1d8] sm:$0xff] %vm4922_vm2, %v4849_v52  ;;  %v5030_v52 = vld [vmem:[#allocation3 + $0x232] sm:$0xff] }
 0x8db   :  { %v5116_v5 = vpop.permute.xlu0 %5115 }
 0x8dc   :  { %5308 = vst.msk [vmem:[#allocation2] sm:$0xff] %vm5307_vm3, %v5116_v5  ;;  %v5035_v5 = vld [vmem:[#allocation3 + $0x272] sm:$0xff] }
 0x8dd   :  { %5191 = vrot.lane.b32.xlu2 %v5025_v27, %s9481_s27 }
 0x8df   :  { %v5126_v6 = vpop.permute.xlu2 %5125  ;;  %5195 = vrot.lane.b32.xlu1 %v5027_v22, %s9481_s27 }
 0x8e0   :  { %5313 = vst.msk [vmem:[#allocation2 + $0x28] sm:$0xff] %vm5307_vm3, %v5126_v6  ;;  %v5031_v6 = vld [vmem:[#allocation3 + $0x242] sm:$0xff] }
 0x8e1   :  { %5205 = vrot.lane.b32.xlu0 %v5032_v39, %s9481_s27  ;;  %v4855_v19 = vpop.permute.xlu1 %4854 }
 0x8e2   :  { %4985 = vst.msk [vmem:[#allocation2 + $0x1f0] sm:$0xff] %vm4922_vm2, %v4855_v19  ;;  %v5033_v19 = vld [vmem:[#allocation3 + $0x25a] sm:$0xff] }
 0x8e3   :  { %v5122_v13 = vpop.permute.xlu0 %5121 }
 0x8e4   :  { %5311 = vst.msk [vmem:[#allocation2 + $0x18] sm:$0xff] %vm5307_vm3, %v5122_v13  ;;  %v5038_v13 = vld [vmem:[#allocation3 + $0x292] sm:$0xff] }
 0x8e5   :  { %5197 = vrot.lane.b32.xlu2 %v5028_v50, %s9481_s27 }
 0x8e7   :  { %v5132_v27 = vpop.permute.xlu2 %5131  ;;  %5201 = vrot.lane.b32.xlu1 %v5030_v52, %s9481_s27 }
 0x8e8   :  { %5316 = vst.msk [vmem:[#allocation2 + $0x40] sm:$0xff] %vm5307_vm3, %v5132_v27  ;;  %v5034_v27 = vld [vmem:[#allocation3 + $0x262] sm:$0xff] }
 0x8e9   :  { %5211 = vrot.lane.b32.xlu0 %v5035_v5, %s9481_s27  ;;  %v5118_v22 = vpop.permute.xlu1 %5117 }
 0x8ea   :  { %5309 = vst.msk [vmem:[#allocation2 + $0x8] sm:$0xff] %vm5307_vm3, %v5118_v22  ;;  %v5036_v22 = vld [vmem:[#allocation3 + $0x27a] sm:$0xff] }
 0x8eb   :  { %v5128_v39 = vpop.permute.xlu0 %5127 }
 0x8ec   :  { %5314 = vst.msk [vmem:[#allocation2 + $0x30] sm:$0xff] %vm5307_vm3, %v5128_v39  ;;  %v5041_v39 = vld [vmem:[#allocation3 + $0x2ba] sm:$0xff] }
 0x8ed   :  { %5203 = vrot.lane.b32.xlu2 %v5031_v6, %s9481_s27 }
 0x8ef   :  { %v5138_v50 = vpop.permute.xlu2 %5137  ;;  %5207 = vrot.lane.b32.xlu1 %v5033_v19, %s9481_s27 }
 0x8f0   :  { %5319 = vst.msk [vmem:[#allocation2 + $0x58] sm:$0xff] %vm5307_vm3, %v5138_v50  ;;  %v5037_v50 = vld [vmem:[#allocation3 + $0x28a] sm:$0xff] }
 0x8f1   :  { %5217 = vrot.lane.b32.xlu0 %v5038_v13, %s9481_s27  ;;  %v5124_v52 = vpop.permute.xlu1 %5123 }
 0x8f2   :  { %5312 = vst.msk [vmem:[#allocation2 + $0x20] sm:$0xff] %vm5307_vm3, %v5124_v52  ;;  %v5039_v52 = vld [vmem:[#allocation3 + $0x2a2] sm:$0xff] }
 0x8f3   :  { %v5134_v5 = vpop.permute.xlu0 %5133 }
 0x8f4   :  { %5317 = vst.msk [vmem:[#allocation2 + $0x48] sm:$0xff] %vm5307_vm3, %v5134_v5  ;;  %v5044_v5 = vld [vmem:[#allocation3 + $0x2da] sm:$0xff] }
 0x8f5   :  { %5209 = vrot.lane.b32.xlu2 %v5034_v27, %s9481_s27 }
 0x8f7   :  { %v5144_v6 = vpop.permute.xlu2 %5143  ;;  %5213 = vrot.lane.b32.xlu1 %v5036_v22, %s9481_s27 }
 0x8f8   :  { %5322 = vst.msk [vmem:[#allocation2 + $0x70] sm:$0xff] %vm5307_vm3, %v5144_v6  ;;  %v5040_v6 = vld [vmem:[#allocation3 + $0x2aa] sm:$0xff] }
 0x8f9   :  { %5223 = vrot.lane.b32.xlu0 %v5041_v39, %s9481_s27  ;;  %v5130_v19 = vpop.permute.xlu1 %5129 }
 0x8fa   :  { %5315 = vst.msk [vmem:[#allocation2 + $0x38] sm:$0xff] %vm5307_vm3, %v5130_v19  ;;  %v5042_v19 = vld [vmem:[#allocation3 + $0x2c2] sm:$0xff] }
 0x8fb   :  { %v5140_v13 = vpop.permute.xlu0 %5139 }
 0x8fc   :  { %5320 = vst.msk [vmem:[#allocation2 + $0x60] sm:$0xff] %vm5307_vm3, %v5140_v13  ;;  %v5047_v13 = vld [vmem:[#allocation3 + $0x302] sm:$0xff] }
 0x8fd   :  { %5215 = vrot.lane.b32.xlu2 %v5037_v50, %s9481_s27 }
 0x8ff   :  { %v5150_v27 = vpop.permute.xlu2 %5149  ;;  %5219 = vrot.lane.b32.xlu1 %v5039_v52, %s9481_s27 }
 0x900   :  { %5325 = vst.msk [vmem:[#allocation2 + $0x88] sm:$0xff] %vm5307_vm3, %v5150_v27  ;;  %v5043_v27 = vld [vmem:[#allocation3 + $0x2d2] sm:$0xff] }
 0x901   :  { %5229 = vrot.lane.b32.xlu0 %v5044_v5, %s9481_s27  ;;  %v5136_v22 = vpop.permute.xlu1 %5135 }
 0x902   :  { %5318 = vst.msk [vmem:[#allocation2 + $0x50] sm:$0xff] %vm5307_vm3, %v5136_v22  ;;  %v5045_v22 = vld [vmem:[#allocation3 + $0x2ea] sm:$0xff] }
 0x903   :  { %v5146_v39 = vpop.permute.xlu0 %5145 }
 0x904   :  { %5323 = vst.msk [vmem:[#allocation2 + $0x78] sm:$0xff] %vm5307_vm3, %v5146_v39  ;;  %v5050_v39 = vld [vmem:[#allocation3 + $0x322] sm:$0xff] }
 0x905   :  { %5221 = vrot.lane.b32.xlu2 %v5040_v6, %s9481_s27 }
 0x907   :  { %v5156_v50 = vpop.permute.xlu2 %5155  ;;  %5225 = vrot.lane.b32.xlu1 %v5042_v19, %s9481_s27 }
 0x908   :  { %5328 = vst.msk [vmem:[#allocation2 + $0xa0] sm:$0xff] %vm5307_vm3, %v5156_v50  ;;  %v5046_v50 = vld [vmem:[#allocation3 + $0x2f2] sm:$0xff] }
 0x909   :  { %5235 = vrot.lane.b32.xlu0 %v5047_v13, %s9481_s27  ;;  %v5142_v52 = vpop.permute.xlu1 %5141 }
 0x90a   :  { %5321 = vst.msk [vmem:[#allocation2 + $0x68] sm:$0xff] %vm5307_vm3, %v5142_v52  ;;  %v5048_v52 = vld [vmem:[#allocation3 + $0x30a] sm:$0xff] }
 0x90b   :  { %v5152_v5 = vpop.permute.xlu0 %5151 }
 0x90c   :  { %5326 = vst.msk [vmem:[#allocation2 + $0x90] sm:$0xff] %vm5307_vm3, %v5152_v5 }
 0x90d   :  { %5227 = vrot.lane.b32.xlu2 %v5043_v27, %s9481_s27 }
 0x90f   :  { %v5162_v6 = vpop.permute.xlu2 %5161  ;;  %5231 = vrot.lane.b32.xlu1 %v5045_v22, %s9481_s27 }
 0x910   :  { %5331 = vst.msk [vmem:[#allocation2 + $0xb8] sm:$0xff] %vm5307_vm3, %v5162_v6  ;;  %v5049_v6 = vld [vmem:[#allocation3 + $0x31a] sm:$0xff] }
 0x911   :  { %5241 = vrot.lane.b32.xlu0 %v5050_v39, %s9481_s27  ;;  %v5148_v19 = vpop.permute.xlu1 %5147  ;;  %v5373_v39 = vld [vmem:[#allocation3 + $0x20] sm:$0xff] }
 0x912   :  { %5324 = vst.msk [vmem:[#allocation2 + $0x80] sm:$0xff] %vm5307_vm3, %v5148_v19 }
 0x913   :  { %v5158_v13 = vpop.permute.xlu0 %5157 }
 0x914   :  { %5329 = vst.msk [vmem:[#allocation2 + $0xa8] sm:$0xff] %vm5307_vm3, %v5158_v13  ;;  %v5376_v13 = vld [vmem:[#allocation3 + $0x48] sm:$0xff] }
 0x915   :  { %5233 = vrot.lane.b32.xlu2 %v5046_v50, %s9481_s27 }
 0x917   :  { %v5168_v27 = vpop.permute.xlu2 %5167  ;;  %5237 = vrot.lane.b32.xlu1 %v5048_v52, %s9481_s27 }
 0x918   :  { %5334 = vst.msk [vmem:[#allocation2 + $0xd0] sm:$0xff] %vm5307_vm3, %v5168_v27 }
 0x919   :  { %5504 = vrot.lane.b32.xlu0 %v13494_v54, %s9483_s13  ;;  %v5154_v50 = vpop.permute.xlu1 %5153 }
 0x91a   :  { %5327 = vst.msk [vmem:[#allocation2 + $0x98] sm:$0xff] %vm5307_vm3, %v5154_v50  ;;  %v5402_v50 = vld [vmem:[#allocation3 + $0x180] sm:$0xff] }
 0x91b   :  { %v5164_v22 = vpop.permute.xlu0 %5163 }
 0x91c   :  { %5332 = vst.msk [vmem:[#allocation2 + $0xc0] sm:$0xff] %vm5307_vm3, %v5164_v22 }
 0x91d   :  { %5239 = vrot.lane.b32.xlu2 %v5049_v6, %s9481_s27  ;;  %s9491_s27 = smov 48  }
 0x91f   :  { %v5174_v5 = vpop.permute.xlu2 %5173  ;;  %5500 = vrot.lane.b32.xlu1 %v13507_v12, %s9483_s13 }
 0x920   :  { %5337 = vst.msk [vmem:[#allocation2 + $0xe8] sm:$0xff] %vm5307_vm3, %v5174_v5  ;;  %v5403_v5 = vld [vmem:[#allocation3 + $0x188] sm:$0xff] }
 0x921   :  { %5510 = vrot.lane.b32.xlu0 %v13510_v21, %s9483_s13  ;;  %v5160_v54 = vpop.permute.xlu1 %5159 }
 0x922   :  { %5330 = vst.msk [vmem:[#allocation2 + $0xb0] sm:$0xff] %vm5307_vm3, %v5160_v54 }
 0x923   :  { %v5170_v19 = vpop.permute.xlu0 %5169 }
 0x924   :  { %5335 = vst.msk [vmem:[#allocation2 + $0xd8] sm:$0xff] %vm5307_vm3, %v5170_v19  ;;  %v16297_v19 = vld [vmem:[#allocation13_spill] sm:$0xff] }
 0x925   :  { %5502 = vrot.lane.b32.xlu2 %v5373_v39, %s9483_s13 }
 0x927   :  { %v5180_v27 = vpop.permute.xlu2 %5179  ;;  %5506 = vrot.lane.b32.xlu1 %v13518_v57, %s9483_s13 }
 0x928   :  { %5340 = vst.msk [vmem:[#allocation2 + $0x100] sm:$0xff] %vm5307_vm3, %v5180_v27  ;;  %v5434_v27 = vld [vmem:[#allocation3 + $0x330] sm:$0xff] }
 0x929   :  { %5516 = vrot.lane.b32.xlu0 %v13522_v2, %s9483_s13  ;;  %v5166_v21 = vpop.permute.xlu1 %5165 }
 0x92a   :  { %5333 = vst.msk [vmem:[#allocation2 + $0xc8] sm:$0xff] %vm5307_vm3, %v5166_v21 }
 0x92b   :  { %v5176_v6 = vpop.permute.xlu0 %5175 }
 0x92c   :  { %5338 = vst.msk [vmem:[#allocation2 + $0xf0] sm:$0xff] %vm5307_vm3, %v5176_v6 }
 0x92d   :  { %5508 = vrot.lane.b32.xlu2 %v5376_v13, %s9483_s13  ;;  %v5758_v13 = vld [vmem:[#allocation3 + $0x21] sm:$0xff] }
 0x92f   :  { %v5186_v12 = vpop.permute.xlu2 %5185  ;;  %5512 = vrot.lane.b32.xlu1 %v13538_v34, %s9483_s13 }
 0x930   :  { %5343 = vst.msk [vmem:[#allocation2 + $0x118] sm:$0xff] %vm5307_vm3, %v5186_v12 }
 0x931   :  { %5522 = vrot.lane.b32.xlu0 %v13541_v33, %s9483_s13  ;;  %v5172_v2 = vpop.permute.xlu1 %5171 }
 0x932   :  { %5336 = vst.msk [vmem:[#allocation2 + $0xe0] sm:$0xff] %vm5307_vm3, %v5172_v2  ;;  %v5435_v2 = vld [vmem:[#allocation3 + $0x338] sm:$0xff] }
 0x933   :  { %v5182_v52 = vpop.permute.xlu0 %5181 }
 0x934   :  { %5341 = vst.msk [vmem:[#allocation2 + $0x108] sm:$0xff] %vm5307_vm3, %v5182_v52  ;;  %v14086_v52 = vld [vmem:[#allocation3 + $0x49] sm:$0xff] }
 0x935   :  { %5514 = vrot.lane.b32.xlu2 %v13491_v20, %s9483_s13 }
 0x937   :  { %v5192_v57 = vpop.permute.xlu2 %5191  ;;  %5518 = vrot.lane.b32.xlu1 %v13548_v3, %s9483_s13 }
 0x938   :  { %5346 = vst.msk [vmem:[#allocation2 + $0x130] sm:$0xff] %vm5307_vm3, %v5192_v57  ;;  %v5757_v57 = vld [vmem:[#allocation3 + $0x19] sm:$0xff] }
 0x939   :  { %5528 = vrot.lane.b32.xlu0 %v13552_v15, %s9483_s13  ;;  %v5178_v34 = vpop.permute.xlu1 %5177 }
 0x93a   :  { %5339 = vst.msk [vmem:[#allocation2 + $0xf8] sm:$0xff] %vm5307_vm3, %v5178_v34 }
 0x93b   :  { %v5188_v33 = vpop.permute.xlu0 %5187 }
 0x93c   :  { %5344 = vst.msk [vmem:[#allocation2 + $0x120] sm:$0xff] %vm5307_vm3, %v5188_v33 }
 0x93d   :  { %5520 = vrot.lane.b32.xlu2 %v13504_v51, %s9483_s13 }
 0x93f   :  { %v5198_v20 = vpop.permute.xlu2 %5197  ;;  %5524 = vrot.lane.b32.xlu1 %v13567_v60, %s9483_s13 }
 0x940   :  { %5349 = vst.msk [vmem:[#allocation2 + $0x148] sm:$0xff] %vm5307_vm3, %v5198_v20 }
 0x941   :  { %5534 = vrot.lane.b32.xlu0 %v13570_v0, %s9483_s13  ;;  %v5184_v3 = vpop.permute.xlu1 %5183 }
 0x942   :  { %5342 = vst.msk [vmem:[#allocation2 + $0x110] sm:$0xff] %vm5307_vm3, %v5184_v3  ;;  %v14095_v3 = vld [vmem:[#allocation3 + $0x31] sm:$0xff] }
 0x943   :  { %v5194_v15 = vpop.permute.xlu0 %5193 }
 0x944   :  { %5347 = vst.msk [vmem:[#allocation2 + $0x138] sm:$0xff] %vm5307_vm3, %v5194_v15  ;;  %v14101_v15 = vld [vmem:[#allocation3 + $0x69] sm:$0xff] }
 0x945   :  { %5526 = vrot.lane.b32.xlu2 %v13514_v36, %s9483_s13 }
 0x947   :  { %v5204_v51 = vpop.permute.xlu2 %5203  ;;  %5530 = vrot.lane.b32.xlu1 %v13578_v49, %s9483_s13 }
 0x948   :  { %5352 = vst.msk [vmem:[#allocation2 + $0x160] sm:$0xff] %vm5307_vm3, %v5204_v51  ;;  %v14093_v51 = vld [vmem:[#allocation3 + $0x39] sm:$0xff] }
 0x949   :  { %5540 = vrot.lane.b32.xlu0 %v13590_v44, %s9483_s13  ;;  %v5190_v60 = vpop.permute.xlu1 %5189 }
 0x94a   :  { %5345 = vst.msk [vmem:[#allocation2 + $0x128] sm:$0xff] %vm5307_vm3, %v5190_v60 }
 0x94b   :  { %v5200_v0 = vpop.permute.xlu0 %5199 }
 0x94c   :  { %5350 = vst.msk [vmem:[#allocation2 + $0x150] sm:$0xff] %vm5307_vm3, %v5200_v0 }
 0x94d   :  { %5532 = vrot.lane.b32.xlu2 %v13526_v24, %s9483_s13 }
 0x94f   :  { %v5210_v36 = vpop.permute.xlu2 %5209  ;;  %5536 = vrot.lane.b32.xlu1 %v13596_v63, %s9483_s13 }
 0x950   :  { %5355 = vst.msk [vmem:[#allocation2 + $0x178] sm:$0xff] %vm5307_vm3, %v5210_v36 }
 0x951   :  { %5546 = vrot.lane.b32.xlu0 %v13600_v14, %s9483_s13  ;;  %v5196_v49 = vpop.permute.xlu1 %5195 }
 0x952   :  { %5348 = vst.msk [vmem:[#allocation2 + $0x140] sm:$0xff] %vm5307_vm3, %v5196_v49  ;;  %v14110_v49 = vld [vmem:[#allocation3 + $0x51] sm:$0xff] }
 0x953   :  { %v5206_v44 = vpop.permute.xlu0 %5205 }
 0x954   :  { %5353 = vst.msk [vmem:[#allocation2 + $0x168] sm:$0xff] %vm5307_vm3, %v5206_v44  ;;  %v14116_v44 = vld [vmem:[#allocation3 + $0x91] sm:$0xff] }
 0x955   :  { %5538 = vrot.lane.b32.xlu2 %v13544_v42, %s9483_s13 }
 0x957   :  { %v5216_v24 = vpop.permute.xlu2 %5215  ;;  %5542 = vrot.lane.b32.xlu1 %v13613_v40, %s9483_s13 }
 0x958   :  { %5358 = vst.msk [vmem:[#allocation2 + $0x190] sm:$0xff] %vm5307_vm3, %v5216_v24  ;;  %v14108_v24 = vld [vmem:[#allocation3 + $0x61] sm:$0xff] }
 0x959   :  { %5552 = vrot.lane.b32.xlu0 %v13616_v56, %s9483_s13  ;;  %v5202_v63 = vpop.permute.xlu1 %5201 }
 0x95a   :  { %5351 = vst.msk [vmem:[#allocation2 + $0x158] sm:$0xff] %vm5307_vm3, %v5202_v63 }
 0x95b   :  { %v5212_v14 = vpop.permute.xlu0 %5211 }
 0x95c   :  { %5356 = vst.msk [vmem:[#allocation2 + $0x180] sm:$0xff] %vm5307_vm3, %v5212_v14 }
 0x95d   :  { %5544 = vrot.lane.b32.xlu2 %v13564_v25, %s9483_s13 }
 0x95f   :  { %v5222_v42 = vpop.permute.xlu2 %5221  ;;  %5548 = vrot.lane.b32.xlu1 %v13623_v46, %s9483_s13 }
 0x960   :  { %5361 = vst.msk [vmem:[#allocation2 + $0x1a8] sm:$0xff] %vm5307_vm3, %v5222_v42 }
 0x961   :  { %5558 = vrot.lane.b32.xlu0 %v13627_v26, %s9483_s13  ;;  %v5208_v40 = vpop.permute.xlu1 %5207 }
 0x962   :  { %5354 = vst.msk [vmem:[#allocation2 + $0x170] sm:$0xff] %vm5307_vm3, %v5208_v40  ;;  %v14125_v40 = vld [vmem:[#allocation3 + $0x79] sm:$0xff] }
 0x963   :  { %v5218_v56 = vpop.permute.xlu0 %5217 }
 0x964   :  { %5359 = vst.msk [vmem:[#allocation2 + $0x198] sm:$0xff] %vm5307_vm3, %v5218_v56  ;;  %v5770_v56 = vld [vmem:[#allocation3 + $0xb1] sm:$0xff] }
 0x965   :  { %5550 = vrot.lane.b32.xlu2 %v13574_v38, %s9483_s13 }
 0x967   :  { %v5228_v25 = vpop.permute.xlu2 %5227  ;;  %5554 = vrot.lane.b32.xlu1 %v13642_v7, %s9483_s13 }
 0x968   :  { %5364 = vst.msk [vmem:[#allocation2 + $0x1c0] sm:$0xff] %vm5307_vm3, %v5228_v25  ;;  %v14123_v25 = vld [vmem:[#allocation3 + $0x81] sm:$0xff] }
 0x969   :  { %5564 = vrot.lane.b32.xlu0 %v13645_v23, %s9483_s13  ;;  %v5214_v46 = vpop.permute.xlu1 %5213 }
 0x96a   :  { %5357 = vst.msk [vmem:[#allocation2 + $0x188] sm:$0xff] %vm5307_vm3, %v5214_v46 }
 0x96b   :  { %v5224_v26 = vpop.permute.xlu0 %5223 }
 0x96c   :  { %5362 = vst.msk [vmem:[#allocation2 + $0x1b0] sm:$0xff] %vm5307_vm3, %v5224_v26 }
 0x96d   :  { %5556 = vrot.lane.b32.xlu2 %v13593_v48, %s9483_s13 }
 0x96f   :  { %v5234_v38 = vpop.permute.xlu2 %5233  ;;  %5560 = vrot.lane.b32.xlu1 %v5402_v50, %s9483_s13  ;;  %v14137_v50 = vld [vmem:[#allocation3 + $0x99] sm:$0xff] }
 0x970   :  { %5367 = vst.msk [vmem:[#allocation2 + $0x1d8] sm:$0xff] %vm5307_vm3, %v5234_v38 }
 0x971   :  { %5570 = vrot.lane.b32.xlu0 %v13653_v53, %s9483_s13  ;;  %v5220_v7 = vpop.permute.xlu1 %5219 }
 0x972   :  { %5360 = vst.msk [vmem:[#allocation2 + $0x1a0] sm:$0xff] %vm5307_vm3, %v5220_v7 }
 0x973   :  { %v5230_v23 = vpop.permute.xlu0 %5229 }
 0x974   :  { %5365 = vst.msk [vmem:[#allocation2 + $0x1c8] sm:$0xff] %vm5307_vm3, %v5230_v23 }
 0x975   :  { %5562 = vrot.lane.b32.xlu2 %v5403_v5, %s9483_s13  ;;  %v14135_v5 = vld [vmem:[#allocation3 + $0xa9] sm:$0xff] }
 0x977   :  { %v5240_v48 = vpop.permute.xlu2 %5239  ;;  %5566 = vrot.lane.b32.xlu1 %v13668_v32, %s9483_s13 }
 0x978   :  { %5370 = vst.msk [vmem:[#allocation2 + $0x1f0] sm:$0xff] %vm5307_vm3, %v5240_v48  ;;  %v5773_v48 = vld [vmem:[#allocation3 + $0xd9] sm:$0xff] }
 0x979   :  { %5576 = vrot.lane.b32.xlu0 %v13671_v62, %s9483_s13  ;;  %v5226_v22 = vpop.permute.xlu1 %5225 }
 0x97a   :  { %5363 = vst.msk [vmem:[#allocation2 + $0x1b8] sm:$0xff] %vm5307_vm3, %v5226_v22  ;;  %v5772_v22 = vld [vmem:[#allocation3 + $0xc9] sm:$0xff] }
 0x97b   :  { %v5236_v39 = vpop.permute.xlu0 %5235 }
 0x97c   :  { %5368 = vst.msk [vmem:[#allocation2 + $0x1e0] sm:$0xff] %vm5307_vm3, %v5236_v39  ;;  %v5771_v39 = vld [vmem:[#allocation3 + $0xc1] sm:$0xff] }
 0x97d   :  { %5568 = vrot.lane.b32.xlu2 %v13619_v29, %s9483_s13 }
 0x97f   :  { %v5503_v53 = vpop.permute.xlu2 %5502  ;;  %5572 = vrot.lane.b32.xlu1 %v13679_v30, %s9483_s13 }
 0x980   :  { %5694 = vst.msk [vmem:[#allocation2 + $0x8] sm:$0xff] %vm5692_vm4, %v5503_v53 }
 0x981   :  { %5582 = vrot.lane.b32.xlu0 %v13692_v55, %s9483_s13  ;;  %v5232_v32 = vpop.permute.xlu1 %5231 }
 0x982   :  { %5366 = vst.msk [vmem:[#allocation2 + $0x1d0] sm:$0xff] %vm5307_vm3, %v5232_v32 }
 0x983   :  { %v5242_v62 = vpop.permute.xlu0 %5241 }
 0x984   :  { %5371 = vst.msk [vmem:[#allocation2 + $0x1f8] sm:$0xff] %vm5307_vm3, %v5242_v62 }
 0x985   :  { %5574 = vrot.lane.b32.xlu2 %v13639_v35, %s9483_s13 }
 0x987   :  { %v5509_v29 = vpop.permute.xlu2 %5508  ;;  %5578 = vrot.lane.b32.xlu1 %v13698_v31, %s9483_s13 }
 0x988   :  { %5697 = vst.msk [vmem:[#allocation2 + $0x20] sm:$0xff] %vm5692_vm4, %v5509_v29  ;;  %v5776_v29 = vld [vmem:[#allocation3 + $0xf9] sm:$0xff] }
 0x989   :  { %5588 = vrot.lane.b32.xlu0 %v13702_v41, %s9483_s13  ;;  %v5238_v30 = vpop.permute.xlu1 %5237 }
 0x98a   :  { %5369 = vst.msk [vmem:[#allocation2 + $0x1e8] sm:$0xff] %vm5307_vm3, %v5238_v30  ;;  %v5775_v30 = vld [vmem:[#allocation3 + $0xf1] sm:$0xff] }
 0x98b   :  { %v5505_v55 = vpop.permute.xlu0 %5504 }
 0x98c   :  { %5695 = vst.msk [vmem:[#allocation2 + $0x10] sm:$0xff] %vm5692_vm4, %v5505_v55  ;;  %v5774_v55 = vld [vmem:[#allocation3 + $0xe1] sm:$0xff] }
 0x98d   :  { %5580 = vrot.lane.b32.xlu2 %v13649_v59, %s9483_s13 }
 0x98f   :  { %v5515_v35 = vpop.permute.xlu2 %5514  ;;  %5584 = vrot.lane.b32.xlu1 %v13717_v37, %s9483_s13 }
 0x990   :  { %5700 = vst.msk [vmem:[#allocation2 + $0x38] sm:$0xff] %vm5692_vm4, %v5515_v35 }
 0x991   :  { %5594 = vrot.lane.b32.xlu0 %v13720_v11, %s9483_s13  ;;  %v5501_v31 = vpop.permute.xlu1 %5500 }
 0x992   :  { %5693 = vst.msk [vmem:[#allocation2] sm:$0xff] %vm5692_vm4, %v5501_v31 }
 0x993   :  { %v5511_v41 = vpop.permute.xlu0 %5510 }
 0x994   :  { %5698 = vst.msk [vmem:[#allocation2 + $0x28] sm:$0xff] %vm5692_vm4, %v5511_v41 }
 0x995   :  { %5586 = vrot.lane.b32.xlu2 %v13665_v10, %s9483_s13 }
 0x997   :  { %v5521_v59 = vpop.permute.xlu2 %5520  ;;  %5590 = vrot.lane.b32.xlu1 %v13728_v47, %s9483_s13 }
 0x998   :  { %5703 = vst.msk [vmem:[#allocation2 + $0x50] sm:$0xff] %vm5692_vm4, %v5521_v59  ;;  %v5779_v59 = vld [vmem:[#allocation3 + $0x121] sm:$0xff] }
 0x999   :  { %5600 = vrot.lane.b32.xlu0 %v13740_v45, %s9483_s13  ;;  %v5507_v37 = vpop.permute.xlu1 %5506 }
 0x99a   :  { %5696 = vst.msk [vmem:[#allocation2 + $0x18] sm:$0xff] %vm5692_vm4, %v5507_v37  ;;  %v5778_v37 = vld [vmem:[#allocation3 + $0x111] sm:$0xff] }
 0x99b   :  { %v5517_v11 = vpop.permute.xlu0 %5516 }
 0x99c   :  { %5701 = vst.msk [vmem:[#allocation2 + $0x40] sm:$0xff] %vm5692_vm4, %v5517_v11  ;;  %v5777_v11 = vld [vmem:[#allocation3 + $0x109] sm:$0xff] }
 0x99d   :  { %5592 = vrot.lane.b32.xlu2 %v13675_v4, %s9483_s13 }
 0x99f   :  { %v5527_v10 = vpop.permute.xlu2 %5526  ;;  %5596 = vrot.lane.b32.xlu1 %v13746_v16, %s9483_s13 }
 0x9a0   :  { %5706 = vst.msk [vmem:[#allocation2 + $0x68] sm:$0xff] %vm5692_vm4, %v5527_v10 }
 0x9a1   :  { %5606 = vrot.lane.b32.xlu0 %v13750_v28, %s9483_s13  ;;  %v5513_v47 = vpop.permute.xlu1 %5512 }
 0x9a2   :  { %5699 = vst.msk [vmem:[#allocation2 + $0x30] sm:$0xff] %vm5692_vm4, %v5513_v47 }
 0x9a3   :  { %v5523_v45 = vpop.permute.xlu0 %5522 }
 0x9a4   :  { %5704 = vst.msk [vmem:[#allocation2 + $0x58] sm:$0xff] %vm5692_vm4, %v5523_v45 }
 0x9a5   :  { %5598 = vrot.lane.b32.xlu2 %v13695_v9, %s9483_s13 }
 0x9a7   :  { %v5533_v4 = vpop.permute.xlu2 %5532  ;;  %5602 = vrot.lane.b32.xlu1 %v13766_v8, %s9483_s13 }
 0x9a8   :  { %5709 = vst.msk [vmem:[#allocation2 + $0x80] sm:$0xff] %vm5692_vm4, %v5533_v4  ;;  %v5782_v4 = vld [vmem:[#allocation3 + $0x141] sm:$0xff] }
 0x9a9   :  { %5612 = vrot.lane.b32.xlu0 %v13769_v61, %s9483_s13  ;;  %v5519_v16 = vpop.permute.xlu1 %5518 }
 0x9aa   :  { %5702 = vst.msk [vmem:[#allocation2 + $0x48] sm:$0xff] %vm5692_vm4, %v5519_v16  ;;  %v5781_v16 = vld [vmem:[#allocation3 + $0x139] sm:$0xff] }
 0x9ab   :  { %v5529_v28 = vpop.permute.xlu0 %5528 }
 0x9ac   :  { %5707 = vst.msk [vmem:[#allocation2 + $0x70] sm:$0xff] %vm5692_vm4, %v5529_v28  ;;  %v5780_v28 = vld [vmem:[#allocation3 + $0x129] sm:$0xff] }
 0x9ad   :  { %5604 = vrot.lane.b32.xlu2 %v13714_v1, %s9483_s13 }
 0x9af   :  { %v5539_v9 = vpop.permute.xlu2 %5538  ;;  %5608 = vrot.lane.b32.xlu1 %v13772_v43, %s9483_s13 }
 0x9b0   :  { %5712 = vst.msk [vmem:[#allocation2 + $0x98] sm:$0xff] %vm5692_vm4, %v5539_v9 }
 0x9b1   :  { %5618 = vrot.lane.b32.xlu0 %v13776_v17, %s9483_s13  ;;  %v5525_v8 = vpop.permute.xlu1 %5524 }
 0x9b2   :  { %5705 = vst.msk [vmem:[#allocation2 + $0x60] sm:$0xff] %vm5692_vm4, %v5525_v8 }
 0x9b3   :  { %v5535_v61 = vpop.permute.xlu0 %5534 }
 0x9b4   :  { %5710 = vst.msk [vmem:[#allocation2 + $0x88] sm:$0xff] %vm5692_vm4, %v5535_v61 }
 0x9b5   :  { %5610 = vrot.lane.b32.xlu2 %v13724_v18, %s9483_s13  ;;  %v16296_v18 = vld [vmem:[#allocation18_spill] sm:$0xff] }
 0x9b7   :  { %v5545_v1 = vpop.permute.xlu2 %5544  ;;  %5614 = vrot.lane.b32.xlu1 %v16296_v18, %s9483_s13 }
 0x9b8   :  { %5715 = vst.msk [vmem:[#allocation2 + $0xb0] sm:$0xff] %vm5692_vm4, %v5545_v1  ;;  %v5785_v1 = vld [vmem:[#allocation3 + $0x169] sm:$0xff] }
 0x9b9   :  { %5624 = vrot.lane.b32.xlu0 %v5434_v27, %s9483_s13  ;;  %v5531_v17 = vpop.permute.xlu1 %5530  ;;  %v5784_v27 = vld [vmem:[#allocation3 + $0x159] sm:$0xff] }
 0x9ba   :  { %5708 = vst.msk [vmem:[#allocation2 + $0x78] sm:$0xff] %vm5692_vm4, %v5531_v17  ;;  %v5788_v17 = vld [vmem:[#allocation3 + $0x189] sm:$0xff] }
 0x9bb   :  { %v5541_v54 = vpop.permute.xlu0 %5540 }
 0x9bc   :  { %5713 = vst.msk [vmem:[#allocation2 + $0xa0] sm:$0xff] %vm5692_vm4, %v5541_v54 }
 0x9bd   :  { %5616 = vrot.lane.b32.xlu2 %v13743_v58, %s9483_s13  ;;  %v16298_v58 = vld [vmem:[#allocation22_spill] sm:$0xff] }
 0x9bf   :  { %v5551_v43 = vpop.permute.xlu2 %5550  ;;  %5620 = vrot.lane.b32.xlu1 %v16298_v58, %s9483_s13 }
 0x9c0   :  { %5718 = vst.msk [vmem:[#allocation2 + $0xc8] sm:$0xff] %vm5692_vm4, %v5551_v43  ;;  %v5783_v43 = vld [vmem:[#allocation3 + $0x151] sm:$0xff] }
 0x9c1   :  { %5887 = vrot.lane.b32.xlu0 %v5758_v13, %s9485_s18  ;;  %v5537_v21 = vpop.permute.xlu1 %5536  ;;  %v5787_v13 = vld [vmem:[#allocation3 + $0x181] sm:$0xff] }
 0x9c2   :  { %5711 = vst.msk [vmem:[#allocation2 + $0x90] sm:$0xff] %vm5692_vm4, %v5537_v21  ;;  %v14179_v21 = vld [vmem:[#allocation3 + $0x1e1] sm:$0xff] }
 0x9c3   :  { %v5547_v6 = vpop.permute.xlu0 %5546 }
 0x9c4   :  { %5716 = vst.msk [vmem:[#allocation2 + $0xb8] sm:$0xff] %vm5692_vm4, %v5547_v6 }
 0x9c5   :  { %5622 = vrot.lane.b32.xlu2 %v16297_v19, %s9483_s13 }
 0x9c7   :  { %v5557_v12 = vpop.permute.xlu2 %5556  ;;  %5626 = vrot.lane.b32.xlu1 %v5435_v2, %s9483_s13 }
 0x9c8   :  { %5721 = vst.msk [vmem:[#allocation2 + $0xe0] sm:$0xff] %vm5692_vm4, %v5557_v12  ;;  %v5786_v12 = vld [vmem:[#allocation3 + $0x171] sm:$0xff] }
 0x9c9   :  { %5893 = vrot.lane.b32.xlu0 %v14086_v52, %s9485_s18  ;;  %v5543_v34 = vpop.permute.xlu1 %5542 }
 0x9ca   :  { %5714 = vst.msk [vmem:[#allocation2 + $0xa8] sm:$0xff] %vm5692_vm4, %v5543_v34  ;;  %v5789_v34 = vld [vmem:[#allocation3 + $0x1c9] sm:$0xff] }
 0x9cb   :  { %v5553_v33 = vpop.permute.xlu0 %5552 }
 0x9cc   :  { %5719 = vst.msk [vmem:[#allocation2 + $0xd0] sm:$0xff] %vm5692_vm4, %v5553_v33  ;;  %v14188_v33 = vld [vmem:[#allocation3 + $0x201] sm:$0xff] }
 0x9cd   :  { %5885 = vrot.lane.b32.xlu2 %v5757_v57, %s9485_s18 }
 0x9cf   :  { %v5563_v20 = vpop.permute.xlu2 %5562  ;;  %5889 = vrot.lane.b32.xlu1 %v14095_v3, %s9485_s18 }
 0x9d0   :  { %5724 = vst.msk [vmem:[#allocation2 + $0xf8] sm:$0xff] %vm5692_vm4, %v5563_v20  ;;  %v5790_v20 = vld [vmem:[#allocation3 + $0x1d1] sm:$0xff] }
 0x9d1   :  { %5899 = vrot.lane.b32.xlu0 %v14101_v15, %s9485_s18  ;;  %v5549_v60 = vpop.permute.xlu1 %5548 }
 0x9d2   :  { %5717 = vst.msk [vmem:[#allocation2 + $0xc0] sm:$0xff] %vm5692_vm4, %v5549_v60 }
 0x9d3   :  { %v5559_v0 = vpop.permute.xlu0 %5558 }
 0x9d4   :  { %5722 = vst.msk [vmem:[#allocation2 + $0xe8] sm:$0xff] %vm5692_vm4, %v5559_v0 }
 0x9d5   :  { %5891 = vrot.lane.b32.xlu2 %v14093_v51, %s9485_s18 }
 0x9d7   :  { %v5569_v36 = vpop.permute.xlu2 %5568  ;;  %5895 = vrot.lane.b32.xlu1 %v14110_v49, %s9485_s18 }
 0x9d8   :  { %5727 = vst.msk [vmem:[#allocation2 + $0x110] sm:$0xff] %vm5692_vm4, %v5569_v36 }
 0x9d9   :  { %5905 = vrot.lane.b32.xlu0 %v14116_v44, %s9485_s18  ;;  %v5555_v63 = vpop.permute.xlu1 %5554 }
 0x9da   :  { %5720 = vst.msk [vmem:[#allocation2 + $0xd8] sm:$0xff] %vm5692_vm4, %v5555_v63  ;;  %v14197_v63 = vld [vmem:[#allocation3 + $0x1e9] sm:$0xff] }
 0x9db   :  { %v5565_v14 = vpop.permute.xlu0 %5564 }
 0x9dc   :  { %5725 = vst.msk [vmem:[#allocation2 + $0x100] sm:$0xff] %vm5692_vm4, %v5565_v14  ;;  %v14203_v14 = vld [vmem:[#allocation3 + $0x229] sm:$0xff] }
 0x9dd   :  { %5897 = vrot.lane.b32.xlu2 %v14108_v24, %s9485_s18 }
 0x9df   :  { %v5575_v42 = vpop.permute.xlu2 %5574  ;;  %5901 = vrot.lane.b32.xlu1 %v14125_v40, %s9485_s18 }
 0x9e0   :  { %5730 = vst.msk [vmem:[#allocation2 + $0x128] sm:$0xff] %vm5692_vm4, %v5575_v42  ;;  %v14195_v42 = vld [vmem:[#allocation3 + $0x1f9] sm:$0xff] }
 0x9e1   :  { %5911 = vrot.lane.b32.xlu0 %v5770_v56, %s9485_s18  ;;  %v5561_v46 = vpop.permute.xlu1 %5560 }
 0x9e2   :  { %5723 = vst.msk [vmem:[#allocation2 + $0xf0] sm:$0xff] %vm5692_vm4, %v5561_v46 }
 0x9e3   :  { %v5571_v26 = vpop.permute.xlu0 %5570 }
 0x9e4   :  { %5728 = vst.msk [vmem:[#allocation2 + $0x118] sm:$0xff] %vm5692_vm4, %v5571_v26  ;;  %v14210_v26 = vld [vmem:[#allocation3 + $0x219] sm:$0xff] }
 0x9e5   :  { %5903 = vrot.lane.b32.xlu2 %v14123_v25, %s9485_s18 }
 0x9e7   :  { %v5581_v38 = vpop.permute.xlu2 %5580  ;;  %5907 = vrot.lane.b32.xlu1 %v14137_v50, %s9485_s18 }
 0x9e8   :  { %5733 = vst.msk [vmem:[#allocation2 + $0x140] sm:$0xff] %vm5692_vm4, %v5581_v38 }
 0x9e9   :  { %5917 = vrot.lane.b32.xlu0 %v5773_v48, %s9485_s18  ;;  %v5567_v23 = vpop.permute.xlu1 %5566  ;;  %v14212_v48 = vld [vmem:[#allocation3 + $0x211] sm:$0xff] }
 0x9ea   :  { %5726 = vst.msk [vmem:[#allocation2 + $0x108] sm:$0xff] %vm5692_vm4, %v5567_v23 }
 0x9eb   :  { %v5577_v53 = vpop.permute.xlu0 %5576 }
 0x9ec   :  { %5731 = vst.msk [vmem:[#allocation2 + $0x130] sm:$0xff] %vm5692_vm4, %v5577_v53 }
 0x9ed   :  { %5909 = vrot.lane.b32.xlu2 %v14135_v5, %s9485_s18 }
 0x9ef   :  { %v5587_v7 = vpop.permute.xlu2 %5586  ;;  %5913 = vrot.lane.b32.xlu1 %v5771_v39, %s9485_s18  ;;  %v5799_v39 = vld [vmem:[#allocation3 + $0x241] sm:$0xff] }
 0x9f0   :  { %5736 = vst.msk [vmem:[#allocation2 + $0x158] sm:$0xff] %vm5692_vm4, %v5587_v7  ;;  %v5800_v7 = vld [vmem:[#allocation3 + $0x249] sm:$0xff] }
 0x9f1   :  { %5923 = vrot.lane.b32.xlu0 %v5776_v29, %s9485_s18  ;;  %v5573_v62 = vpop.permute.xlu1 %5572  ;;  %v5798_v29 = vld [vmem:[#allocation3 + $0x231] sm:$0xff] }
 0x9f2   :  { %5729 = vst.msk [vmem:[#allocation2 + $0x120] sm:$0xff] %vm5692_vm4, %v5573_v62 }
 0x9f3   :  { %v5583_v35 = vpop.permute.xlu0 %5582 }
 0x9f4   :  { %5734 = vst.msk [vmem:[#allocation2 + $0x148] sm:$0xff] %vm5692_vm4, %v5583_v35 }
 0x9f5   :  { %5915 = vrot.lane.b32.xlu2 %v5772_v22, %s9485_s18 }
 0x9f7   :  { %v5593_v32 = vpop.permute.xlu2 %5592  ;;  %5919 = vrot.lane.b32.xlu1 %v5774_v55, %s9485_s18  ;;  %v5802_v55 = vld [vmem:[#allocation3 + $0x261] sm:$0xff] }
 0x9f8   :  { %5739 = vst.msk [vmem:[#allocation2 + $0x170] sm:$0xff] %vm5692_vm4, %v5593_v32  ;;  %v5803_v32 = vld [vmem:[#allocation3 + $0x271] sm:$0xff] }
 0x9f9   :  { %5929 = vrot.lane.b32.xlu0 %v5779_v59, %s9485_s18  ;;  %v5579_v41 = vpop.permute.xlu1 %5578  ;;  %v5801_v59 = vld [vmem:[#allocation3 + $0x259] sm:$0xff] }
 0x9fa   :  { %5732 = vst.msk [vmem:[#allocation2 + $0x138] sm:$0xff] %vm5692_vm4, %v5579_v41 }
 0x9fb   :  { %v5589_v10 = vpop.permute.xlu0 %5588 }
 0x9fc   :  { %5737 = vst.msk [vmem:[#allocation2 + $0x160] sm:$0xff] %vm5692_vm4, %v5589_v10 }
 0x9fd   :  { %5921 = vrot.lane.b32.xlu2 %v5775_v30, %s9485_s18 }
 0x9ff   :  { %v5599_v31 = vpop.permute.xlu2 %5598  ;;  %5925 = vrot.lane.b32.xlu1 %v5777_v11, %s9485_s18  ;;  %v5805_v11 = vld [vmem:[#allocation3 + $0x289] sm:$0xff] }
 0xa00   :  { %5742 = vst.msk [vmem:[#allocation2 + $0x188] sm:$0xff] %vm5692_vm4, %v5599_v31  ;;  %v5806_v31 = vld [vmem:[#allocation3 + $0x291] sm:$0xff] }
 0xa01   :  { %5935 = vrot.lane.b32.xlu0 %v5782_v4, %s9485_s18  ;;  %v5585_v45 = vpop.permute.xlu1 %5584  ;;  %v5804_v4 = vld [vmem:[#allocation3 + $0x279] sm:$0xff] }
 0xa02   :  { %5735 = vst.msk [vmem:[#allocation2 + $0x150] sm:$0xff] %vm5692_vm4, %v5585_v45 }
 0xa03   :  { %v5595_v9 = vpop.permute.xlu0 %5594 }
 0xa04   :  { %5740 = vst.msk [vmem:[#allocation2 + $0x178] sm:$0xff] %vm5692_vm4, %v5595_v9 }
 0xa05   :  { %5927 = vrot.lane.b32.xlu2 %v5778_v37, %s9485_s18 }
 0xa07   :  { %v5605_v47 = vpop.permute.xlu2 %5604  ;;  %5931 = vrot.lane.b32.xlu1 %v5780_v28, %s9485_s18  ;;  %v5808_v28 = vld [vmem:[#allocation3 + $0x2a9] sm:$0xff] }
 0xa08   :  { %5745 = vst.msk [vmem:[#allocation2 + $0x1a0] sm:$0xff] %vm5692_vm4, %v5605_v47  ;;  %v5809_v47 = vld [vmem:[#allocation3 + $0x2b9] sm:$0xff] }
 0xa09   :  { %5941 = vrot.lane.b32.xlu0 %v5785_v1, %s9485_s18  ;;  %v5591_v61 = vpop.permute.xlu1 %5590  ;;  %v5807_v1 = vld [vmem:[#allocation3 + $0x2a1] sm:$0xff] }
 0xa0a   :  { %5738 = vst.msk [vmem:[#allocation2 + $0x168] sm:$0xff] %vm5692_vm4, %v5591_v61 }
 0xa0b   :  { %v5601_v18 = vpop.permute.xlu0 %5600 }
 0xa0c   :  { %5743 = vst.msk [vmem:[#allocation2 + $0x190] sm:$0xff] %vm5692_vm4, %v5601_v18 }
 0xa0d   :  { %5933 = vrot.lane.b32.xlu2 %v5781_v16, %s9485_s18 }
 0xa0f   :  { %v5611_v8 = vpop.permute.xlu2 %5610  ;;  %5937 = vrot.lane.b32.xlu1 %v5783_v43, %s9485_s18  ;;  %v5811_v43 = vld [vmem:[#allocation3 + $0x2d1] sm:$0xff] }
 0xa10   :  { %5748 = vst.msk [vmem:[#allocation2 + $0x1b8] sm:$0xff] %vm5692_vm4, %v5611_v8  ;;  %v5812_v8 = vld [vmem:[#allocation3 + $0x2d9] sm:$0xff] }
 0xa11   :  { %5947 = vrot.lane.b32.xlu0 %v5788_v17, %s9485_s18  ;;  %v5597_v19 = vpop.permute.xlu1 %5596  ;;  %v5810_v17 = vld [vmem:[#allocation3 + $0x2c1] sm:$0xff] }
 0xa12   :  { %5741 = vst.msk [vmem:[#allocation2 + $0x180] sm:$0xff] %vm5692_vm4, %v5597_v19 }
 0xa13   :  { %v5607_v58 = vpop.permute.xlu0 %5606 }
 0xa14   :  { %5746 = vst.msk [vmem:[#allocation2 + $0x1a8] sm:$0xff] %vm5692_vm4, %v5607_v58 }
 0xa15   :  { %5939 = vrot.lane.b32.xlu2 %v5784_v27, %s9485_s18 }
 0xa17   :  { %v5617_v54 = vpop.permute.xlu2 %5616  ;;  %5943 = vrot.lane.b32.xlu1 %v5786_v12, %s9485_s18  ;;  %v5814_v12 = vld [vmem:[#allocation3 + $0x2f1] sm:$0xff] }
 0xa18   :  { %5751 = vst.msk [vmem:[#allocation2 + $0x1d0] sm:$0xff] %vm5692_vm4, %v5617_v54  ;;  %v5815_v54 = vld [vmem:[#allocation3 + $0x301] sm:$0xff] }
 0xa19   :  { %5953 = vrot.lane.b32.xlu0 %v14179_v21, %s9485_s18  ;;  %v5603_v57 = vpop.permute.xlu1 %5602 }
 0xa1a   :  { %5744 = vst.msk [vmem:[#allocation2 + $0x198] sm:$0xff] %vm5692_vm4, %v5603_v57  ;;  %v5818_v57 = vld [vmem:[#allocation3 + $0x321] sm:$0xff] }
 0xa1b   :  { %v5613_v2 = vpop.permute.xlu0 %5612 }
 0xa1c   :  { %5749 = vst.msk [vmem:[#allocation2 + $0x1c0] sm:$0xff] %vm5692_vm4, %v5613_v2 }
 0xa1d   :  { %5945 = vrot.lane.b32.xlu2 %v5787_v13, %s9485_s18 }
 0xa1f   :  { %v5623_v6 = vpop.permute.xlu2 %5622  ;;  %5949 = vrot.lane.b32.xlu1 %v5789_v34, %s9485_s18 }
 0xa20   :  { %5754 = vst.msk [vmem:[#allocation2 + $0x1e8] sm:$0xff] %vm5692_vm4, %v5623_v6  ;;  %v5813_v6 = vld [vmem:[#allocation3 + $0x2e9] sm:$0xff] }
 0xa21   :  { %5959 = vrot.lane.b32.xlu0 %v14188_v33, %s9485_s18  ;;  %v5609_v60 = vpop.permute.xlu1 %5608 }
 0xa22   :  { %5747 = vst.msk [vmem:[#allocation2 + $0x1b0] sm:$0xff] %vm5692_vm4, %v5609_v60  ;;  %v5816_v60 = vld [vmem:[#allocation3 + $0x309] sm:$0xff] }
 0xa23   :  { %v5619_v0 = vpop.permute.xlu0 %5618 }
 0xa24   :  { %5752 = vst.msk [vmem:[#allocation2 + $0x1d8] sm:$0xff] %vm5692_vm4, %v5619_v0  ;;  %v6142_v0 = vld [vmem:[#allocation3 + $0x1a] sm:$0xff] }
 0xa25   :  { %5951 = vrot.lane.b32.xlu2 %v5790_v20, %s9485_s18 }
 0xa27   :  { %v5886_v36 = vpop.permute.xlu2 %5885  ;;  %5955 = vrot.lane.b32.xlu1 %v14197_v63, %s9485_s18 }
 0xa28   :  { %6078 = vst.msk [vmem:[#allocation2] sm:$0xff] %vm6077_vm5, %v5886_v36  ;;  %v5817_v36 = vld [vmem:[#allocation3 + $0x319] sm:$0xff] }
 0xa29   :  { %5965 = vrot.lane.b32.xlu0 %v14203_v14, %s9485_s18  ;;  %v5615_v38 = vpop.permute.xlu1 %5614 }
 0xa2a   :  { %5750 = vst.msk [vmem:[#allocation2 + $0x1c8] sm:$0xff] %vm5692_vm4, %v5615_v38 }
 0xa2b   :  { %v5625_v46 = vpop.permute.xlu0 %5624 }
 0xa2c   :  { %5755 = vst.msk [vmem:[#allocation2 + $0x1f0] sm:$0xff] %vm5692_vm4, %v5625_v46 }
 0xa2d   :  { %5957 = vrot.lane.b32.xlu2 %v14195_v42, %s9485_s18 }
 0xa2f   :  { %v5892_v56 = vpop.permute.xlu2 %5891  ;;  %5961 = vrot.lane.b32.xlu1 %v14212_v48, %s9485_s18 }
 0xa30   :  { %6081 = vst.msk [vmem:[#allocation2 + $0x18] sm:$0xff] %vm6077_vm5, %v5892_v56 }
 0xa31   :  { %5971 = vrot.lane.b32.xlu0 %v5800_v7, %s9485_s18  ;;  %v5621_v53 = vpop.permute.xlu1 %5620  ;;  %v5820_v7 = vld [vmem:[#allocation3 + $0x339] sm:$0xff] }
 0xa32   :  { %5753 = vst.msk [vmem:[#allocation2 + $0x1e0] sm:$0xff] %vm5692_vm4, %v5621_v53  ;;  %v14266_v53 = vld [vmem:[#allocation3 + $0x3a] sm:$0xff] }
 0xa33   :  { %v5888_v22 = vpop.permute.xlu0 %5887 }
 0xa34   :  { %6079 = vst.msk [vmem:[#allocation2 + $0x8] sm:$0xff] %vm6077_vm5, %v5888_v22 }
 0xa35   :  { %5963 = vrot.lane.b32.xlu2 %v14210_v26, %s9485_s18 }
 0xa37   :  { %v5898_v23 = vpop.permute.xlu2 %5897  ;;  %5967 = vrot.lane.b32.xlu1 %v5798_v29, %s9485_s18 }
 0xa38   :  { %6084 = vst.msk [vmem:[#allocation2 + $0x30] sm:$0xff] %vm6077_vm5, %v5898_v23  ;;  %v5819_v23 = vld [vmem:[#allocation3 + $0x331] sm:$0xff] }
 0xa39   :  { %5977 = vrot.lane.b32.xlu0 %v5803_v32, %s9485_s18  ;;  %v5627_v35 = vpop.permute.xlu1 %5626  ;;  %v14273_v32 = vld [vmem:[#allocation3 + $0x32] sm:$0xff] }
 0xa3a   :  { %5756 = vst.msk [vmem:[#allocation2 + $0x1f8] sm:$0xff] %vm5692_vm4, %v5627_v35  ;;  %v14278_v35 = vld [vmem:[#allocation3 + $0x62] sm:$0xff] }
 0xa3b   :  { %v5894_v30 = vpop.permute.xlu0 %5893 }
 0xa3c   :  { %6082 = vst.msk [vmem:[#allocation2 + $0x20] sm:$0xff] %vm6077_vm5, %v5894_v30 }
 0xa3d   :  { %5969 = vrot.lane.b32.xlu2 %v5799_v39, %s9485_s18 }
 0xa3f   :  { %v5904_v62 = vpop.permute.xlu2 %5903  ;;  %5973 = vrot.lane.b32.xlu1 %v5801_v59, %s9485_s18 }
 0xa40   :  { %6087 = vst.msk [vmem:[#allocation2 + $0x48] sm:$0xff] %vm6077_vm5, %v5904_v62  ;;  %v6143_v62 = vld [vmem:[#allocation3 + $0x22] sm:$0xff] }
 0xa41   :  { %5983 = vrot.lane.b32.xlu0 %v5806_v31, %s9485_s18  ;;  %v5890_v10 = vpop.permute.xlu1 %5889  ;;  %v14285_v31 = vld [vmem:[#allocation3 + $0x52] sm:$0xff] }
 0xa42   :  { %6080 = vst.msk [vmem:[#allocation2 + $0x10] sm:$0xff] %vm6077_vm5, %v5890_v10  ;;  %v14293_v10 = vld [vmem:[#allocation3 + $0x82] sm:$0xff] }
 0xa43   :  { %v5900_v37 = vpop.permute.xlu0 %5899 }
 0xa44   :  { %6085 = vst.msk [vmem:[#allocation2 + $0x38] sm:$0xff] %vm6077_vm5, %v5900_v37 }
 0xa45   :  { %5975 = vrot.lane.b32.xlu2 %v5802_v55, %s9485_s18 }
 0xa47   :  { %v5910_v41 = vpop.permute.xlu2 %5909  ;;  %5979 = vrot.lane.b32.xlu1 %v5804_v4, %s9485_s18 }
 0xa48   :  { %6090 = vst.msk [vmem:[#allocation2 + $0x60] sm:$0xff] %vm6077_vm5, %v5910_v41  ;;  %v14287_v41 = vld [vmem:[#allocation3 + $0x4a] sm:$0xff] }
 0xa49   :  { %5989 = vrot.lane.b32.xlu0 %v5809_v47, %s9485_s18  ;;  %v5896_v9 = vpop.permute.xlu1 %5895  ;;  %v14300_v47 = vld [vmem:[#allocation3 + $0x7a] sm:$0xff] }
 0xa4a   :  { %6083 = vst.msk [vmem:[#allocation2 + $0x28] sm:$0xff] %vm6077_vm5, %v5896_v9  ;;  %v14308_v9 = vld [vmem:[#allocation3 + $0xaa] sm:$0xff] }
 0xa4b   :  { %v5906_v16 = vpop.permute.xlu0 %5905 }
 0xa4c   :  { %6088 = vst.msk [vmem:[#allocation2 + $0x50] sm:$0xff] %vm6077_vm5, %v5906_v16 }
 0xa4d   :  { %5981 = vrot.lane.b32.xlu2 %v5805_v11, %s9485_s18 }
 0xa4f   :  { %v5916_v45 = vpop.permute.xlu2 %5915  ;;  %5985 = vrot.lane.b32.xlu1 %v5807_v1, %s9485_s18 }
 0xa50   :  { %6093 = vst.msk [vmem:[#allocation2 + $0x78] sm:$0xff] %vm6077_vm5, %v5916_v45  ;;  %v14302_v45 = vld [vmem:[#allocation3 + $0x6a] sm:$0xff] }
 0xa51   :  { %5995 = vrot.lane.b32.xlu0 %v5812_v8, %s9485_s18  ;;  %v5902_v18 = vpop.permute.xlu1 %5901  ;;  %v14315_v8 = vld [vmem:[#allocation3 + $0x9a] sm:$0xff] }
 0xa52   :  { %6086 = vst.msk [vmem:[#allocation2 + $0x40] sm:$0xff] %vm6077_vm5, %v5902_v18  ;;  %v14323_v18 = vld [vmem:[#allocation3 + $0xca] sm:$0xff] }
 0xa53   :  { %v5912_v27 = vpop.permute.xlu0 %5911 }
 0xa54   :  { %6091 = vst.msk [vmem:[#allocation2 + $0x68] sm:$0xff] %vm6077_vm5, %v5912_v27 }
 0xa55   :  { %5987 = vrot.lane.b32.xlu2 %v5808_v28, %s9485_s18 }
 0xa57   :  { %v5922_v61 = vpop.permute.xlu2 %5921  ;;  %5991 = vrot.lane.b32.xlu1 %v5810_v17, %s9485_s18 }
 0xa58   :  { %6096 = vst.msk [vmem:[#allocation2 + $0x90] sm:$0xff] %vm6077_vm5, %v5922_v61  ;;  %v14317_v61 = vld [vmem:[#allocation3 + $0x92] sm:$0xff] }
 0xa59   :  { %6001 = vrot.lane.b32.xlu0 %v5815_v54, %s9485_s18  ;;  %v5908_v58 = vpop.permute.xlu1 %5907  ;;  %v14330_v54 = vld [vmem:[#allocation3 + $0xc2] sm:$0xff] }
 0xa5a   :  { %6089 = vst.msk [vmem:[#allocation2 + $0x58] sm:$0xff] %vm6077_vm5, %v5908_v58  ;;  %v14338_v58 = vld [vmem:[#allocation3 + $0xf2] sm:$0xff] }
 0xa5b   :  { %v5918_v13 = vpop.permute.xlu0 %5917 }
 0xa5c   :  { %6094 = vst.msk [vmem:[#allocation2 + $0x80] sm:$0xff] %vm6077_vm5, %v5918_v13 }
 0xa5d   :  { %5993 = vrot.lane.b32.xlu2 %v5811_v43, %s9485_s18 }
 0xa5f   :  { %v5928_v19 = vpop.permute.xlu2 %5927  ;;  %5997 = vrot.lane.b32.xlu1 %v5813_v6, %s9485_s18 }
 0xa60   :  { %6099 = vst.msk [vmem:[#allocation2 + $0xa8] sm:$0xff] %vm6077_vm5, %v5928_v19  ;;  %v14332_v19 = vld [vmem:[#allocation3 + $0xb2] sm:$0xff] }
 0xa61   :  { %6007 = vrot.lane.b32.xlu0 %v5818_v57, %s9485_s18  ;;  %v5914_v20 = vpop.permute.xlu1 %5913  ;;  %v14345_v57 = vld [vmem:[#allocation3 + $0xe2] sm:$0xff] }
 0xa62   :  { %6092 = vst.msk [vmem:[#allocation2 + $0x70] sm:$0xff] %vm6077_vm5, %v5914_v20  ;;  %v6163_v20 = vld [vmem:[#allocation3 + $0x112] sm:$0xff] }
 0xa63   :  { %v5924_v34 = vpop.permute.xlu0 %5923 }
 0xa64   :  { %6097 = vst.msk [vmem:[#allocation2 + $0x98] sm:$0xff] %vm6077_vm5, %v5924_v34 }
 0xa65   :  { %5999 = vrot.lane.b32.xlu2 %v5814_v12, %s9485_s18 }
 0xa67   :  { %v5934_v2 = vpop.permute.xlu2 %5933  ;;  %6003 = vrot.lane.b32.xlu1 %v5816_v60, %s9485_s18 }
 0xa68   :  { %6102 = vst.msk [vmem:[#allocation2 + $0xc0] sm:$0xff] %vm6077_vm5, %v5934_v2  ;;  %v14347_v2 = vld [vmem:[#allocation3 + $0xda] sm:$0xff] }
 0xa69   :  { %6270 = vrot.lane.b32.xlu0 %v6142_v0, %s9488_s2  ;;  %v5920_v38 = vpop.permute.xlu1 %5919  ;;  %v14357_v0 = vld [vmem:[#allocation3 + $0x10a] sm:$0xff] }
 0xa6a   :  { %6095 = vst.msk [vmem:[#allocation2 + $0x88] sm:$0xff] %vm6077_vm5, %v5920_v38  ;;  %v6166_v38 = vld [vmem:[#allocation3 + $0x13a] sm:$0xff] }
 0xa6b   :  { %v5930_v46 = vpop.permute.xlu0 %5929 }
 0xa6c   :  { %6100 = vst.msk [vmem:[#allocation2 + $0xb0] sm:$0xff] %vm6077_vm5, %v5930_v46 }
 0xa6d   :  { %6005 = vrot.lane.b32.xlu2 %v5817_v36, %s9485_s18 }
 0xa6f   :  { %v5940_v56 = vpop.permute.xlu2 %5939  ;;  %6009 = vrot.lane.b32.xlu1 %v5819_v23, %s9485_s18 }
 0xa70   :  { %6105 = vst.msk [vmem:[#allocation2 + $0xd8] sm:$0xff] %vm6077_vm5, %v5940_v56  ;;  %v14359_v56 = vld [vmem:[#allocation3 + $0xfa] sm:$0xff] }
 0xa71   :  { %6276 = vrot.lane.b32.xlu0 %v14266_v53, %s9488_s2  ;;  %v5926_v39 = vpop.permute.xlu1 %5925 }
 0xa72   :  { %6098 = vst.msk [vmem:[#allocation2 + $0xa0] sm:$0xff] %vm6077_vm5, %v5926_v39  ;;  %v6164_v39 = vld [vmem:[#allocation3 + $0x122] sm:$0xff] }
 0xa73   :  { %v5936_v29 = vpop.permute.xlu0 %5935 }
 0xa74   :  { %6103 = vst.msk [vmem:[#allocation2 + $0xc8] sm:$0xff] %vm6077_vm5, %v5936_v29 }
 0xa75   :  { %6011 = vrot.lane.b32.xlu2 %v5820_v7, %s9485_s18 }
 0xa77   :  { %v5946_v22 = vpop.permute.xlu2 %5945  ;;  %6272 = vrot.lane.b32.xlu1 %v6143_v62, %s9488_s2 }
 0xa78   :  { %6108 = vst.msk [vmem:[#allocation2 + $0xf0] sm:$0xff] %vm6077_vm5, %v5946_v22  ;;  %v6165_v22 = vld [vmem:[#allocation3 + $0x12a] sm:$0xff] }
 0xa79   :  { %6282 = vrot.lane.b32.xlu0 %v14278_v35, %s9488_s2  ;;  %v5932_v55 = vpop.permute.xlu1 %5931 }
 0xa7a   :  { %6101 = vst.msk [vmem:[#allocation2 + $0xb8] sm:$0xff] %vm6077_vm5, %v5932_v55  ;;  %v6528_v55 = vld [vmem:[#allocation3 + $0x30] sm:$0xff] }
 0xa7b   :  { %v5942_v59 = vpop.permute.xlu0 %5941 }
 0xa7c   :  { %6106 = vst.msk [vmem:[#allocation2 + $0xe0] sm:$0xff] %vm6077_vm5, %v5942_v59 }
 0xa7d   :  { %6274 = vrot.lane.b32.xlu2 %v14273_v32, %s9488_s2 }
 0xa7f   :  { %v5952_v30 = vpop.permute.xlu2 %5951  ;;  %6278 = vrot.lane.b32.xlu1 %v14287_v41, %s9488_s2 }
 0xa80   :  { %6111 = vst.msk [vmem:[#allocation2 + $0x108] sm:$0xff] %vm6077_vm5, %v5952_v30 }
 0xa81   :  { %6288 = vrot.lane.b32.xlu0 %v14293_v10, %s9488_s2  ;;  %v5938_v11 = vpop.permute.xlu1 %5937 }
 0xa82   :  { %6104 = vst.msk [vmem:[#allocation2 + $0xd0] sm:$0xff] %vm6077_vm5, %v5938_v11  ;;  %v6529_v11 = vld [vmem:[#allocation3 + $0x38] sm:$0xff] }
 0xa83   :  { %v5948_v4 = vpop.permute.xlu0 %5947 }
 0xa84   :  { %6109 = vst.msk [vmem:[#allocation2 + $0xf8] sm:$0xff] %vm6077_vm5, %v5948_v4 }
 0xa85   :  { %6280 = vrot.lane.b32.xlu2 %v14285_v31, %s9488_s2 }
 0xa87   :  { %v5958_v37 = vpop.permute.xlu2 %5957  ;;  %6284 = vrot.lane.b32.xlu1 %v14302_v45, %s9488_s2 }
 0xa88   :  { %6114 = vst.msk [vmem:[#allocation2 + $0x120] sm:$0xff] %vm6077_vm5, %v5958_v37 }
 0xa89   :  { %6294 = vrot.lane.b32.xlu0 %v14308_v9, %s9488_s2  ;;  %v5944_v28 = vpop.permute.xlu1 %5943 }
 0xa8a   :  { %6107 = vst.msk [vmem:[#allocation2 + $0xe8] sm:$0xff] %vm6077_vm5, %v5944_v28 }
 0xa8b   :  { %v5954_v1 = vpop.permute.xlu0 %5953 }
 0xa8c   :  { %6112 = vst.msk [vmem:[#allocation2 + $0x110] sm:$0xff] %vm6077_vm5, %v5954_v1  ;;  %v6531_v1 = vld [vmem:[#allocation3 + $0x50] sm:$0xff] }
 0xa8d   :  { %6286 = vrot.lane.b32.xlu2 %v14300_v47, %s9488_s2 }
 0xa8f   :  { %v5964_v16 = vpop.permute.xlu2 %5963  ;;  %6290 = vrot.lane.b32.xlu1 %v14317_v61, %s9488_s2 }
 0xa90   :  { %6117 = vst.msk [vmem:[#allocation2 + $0x138] sm:$0xff] %vm6077_vm5, %v5964_v16  ;;  %v6530_v16 = vld [vmem:[#allocation3 + $0x48] sm:$0xff] }
 0xa91   :  { %6300 = vrot.lane.b32.xlu0 %v14323_v18, %s9488_s2  ;;  %v5950_v43 = vpop.permute.xlu1 %5949 }
 0xa92   :  { %6110 = vst.msk [vmem:[#allocation2 + $0x100] sm:$0xff] %vm6077_vm5, %v5950_v43  ;;  %v6532_v43 = vld [vmem:[#allocation3 + $0x60] sm:$0xff] }
 0xa93   :  { %v5960_v17 = vpop.permute.xlu0 %5959 }
 0xa94   :  { %6115 = vst.msk [vmem:[#allocation2 + $0x128] sm:$0xff] %vm6077_vm5, %v5960_v17 }
 0xa95   :  { %6292 = vrot.lane.b32.xlu2 %v14315_v8, %s9488_s2 }
 0xa97   :  { %v5970_v27 = vpop.permute.xlu2 %5969  ;;  %6296 = vrot.lane.b32.xlu1 %v14332_v19, %s9488_s2 }
 0xa98   :  { %6120 = vst.msk [vmem:[#allocation2 + $0x150] sm:$0xff] %vm6077_vm5, %v5970_v27 }
 0xa99   :  { %6306 = vrot.lane.b32.xlu0 %v14338_v58, %s9488_s2  ;;  %v5956_v12 = vpop.permute.xlu1 %5955 }
 0xa9a   :  { %6113 = vst.msk [vmem:[#allocation2 + $0x118] sm:$0xff] %vm6077_vm5, %v5956_v12 }
 0xa9b   :  { %v5966_v6 = vpop.permute.xlu0 %5965 }
 0xa9c   :  { %6118 = vst.msk [vmem:[#allocation2 + $0x140] sm:$0xff] %vm6077_vm5, %v5966_v6  ;;  %v6534_v6 = vld [vmem:[#allocation3 + $0x78] sm:$0xff] }
 0xa9d   :  { %6298 = vrot.lane.b32.xlu2 %v14330_v54, %s9488_s2 }
 0xa9f   :  { %v5976_v13 = vpop.permute.xlu2 %5975  ;;  %6302 = vrot.lane.b32.xlu1 %v14347_v2, %s9488_s2 }
 0xaa0   :  { %6123 = vst.msk [vmem:[#allocation2 + $0x168] sm:$0xff] %vm6077_vm5, %v5976_v13  ;;  %v6533_v13 = vld [vmem:[#allocation3 + $0x68] sm:$0xff] }
 0xaa1   :  { %6312 = vrot.lane.b32.xlu0 %v6163_v20, %s9488_s2  ;;  %v5962_v36 = vpop.permute.xlu1 %5961 }
 0xaa2   :  { %6116 = vst.msk [vmem:[#allocation2 + $0x130] sm:$0xff] %vm6077_vm5, %v5962_v36  ;;  %v6535_v36 = vld [vmem:[#allocation3 + $0x80] sm:$0xff] }
 0xaa3   :  { %v5972_v60 = vpop.permute.xlu0 %5971 }
 0xaa4   :  { %6121 = vst.msk [vmem:[#allocation2 + $0x158] sm:$0xff] %vm6077_vm5, %v5972_v60 }
 0xaa5   :  { %6304 = vrot.lane.b32.xlu2 %v14345_v57, %s9488_s2 }
 0xaa7   :  { %v5982_v34 = vpop.permute.xlu2 %5981  ;;  %6308 = vrot.lane.b32.xlu1 %v14359_v56, %s9488_s2 }
 0xaa8   :  { %6126 = vst.msk [vmem:[#allocation2 + $0x180] sm:$0xff] %vm6077_vm5, %v5982_v34  ;;  %v6174_v34 = vld [vmem:[#allocation3 + $0x1ca] sm:$0xff] }
 0xaa9   :  { %6318 = vrot.lane.b32.xlu0 %v6166_v38, %s9488_s2  ;;  %v5968_v7 = vpop.permute.xlu1 %5967  ;;  %v6560_v38 = vld [vmem:[#allocation3 + $0x1e0] sm:$0xff] }
 0xaaa   :  { %6119 = vst.msk [vmem:[#allocation2 + $0x148] sm:$0xff] %vm6077_vm5, %v5968_v7 }
 0xaab   :  { %v5978_v23 = vpop.permute.xlu0 %5977 }
 0xaac   :  { %6124 = vst.msk [vmem:[#allocation2 + $0x170] sm:$0xff] %vm6077_vm5, %v5978_v23 }
 0xaad   :  { %6310 = vrot.lane.b32.xlu2 %v14357_v0, %s9488_s2 }
 0xaaf   :  { %v5988_v46 = vpop.permute.xlu2 %5987  ;;  %6314 = vrot.lane.b32.xlu1 %v6164_v39, %s9488_s2  ;;  %v7330_v39 = vld [vmem:[#allocation3 + $0x1e2] sm:$0xff] }
 0xab0   :  { %6129 = vst.msk [vmem:[#allocation2 + $0x198] sm:$0xff] %vm6077_vm5, %v5988_v46  ;;  %v6175_v46 = vld [vmem:[#allocation3 + $0x1d2] sm:$0xff] }
 0xab1   :  { %7426 = vrot.lane.b32.xlu0 %v14273_v32, %s9489_s3  ;;  %v5974_v62 = vpop.permute.xlu1 %5973 }
 0xab2   :  { %6122 = vst.msk [vmem:[#allocation2 + $0x160] sm:$0xff] %vm6077_vm5, %v5974_v62 }
 0xab3   :  { %v5984_v30 = vpop.permute.xlu0 %5983 }
 0xab4   :  { %6127 = vst.msk [vmem:[#allocation2 + $0x188] sm:$0xff] %vm6077_vm5, %v5984_v30  ;;  %v7755_v30 = vld [vmem:[%s16082_s4 + $0x40] sm:$0xff] }
 0xab5   :  { %6316 = vrot.lane.b32.xlu2 %v6165_v22, %s9488_s2  ;;  %v6536_v22 = vld [vmem:[#allocation3 + $0x90] sm:$0xff]  ;;  %7956 = vmatpush.msra.mxu1 %v7755_v30 }
 0xab6   :  { %9449 = vmatpush.msra.mxu2 %v7755_v30  ;;  %v6925_v30 = vld [vmem:[#allocation3 + $0xc1] sm:$0xff] }
 0xab7   :  { %v5994_v29 = vpop.permute.xlu2 %5993  ;;  %6656 = vrot.lane.b32.xlu1 %v6528_v55, %s9491_s27  ;;  %v7754_v55 = vld [vmem:[%s16082_s4 + $0x38] sm:$0xff] }
 0xab8   :  { %6132 = vst.msk [vmem:[#allocation2 + $0x1b0] sm:$0xff] %vm6077_vm5, %v5994_v29  ;;  %7957 = vmatpush.msra.mxu1 %v7754_v55  ;;  %9450 = vmatpush.msra.mxu2 %v7754_v55 }
 0xab9   :  { %7428 = vrot.lane.b32.xlu0 %v14266_v53, %s9489_s3  ;;  %v5980_v59 = vpop.permute.xlu1 %5979 }
 0xaba   :  { %6125 = vst.msk [vmem:[#allocation2 + $0x178] sm:$0xff] %vm6077_vm5, %v5980_v59  ;;  %v6537_v59 = vld [vmem:[#allocation3 + $0x98] sm:$0xff] }
 0xabb   :  { %v5990_v37 = vpop.permute.xlu0 %5989 }
 0xabc   :  { %6130 = vst.msk [vmem:[#allocation2 + $0x1a0] sm:$0xff] %vm6077_vm5, %v5990_v37  ;;  %v7752_v37 = vld [vmem:[%s16082_s4 + $0x28] sm:$0xff] }
 0xabd   :  { %7041 = vrot.lane.b32.xlu2 %v14095_v3, %s9490_s20 }
 0xabf   :  { %v6000_v32 = vpop.permute.xlu2 %5999  ;;  %6658 = vrot.lane.b32.xlu1 %v6529_v11, %s9491_s27 }
 0xac0   :  { %6135 = vst.msk [vmem:[#allocation2 + $0x1c8] sm:$0xff] %vm6077_vm5, %v6000_v32  ;;  %v6561_v32 = vld [vmem:[#allocation3 + $0x1e8] sm:$0xff] }
 0xac1   :  { %7430 = vrot.lane.b32.xlu0 %v14287_v41, %s9489_s3  ;;  %v5986_v53 = vpop.permute.xlu1 %5985 }
 0xac2   :  { %6128 = vst.msk [vmem:[#allocation2 + $0x190] sm:$0xff] %vm6077_vm5, %v5986_v53 }
 0xac3   :  { %v5996_v4 = vpop.permute.xlu0 %5995 }
 0xac4   :  { %6133 = vst.msk [vmem:[#allocation2 + $0x1b8] sm:$0xff] %vm6077_vm5, %v5996_v4  ;;  %v7750_v4 = vld [vmem:[%s16082_s4 + $0x18] sm:$0xff] }
 0xac5   :  { %7043 = vrot.lane.b32.xlu2 %v14093_v51, %s9490_s20 }
 0xac7   :  { %v6006_v3 = vpop.permute.xlu2 %6005  ;;  %6660 = vrot.lane.b32.xlu1 %v6530_v16, %s9491_s27  ;;  %v7331_v16 = vld [vmem:[#allocation3 + $0x1ea] sm:$0xff] }
 0xac8   :  { %6138 = vst.msk [vmem:[#allocation2 + $0x1e0] sm:$0xff] %vm6077_vm5, %v6006_v3 }
 0xac9   :  { %7432 = vrot.lane.b32.xlu0 %v14285_v31, %s9489_s3  ;;  %v5992_v41 = vpop.permute.xlu1 %5991 }
 0xaca   :  { %6131 = vst.msk [vmem:[#allocation2 + $0x1a8] sm:$0xff] %vm6077_vm5, %v5992_v41  ;;  %v7749_v41 = vld [vmem:[%s16082_s4 + $0x10] sm:$0xff] }
 0xacb   :  { %v6002_v28 = vpop.permute.xlu0 %6001 }
 0xacc   :  { %6136 = vst.msk [vmem:[#allocation2 + $0x1d0] sm:$0xff] %vm6077_vm5, %v6002_v28 }
 0xacd   :  { %7045 = vrot.lane.b32.xlu2 %v14086_v52, %s9490_s20 }
 0xacf   :  { %v6012_v51 = vpop.permute.xlu2 %6011  ;;  %6662 = vrot.lane.b32.xlu1 %v6531_v1, %s9491_s27 }
 0xad0   :  { %6141 = vst.msk [vmem:[#allocation2 + $0x1f8] sm:$0xff] %vm6077_vm5, %v6012_v51  ;;  %v6562_v51 = vld [vmem:[#allocation3 + $0x1f8] sm:$0xff] }
 0xad1   :  { %7434 = vrot.lane.b32.xlu0 %v14278_v35, %s9489_s3  ;;  %v5998_v31 = vpop.permute.xlu1 %5997 }
 0xad2   :  { %6134 = vst.msk [vmem:[#allocation2 + $0x1c0] sm:$0xff] %vm6077_vm5, %v5998_v31 }
 0xad3   :  { %v6008_v27 = vpop.permute.xlu0 %6007 }
 0xad4   :  { %6139 = vst.msk [vmem:[#allocation2 + $0x1e8] sm:$0xff] %vm6077_vm5, %v6008_v27  ;;  %v7332_v27 = vld [vmem:[#allocation3 + $0x1fa] sm:$0xff] }
 0xad5   :  { %7047 = vrot.lane.b32.xlu2 %v14110_v49, %s9490_s20 }
 0xad7   :  { %v6275_v52 = vpop.permute.xlu2 %6274  ;;  %6664 = vrot.lane.b32.xlu1 %v6532_v43, %s9491_s27 }
 0xad8   :  { %6465 = vst.msk [vmem:[#allocation2 + $0x10] sm:$0xff] %vm6462_vm6, %v6275_v52  ;;  %v7748_v52 = vld [vmem:[%s16082_s4 + $0x8] sm:$0xff] }
 0xad9   :  { %7436 = vrot.lane.b32.xlu0 %v14302_v45, %s9489_s3  ;;  %v6004_v35 = vpop.permute.xlu1 %6003 }
 0xada   :  { %6137 = vst.msk [vmem:[#allocation2 + $0x1d8] sm:$0xff] %vm6077_vm5, %v6004_v35 }
 0xadb   :  { %v6271_v17 = vpop.permute.xlu0 %6270 }
 0xadc   :  { %6463 = vst.msk [vmem:[#allocation2] sm:$0xff] %vm6462_vm6, %v6271_v17 }
 0xadd   :  { %7049 = vrot.lane.b32.xlu2 %v14108_v24, %s9490_s20 }
 0xadf   :  { %v6281_v49 = vpop.permute.xlu2 %6280  ;;  %6666 = vrot.lane.b32.xlu1 %v6533_v13, %s9491_s27 }
 0xae0   :  { %6468 = vst.msk [vmem:[#allocation2 + $0x28] sm:$0xff] %vm6462_vm6, %v6281_v49 }
 0xae1   :  { %7438 = vrot.lane.b32.xlu0 %v14300_v47, %s9489_s3  ;;  %v6010_v45 = vpop.permute.xlu1 %6009 }
 0xae2   :  { %6140 = vst.msk [vmem:[#allocation2 + $0x1f0] sm:$0xff] %vm6077_vm5, %v6010_v45  ;;  %v6563_v45 = vld [vmem:[#allocation3 + $0x200] sm:$0xff] }
 0xae3   :  { %v6277_v12 = vpop.permute.xlu0 %6276 }
 0xae4   :  { %6466 = vst.msk [vmem:[#allocation2 + $0x18] sm:$0xff] %vm6462_vm6, %v6277_v12 }
 0xae5   :  { %7051 = vrot.lane.b32.xlu2 %v14101_v15, %s9490_s20 }
 0xae7   :  { %v6287_v24 = vpop.permute.xlu2 %6286  ;;  %6668 = vrot.lane.b32.xlu1 %v6534_v6, %s9491_s27 }
 0xae8   :  { %6471 = vst.msk [vmem:[#allocation2 + $0x40] sm:$0xff] %vm6462_vm6, %v6287_v24  ;;  %v6538_v24 = vld [vmem:[#allocation3 + $0xa8] sm:$0xff] }
 0xae9   :  { %7055 = vrot.lane.b32.xlu0 %v14123_v25, %s9490_s20  ;;  %v6273_v47 = vpop.permute.xlu1 %6272 }
 0xaea   :  { %6464 = vst.msk [vmem:[#allocation2 + $0x8] sm:$0xff] %vm6462_vm6, %v6273_v47  ;;  %v6539_v47 = vld [vmem:[#allocation3 + $0xb0] sm:$0xff] }
 0xaeb   :  { %v6283_v20 = vpop.permute.xlu0 %6282 }
 0xaec   :  { %6469 = vst.msk [vmem:[#allocation2 + $0x30] sm:$0xff] %vm6462_vm6, %v6283_v20  ;;  %v7333_v20 = vld [vmem:[#allocation3 + $0x202] sm:$0xff] }
 0xaed   :  { %7053 = vrot.lane.b32.xlu2 %v14125_v40, %s9490_s20 }
 0xaef   :  { %v6293_v15 = vpop.permute.xlu2 %6292  ;;  %6670 = vrot.lane.b32.xlu1 %v6535_v36, %s9491_s27 }
 0xaf0   :  { %6474 = vst.msk [vmem:[#allocation2 + $0x58] sm:$0xff] %vm6462_vm6, %v6293_v15 }
 0xaf1   :  { %7105 = vrot.lane.b32.xlu0 %v14179_v21, %s9490_s20  ;;  %v6279_v25 = vpop.permute.xlu1 %6278 }
 0xaf2   :  { %6467 = vst.msk [vmem:[#allocation2 + $0x20] sm:$0xff] %vm6462_vm6, %v6279_v25  ;;  %v6564_v25 = vld [vmem:[#allocation3 + $0x210] sm:$0xff] }
 0xaf3   :  { %v6289_v60 = vpop.permute.xlu0 %6288 }
 0xaf4   :  { %6472 = vst.msk [vmem:[#allocation2 + $0x48] sm:$0xff] %vm6462_vm6, %v6289_v60  ;;  %v6924_v60 = vld [vmem:[#allocation3 + $0xb1] sm:$0xff] }
 0xaf5   :  { %6334 = vrot.lane.b32.xlu2 %v6174_v34, %s9488_s2 }
 0xaf7   :  { %v6299_v40 = vpop.permute.xlu2 %6298  ;;  %6720 = vrot.lane.b32.xlu1 %v6560_v38, %s9491_s27  ;;  %v6540_v38 = vld [vmem:[#allocation3 + $0xc0] sm:$0xff] }
 0xaf8   :  { %6477 = vst.msk [vmem:[#allocation2 + $0x70] sm:$0xff] %vm6462_vm6, %v6299_v40 }
 0xaf9   :  { %6336 = vrot.lane.b32.xlu0 %v6175_v46, %s9488_s2  ;;  %v6285_v21 = vpop.permute.xlu1 %6284 }
 0xafa   :  { %6470 = vst.msk [vmem:[#allocation2 + $0x38] sm:$0xff] %vm6462_vm6, %v6285_v21 }
 0xafb   :  { %v6295_v23 = vpop.permute.xlu0 %6294 }
 0xafc   :  { %6475 = vst.msk [vmem:[#allocation2 + $0x60] sm:$0xff] %vm6462_vm6, %v6295_v23  ;;  %v7334_v23 = vld [vmem:[#allocation3 + $0x212] sm:$0xff] }
 0xafd   :  { %7440 = vrot.lane.b32.xlu2 %v14293_v10, %s9489_s3 }
 0xaff   :  { %v6305_v7 = vpop.permute.xlu2 %6304  ;;  %7490 = vrot.lane.b32.xlu1 %v7330_v39, %s9489_s3 }
 0xb00   :  { %6480 = vst.msk [vmem:[#allocation2 + $0x88] sm:$0xff] %vm6462_vm6, %v6305_v7 }
 0xb01   :  { %7442 = vrot.lane.b32.xlu0 %v14317_v61, %s9489_s3  ;;  %v6291_v29 = vpop.permute.xlu1 %6290  ;;  %v7753_v61 = vld [vmem:[%s16082_s4 + $0x30] sm:$0xff] }
 0xb02   :  { %6473 = vst.msk [vmem:[#allocation2 + $0x50] sm:$0xff] %vm6462_vm6, %v6291_v29  ;;  %7958 = vmatpush.msra.mxu1 %v7753_v61  ;;  %9451 = vmatpush.msra.mxu2 %v7753_v61 }
 0xb03   :  { %v6301_v62 = vpop.permute.xlu0 %6300 }
 0xb04   :  { %6478 = vst.msk [vmem:[#allocation2 + $0x78] sm:$0xff] %vm6462_vm6, %v6301_v62  ;;  %7959 = vmatpush.msra.mxu1 %v7752_v37  ;;  %9452 = vmatpush.msra.mxu2 %v7752_v37  ;;  %v6926_v37 = vld [vmem:[#allocation3 + $0xc9] sm:$0xff] }
 0xb05   :  { %6672 = vrot.lane.b32.xlu2 %v6536_v22, %s9491_s27  ;;  %v6565_v22 = vld [vmem:[#allocation3 + $0x218] sm:$0xff] }
 0xb07   :  { %v6311_v10 = vpop.permute.xlu2 %6310  ;;  %7057 = vrot.lane.b32.xlu1 %v14116_v44, %s9490_s20  ;;  %v7751_v44 = vld [vmem:[%s16082_s4 + $0x20] sm:$0xff] }
 0xb08   :  { %6483 = vst.msk [vmem:[#allocation2 + $0xa0] sm:$0xff] %vm6462_vm6, %v6311_v10  ;;  %7960 = vmatpush.msra.mxu1 %v7751_v44  ;;  %9453 = vmatpush.msra.mxu2 %v7751_v44 }
 0xb09   :  { %6674 = vrot.lane.b32.xlu0 %v6537_v59, %s9491_s27  ;;  %v6297_v3 = vpop.permute.xlu1 %6296 }
 0xb0a   :  { %6476 = vst.msk [vmem:[#allocation2 + $0x68] sm:$0xff] %vm6462_vm6, %v6297_v3  ;;  %7961 = vmatpush.msra.mxu1 %v7750_v4  ;;  %9454 = vmatpush.msra.mxu2 %v7750_v4 }
 0xb0b   :  { %v6307_v53 = vpop.permute.xlu0 %6306 }
 0xb0c   :  { %6481 = vst.msk [vmem:[#allocation2 + $0x90] sm:$0xff] %vm6462_vm6, %v6307_v53  ;;  %7962 = vmatpush.msra.mxu1 %v7749_v41  ;;  %9455 = vmatpush.msra.mxu2 %v7749_v41  ;;  %v6566_v41 = vld [vmem:[#allocation3 + $0x228] sm:$0xff] }
 0xb0d   :  { %6722 = vrot.lane.b32.xlu2 %v6561_v32, %s9491_s27 }
 0xb0e   :  { %7963 = vmatpush.msra.mxu1 %v7748_v52  ;;  %9456 = vmatpush.msra.mxu2 %v7748_v52 }
 0xb0f   :  { %v6317_v11 = vpop.permute.xlu2 %6316  ;;  %7107 = vrot.lane.b32.xlu1 %v14197_v63, %s9490_s20  ;;  %v7747_v63 = vld [vmem:[%s16082_s4] sm:$0xff] }
 0xb10   :  { %6486 = vst.msk [vmem:[#allocation2 + $0xb8] sm:$0xff] %vm6462_vm6, %v6317_v11  ;;  %7964 = vmatpush.msra.mxu1 %v7747_v63  ;;  %9457 = vmatpush.msra.mxu2 %v7747_v63 }
 0xb11   :  { %6724 = vrot.lane.b32.xlu0 %v6562_v51, %s9491_s27  ;;  %v6303_v1 = vpop.permute.xlu1 %6302 }
 0xb12   :  { %6479 = vst.msk [vmem:[#allocation2 + $0x80] sm:$0xff] %vm6462_vm6, %v6303_v1 }
 0xb13   :  { %v6313_v31 = vpop.permute.xlu0 %6312 }
 0xb14   :  { %6484 = vst.msk [vmem:[#allocation2 + $0xa8] sm:$0xff] %vm6462_vm6, %v6313_v31  ;;  %v6542_v31 = vld [vmem:[#allocation3 + $0xd8] sm:$0xff] }
 0xb15   :  { %7492 = vrot.lane.b32.xlu2 %v7331_v16, %s9489_s3 }
 0xb17   :  { %v7042_v28 = vpop.permute.xlu2 %7041  ;;  %6338 = vrot.lane.b32.xlu1 %v7330_v39, %s9488_s2 }
 0xb19   :  { %7494 = vrot.lane.b32.xlu0 %v7332_v27, %s9489_s3  ;;  %v6309_v49 = vpop.permute.xlu1 %6308 }
 0xb1a   :  { %6482 = vst.msk [vmem:[#allocation2 + $0x98] sm:$0xff] %vm6462_vm6, %v6309_v49  ;;  %v6567_v49 = vld [vmem:[#allocation3 + $0x230] sm:$0xff] }
 0xb1b   :  { %v6319_v35 = vpop.permute.xlu0 %6318 }
 0xb1c   :  { %6487 = vst.msk [vmem:[#allocation2 + $0xc0] sm:$0xff] %vm6462_vm6, %v6319_v35  ;;  %v6927_v35 = vld [vmem:[#allocation3 + $0xd9] sm:$0xff] }
 0xb1d   :  { %7059 = vrot.lane.b32.xlu2 %v14137_v50, %s9490_s20 }
 0xb1f   :  { %v7044_v43 = vpop.permute.xlu2 %7043  ;;  %7444 = vrot.lane.b32.xlu1 %v14315_v8, %s9489_s3 }
 0xb21   :  { %7061 = vrot.lane.b32.xlu0 %v14135_v5, %s9490_s20  ;;  %v6315_v17 = vpop.permute.xlu1 %6314 }
 0xb22   :  { %6485 = vst.msk [vmem:[#allocation2 + $0xb0] sm:$0xff] %vm6462_vm6, %v6315_v17 }
 0xb23   :  { %v7427_v13 = vpop.permute.xlu0 %7426 }
 0xb25   :  { %7109 = vrot.lane.b32.xlu2 %v14195_v42, %s9490_s20 }
 0xb27   :  { %v7046_v50 = vpop.permute.xlu2 %7045  ;;  %6676 = vrot.lane.b32.xlu1 %v6538_v24, %s9491_s27 }
 0xb29   :  { %7111 = vrot.lane.b32.xlu0 %v14188_v33, %s9490_s20  ;;  %v6657_v8 = vpop.permute.xlu1 %6656 }
 0xb2a   :  { %6849 = vst.msk [vmem:[#allocation2] sm:$0xff] %vm6848_vm7, %v6657_v8  ;;  %v6952_v8 = vld [vmem:[#allocation3 + $0x231] sm:$0xff] }
 0xb2b   :  { %v7429_v5 = vpop.permute.xlu0 %7428  ;;  %7234 = vst.msk [vmem:[#allocation2] sm:$0xff] %vm7233_vm8, %v7042_v28 }
 0xb2c   :  { %7619 = vst.msk [vmem:[#allocation2] sm:$0xff] %vm7618_vm9, %v7427_v13 }
 0xb2d   :  { %6340 = vrot.lane.b32.xlu2 %v7331_v16, %s9488_s2 }
 0xb2f   :  { %v7048_v42 = vpop.permute.xlu2 %7047  ;;  %6726 = vrot.lane.b32.xlu1 %v6563_v45, %s9491_s27 }
 0xb31   :  { %6342 = vrot.lane.b32.xlu0 %v7332_v27, %s9488_s2  ;;  %v6659_v33 = vpop.permute.xlu1 %6658 }
 0xb32   :  { %6850 = vst.msk [vmem:[#allocation2 + $0x8] sm:$0xff] %vm6848_vm7, %v6659_v33 }
 0xb33   :  { %v7431_v6 = vpop.permute.xlu0 %7430  ;;  %7235 = vst.msk [vmem:[#allocation2 + $0x8] sm:$0xff] %vm7233_vm8, %v7044_v43  ;;  %v7683_v15 = vld [vmem:[#allocation2] sm:$0xff] }
 0xb34   :  { %7620 = vst.msk [vmem:[#allocation2 + $0x8] sm:$0xff] %vm7618_vm9, %v7429_v5  ;;  %9380 = vmatmul.msk.f32.vlgmr.msra.gmra.mxu1 %vm7756_vm10, %v7683_v15  ;;  %v6568_v5 = vld [vmem:[#allocation3 + $0x240] sm:$0xff] }
 0xb35   :  { %7446 = vrot.lane.b32.xlu2 %v14308_v9, %s9489_s3  ;;  %v6928_v15 = vld [vmem:[#allocation3 + $0xe1] sm:$0xff] }
 0xb37   :  { %v7050_v12 = vpop.permute.xlu2 %7049  ;;  %7496 = vrot.lane.b32.xlu1 %v7333_v20, %s9489_s3 }
 0xb39   :  { %7448 = vrot.lane.b32.xlu0 %v14332_v19, %s9489_s3  ;;  %v6661_v34 = vpop.permute.xlu1 %6660 }
 0xb3a   :  { %6851 = vst.msk [vmem:[#allocation2 + $0x10] sm:$0xff] %vm6848_vm7, %v6661_v34 }
 0xb3b   :  { %v7433_v36 = vpop.permute.xlu0 %7432  ;;  %7236 = vst.msk [vmem:[#allocation2 + $0x10] sm:$0xff] %vm7233_vm8, %v7046_v50  ;;  %v7684_v40 = vld [vmem:[#allocation2 + $0x8] sm:$0xff]  ;;  %v6543_v50 = vld [vmem:[#allocation3 + $0xe0] sm:$0xff] }
 0xb3c   :  { %7621 = vst.msk [vmem:[#allocation2 + $0x10] sm:$0xff] %vm7618_vm9, %v7431_v6  ;;  %9381 = vmatmul.msk.f32.gmra.mxu1 %vm7756_vm10, %v7684_v40  ;;  %v6953_v40 = vld [vmem:[#allocation3 + $0x241] sm:$0xff] }
 0xb3d   :  { %6678 = vrot.lane.b32.xlu2 %v6539_v47, %s9491_s27  ;;  %v7338_v47 = vld [vmem:[#allocation3 + $0x242] sm:$0xff] }
 0xb3f   :  { %v7052_v9 = vpop.permute.xlu2 %7051  ;;  %7063 = vrot.lane.b32.xlu1 %v6924_v60, %s9490_s20 }
 0xb41   :  { %6680 = vrot.lane.b32.xlu0 %v6540_v38, %s9491_s27  ;;  %v6663_v46 = vpop.permute.xlu1 %6662 }
 0xb42   :  { %6852 = vst.msk [vmem:[#allocation2 + $0x18] sm:$0xff] %vm6848_vm7, %v6663_v46 }
 0xb43   :  { %v7435_v7 = vpop.permute.xlu0 %7434  ;;  %7237 = vst.msk [vmem:[#allocation2 + $0x18] sm:$0xff] %vm7233_vm8, %v7048_v42  ;;  %v7685_v21 = vld [vmem:[#allocation2 + $0x10] sm:$0xff] }
 0xb44   :  { %7622 = vst.msk [vmem:[#allocation2 + $0x18] sm:$0xff] %vm7618_vm9, %v7433_v36  ;;  %9382 = vmatmul.msk.f32.gmra.mxu1 %vm7756_vm10, %v7685_v21  ;;  %v7337_v42 = vld [vmem:[#allocation3 + $0x232] sm:$0xff]  ;;  %v6954_v21 = vld [vmem:[#allocation3 + $0x249] sm:$0xff] }
 0xb45   :  { %6728 = vrot.lane.b32.xlu2 %v6564_v25, %s9491_s27  ;;  %v6929_v25 = vld [vmem:[#allocation3 + $0xf1] sm:$0xff] }
 0xb47   :  { %v7054_v19 = vpop.permute.xlu2 %7053  ;;  %7113 = vrot.lane.b32.xlu1 %v14212_v48, %s9490_s20  ;;  %v7335_v48 = vld [vmem:[#allocation3 + $0x21a] sm:$0xff] }
 0xb49   :  { %6730 = vrot.lane.b32.xlu0 %v6565_v22, %s9491_s27  ;;  %v6665_v10 = vpop.permute.xlu1 %6664 }
 0xb4a   :  { %6853 = vst.msk [vmem:[#allocation2 + $0x20] sm:$0xff] %vm6848_vm7, %v6665_v10  ;;  %v6569_v10 = vld [vmem:[#allocation3 + $0x248] sm:$0xff] }
 0xb4b   :  { %v7437_v29 = vpop.permute.xlu0 %7436  ;;  %v7686_v62 = vld [vmem:[#allocation2 + $0x18] sm:$0xff]  ;;  %7238 = vst.msk [vmem:[#allocation2 + $0x20] sm:$0xff] %vm7233_vm8, %v7050_v12 }
 0xb4c   :  { %9383 = vmatmul.msk.f32.gmra.mxu1 %vm7756_vm10, %v7686_v62  ;;  %7623 = vst.msk [vmem:[#allocation2 + $0x20] sm:$0xff] %vm7618_vm9, %v7435_v7  ;;  %v6544_v7 = vld [vmem:[#allocation3 + $0xf0] sm:$0xff] }
 0xb4d   :  { %7498 = vrot.lane.b32.xlu2 %v7334_v23, %s9489_s3 }
 0xb4f   :  { %v6335_v39 = vpop.permute.xlu2 %6334  ;;  %6344 = vrot.lane.b32.xlu1 %v7333_v20, %s9488_s2 }
 0xb50   :  { %6495 = vst.msk [vmem:[#allocation2 + $0x100] sm:$0xff] %vm6462_vm6, %v6335_v39 }
 0xb51   :  { %7500 = vrot.lane.b32.xlu0 %v7335_v48, %s9489_s3  ;;  %v6667_v61 = vpop.permute.xlu1 %6666 }
 0xb52   :  { %6854 = vst.msk [vmem:[#allocation2 + $0x28] sm:$0xff] %vm6848_vm7, %v6667_v61 }
 0xb53   :  { %v7439_v32 = vpop.permute.xlu0 %7438  ;;  %7239 = vst.msk [vmem:[#allocation2 + $0x28] sm:$0xff] %vm7233_vm8, %v7052_v9  ;;  %v7687_v59 = vld [vmem:[#allocation2 + $0x20] sm:$0xff] }
 0xb54   :  { %7624 = vst.msk [vmem:[#allocation2 + $0x28] sm:$0xff] %vm7618_vm9, %v7437_v29  ;;  %9384 = vmatmul.msk.f32.gmra.mxu1 %vm7756_vm10, %v7687_v59 }
 0xb55   :  { %7065 = vrot.lane.b32.xlu2 %v6925_v30, %s9490_s20 }
 0xb57   :  { %v7441_v55 = vpop.permute.xlu2 %7440  ;;  %7450 = vrot.lane.b32.xlu1 %v14330_v54, %s9489_s3 }
 0xb59   :  { %7067 = vrot.lane.b32.xlu0 %v6926_v37, %s9490_s20  ;;  %v6669_v3 = vpop.permute.xlu1 %6668  ;;  %v6570_v37 = vld [vmem:[#allocation3 + $0x258] sm:$0xff] }
 0xb5a   :  { %6855 = vst.msk [vmem:[#allocation2 + $0x30] sm:$0xff] %vm6848_vm7, %v6669_v3  ;;  %v6546_v3 = vld [vmem:[#allocation3 + $0x108] sm:$0xff] }
 0xb5b   :  { %v7056_v53 = vpop.permute.xlu0 %7055  ;;  %v7688_v44 = vld [vmem:[#allocation2 + $0x28] sm:$0xff]  ;;  %7240 = vst.msk [vmem:[#allocation2 + $0x30] sm:$0xff] %vm7233_vm8, %v7054_v19 }
 0xb5c   :  { %7625 = vst.msk [vmem:[#allocation2 + $0x30] sm:$0xff] %vm7618_vm9, %v7439_v32  ;;  %9385 = vmatmul.msk.f32.gmra.mxu1 %vm7756_vm10, %v7688_v44 }
 0xb5d   :  { %7115 = vrot.lane.b32.xlu2 %v14210_v26, %s9490_s20  ;;  %v6541_v26 = vld [vmem:[#allocation3 + $0xc8] sm:$0xff] }
 0xb5f   :  { %v6673_v11 = vpop.permute.xlu2 %6672  ;;  %6682 = vrot.lane.b32.xlu1 %v6541_v26, %s9491_s27 }
 0xb60   :  { %6857 = vst.msk [vmem:[#allocation2 + $0x40] sm:$0xff] %vm6848_vm7, %v6673_v11  ;;  %v6930_v11 = vld [vmem:[#allocation3 + $0xf9] sm:$0xff] }
 0xb61   :  { %7117 = vrot.lane.b32.xlu0 %v14203_v14, %s9490_s20  ;;  %v6671_v4 = vpop.permute.xlu1 %6670 }
 0xb62   :  { %6856 = vst.msk [vmem:[#allocation2 + $0x38] sm:$0xff] %vm6848_vm7, %v6671_v4  ;;  %v6955_v4 = vld [vmem:[#allocation3 + $0x259] sm:$0xff] }
 0xb63   :  { %v7106_v16 = vpop.permute.xlu0 %7105  ;;  %7241 = vst.msk [vmem:[#allocation2 + $0x38] sm:$0xff] %vm7233_vm8, %v7056_v53  ;;  %v7689_v51 = vld [vmem:[#allocation2 + $0x30] sm:$0xff] }
 0xb64   :  { %7626 = vst.msk [vmem:[#allocation2 + $0x38] sm:$0xff] %vm7618_vm9, %v7441_v55  ;;  %9386 = vmatmul.msk.f32.gmra.mxu1 %vm7756_vm10, %v7689_v51  ;;  %v6545_v55 = vld [vmem:[#allocation3 + $0xf8] sm:$0xff] }
 0xb65   :  { %6346 = vrot.lane.b32.xlu2 %v7334_v23, %s9488_s2 }
 0xb67   :  { %v6723_v54 = vpop.permute.xlu2 %6722  ;;  %6732 = vrot.lane.b32.xlu1 %v6566_v41, %s9491_s27 }
 0xb69   :  { %6348 = vrot.lane.b32.xlu0 %v7335_v48, %s9488_s2  ;;  %v6721_v28 = vpop.permute.xlu1 %6720 }
 0xb6a   :  { %6881 = vst.msk [vmem:[#allocation2 + $0x100] sm:$0xff] %vm6848_vm7, %v6721_v28 }
 0xb6b   :  { %v6337_v1 = vpop.permute.xlu0 %6336  ;;  %7266 = vst.msk [vmem:[#allocation2 + $0x100] sm:$0xff] %vm7233_vm8, %v7106_v16  ;;  %v7690_v52 = vld [vmem:[#allocation2 + $0x38] sm:$0xff]  ;;  %v6571_v16 = vld [vmem:[#allocation3 + $0x260] sm:$0xff] }
 0xb6c   :  { %6496 = vst.msk [vmem:[#allocation2 + $0x108] sm:$0xff] %vm6462_vm6, %v6337_v1  ;;  %9387 = vmatmul.msk.f32.gmra.mxu1 %vm7756_vm10, %v7690_v52  ;;  %v6931_v1 = vld [vmem:[#allocation3 + $0x109] sm:$0xff] }
 0xb6d   :  { %7452 = vrot.lane.b32.xlu2 %v14323_v18, %s9489_s3  ;;  %6882 = vst.msk [vmem:[#allocation2 + $0x108] sm:$0xff] %vm6848_vm7, %v6723_v54  ;;  %v7336_v18 = vld [vmem:[#allocation3 + $0x22a] sm:$0xff]  ;;  %v7340_v54 = vld [vmem:[#allocation3 + $0x25a] sm:$0xff]  ;;  %v7341_v52 = vld [vmem:[#allocation3 + $0x262] sm:$0xff] }
 0xb6f   :  { %v7493_v14 = vpop.permute.xlu2 %7492  ;;  %7502 = vrot.lane.b32.xlu1 %v7336_v18, %s9489_s3 }
 0xb71   :  { %7454 = vrot.lane.b32.xlu0 %v14347_v2, %s9489_s3  ;;  %v7491_v27 = vpop.permute.xlu1 %7490 }
 0xb72   :  { %7651 = vst.msk [vmem:[#allocation2 + $0x100] sm:$0xff] %vm7618_vm9, %v7491_v27 }
 0xb73   :  { %v7443_v43 = vpop.permute.xlu0 %7442 }
 0xb75   :  { %6684 = vrot.lane.b32.xlu2 %v6542_v31, %s9491_s27 }
 0xb77   :  { %v7060_v63 = vpop.permute.xlu2 %7059  ;;  %7069 = vrot.lane.b32.xlu1 %v6927_v35, %s9490_s20 }
 0xb79   :  { %6686 = vrot.lane.b32.xlu0 %v6543_v50, %s9491_s27  ;;  %v7058_v13 = vpop.permute.xlu1 %7057  ;;  %v7715_v24 = vld [vmem:[#allocation2 + $0x100] sm:$0xff] }
 0xb7a   :  { %7242 = vst.msk [vmem:[#allocation2 + $0x40] sm:$0xff] %vm7233_vm8, %v7058_v13  ;;  %9412 = vmatmul.msk.f32.vlgmr.msra.gmra.mxu2 %vm7756_vm10, %v7715_v24  ;;  %v6547_v24 = vld [vmem:[#allocation3 + $0x110] sm:$0xff] }
 0xb7b   :  { %v6675_v2 = vpop.permute.xlu0 %6674  ;;  %7627 = vst.msk [vmem:[#allocation2 + $0x40] sm:$0xff] %vm7618_vm9, %v7443_v43  ;;  %v6956_v43 = vld [vmem:[#allocation3 + $0x261] sm:$0xff] }
 0xb7c   :  { %6858 = vst.msk [vmem:[#allocation2 + $0x48] sm:$0xff] %vm6848_vm7, %v6675_v2  ;;  %v6957_v2 = vld [vmem:[#allocation3 + $0x271] sm:$0xff] }
 0xb7d   :  { %6734 = vrot.lane.b32.xlu2 %v6567_v49, %s9491_s27  ;;  %7243 = vst.msk [vmem:[#allocation2 + $0x48] sm:$0xff] %vm7233_vm8, %v7060_v63  ;;  %v6932_v49 = vld [vmem:[#allocation3 + $0x111] sm:$0xff] }
 0xb7f   :  { %v7110_v17 = vpop.permute.xlu2 %7109  ;;  %7119 = vrot.lane.b32.xlu1 %v6952_v8, %s9490_s20 }
 0xb81   :  { %6736 = vrot.lane.b32.xlu0 %v6568_v5, %s9491_s27  ;;  %v7108_v12 = vpop.permute.xlu1 %7107 }
 0xb82   :  { %v7691_v33 = vld [vmem:[#allocation2 + $0x40] sm:$0xff]  ;;  %7267 = vst.msk [vmem:[#allocation2 + $0x108] sm:$0xff] %vm7233_vm8, %v7108_v12  ;;  %v6572_v12 = vld [vmem:[#allocation3 + $0x270] sm:$0xff] }
 0xb83   :  { %v6725_v6 = vpop.permute.xlu0 %6724  ;;  %9388 = vmatmul.msk.f32.gmra.mxu1 %vm7756_vm10, %v7691_v33  ;;  %7652 = vst.msk [vmem:[#allocation2 + $0x108] sm:$0xff] %vm7618_vm9, %v7493_v14 }
 0xb85   :  { %7504 = vrot.lane.b32.xlu2 %v7337_v42, %s9489_s3 }
 0xb87   :  { %v6341_v45 = vpop.permute.xlu2 %6340  ;;  %6350 = vrot.lane.b32.xlu1 %v7336_v18, %s9488_s2 }
 0xb88   :  { %6498 = vst.msk [vmem:[#allocation2 + $0x118] sm:$0xff] %vm6462_vm6, %v6341_v45  ;;  %v7317_v45 = vld [vmem:[#allocation3 + $0x112] sm:$0xff] }
 0xb89   :  { %7506 = vrot.lane.b32.xlu0 %v7338_v47, %s9489_s3  ;;  %v6339_v9 = vpop.permute.xlu1 %6338 }
 0xb8a   :  { %6497 = vst.msk [vmem:[#allocation2 + $0x110] sm:$0xff] %vm6462_vm6, %v6339_v9  ;;  %v7716_v36 = vld [vmem:[#allocation2 + $0x108] sm:$0xff]  ;;  %v7342_v9 = vld [vmem:[#allocation3 + $0x272] sm:$0xff] }
 0xb8b   :  { %v7495_v34 = vpop.permute.xlu0 %7494  ;;  %6883 = vst.msk [vmem:[#allocation2 + $0x110] sm:$0xff] %vm6848_vm7, %v6725_v6  ;;  %9413 = vmatmul.msk.f32.gmra.mxu2 %vm7756_vm10, %v7716_v36 }
 0xb8c   :  { %7268 = vst.msk [vmem:[#allocation2 + $0x110] sm:$0xff] %vm7233_vm8, %v7110_v17 }
 0xb8d   :  { %7071 = vrot.lane.b32.xlu2 %v6928_v15, %s9490_s20  ;;  %7653 = vst.msk [vmem:[#allocation2 + $0x110] sm:$0xff] %vm7618_vm9, %v7495_v34  ;;  %v7318_v34 = vld [vmem:[#allocation3 + $0x122] sm:$0xff] }
 0xb8f   :  { %v7447_v20 = vpop.permute.xlu2 %7446  ;;  %7456 = vrot.lane.b32.xlu1 %v14345_v57, %s9489_s3 }
 0xb91   :  { %7073 = vrot.lane.b32.xlu0 %v6929_v25, %s9490_s20  ;;  %v7445_v38 = vpop.permute.xlu1 %7444 }
 0xb92   :  { %7628 = vst.msk [vmem:[#allocation2 + $0x48] sm:$0xff] %vm7618_vm9, %v7445_v38  ;;  %v6933_v38 = vld [vmem:[#allocation3 + $0x121] sm:$0xff] }
 0xb93   :  { %v7062_v19 = vpop.permute.xlu0 %7061 }
 0xb94   :  { %v7717_v46 = vld [vmem:[#allocation2 + $0x110] sm:$0xff] }
 0xb95   :  { %7121 = vrot.lane.b32.xlu2 %v6953_v40, %s9490_s20  ;;  %9414 = vmatmul.msk.f32.gmra.mxu2 %vm7756_vm10, %v7717_v46 }
 0xb97   :  { %v6679_v60 = vpop.permute.xlu2 %6678  ;;  %6688 = vrot.lane.b32.xlu1 %v6544_v7, %s9491_s27 }
 0xb98   :  { %6860 = vst.msk [vmem:[#allocation2 + $0x58] sm:$0xff] %vm6848_vm7, %v6679_v60  ;;  %v6573_v60 = vld [vmem:[#allocation3 + $0x278] sm:$0xff] }
 0xb99   :  { %7123 = vrot.lane.b32.xlu0 %v6954_v21, %s9490_s20  ;;  %v6677_v23 = vpop.permute.xlu1 %6676  ;;  %v7692_v22 = vld [vmem:[#allocation2 + $0x48] sm:$0xff] }
 0xb9a   :  { %6859 = vst.msk [vmem:[#allocation2 + $0x50] sm:$0xff] %vm6848_vm7, %v6677_v23  ;;  %9389 = vmatmul.msk.f32.gmra.mxu1 %vm7756_vm10, %v7692_v22  ;;  %v7343_v23 = vld [vmem:[#allocation3 + $0x27a] sm:$0xff] }
 0xb9b   :  { %v7112_v39 = vpop.permute.xlu0 %7111  ;;  %7244 = vst.msk [vmem:[#allocation2 + $0x50] sm:$0xff] %vm7233_vm8, %v7062_v19  ;;  %v6549_v19 = vld [vmem:[#allocation3 + $0x128] sm:$0xff]  ;;  %v6958_v22 = vld [vmem:[#allocation3 + $0x279] sm:$0xff] }
 0xb9c   :  { %7629 = vst.msk [vmem:[#allocation2 + $0x50] sm:$0xff] %vm7618_vm9, %v7447_v20  ;;  %v6548_v20 = vld [vmem:[#allocation3 + $0x120] sm:$0xff] }
 0xb9d   :  { %6352 = vrot.lane.b32.xlu2 %v7337_v42, %s9488_s2 }
 0xb9f   :  { %v6729_v57 = vpop.permute.xlu2 %6728  ;;  %6738 = vrot.lane.b32.xlu1 %v6569_v10, %s9491_s27 }
 0xba1   :  { %6354 = vrot.lane.b32.xlu0 %v7338_v47, %s9488_s2  ;;  %v6727_v62 = vpop.permute.xlu1 %6726 }
 0xba2   :  { %6884 = vst.msk [vmem:[#allocation2 + $0x118] sm:$0xff] %vm6848_vm7, %v6727_v62 }
 0xba3   :  { %v6343_v30 = vpop.permute.xlu0 %6342  ;;  %7269 = vst.msk [vmem:[#allocation2 + $0x118] sm:$0xff] %vm7233_vm8, %v7112_v39  ;;  %v7693_v48 = vld [vmem:[#allocation2 + $0x50] sm:$0xff]  ;;  %v6574_v39 = vld [vmem:[#allocation3 + $0x288] sm:$0xff] }
 0xba4   :  { %9390 = vmatmul.msk.f32.gmra.mxu1 %vm7756_vm10, %v7693_v48  ;;  %6499 = vst.msk [vmem:[#allocation2 + $0x120] sm:$0xff] %vm6462_vm6, %v6343_v30  ;;  %v6934_v48 = vld [vmem:[#allocation3 + $0x129] sm:$0xff] }
 0xba5   :  { %7458 = vrot.lane.b32.xlu2 %v14338_v58, %s9489_s3  ;;  %6885 = vst.msk [vmem:[#allocation2 + $0x120] sm:$0xff] %vm6848_vm7, %v6729_v57  ;;  %v7339_v58 = vld [vmem:[#allocation3 + $0x24a] sm:$0xff] }
 0xba7   :  { %v7499_v29 = vpop.permute.xlu2 %7498  ;;  %7508 = vrot.lane.b32.xlu1 %v7339_v58, %s9489_s3 }
 0xba9   :  { %7460 = vrot.lane.b32.xlu0 %v14359_v56, %s9489_s3  ;;  %v7497_v32 = vpop.permute.xlu1 %7496 }
 0xbaa   :  { %7654 = vst.msk [vmem:[#allocation2 + $0x118] sm:$0xff] %vm7618_vm9, %v7497_v32 }
 0xbab   :  { %v7449_v59 = vpop.permute.xlu0 %7448 }
 0xbad   :  { %6690 = vrot.lane.b32.xlu2 %v6545_v55, %s9491_s27  ;;  %v7344_v55 = vld [vmem:[#allocation3 + $0x28a] sm:$0xff] }
 0xbaf   :  { %v7066_v61 = vpop.permute.xlu2 %7065  ;;  %7075 = vrot.lane.b32.xlu1 %v6930_v11, %s9490_s20  ;;  %v7319_v11 = vld [vmem:[#allocation3 + $0x12a] sm:$0xff] }
 0xbb1   :  { %6692 = vrot.lane.b32.xlu0 %v6546_v3, %s9491_s27  ;;  %v7718_v44 = vld [vmem:[#allocation2 + $0x118] sm:$0xff]  ;;  %v7064_v26 = vpop.permute.xlu1 %7063 }
 0xbb2   :  { %9415 = vmatmul.msk.f32.gmra.mxu2 %vm7756_vm10, %v7718_v44  ;;  %7245 = vst.msk [vmem:[#allocation2 + $0x58] sm:$0xff] %vm7233_vm8, %v7064_v26  ;;  %v6935_v3 = vld [vmem:[#allocation3 + $0x139] sm:$0xff] }
 0xbb3   :  { %v6681_v56 = vpop.permute.xlu0 %6680  ;;  %7630 = vst.msk [vmem:[#allocation2 + $0x58] sm:$0xff] %vm7618_vm9, %v7449_v59 }
 0xbb4   :  { %6861 = vst.msk [vmem:[#allocation2 + $0x60] sm:$0xff] %vm6848_vm7, %v6681_v56 }
 0xbb5   :  { %6740 = vrot.lane.b32.xlu2 %v6570_v37, %s9491_s27  ;;  %7246 = vst.msk [vmem:[#allocation2 + $0x60] sm:$0xff] %vm7233_vm8, %v7066_v61  ;;  %v6959_v37 = vld [vmem:[#allocation3 + $0x289] sm:$0xff] }
 0xbb7   :  { %v7116_v53 = vpop.permute.xlu2 %7115  ;;  %7125 = vrot.lane.b32.xlu1 %v6955_v4, %s9490_s20  ;;  %v6960_v4 = vld [vmem:[#allocation3 + $0x291] sm:$0xff] }
 0xbb9   :  { %6742 = vrot.lane.b32.xlu0 %v6571_v16, %s9491_s27  ;;  %v7114_v41 = vpop.permute.xlu1 %7113 }
 0xbba   :  { %7270 = vst.msk [vmem:[#allocation2 + $0x120] sm:$0xff] %vm7233_vm8, %v7114_v41  ;;  %v7694_v28 = vld [vmem:[#allocation2 + $0x58] sm:$0xff] }
 0xbbb   :  { %v6731_v14 = vpop.permute.xlu0 %6730  ;;  %7655 = vst.msk [vmem:[#allocation2 + $0x120] sm:$0xff] %vm7618_vm9, %v7499_v29  ;;  %9391 = vmatmul.msk.f32.gmra.mxu1 %vm7756_vm10, %v7694_v28  ;;  %v7320_v28 = vld [vmem:[#allocation3 + $0x13a] sm:$0xff] }
 0xbbd   :  { %7510 = vrot.lane.b32.xlu2 %v7340_v54, %s9489_s3 }
 0xbbf   :  { %v6347_v51 = vpop.permute.xlu2 %6346  ;;  %6356 = vrot.lane.b32.xlu1 %v7339_v58, %s9488_s2 }
 0xbc0   :  { %6501 = vst.msk [vmem:[#allocation2 + $0x130] sm:$0xff] %vm6462_vm6, %v6347_v51 }
 0xbc1   :  { %7512 = vrot.lane.b32.xlu0 %v7341_v52, %s9489_s3  ;;  %v6345_v18 = vpop.permute.xlu1 %6344 }
 0xbc2   :  { %6500 = vst.msk [vmem:[#allocation2 + $0x128] sm:$0xff] %vm6462_vm6, %v6345_v18  ;;  %v7719_v27 = vld [vmem:[#allocation2 + $0x120] sm:$0xff] }
 0xbc3   :  { %v7501_v63 = vpop.permute.xlu0 %7500  ;;  %6886 = vst.msk [vmem:[#allocation2 + $0x128] sm:$0xff] %vm6848_vm7, %v6731_v14  ;;  %9416 = vmatmul.msk.f32.gmra.mxu2 %vm7756_vm10, %v7719_v27  ;;  %v6551_v27 = vld [vmem:[#allocation3 + $0x140] sm:$0xff] }
 0xbc4   :  { %7271 = vst.msk [vmem:[#allocation2 + $0x128] sm:$0xff] %vm7233_vm8, %v7116_v53 }
 0xbc5   :  { %7077 = vrot.lane.b32.xlu2 %v6931_v1, %s9490_s20  ;;  %7656 = vst.msk [vmem:[#allocation2 + $0x128] sm:$0xff] %vm7618_vm9, %v7501_v63  ;;  %v6575_v1 = vld [vmem:[#allocation3 + $0x290] sm:$0xff] }
 0xbc7   :  { %v7453_v31 = vpop.permute.xlu2 %7452  ;;  %7462 = vrot.lane.b32.xlu1 %v14357_v0, %s9489_s3 }
 0xbc9   :  { %7079 = vrot.lane.b32.xlu0 %v6932_v49, %s9490_s20  ;;  %v7451_v50 = vpop.permute.xlu1 %7450  ;;  %v7321_v49 = vld [vmem:[#allocation3 + $0x142] sm:$0xff] }
 0xbca   :  { %7631 = vst.msk [vmem:[#allocation2 + $0x60] sm:$0xff] %vm7618_vm9, %v7451_v50 }
 0xbcb   :  { %v7068_v17 = vpop.permute.xlu0 %7067 }
 0xbcc   :  { %v7720_v13 = vld [vmem:[#allocation2 + $0x128] sm:$0xff] }
 0xbcd   :  { %7127 = vrot.lane.b32.xlu2 %v6956_v43, %s9490_s20  ;;  %9417 = vmatmul.msk.f32.gmra.mxu2 %vm7756_vm10, %v7720_v13  ;;  %v7345_v43 = vld [vmem:[#allocation3 + $0x292] sm:$0xff]  ;;  %v6576_v13 = vld [vmem:[#allocation3 + $0x2a0] sm:$0xff] }
 0xbcf   :  { %v6685_v35 = vpop.permute.xlu2 %6684  ;;  %6694 = vrot.lane.b32.xlu1 %v6547_v24, %s9491_s27  ;;  %v6936_v24 = vld [vmem:[#allocation3 + $0x141] sm:$0xff] }
 0xbd0   :  { %6863 = vst.msk [vmem:[#allocation2 + $0x70] sm:$0xff] %vm6848_vm7, %v6685_v35 }
 0xbd1   :  { %7129 = vrot.lane.b32.xlu0 %v6957_v2, %s9490_s20  ;;  %v6683_v42 = vpop.permute.xlu1 %6682  ;;  %v7695_v8 = vld [vmem:[#allocation2 + $0x60] sm:$0xff]  ;;  %v6552_v2 = vld [vmem:[#allocation3 + $0x150] sm:$0xff] }
 0xbd2   :  { %6862 = vst.msk [vmem:[#allocation2 + $0x68] sm:$0xff] %vm6848_vm7, %v6683_v42  ;;  %9392 = vmatmul.msk.f32.gmra.mxu1 %vm7756_vm10, %v7695_v8 }
 0xbd3   :  { %v7118_v5 = vpop.permute.xlu0 %7117  ;;  %7247 = vst.msk [vmem:[#allocation2 + $0x68] sm:$0xff] %vm7233_vm8, %v7068_v17 }
 0xbd4   :  { %7632 = vst.msk [vmem:[#allocation2 + $0x68] sm:$0xff] %vm7618_vm9, %v7453_v31 }
 0xbd5   :  { %6358 = vrot.lane.b32.xlu2 %v7340_v54, %s9488_s2  ;;  %v6550_v54 = vld [vmem:[#allocation3 + $0x138] sm:$0xff] }
 0xbd7   :  { %v6735_v0 = vpop.permute.xlu2 %6734  ;;  %6744 = vrot.lane.b32.xlu1 %v6572_v12, %s9491_s27  ;;  %v6961_v12 = vld [vmem:[#allocation3 + $0x2a1] sm:$0xff] }
 0xbd9   :  { %6360 = vrot.lane.b32.xlu0 %v7341_v52, %s9488_s2  ;;  %v6733_v6 = vpop.permute.xlu1 %6732 }
 0xbda   :  { %6887 = vst.msk [vmem:[#allocation2 + $0x130] sm:$0xff] %vm6848_vm7, %v6733_v6 }
 0xbdb   :  { %v6349_v15 = vpop.permute.xlu0 %6348  ;;  %7272 = vst.msk [vmem:[#allocation2 + $0x130] sm:$0xff] %vm7233_vm8, %v7118_v5  ;;  %v7696_v47 = vld [vmem:[#allocation2 + $0x68] sm:$0xff] }
 0xbdc   :  { %9393 = vmatmul.msk.f32.gmra.mxu1 %vm7756_vm10, %v7696_v47  ;;  %6502 = vst.msk [vmem:[#allocation2 + $0x138] sm:$0xff] %vm6462_vm6, %v6349_v15 }
 0xbdd   :  { %7464 = vrot.lane.b32.xlu2 %v7317_v45, %s9489_s3  ;;  %6888 = vst.msk [vmem:[#allocation2 + $0x138] sm:$0xff] %vm6848_vm7, %v6735_v0  ;;  %v7346_v45 = vld [vmem:[#allocation3 + $0x2a2] sm:$0xff] }
 0xbdf   :  { %v7505_v33 = vpop.permute.xlu2 %7504  ;;  %7514 = vrot.lane.b32.xlu1 %v7342_v9, %s9489_s3 }
 0xbe1   :  { %7466 = vrot.lane.b32.xlu0 %v7318_v34, %s9489_s3  ;;  %v7503_v40 = vpop.permute.xlu1 %7502  ;;  %v7347_v34 = vld [vmem:[#allocation3 + $0x2aa] sm:$0xff] }
 0xbe2   :  { %7657 = vst.msk [vmem:[#allocation2 + $0x130] sm:$0xff] %vm7618_vm9, %v7503_v40 }
 0xbe3   :  { %v7455_v25 = vpop.permute.xlu0 %7454 }
 0xbe5   :  { %6696 = vrot.lane.b32.xlu2 %v6548_v20, %s9491_s27 }
 0xbe7   :  { %v7072_v36 = vpop.permute.xlu2 %7071  ;;  %7081 = vrot.lane.b32.xlu1 %v6933_v38, %s9490_s20  ;;  %v6962_v38 = vld [vmem:[#allocation3 + $0x2a9] sm:$0xff] }
 0xbe9   :  { %6698 = vrot.lane.b32.xlu0 %v6549_v19, %s9491_s27  ;;  %v7070_v7 = vpop.permute.xlu1 %7069  ;;  %v7721_v21 = vld [vmem:[#allocation2 + $0x130] sm:$0xff] }
 0xbea   :  { %7248 = vst.msk [vmem:[#allocation2 + $0x70] sm:$0xff] %vm7233_vm8, %v7070_v7  ;;  %9418 = vmatmul.msk.f32.gmra.mxu2 %vm7756_vm10, %v7721_v21  ;;  %v7322_v19 = vld [vmem:[#allocation3 + $0x152] sm:$0xff] }
 0xbeb   :  { %v6687_v57 = vpop.permute.xlu0 %6686  ;;  %7633 = vst.msk [vmem:[#allocation2 + $0x70] sm:$0xff] %vm7618_vm9, %v7455_v25 }
 0xbec   :  { %6864 = vst.msk [vmem:[#allocation2 + $0x78] sm:$0xff] %vm6848_vm7, %v6687_v57 }
 0xbed   :  { %6746 = vrot.lane.b32.xlu2 %v6573_v60, %s9491_s27  ;;  %7249 = vst.msk [vmem:[#allocation2 + $0x78] sm:$0xff] %vm7233_vm8, %v7072_v36 }
 0xbef   :  { %v7122_v46 = vpop.permute.xlu2 %7121  ;;  %7131 = vrot.lane.b32.xlu1 %v6958_v22, %s9490_s20  ;;  %v7323_v22 = vld [vmem:[#allocation3 + $0x15a] sm:$0xff] }
 0xbf1   :  { %6748 = vrot.lane.b32.xlu0 %v6574_v39, %s9491_s27  ;;  %v7120_v29 = vpop.permute.xlu1 %7119 }
 0xbf2   :  { %7273 = vst.msk [vmem:[#allocation2 + $0x138] sm:$0xff] %vm7233_vm8, %v7120_v29  ;;  %v7697_v62 = vld [vmem:[#allocation2 + $0x70] sm:$0xff] }
 0xbf3   :  { %v6737_v30 = vpop.permute.xlu0 %6736  ;;  %7658 = vst.msk [vmem:[#allocation2 + $0x138] sm:$0xff] %vm7618_vm9, %v7505_v33  ;;  %9394 = vmatmul.msk.f32.gmra.mxu1 %vm7756_vm10, %v7697_v62  ;;  %v6577_v33 = vld [vmem:[#allocation3 + $0x2a8] sm:$0xff] }
 0xbf5   :  { %7516 = vrot.lane.b32.xlu2 %v7343_v23, %s9489_s3 }
 0xbf7   :  { %v6353_v10 = vpop.permute.xlu2 %6352  ;;  %6362 = vrot.lane.b32.xlu1 %v7342_v9, %s9488_s2  ;;  %v6937_v9 = vld [vmem:[#allocation3 + $0x151] sm:$0xff] }
 0xbf8   :  { %6504 = vst.msk [vmem:[#allocation2 + $0x148] sm:$0xff] %vm6462_vm6, %v6353_v10 }
 0xbf9   :  { %7518 = vrot.lane.b32.xlu0 %v7344_v55, %s9489_s3  ;;  %v6351_v61 = vpop.permute.xlu1 %6350 }
 0xbfa   :  { %6503 = vst.msk [vmem:[#allocation2 + $0x140] sm:$0xff] %vm6462_vm6, %v6351_v61  ;;  %v7722_v32 = vld [vmem:[#allocation2 + $0x138] sm:$0xff] }
 0xbfb   :  { %v7507_v59 = vpop.permute.xlu0 %7506  ;;  %6889 = vst.msk [vmem:[#allocation2 + $0x140] sm:$0xff] %vm6848_vm7, %v6737_v30  ;;  %9419 = vmatmul.msk.f32.gmra.mxu2 %vm7756_vm10, %v7722_v32  ;;  %v6578_v30 = vld [vmem:[#allocation3 + $0x2b8] sm:$0xff] }
 0xbfc   :  { %7274 = vst.msk [vmem:[#allocation2 + $0x140] sm:$0xff] %vm7233_vm8, %v7122_v46 }
 0xbfd   :  { %7083 = vrot.lane.b32.xlu2 %v6934_v48, %s9490_s20  ;;  %7659 = vst.msk [vmem:[#allocation2 + $0x140] sm:$0xff] %vm7618_vm9, %v7507_v59  ;;  %v6938_v48 = vld [vmem:[#allocation3 + $0x159] sm:$0xff] }
 0xbfe   :  { %v7348_v59 = vld [vmem:[#allocation3 + $0x2ba] sm:$0xff] }
 0xbff   :  { %v7459_v58 = vpop.permute.xlu2 %7458  ;;  %7468 = vrot.lane.b32.xlu1 %v7319_v11, %s9489_s3  ;;  %v6939_v11 = vld [vmem:[#allocation3 + $0x169] sm:$0xff] }
 0xc01   :  { %7085 = vrot.lane.b32.xlu0 %v6935_v3, %s9490_s20  ;;  %v7457_v44 = vpop.permute.xlu1 %7456 }
 0xc02   :  { %7634 = vst.msk [vmem:[#allocation2 + $0x78] sm:$0xff] %vm7618_vm9, %v7457_v44 }
 0xc03   :  { %v7074_v26 = vpop.permute.xlu0 %7073 }
 0xc04   :  { %v7723_v56 = vld [vmem:[#allocation2 + $0x140] sm:$0xff] }
 0xc05   :  { %7133 = vrot.lane.b32.xlu2 %v6959_v37, %s9490_s20  ;;  %9420 = vmatmul.msk.f32.gmra.mxu2 %vm7756_vm10, %v7723_v56  ;;  %v6963_v37 = vld [vmem:[#allocation3 + $0x2b9] sm:$0xff]  ;;  %v6964_v56 = vld [vmem:[#allocation3 + $0x2c1] sm:$0xff] }
 0xc07   :  { %v6691_v53 = vpop.permute.xlu2 %6690  ;;  %6700 = vrot.lane.b32.xlu1 %v6550_v54, %s9491_s27 }
 0xc08   :  { %6866 = vst.msk [vmem:[#allocation2 + $0x88] sm:$0xff] %vm6848_vm7, %v6691_v53 }
 0xc09   :  { %7135 = vrot.lane.b32.xlu0 %v6960_v4, %s9490_s20  ;;  %v6689_v51 = vpop.permute.xlu1 %6688  ;;  %v7698_v41 = vld [vmem:[#allocation2 + $0x78] sm:$0xff] }
 0xc0a   :  { %6865 = vst.msk [vmem:[#allocation2 + $0x80] sm:$0xff] %vm6848_vm7, %v6689_v51  ;;  %9395 = vmatmul.msk.f32.gmra.mxu1 %vm7756_vm10, %v7698_v41  ;;  %v7324_v41 = vld [vmem:[#allocation3 + $0x16a] sm:$0xff] }
 0xc0b   :  { %v7124_v14 = vpop.permute.xlu0 %7123  ;;  %7250 = vst.msk [vmem:[#allocation2 + $0x80] sm:$0xff] %vm7233_vm8, %v7074_v26  ;;  %v6554_v26 = vld [vmem:[#allocation3 + $0x168] sm:$0xff] }
 0xc0c   :  { %7635 = vst.msk [vmem:[#allocation2 + $0x80] sm:$0xff] %vm7618_vm9, %v7459_v58 }
 0xc0d   :  { %6364 = vrot.lane.b32.xlu2 %v7343_v23, %s9488_s2  ;;  %v6553_v23 = vld [vmem:[#allocation3 + $0x158] sm:$0xff] }
 0xc0f   :  { %v6741_v16 = vpop.permute.xlu2 %6740  ;;  %6750 = vrot.lane.b32.xlu1 %v6575_v1, %s9491_s27 }
 0xc11   :  { %6366 = vrot.lane.b32.xlu0 %v7344_v55, %s9488_s2  ;;  %v6739_v31 = vpop.permute.xlu1 %6738 }
 0xc12   :  { %6890 = vst.msk [vmem:[#allocation2 + $0x148] sm:$0xff] %vm6848_vm7, %v6739_v31 }
 0xc13   :  { %v6355_v18 = vpop.permute.xlu0 %6354  ;;  %7275 = vst.msk [vmem:[#allocation2 + $0x148] sm:$0xff] %vm7233_vm8, %v7124_v14  ;;  %v7699_v63 = vld [vmem:[#allocation2 + $0x80] sm:$0xff] }
 0xc14   :  { %9396 = vmatmul.msk.f32.gmra.mxu1 %vm7756_vm10, %v7699_v63  ;;  %6505 = vst.msk [vmem:[#allocation2 + $0x150] sm:$0xff] %vm6462_vm6, %v6355_v18  ;;  %v6579_v14 = vld [vmem:[#allocation3 + $0x2c0] sm:$0xff] }
 0xc15   :  { %7470 = vrot.lane.b32.xlu2 %v7320_v28, %s9489_s3  ;;  %6891 = vst.msk [vmem:[#allocation2 + $0x150] sm:$0xff] %vm6848_vm7, %v6741_v16  ;;  %v6555_v28 = vld [vmem:[#allocation3 + $0x170] sm:$0xff]  ;;  %v7349_v63 = vld [vmem:[#allocation3 + $0x2c2] sm:$0xff] }
 0xc17   :  { %v7511_v52 = vpop.permute.xlu2 %7510  ;;  %7520 = vrot.lane.b32.xlu1 %v7345_v43, %s9489_s3 }
 0xc19   :  { %7472 = vrot.lane.b32.xlu0 %v7321_v49, %s9489_s3  ;;  %v7509_v50 = vpop.permute.xlu1 %7508 }
 0xc1a   :  { %7660 = vst.msk [vmem:[#allocation2 + $0x148] sm:$0xff] %vm7618_vm9, %v7509_v50 }
 0xc1b   :  { %v7461_v17 = vpop.permute.xlu0 %7460 }
 0xc1d   :  { %6702 = vrot.lane.b32.xlu2 %v6551_v27, %s9491_s27  ;;  %v6580_v27 = vld [vmem:[#allocation3 + $0x2d0] sm:$0xff] }
 0xc1f   :  { %v7078_v35 = vpop.permute.xlu2 %7077  ;;  %7087 = vrot.lane.b32.xlu1 %v6936_v24, %s9490_s20 }
 0xc21   :  { %6704 = vrot.lane.b32.xlu0 %v6552_v2, %s9491_s27  ;;  %v7076_v42 = vpop.permute.xlu1 %7075  ;;  %v7724_v8 = vld [vmem:[#allocation2 + $0x148] sm:$0xff] }
 0xc22   :  { %7251 = vst.msk [vmem:[#allocation2 + $0x88] sm:$0xff] %vm7233_vm8, %v7076_v42  ;;  %9421 = vmatmul.msk.f32.gmra.mxu2 %vm7756_vm10, %v7724_v8  ;;  %v6965_v8 = vld [vmem:[#allocation3 + $0x2d1] sm:$0xff] }
 0xc23   :  { %v6693_v5 = vpop.permute.xlu0 %6692  ;;  %7636 = vst.msk [vmem:[#allocation2 + $0x88] sm:$0xff] %vm7618_vm9, %v7461_v17  ;;  %v6940_v17 = vld [vmem:[#allocation3 + $0x171] sm:$0xff] }
 0xc24   :  { %6867 = vst.msk [vmem:[#allocation2 + $0x90] sm:$0xff] %vm6848_vm7, %v6693_v5  ;;  %v7325_v5 = vld [vmem:[#allocation3 + $0x172] sm:$0xff] }
 0xc25   :  { %6752 = vrot.lane.b32.xlu2 %v6576_v13, %s9491_s27  ;;  %7252 = vst.msk [vmem:[#allocation2 + $0x90] sm:$0xff] %vm7233_vm8, %v7078_v35  ;;  %v7350_v13 = vld [vmem:[#allocation3 + $0x2d2] sm:$0xff] }
 0xc27   :  { %v7128_v0 = vpop.permute.xlu2 %7127  ;;  %7137 = vrot.lane.b32.xlu1 %v6961_v12, %s9490_s20 }
 0xc29   :  { %6754 = vrot.lane.b32.xlu0 %v6577_v33, %s9491_s27  ;;  %v7126_v15 = vpop.permute.xlu1 %7125 }
 0xc2a   :  { %7276 = vst.msk [vmem:[#allocation2 + $0x150] sm:$0xff] %vm7233_vm8, %v7126_v15  ;;  %v7700_v47 = vld [vmem:[#allocation2 + $0x88] sm:$0xff]  ;;  %v6556_v15 = vld [vmem:[#allocation3 + $0x180] sm:$0xff] }
 0xc2b   :  { %v6743_v20 = vpop.permute.xlu0 %6742  ;;  %7661 = vst.msk [vmem:[#allocation2 + $0x150] sm:$0xff] %vm7618_vm9, %v7511_v52  ;;  %9397 = vmatmul.msk.f32.gmra.mxu1 %vm7756_vm10, %v7700_v47  ;;  %v14818_v47 = vld [vmem:[#allocation3 + $0x182] sm:$0xff] }
 0xc2d   :  { %7522 = vrot.lane.b32.xlu2 %v7346_v45, %s9489_s3 }
 0xc2f   :  { %v6359_v6 = vpop.permute.xlu2 %6358  ;;  %6368 = vrot.lane.b32.xlu1 %v7345_v43, %s9488_s2 }
 0xc30   :  { %6507 = vst.msk [vmem:[#allocation2 + $0x160] sm:$0xff] %vm6462_vm6, %v6359_v6 }
 0xc31   :  { %7524 = vrot.lane.b32.xlu0 %v7347_v34, %s9489_s3  ;;  %v6357_v40 = vpop.permute.xlu1 %6356 }
 0xc32   :  { %6506 = vst.msk [vmem:[#allocation2 + $0x158] sm:$0xff] %vm6462_vm6, %v6357_v40  ;;  %v7725_v25 = vld [vmem:[#allocation2 + $0x150] sm:$0xff]  ;;  %v6581_v40 = vld [vmem:[#allocation3 + $0x2d8] sm:$0xff] }
 0xc33   :  { %v7513_v60 = vpop.permute.xlu0 %7512  ;;  %6892 = vst.msk [vmem:[#allocation2 + $0x158] sm:$0xff] %vm6848_vm7, %v6743_v20  ;;  %9422 = vmatmul.msk.f32.gmra.mxu2 %vm7756_vm10, %v7725_v25  ;;  %v6941_v25 = vld [vmem:[#allocation3 + $0x181] sm:$0xff] }
 0xc34   :  { %7277 = vst.msk [vmem:[#allocation2 + $0x158] sm:$0xff] %vm7233_vm8, %v7128_v0 }
 0xc35   :  { %7089 = vrot.lane.b32.xlu2 %v6937_v9, %s9490_s20  ;;  %7662 = vst.msk [vmem:[#allocation2 + $0x158] sm:$0xff] %vm7618_vm9, %v7513_v60 }
 0xc37   :  { %v7465_v36 = vpop.permute.xlu2 %7464  ;;  %7474 = vrot.lane.b32.xlu1 %v7322_v19, %s9489_s3 }
 0xc39   :  { %6370 = vrot.lane.b32.xlu0 %v7346_v45, %s9488_s2  ;;  %v7463_v7 = vpop.permute.xlu1 %7462 }
 0xc3a   :  { %7637 = vst.msk [vmem:[#allocation2 + $0x90] sm:$0xff] %vm7618_vm9, %v7463_v7  ;;  %v6966_v7 = vld [vmem:[#allocation3 + $0x2d9] sm:$0xff] }
 0xc3b   :  { %v7080_v21 = vpop.permute.xlu0 %7079 }
 0xc3c   :  { %v7726_v57 = vld [vmem:[#allocation2 + $0x158] sm:$0xff] }
 0xc3d   :  { %7139 = vrot.lane.b32.xlu2 %v6962_v38, %s9490_s20  ;;  %9423 = vmatmul.msk.f32.gmra.mxu2 %vm7756_vm10, %v7726_v57 }
 0xc3f   :  { %v6697_v46 = vpop.permute.xlu2 %6696  ;;  %6320 = vrot.lane.b32.xlu1 %v7321_v49, %s9488_s2 }
 0xc40   :  { %6869 = vst.msk [vmem:[#allocation2 + $0xa0] sm:$0xff] %vm6848_vm7, %v6697_v46  ;;  %v7351_v46 = vld [vmem:[#allocation3 + $0x2da] sm:$0xff] }
 0xc41   :  { %7476 = vrot.lane.b32.xlu0 %v7323_v22, %s9489_s3  ;;  %v6695_v10 = vpop.permute.xlu1 %6694  ;;  %v7701_v29 = vld [vmem:[#allocation2 + $0x90] sm:$0xff] }
 0xc42   :  { %6868 = vst.msk [vmem:[#allocation2 + $0x98] sm:$0xff] %vm6848_vm7, %v6695_v10  ;;  %9398 = vmatmul.msk.f32.gmra.mxu1 %vm7756_vm10, %v7701_v29  ;;  %v6557_v10 = vld [vmem:[#allocation3 + $0x188] sm:$0xff] }
 0xc43   :  { %v7130_v62 = vpop.permute.xlu0 %7129  ;;  %7253 = vst.msk [vmem:[#allocation2 + $0x98] sm:$0xff] %vm7233_vm8, %v7080_v21  ;;  %v6942_v21 = vld [vmem:[#allocation3 + $0x189] sm:$0xff] }
 0xc44   :  { %7638 = vst.msk [vmem:[#allocation2 + $0x98] sm:$0xff] %vm7618_vm9, %v7465_v36  ;;  %v6967_v29 = vld [vmem:[#allocation3 + $0x2e9] sm:$0xff] }
 0xc45   :  { %6706 = vrot.lane.b32.xlu2 %v6553_v23, %s9491_s27 }
 0xc47   :  { %v6747_v39 = vpop.permute.xlu2 %6746  ;;  %7091 = vrot.lane.b32.xlu1 %v6938_v48, %s9490_s20 }
 0xc49   :  { %6322 = vrot.lane.b32.xlu0 %v7322_v19, %s9488_s2  ;;  %v6745_v58 = vpop.permute.xlu1 %6744 }
 0xc4a   :  { %6893 = vst.msk [vmem:[#allocation2 + $0x160] sm:$0xff] %vm6848_vm7, %v6745_v58  ;;  %v6558_v58 = vld [vmem:[#allocation3 + $0x198] sm:$0xff] }
 0xc4b   :  { %v6361_v61 = vpop.permute.xlu0 %6360  ;;  %7278 = vst.msk [vmem:[#allocation2 + $0x160] sm:$0xff] %vm7233_vm8, %v7130_v62  ;;  %v7702_v32 = vld [vmem:[#allocation2 + $0x98] sm:$0xff] }
 0xc4c   :  { %9399 = vmatmul.msk.f32.gmra.mxu1 %vm7756_vm10, %v7702_v32  ;;  %6508 = vst.msk [vmem:[#allocation2 + $0x168] sm:$0xff] %vm6462_vm6, %v6361_v61  ;;  %v7327_v61 = vld [vmem:[#allocation3 + $0x18a] sm:$0xff] }
 0xc4d   :  { %6756 = vrot.lane.b32.xlu2 %v6578_v30, %s9491_s27  ;;  %6894 = vst.msk [vmem:[#allocation2 + $0x168] sm:$0xff] %vm6848_vm7, %v6747_v39  ;;  %v6582_v32 = vld [vmem:[#allocation3 + $0x2e8] sm:$0xff] }
 0xc4f   :  { %v7517_v55 = vpop.permute.xlu2 %7516  ;;  %7141 = vrot.lane.b32.xlu1 %v6963_v37, %s9490_s20 }
 0xc51   :  { %7093 = vrot.lane.b32.xlu0 %v6939_v11, %s9490_s20  ;;  %v7515_v53 = vpop.permute.xlu1 %7514 }
 0xc52   :  { %7663 = vst.msk [vmem:[#allocation2 + $0x160] sm:$0xff] %vm7618_vm9, %v7515_v53  ;;  %v7352_v53 = vld [vmem:[#allocation3 + $0x2ea] sm:$0xff] }
 0xc53   :  { %v7467_v44 = vpop.permute.xlu0 %7466 }
 0xc55   :  { %7526 = vrot.lane.b32.xlu2 %v7348_v59, %s9489_s3 }
 0xc57   :  { %v7084_v3 = vpop.permute.xlu2 %7083  ;;  %6708 = vrot.lane.b32.xlu1 %v6554_v26, %s9491_s27 }
 0xc59   :  { %7143 = vrot.lane.b32.xlu0 %v6964_v56, %s9490_s20  ;;  %v7082_v4 = vpop.permute.xlu1 %7081  ;;  %v7727_v16 = vld [vmem:[#allocation2 + $0x160] sm:$0xff] }
 0xc5a   :  { %7254 = vst.msk [vmem:[#allocation2 + $0xa0] sm:$0xff] %vm7233_vm8, %v7082_v4  ;;  %9424 = vmatmul.msk.f32.gmra.mxu2 %vm7756_vm10, %v7727_v16  ;;  %v6943_v4 = vld [vmem:[#allocation3 + $0x199] sm:$0xff] }
 0xc5b   :  { %v6699_v51 = vpop.permute.xlu0 %6698  ;;  %7639 = vst.msk [vmem:[#allocation2 + $0xa0] sm:$0xff] %vm7618_vm9, %v7467_v44  ;;  %v6583_v44 = vld [vmem:[#allocation3 + $0x2f0] sm:$0xff] }
 0xc5c   :  { %6870 = vst.msk [vmem:[#allocation2 + $0xa8] sm:$0xff] %vm6848_vm7, %v6699_v51  ;;  %v7353_v51 = vld [vmem:[#allocation3 + $0x2f2] sm:$0xff] }
 0xc5d   :  { %6372 = vrot.lane.b32.xlu2 %v7347_v34, %s9488_s2  ;;  %7255 = vst.msk [vmem:[#allocation2 + $0xa8] sm:$0xff] %vm7233_vm8, %v7084_v3 }
 0xc5f   :  { %v7134_v54 = vpop.permute.xlu2 %7133  ;;  %6758 = vrot.lane.b32.xlu1 %v6579_v14, %s9491_s27 }
 0xc61   :  { %6710 = vrot.lane.b32.xlu0 %v6555_v28, %s9491_s27  ;;  %v7132_v52 = vpop.permute.xlu1 %7131 }
 0xc62   :  { %7279 = vst.msk [vmem:[#allocation2 + $0x168] sm:$0xff] %vm7233_vm8, %v7132_v52  ;;  %v7703_v31 = vld [vmem:[#allocation2 + $0xa0] sm:$0xff] }
 0xc63   :  { %v6749_v18 = vpop.permute.xlu0 %6748  ;;  %7664 = vst.msk [vmem:[#allocation2 + $0x168] sm:$0xff] %vm7618_vm9, %v7517_v55  ;;  %9400 = vmatmul.msk.f32.gmra.mxu1 %vm7756_vm10, %v7703_v31  ;;  %v7328_v31 = vld [vmem:[#allocation3 + $0x19a] sm:$0xff] }
 0xc65   :  { %7478 = vrot.lane.b32.xlu2 %v7324_v41, %s9489_s3 }
 0xc67   :  { %v6365_v1 = vpop.permute.xlu2 %6364  ;;  %7528 = vrot.lane.b32.xlu1 %v7349_v63, %s9489_s3 }
 0xc68   :  { %6510 = vst.msk [vmem:[#allocation2 + $0x178] sm:$0xff] %vm6462_vm6, %v6365_v1  ;;  %v14865_v1 = vpop.f32.mrf.mxu1 }
 0xc69   :  { %6760 = vrot.lane.b32.xlu0 %v6580_v27, %s9491_s27  ;;  %v6363_v49 = vpop.permute.xlu1 %6362 }
 0xc6a   :  { %6509 = vst.msk [vmem:[#allocation2 + $0x170] sm:$0xff] %vm6462_vm6, %v6363_v49  ;;  %v7728_v35 = vld [vmem:[#allocation2 + $0x168] sm:$0xff]  ;;  %v6559_v49 = vld [vmem:[#allocation3 + $0x1a0] sm:$0xff] }
 0xc6b   :  { %v7519_v50 = vpop.permute.xlu0 %7518  ;;  %6895 = vst.msk [vmem:[#allocation2 + $0x170] sm:$0xff] %vm6848_vm7, %v6749_v18  ;;  %9425 = vmatmul.msk.f32.gmra.mxu2 %vm7756_vm10, %v7728_v35  ;;  %v6968_v18 = vld [vmem:[#allocation3 + $0x2f1] sm:$0xff]  ;;  %v7329_v35 = vld [vmem:[#allocation3 + $0x1a2] sm:$0xff] }
 0xc6c   :  { %7280 = vst.msk [vmem:[#allocation2 + $0x170] sm:$0xff] %vm7233_vm8, %v7134_v54 }
 0xc6d   :  { %6324 = vrot.lane.b32.xlu2 %v7323_v22, %s9488_s2  ;;  %7665 = vst.msk [vmem:[#allocation2 + $0x170] sm:$0xff] %vm7618_vm9, %v7519_v50 }
 0xc6f   :  { %v7471_v43 = vpop.permute.xlu2 %7470  ;;  %6374 = vrot.lane.b32.xlu1 %v7348_v59, %s9488_s2 }
 0xc71   :  { %7530 = vrot.lane.b32.xlu0 %v7350_v13, %s9489_s3  ;;  %v7469_v2 = vpop.permute.xlu1 %7468 }
 0xc72   :  { %7640 = vst.msk [vmem:[#allocation2 + $0xa8] sm:$0xff] %vm7618_vm9, %v7469_v2  ;;  %v14881_v2 = vpop.f32.mrf.mxu1 }
 0xc73   :  { %v7086_v0 = vpop.permute.xlu0 %7085 }
 0xc74   :  { %v7729_v42 = vld [vmem:[#allocation2 + $0x170] sm:$0xff] }
 0xc75   :  { %7095 = vrot.lane.b32.xlu2 %v6940_v17, %s9490_s20  ;;  %9426 = vmatmul.msk.f32.gmra.mxu2 %vm7756_vm10, %v7729_v42  ;;  %v6584_v42 = vld [vmem:[#allocation3 + $0x300] sm:$0xff] }
 0xc77   :  { %v6703_v24 = vpop.permute.xlu2 %6702  ;;  %7480 = vrot.lane.b32.xlu1 %v7325_v5, %s9489_s3 }
 0xc78   :  { %6872 = vst.msk [vmem:[#allocation2 + $0xb8] sm:$0xff] %vm6848_vm7, %v6703_v24 }
 0xc79   :  { %6376 = vrot.lane.b32.xlu0 %v7349_v63, %s9488_s2  ;;  %v6701_v12 = vpop.permute.xlu1 %6700  ;;  %v7704_v33 = vld [vmem:[#allocation2 + $0xa8] sm:$0xff] }
 0xc7a   :  { %6871 = vst.msk [vmem:[#allocation2 + $0xb0] sm:$0xff] %vm6848_vm7, %v6701_v12  ;;  %9401 = vmatmul.msk.f32.gmra.mxu1 %vm7756_vm10, %v7704_v33  ;;  %v7354_v33 = vld [vmem:[#allocation3 + $0x302] sm:$0xff] }
 0xc7b   :  { %v7136_v6 = vpop.permute.xlu0 %7135  ;;  %7256 = vst.msk [vmem:[#allocation2 + $0xb0] sm:$0xff] %vm7233_vm8, %v7086_v0  ;;  %v6944_v0 = vld [vmem:[#allocation3 + $0x1a1] sm:$0xff] }
 0xc7c   :  { %7641 = vst.msk [vmem:[#allocation2 + $0xb0] sm:$0xff] %vm7618_vm9, %v7471_v43 }
 0xc7d   :  { %7145 = vrot.lane.b32.xlu2 %v6965_v8, %s9490_s20 }
 0xc7f   :  { %v6753_v45 = vpop.permute.xlu2 %6752  ;;  %6326 = vrot.lane.b32.xlu1 %v7324_v41, %s9488_s2 }
 0xc81   :  { %7482 = vrot.lane.b32.xlu0 %v14818_v47, %s9489_s3  ;;  %v6751_v9 = vpop.permute.xlu1 %6750 }
 0xc82   :  { %6896 = vst.msk [vmem:[#allocation2 + $0x178] sm:$0xff] %vm6848_vm7, %v6751_v9 }
 0xc83   :  { %v6367_v34 = vpop.permute.xlu0 %6366  ;;  %7281 = vst.msk [vmem:[#allocation2 + $0x178] sm:$0xff] %vm7233_vm8, %v7136_v6  ;;  %v7705_v36 = vld [vmem:[#allocation2 + $0xb0] sm:$0xff]  ;;  %v6969_v6 = vld [vmem:[#allocation3 + $0x301] sm:$0xff] }
 0xc84   :  { %9402 = vmatmul.msk.f32.gmra.mxu1 %vm7756_vm10, %v7705_v36  ;;  %6511 = vst.msk [vmem:[#allocation2 + $0x180] sm:$0xff] %vm6462_vm6, %v6367_v34 }
 0xc85   :  { %6712 = vrot.lane.b32.xlu2 %v6556_v15, %s9491_s27  ;;  %6897 = vst.msk [vmem:[#allocation2 + $0x180] sm:$0xff] %vm6848_vm7, %v6753_v45  ;;  %v14892_v15 = vpop.f32.mrf.mxu1 }
 0xc87   :  { %v7523_v20 = vpop.permute.xlu2 %7522  ;;  %7097 = vrot.lane.b32.xlu1 %v6941_v25, %s9490_s20  ;;  %v6585_v25 = vld [vmem:[#allocation3 + $0x308] sm:$0xff] }
 0xc89   :  { %6328 = vrot.lane.b32.xlu0 %v7325_v5, %s9488_s2  ;;  %v7521_v38 = vpop.permute.xlu1 %7520 }
 0xc8a   :  { %7666 = vst.msk [vmem:[#allocation2 + $0x178] sm:$0xff] %vm7618_vm9, %v7521_v38 }
 0xc8b   :  { %v7473_v19 = vpop.permute.xlu0 %7472 }
 0xc8d   :  { %6762 = vrot.lane.b32.xlu2 %v6581_v40, %s9491_s27  ;;  %v6970_v40 = vld [vmem:[#allocation3 + $0x309] sm:$0xff]  ;;  %v14905_v38 = vpop.f32.mrf.mxu1 }
 0xc8e   :  { %16299 = vst [vmem:[#allocation25_spill] sm:$0xff] %v14905_v38 }
 0xc8f   :  { %v7090_v60 = vpop.permute.xlu2 %7089  ;;  %7147 = vrot.lane.b32.xlu1 %v6966_v7, %s9490_s20 }
 0xc91   :  { %7099 = vrot.lane.b32.xlu0 %v6942_v21, %s9490_s20  ;;  %v7088_v23 = vpop.permute.xlu1 %7087  ;;  %v7730_v22 = vld [vmem:[#allocation2 + $0x178] sm:$0xff] }
 0xc92   :  { %7257 = vst.msk [vmem:[#allocation2 + $0xb8] sm:$0xff] %vm7233_vm8, %v7088_v23  ;;  %9427 = vmatmul.msk.f32.gmra.mxu2 %vm7756_vm10, %v7730_v22  ;;  %v6586_v21 = vld [vmem:[#allocation3 + $0x318] sm:$0xff] }
 0xc93   :  { %v6705_v39 = vpop.permute.xlu0 %6704  ;;  %7642 = vst.msk [vmem:[#allocation2 + $0xb8] sm:$0xff] %vm7618_vm9, %v7473_v19 }
 0xc94   :  { %6873 = vst.msk [vmem:[#allocation2 + $0xc0] sm:$0xff] %vm6848_vm7, %v6705_v39 }
 0xc95   :  { %7532 = vrot.lane.b32.xlu2 %v7351_v46, %s9489_s3  ;;  %7258 = vst.msk [vmem:[#allocation2 + $0xc0] sm:$0xff] %vm7233_vm8, %v7090_v60  ;;  %v6971_v60 = vld [vmem:[#allocation3 + $0x319] sm:$0xff] }
 0xc97   :  { %v7140_v57 = vpop.permute.xlu2 %7139  ;;  %6714 = vrot.lane.b32.xlu1 %v6557_v10, %s9491_s27  ;;  %v14911_v10 = vpop.f32.mrf.mxu1 }
 0xc98   :  { %16300 = vst [vmem:[#allocation30_spill] sm:$0xff] %v14911_v10 }
 0xc99   :  { %7149 = vrot.lane.b32.xlu0 %v6967_v29, %s9490_s20  ;;  %v7138_v30 = vpop.permute.xlu1 %7137 }
 0xc9a   :  { %7282 = vst.msk [vmem:[#allocation2 + $0x180] sm:$0xff] %vm7233_vm8, %v7138_v30  ;;  %v7706_v48 = vld [vmem:[#allocation2 + $0xb8] sm:$0xff] }
 0xc9b   :  { %v6755_v55 = vpop.permute.xlu0 %6754  ;;  %7667 = vst.msk [vmem:[#allocation2 + $0x180] sm:$0xff] %vm7618_vm9, %v7523_v20  ;;  %9403 = vmatmul.msk.f32.gmra.mxu1 %vm7756_vm10, %v7706_v48 }
 0xc9d   :  { %6378 = vrot.lane.b32.xlu2 %v7350_v13, %s9488_s2 }
 0xc9f   :  { %v6707_v62 = vpop.permute.xlu2 %6706  ;;  %6764 = vrot.lane.b32.xlu1 %v6582_v32, %s9491_s27  ;;  %v7357_v32 = vld [vmem:[#allocation3 + $0x322] sm:$0xff] }
 0xca1   :  { %6716 = vrot.lane.b32.xlu0 %v6558_v58, %s9491_s27  ;;  %v6369_v37 = vpop.permute.xlu1 %6368  ;;  %v14923_v58 = vpop.f32.mrf.mxu1 }
 0xca2   :  { %6512 = vst.msk [vmem:[#allocation2 + $0x188] sm:$0xff] %vm6462_vm6, %v6369_v37  ;;  %v7731_v11 = vld [vmem:[#allocation2 + $0x180] sm:$0xff]  ;;  %v7358_v37 = vld [vmem:[#allocation3 + $0x332] sm:$0xff] }
 0xca3   :  { %v7525_v3 = vpop.permute.xlu0 %7524  ;;  %6898 = vst.msk [vmem:[#allocation2 + $0x188] sm:$0xff] %vm6848_vm7, %v6755_v55  ;;  %9428 = vmatmul.msk.f32.gmra.mxu2 %vm7756_vm10, %v7731_v11 }
 0xca4   :  { %7283 = vst.msk [vmem:[#allocation2 + $0x188] sm:$0xff] %vm7233_vm8, %v7140_v57  ;;  %v6587_v57 = vld [vmem:[#allocation3 + $0x320] sm:$0xff] }
 0xca5   :  { %7484 = vrot.lane.b32.xlu2 %v7327_v61, %s9489_s3  ;;  %7668 = vst.msk [vmem:[#allocation2 + $0x188] sm:$0xff] %vm7618_vm9, %v7525_v3 }
 0xca6   :  { %16301 = vst [vmem:[#allocation32_spill] sm:$0xff] %v14923_v58 }
 0xca7   :  { %v6757_v59 = vpop.permute.xlu2 %6756  ;;  %7534 = vrot.lane.b32.xlu1 %v7352_v53, %s9489_s3 }
 0xca9   :  { %6766 = vrot.lane.b32.xlu0 %v6583_v44, %s9491_s27  ;;  %v7475_v56 = vpop.permute.xlu1 %7474 }
 0xcaa   :  { %7643 = vst.msk [vmem:[#allocation2 + $0xc0] sm:$0xff] %vm7618_vm9, %v7475_v56  ;;  %v6588_v56 = vld [vmem:[#allocation3 + $0x330] sm:$0xff] }
 0xcab   :  { %v6371_v54 = vpop.permute.xlu0 %6370 }
 0xcac   :  { %6513 = vst.msk [vmem:[#allocation2 + $0x190] sm:$0xff] %vm6462_vm6, %v6371_v54  ;;  %v7732_v16 = vld [vmem:[#allocation2 + $0x188] sm:$0xff]  ;;  %v14934_v54 = vpop.f32.mrf.mxu1 }
 0xcad   :  { %6330 = vrot.lane.b32.xlu2 %v14818_v47, %s9488_s2  ;;  %6899 = vst.msk [vmem:[#allocation2 + $0x190] sm:$0xff] %vm6848_vm7, %v6757_v59  ;;  %9429 = vmatmul.msk.f32.gmra.mxu2 %vm7756_vm10, %v7732_v16  ;;  %v7355_v47 = vld [vmem:[#allocation3 + $0x30a] sm:$0xff]  ;;  %v6972_v59 = vld [vmem:[#allocation3 + $0x321] sm:$0xff] }
 0xcaf   :  { %v7527_v26 = vpop.permute.xlu2 %7526  ;;  %6380 = vrot.lane.b32.xlu1 %v7351_v46, %s9488_s2 }
 0xcb1   :  { %7536 = vrot.lane.b32.xlu0 %v7353_v51, %s9489_s3  ;;  %v6321_v14 = vpop.permute.xlu1 %6320  ;;  %v7707_v28 = vld [vmem:[#allocation2 + $0xc0] sm:$0xff] }
 0xcb2   :  { %6488 = vst.msk [vmem:[#allocation2 + $0xc8] sm:$0xff] %vm6462_vm6, %v6321_v14  ;;  %9404 = vmatmul.msk.f32.gmra.mxu1 %vm7756_vm10, %v7707_v28  ;;  %v6590_v14 = vld [vmem:[#allocation3 + $0x348] sm:$0xff]  ;;  %v6589_v28 = vld [vmem:[#allocation3 + $0x338] sm:$0xff] }
 0xcb3   :  { %v7477_v52 = vpop.permute.xlu0 %7476  ;;  %6874 = vst.msk [vmem:[#allocation2 + $0xc8] sm:$0xff] %vm6848_vm7, %v6707_v62  ;;  %v7356_v62 = vld [vmem:[#allocation3 + $0x31a] sm:$0xff] }
 0xcb5   :  { %7101 = vrot.lane.b32.xlu2 %v6943_v4, %s9490_s20  ;;  %v6974_v4 = vld [vmem:[#allocation3 + $0x339] sm:$0xff] }
 0xcb7   :  { %v6373_v41 = vpop.permute.xlu2 %6372  ;;  %7486 = vrot.lane.b32.xlu1 %v7328_v31, %s9489_s3 }
 0xcb8   :  { %6514 = vst.msk [vmem:[#allocation2 + $0x198] sm:$0xff] %vm6462_vm6, %v6373_v41 }
 0xcb9   :  { %6382 = vrot.lane.b32.xlu0 %v7352_v53, %s9488_s2  ;;  %v7092_v27 = vpop.permute.xlu1 %7091 }
 0xcba   :  { %7259 = vst.msk [vmem:[#allocation2 + $0xc8] sm:$0xff] %vm7233_vm8, %v7092_v27 }
 0xcbb   :  { %v6323_v43 = vpop.permute.xlu0 %6322  ;;  %7644 = vst.msk [vmem:[#allocation2 + $0xc8] sm:$0xff] %vm7618_vm9, %v7477_v52  ;;  %v14945_v52 = vpop.f32.mrf.mxu1 }
 0xcbc   :  { %6489 = vst.msk [vmem:[#allocation2 + $0xd0] sm:$0xff] %vm6462_vm6, %v6323_v43  ;;  %v7359_v43 = vld [vmem:[#allocation3 + $0x33a] sm:$0xff] }
 0xcbd   :  { %7151 = vrot.lane.b32.xlu2 %v6968_v18, %s9490_s20 }
 0xcbf   :  { %v7479_v63 = vpop.permute.xlu2 %7478  ;;  %6332 = vrot.lane.b32.xlu1 %v7327_v61, %s9488_s2 }
 0xcc1   :  { %7488 = vrot.lane.b32.xlu0 %v7329_v35, %s9489_s3  ;;  %v7142_v17 = vpop.permute.xlu1 %7141 }
 0xcc2   :  { %7284 = vst.msk [vmem:[#allocation2 + $0x190] sm:$0xff] %vm7233_vm8, %v7142_v17  ;;  %v7708_v13 = vld [vmem:[#allocation2 + $0xc8] sm:$0xff] }
 0xcc3   :  { %v7094_v24 = vpop.permute.xlu0 %7093  ;;  %7669 = vst.msk [vmem:[#allocation2 + $0x190] sm:$0xff] %vm7618_vm9, %v7527_v26  ;;  %9405 = vmatmul.msk.f32.gmra.mxu1 %vm7756_vm10, %v7708_v13  ;;  %v6973_v26 = vld [vmem:[#allocation3 + $0x331] sm:$0xff] }
 0xcc5   :  { %6718 = vrot.lane.b32.xlu2 %v6559_v49, %s9491_s27  ;;  %v14954_v49 = vpop.f32.mrf.mxu1 }
 0xcc7   :  { %v6325_v50 = vpop.permute.xlu2 %6324  ;;  %7103 = vrot.lane.b32.xlu1 %v6944_v0, %s9490_s20  ;;  %v7360_v0 = vld [vmem:[#allocation3 + $0x34a] sm:$0xff] }
 0xcc8   :  { %6490 = vst.msk [vmem:[#allocation2 + $0xd8] sm:$0xff] %vm6462_vm6, %v6325_v50 }
 0xcc9   :  { %6384 = vrot.lane.b32.xlu0 %v7353_v51, %s9488_s2  ;;  %v6709_v5 = vpop.permute.xlu1 %6708 }
 0xcca   :  { %6875 = vst.msk [vmem:[#allocation2 + $0xd0] sm:$0xff] %vm6848_vm7, %v6709_v5  ;;  %v7733_v45 = vld [vmem:[#allocation2 + $0x190] sm:$0xff] }
 0xccb   :  { %v7144_v12 = vpop.permute.xlu0 %7143  ;;  %7260 = vst.msk [vmem:[#allocation2 + $0xd0] sm:$0xff] %vm7233_vm8, %v7094_v24  ;;  %9430 = vmatmul.msk.f32.gmra.mxu2 %vm7756_vm10, %v7733_v45  ;;  %v6975_v24 = vld [vmem:[#allocation3 + $0x349] sm:$0xff] }
 0xccc   :  { %7645 = vst.msk [vmem:[#allocation2 + $0xd0] sm:$0xff] %vm7618_vm9, %v7479_v63 }
 0xccd   :  { %6768 = vrot.lane.b32.xlu2 %v6584_v42, %s9491_s27  ;;  %v7361_v42 = vld [vmem:[#allocation3 + $0x352] sm:$0xff] }
 0xccf   :  { %v7096_v8 = vpop.permute.xlu2 %7095  ;;  %7153 = vrot.lane.b32.xlu1 %v6969_v6, %s9490_s20  ;;  %v6591_v6 = vld [vmem:[#allocation3 + $0x350] sm:$0xff] }
 0xcd1   :  { %7540 = vrot.lane.b32.xlu0 %v7355_v47, %s9489_s3  ;;  %v6759_v9 = vpop.permute.xlu1 %6758 }
 0xcd2   :  { %6900 = vst.msk [vmem:[#allocation2 + $0x198] sm:$0xff] %vm6848_vm7, %v6759_v9 }
 0xcd3   :  { %v6711_v34 = vpop.permute.xlu0 %6710  ;;  %7285 = vst.msk [vmem:[#allocation2 + $0x198] sm:$0xff] %vm7233_vm8, %v7144_v12  ;;  %v7709_v36 = vld [vmem:[#allocation2 + $0xd0] sm:$0xff] }
 0xcd4   :  { %9406 = vmatmul.msk.f32.gmra.mxu1 %vm7756_vm10, %v7709_v36  ;;  %6876 = vst.msk [vmem:[#allocation2 + $0xd8] sm:$0xff] %vm6848_vm7, %v6711_v34 }
 0xcd5   :  { %7538 = vrot.lane.b32.xlu2 %v7354_v33, %s9489_s3  ;;  %7261 = vst.msk [vmem:[#allocation2 + $0xd8] sm:$0xff] %vm7233_vm8, %v7096_v8  ;;  %v14963_v8 = vpop.f32.mrf.mxu1 }
 0xcd7   :  { %v7146_v20 = vpop.permute.xlu2 %7145  ;;  %6770 = vrot.lane.b32.xlu1 %v6585_v25, %s9491_s27 }
 0xcd9   :  { %7157 = vrot.lane.b32.xlu0 %v6971_v60, %s9490_s20  ;;  %v7529_v46 = vpop.permute.xlu1 %7528 }
 0xcda   :  { %7670 = vst.msk [vmem:[#allocation2 + $0x198] sm:$0xff] %vm7618_vm9, %v7529_v46 }
 0xcdb   :  { %v6761_v7 = vpop.permute.xlu0 %6760 }
 0xcdd   :  { %7155 = vrot.lane.b32.xlu2 %v6970_v40, %s9490_s20  ;;  %v14974_v9 = vpop.f32.mrf.mxu1 }
 0xcdf   :  { %v6713_v19 = vpop.permute.xlu2 %6712  ;;  %6386 = vrot.lane.b32.xlu1 %v7354_v33, %s9488_s2 }
 0xce1   :  { %6774 = vrot.lane.b32.xlu0 %v6587_v57, %s9491_s27  ;;  %v6375_v22 = vpop.permute.xlu1 %6374  ;;  %v7734_v39 = vld [vmem:[#allocation2 + $0x198] sm:$0xff] }
 0xce2   :  { %6515 = vst.msk [vmem:[#allocation2 + $0x1a0] sm:$0xff] %vm6462_vm6, %v6375_v22  ;;  %9431 = vmatmul.msk.f32.gmra.mxu2 %vm7756_vm10, %v7734_v39 }
 0xce3   :  { %v7531_v29 = vpop.permute.xlu0 %7530  ;;  %6901 = vst.msk [vmem:[#allocation2 + $0x1a0] sm:$0xff] %vm6848_vm7, %v6761_v7 }
 0xce4   :  { %7286 = vst.msk [vmem:[#allocation2 + $0x1a0] sm:$0xff] %vm7233_vm8, %v7146_v20  ;;  %v14972_v20 = vpop.f32.mrf.mxu2 }
 0xce5   :  { %6772 = vrot.lane.b32.xlu2 %v6586_v21, %s9491_s27  ;;  %7671 = vst.msk [vmem:[#allocation2 + $0x1a0] sm:$0xff] %vm7618_vm9, %v7531_v29  ;;  %v14979_v60 = vpop.f32.mrf.mxu1 }
 0xce6   :  { %16302 = vst [vmem:[#allocation34_spill] sm:$0xff] %v14972_v20 }
 0xce7   :  { %v6763_v23 = vpop.permute.xlu2 %6762  ;;  %7542 = vrot.lane.b32.xlu1 %v7356_v62, %s9489_s3 }
 0xce9   :  { %6390 = vrot.lane.b32.xlu0 %v7356_v62, %s9488_s2  ;;  %v7481_v48 = vpop.permute.xlu1 %7480 }
 0xcea   :  { %7646 = vst.msk [vmem:[#allocation2 + $0xd8] sm:$0xff] %vm7618_vm9, %v7481_v48 }
 0xceb   :  { %v6377_v55 = vpop.permute.xlu0 %6376 }
 0xcec   :  { %6516 = vst.msk [vmem:[#allocation2 + $0x1a8] sm:$0xff] %vm6462_vm6, %v6377_v55  ;;  %v7735_v61 = vld [vmem:[#allocation2 + $0x1a0] sm:$0xff]  ;;  %v14977_v25 = vpop.f32.mrf.mxu2 }
 0xced   :  { %6388 = vrot.lane.b32.xlu2 %v7355_v47, %s9488_s2  ;;  %6902 = vst.msk [vmem:[#allocation2 + $0x1a8] sm:$0xff] %vm6848_vm7, %v6763_v23  ;;  %9432 = vmatmul.msk.f32.gmra.mxu2 %vm7756_vm10, %v7735_v61  ;;  %v6976_v47 = vld [vmem:[#allocation3 + $0x351] sm:$0xff]  ;;  %v14988_v23 = vpop.f32.mrf.mxu1 }
 0xcef   :  { %v7533_v30 = vpop.permute.xlu2 %7532  ;;  %7159 = vrot.lane.b32.xlu1 %v6972_v59, %s9490_s20 }
 0xcf1   :  { %7546 = vrot.lane.b32.xlu0 %v7358_v37, %s9489_s3  ;;  %v6327_v3 = vpop.permute.xlu1 %6326  ;;  %v7710_v53 = vld [vmem:[#allocation2 + $0xd8] sm:$0xff] }
 0xcf2   :  { %6491 = vst.msk [vmem:[#allocation2 + $0xe0] sm:$0xff] %vm6462_vm6, %v6327_v3  ;;  %9407 = vmatmul.msk.f32.gmra.mxu1 %vm7756_vm10, %v7710_v53 }
 0xcf3   :  { %v7483_v44 = vpop.permute.xlu0 %7482  ;;  %6877 = vst.msk [vmem:[#allocation2 + $0xe0] sm:$0xff] %vm6848_vm7, %v6713_v19 }
 0xcf4   :  { %v14986_v57 = vpop.f32.mrf.mxu2 }
 0xcf5   :  { %7544 = vrot.lane.b32.xlu2 %v7357_v32, %s9489_s3  ;;  %v14996_v48 = vpop.f32.mrf.mxu1 }
 0xcf7   :  { %v6379_v11 = vpop.permute.xlu2 %6378  ;;  %6776 = vrot.lane.b32.xlu1 %v6588_v56, %s9491_s27 }
 0xcf8   :  { %6517 = vst.msk [vmem:[#allocation2 + $0x1b0] sm:$0xff] %vm6462_vm6, %v6379_v11 }
 0xcf9   :  { %7163 = vrot.lane.b32.xlu0 %v6974_v4, %s9490_s20  ;;  %v7098_v51 = vpop.permute.xlu1 %7097 }
 0xcfa   :  { %7262 = vst.msk [vmem:[#allocation2 + $0xe0] sm:$0xff] %vm7233_vm8, %v7098_v51 }
 0xcfb   :  { %v6329_v41 = vpop.permute.xlu0 %6328  ;;  %7647 = vst.msk [vmem:[#allocation2 + $0xe0] sm:$0xff] %vm7618_vm9, %v7483_v44 }
 0xcfc   :  { %6492 = vst.msk [vmem:[#allocation2 + $0xe8] sm:$0xff] %vm6462_vm6, %v6329_v41 }
 0xcfd   :  { %7161 = vrot.lane.b32.xlu2 %v6973_v26, %s9490_s20  ;;  %v15003_v11 = vpop.f32.mrf.mxu1 }
 0xcff   :  { %v7485_v16 = vpop.permute.xlu2 %7484  ;;  %6392 = vrot.lane.b32.xlu1 %v7357_v32, %s9488_s2 }
 0xd01   :  { %6780 = vrot.lane.b32.xlu0 %v6590_v14, %s9491_s27  ;;  %v7148_v18 = vpop.permute.xlu1 %7147 }
 0xd02   :  { %7287 = vst.msk [vmem:[#allocation2 + $0x1a8] sm:$0xff] %vm7233_vm8, %v7148_v18  ;;  %v7711_v63 = vld [vmem:[#allocation2 + $0xe0] sm:$0xff] }
 0xd03   :  { %v7100_v27 = vpop.permute.xlu0 %7099  ;;  %7672 = vst.msk [vmem:[#allocation2 + $0x1a8] sm:$0xff] %vm7618_vm9, %v7533_v30  ;;  %9408 = vmatmul.msk.f32.gmra.mxu1 %vm7756_vm10, %v7711_v63  ;;  %v14994_v30 = vpop.f32.mrf.mxu2 }
 0xd04   :  { %16303 = vst [vmem:[#allocation36_spill] sm:$0xff] %v14994_v30 }
 0xd05   :  { %6778 = vrot.lane.b32.xlu2 %v6589_v28, %s9491_s27  ;;  %v15010_v56 = vpop.f32.mrf.mxu1 }
 0xd07   :  { %v6331_v31 = vpop.permute.xlu2 %6330  ;;  %7548 = vrot.lane.b32.xlu1 %v7359_v43, %s9489_s3 }
 0xd08   :  { %6493 = vst.msk [vmem:[#allocation2 + $0xf0] sm:$0xff] %vm6462_vm6, %v6331_v31 }
 0xd09   :  { %6396 = vrot.lane.b32.xlu0 %v7359_v43, %s9488_s2  ;;  %v6715_v50 = vpop.permute.xlu1 %6714 }
 0xd0a   :  { %6878 = vst.msk [vmem:[#allocation2 + $0xe8] sm:$0xff] %vm6848_vm7, %v6715_v50  ;;  %v7736_v17 = vld [vmem:[#allocation2 + $0x1a8] sm:$0xff] }
 0xd0b   :  { %v7150_v13 = vpop.permute.xlu0 %7149  ;;  %7263 = vst.msk [vmem:[#allocation2 + $0xe8] sm:$0xff] %vm7233_vm8, %v7100_v27  ;;  %9433 = vmatmul.msk.f32.gmra.mxu2 %vm7756_vm10, %v7736_v17 }
 0xd0c   :  { %7648 = vst.msk [vmem:[#allocation2 + $0xe8] sm:$0xff] %vm7618_vm9, %v7485_v16 }
 0xd0d   :  { %6394 = vrot.lane.b32.xlu2 %v7358_v37, %s9488_s2  ;;  %v15001_v37 = vpop.f32.mrf.mxu2  ;;  %v15018_v28 = vpop.f32.mrf.mxu1 }
 0xd0e   :  { %16304 = vst [vmem:[#allocation37_spill] sm:$0xff] %v15001_v37 }
 0xd0f   :  { %v7102_v35 = vpop.permute.xlu2 %7101  ;;  %7165 = vrot.lane.b32.xlu1 %v6975_v24, %s9490_s20 }
 0xd11   :  { %7552 = vrot.lane.b32.xlu0 %v7361_v42, %s9489_s3  ;;  %v6765_v45 = vpop.permute.xlu1 %6764 }
 0xd12   :  { %6903 = vst.msk [vmem:[#allocation2 + $0x1b0] sm:$0xff] %vm6848_vm7, %v6765_v45 }
 0xd13   :  { %v6717_v12 = vpop.permute.xlu0 %6716  ;;  %7288 = vst.msk [vmem:[#allocation2 + $0x1b0] sm:$0xff] %vm7233_vm8, %v7150_v13  ;;  %v7712_v33 = vld [vmem:[#allocation2 + $0xe8] sm:$0xff] }
 0xd14   :  { %9409 = vmatmul.msk.f32.gmra.mxu1 %vm7756_vm10, %v7712_v33  ;;  %6879 = vst.msk [vmem:[#allocation2 + $0xf0] sm:$0xff] %vm6848_vm7, %v6717_v12 }
 0xd15   :  { %7550 = vrot.lane.b32.xlu2 %v7360_v0, %s9489_s3  ;;  %7264 = vst.msk [vmem:[#allocation2 + $0xf0] sm:$0xff] %vm7233_vm8, %v7102_v35  ;;  %v15008_v26 = vpop.f32.mrf.mxu2  ;;  %v15026_v35 = vpop.f32.mrf.mxu1 }
 0xd17   :  { %v7152_v5 = vpop.permute.xlu2 %7151  ;;  %6782 = vrot.lane.b32.xlu1 %v6591_v6, %s9491_s27 }
 0xd19   :  { %v7535_v36 = vpop.permute.xlu1 %7534 }
 0xd1a   :  { %7673 = vst.msk [vmem:[#allocation2 + $0x1b0] sm:$0xff] %vm7618_vm9, %v7535_v36 }
 0xd1b   :  { %v6767_v40 = vpop.permute.xlu0 %6766 }
 0xd1d   :  { %7167 = vrot.lane.b32.xlu2 %v6976_v47, %s9490_s20  ;;  %v15016_v14 = vpop.f32.mrf.mxu2  ;;  %v15035_v42 = vpop.f32.mrf.mxu1 }
 0xd1f   :  { %v6719_v34 = vpop.permute.xlu2 %6718 }
 0xd21   :  { %v6381_v46 = vpop.permute.xlu1 %6380  ;;  %v7737_v7 = vld [vmem:[#allocation2 + $0x1b0] sm:$0xff] }
 0xd22   :  { %6518 = vst.msk [vmem:[#allocation2 + $0x1b8] sm:$0xff] %vm6462_vm6, %v6381_v46  ;;  %9434 = vmatmul.msk.f32.gmra.mxu2 %vm7756_vm10, %v7737_v7 }
 0xd23   :  { %v7537_v21 = vpop.permute.xlu0 %7536  ;;  %6904 = vst.msk [vmem:[#allocation2 + $0x1b8] sm:$0xff] %vm6848_vm7, %v6767_v40 }
 0xd24   :  { %7289 = vst.msk [vmem:[#allocation2 + $0x1b8] sm:$0xff] %vm7233_vm8, %v7152_v5 }
 0xd25   :  { %7674 = vst.msk [vmem:[#allocation2 + $0x1b8] sm:$0xff] %vm7618_vm9, %v7537_v21  ;;  %v15024_v43 = vpop.f32.mrf.mxu2  ;;  %v15041_v6 = vpop.f32.mrf.mxu1 }
 0xd26   :  { %16305 = vst [vmem:[#allocation38_spill] sm:$0xff] %v15024_v43 }
 0xd27   :  { %v6769_v19 = vpop.permute.xlu2 %6768 }
 0xd29   :  { %v7487_v39 = vpop.permute.xlu1 %7486 }
 0xd2a   :  { %7649 = vst.msk [vmem:[#allocation2 + $0xf0] sm:$0xff] %vm7618_vm9, %v7487_v39 }
 0xd2b   :  { %v6383_v29 = vpop.permute.xlu0 %6382 }
 0xd2c   :  { %6519 = vst.msk [vmem:[#allocation2 + $0x1c0] sm:$0xff] %vm6462_vm6, %v6383_v29  ;;  %v7738_v62 = vld [vmem:[#allocation2 + $0x1b8] sm:$0xff] }
 0xd2d   :  { %6905 = vst.msk [vmem:[#allocation2 + $0x1c0] sm:$0xff] %vm6848_vm7, %v6769_v19  ;;  %9435 = vmatmul.msk.f32.gmra.mxu2 %vm7756_vm10, %v7738_v62  ;;  %v15033_v0 = vpop.f32.mrf.mxu2  ;;  %v15049_v46 = vpop.f32.mrf.mxu1 }
 0xd2f   :  { %v7539_v22 = vpop.permute.xlu2 %7538 }
 0xd31   :  { %v6333_v61 = vpop.permute.xlu1 %6332  ;;  %v7713_v32 = vld [vmem:[#allocation2 + $0xf0] sm:$0xff] }
 0xd32   :  { %6494 = vst.msk [vmem:[#allocation2 + $0xf8] sm:$0xff] %vm6462_vm6, %v6333_v61  ;;  %9410 = vmatmul.msk.f32.gmra.mxu1 %vm7756_vm10, %v7713_v32 }
 0xd33   :  { %v7489_v59 = vpop.permute.xlu0 %7488  ;;  %6880 = vst.msk [vmem:[#allocation2 + $0xf8] sm:$0xff] %vm6848_vm7, %v6719_v34 }
 0xd35   :  { %v15039_v33 = vpop.f32.mrf.mxu2  ;;  %v15057_v29 = vpop.f32.mrf.mxu1 }
 0xd36   :  { %16306 = vst [vmem:[#allocation39_spill] sm:$0xff] %v15039_v33 }
 0xd37   :  { %v7156_v55 = vpop.permute.xlu2 %7155 }
 0xd39   :  { %v7104_v53 = vpop.permute.xlu1 %7103 }
 0xd3a   :  { %7265 = vst.msk [vmem:[#allocation2 + $0xf8] sm:$0xff] %vm7233_vm8, %v7104_v53 }
 0xd3b   :  { %v6385_v44 = vpop.permute.xlu0 %6384  ;;  %7650 = vst.msk [vmem:[#allocation2 + $0xf8] sm:$0xff] %vm7618_vm9, %v7489_v59 }
 0xd3c   :  { %6520 = vst.msk [vmem:[#allocation2 + $0x1c8] sm:$0xff] %vm6462_vm6, %v6385_v44 }
 0xd3d   :  { %v15047_v19 = vpop.f32.mrf.mxu2  ;;  %v15066_v59 = vpop.f32.mrf.mxu1 }
 0xd3e   :  { %16307 = vst [vmem:[#allocation40_spill] sm:$0xff] %v15047_v19 }
 0xd3f   :  { %v6773_v3 = vpop.permute.xlu2 %6772 }
 0xd41   :  { %v7154_v16 = vpop.permute.xlu1 %7153 }
 0xd42   :  { %7290 = vst.msk [vmem:[#allocation2 + $0x1c0] sm:$0xff] %vm7233_vm8, %v7154_v16  ;;  %v7714_v51 = vld [vmem:[#allocation2 + $0xf8] sm:$0xff] }
 0xd43   :  { %v7541_v41 = vpop.permute.xlu0 %7540  ;;  %7675 = vst.msk [vmem:[#allocation2 + $0x1c0] sm:$0xff] %vm7618_vm9, %v7539_v22  ;;  %9411 = vmatmul.msk.f32.gmra.mxu1 %vm7756_vm10, %v7714_v51 }
 0xd45   :  { %v15055_v39 = vpop.f32.mrf.mxu2  ;;  %v15072_v16 = vpop.f32.mrf.mxu1 }
 0xd47   :  { %v6389_v4 = vpop.permute.xlu2 %6388 }
 0xd48   :  { %6522 = vst.msk [vmem:[#allocation2 + $0x1d8] sm:$0xff] %vm6462_vm6, %v6389_v4 }
 0xd49   :  { %v6771_v18 = vpop.permute.xlu1 %6770 }
 0xd4a   :  { %6906 = vst.msk [vmem:[#allocation2 + $0x1c8] sm:$0xff] %vm6848_vm7, %v6771_v18  ;;  %v7739_v63 = vld [vmem:[#allocation2 + $0x1c0] sm:$0xff]  ;;  %v8158_v18 = vsel %vm3712_vm11, %v14865_v1, 0.0 }
 0xd4b   :  { %v7158_v27 = vpop.permute.xlu0 %7157  ;;  %7291 = vst.msk [vmem:[#allocation2 + $0x1c8] sm:$0xff] %vm7233_vm8, %v7156_v55  ;;  %9436 = vmatmul.msk.f32.gmra.mxu2 %vm7756_vm10, %v7739_v63  ;;  %v8161_v63 = vsel %vm3712_vm11, %v14892_v15, 0.0 }
 0xd4c   :  { %7676 = vst.msk [vmem:[#allocation2 + $0x1c8] sm:$0xff] %vm7618_vm9, %v7541_v41 }
 0xd4d   :  { %v15064_v32 = vpop.f32.mrf.mxu2 }
 0xd4e   :  { %16308 = vst [vmem:[#allocation41_spill] sm:$0xff] %v15064_v32 }
 0xd4f   :  { %v7545_v31 = vpop.permute.xlu2 %7544 }
 0xd51   :  { %v6387_v17 = vpop.permute.xlu1 %6386 }
 0xd52   :  { %6521 = vst.msk [vmem:[#allocation2 + $0x1d0] sm:$0xff] %vm6462_vm6, %v6387_v17 }
 0xd53   :  { %v6775_v13 = vpop.permute.xlu0 %6774  ;;  %6907 = vst.msk [vmem:[#allocation2 + $0x1d0] sm:$0xff] %vm6848_vm7, %v6773_v3  ;;  %v7740_v24 = vld [vmem:[#allocation2 + $0x1c8] sm:$0xff] }
 0xd54   :  { %7292 = vst.msk [vmem:[#allocation2 + $0x1d0] sm:$0xff] %vm7233_vm8, %v7158_v27  ;;  %9437 = vmatmul.msk.f32.gmra.mxu2 %vm7756_vm10, %v7740_v24  ;;  %v15087_v24 = vpop.f32.mrf.mxu1 }
 0xd55   :  { %6908 = vst.msk [vmem:[#allocation2 + $0x1d8] sm:$0xff] %vm6848_vm7, %v6775_v13  ;;  %v15070_v4 = vpop.f32.mrf.mxu2 }
 0xd56   :  { %16309 = vst [vmem:[#allocation42_spill] sm:$0xff] %v15070_v4 }
 0xd57   :  { %v7162_v50 = vpop.permute.xlu2 %7161  ;;  %16311 = vst [vmem:[#allocation44_spill] sm:$0xff] %v15087_v24 }
 0xd59   :  { %v7543_v45 = vpop.permute.xlu1 %7542 }
 0xd5a   :  { %7677 = vst.msk [vmem:[#allocation2 + $0x1d0] sm:$0xff] %vm7618_vm9, %v7543_v45  ;;  %v8165_v45 = vsel %vm3712_vm11, %v14911_v10, 0.0 }
 0xd5b   :  { %v6391_v12 = vpop.permute.xlu0 %6390 }
 0xd5c   :  { %6523 = vst.msk [vmem:[#allocation2 + $0x1e0] sm:$0xff] %vm6462_vm6, %v6391_v12 }
 0xd5d   :  { %v15085_v17 = vpop.f32.mrf.mxu2 }
 0xd5e   :  { %16310 = vst [vmem:[#allocation43_spill] sm:$0xff] %v15085_v17 }
 0xd5f   :  { %v6779_v5 = vpop.permute.xlu2 %6778 }
 0xd61   :  { %v7160_v34 = vpop.permute.xlu1 %7159  ;;  %v7741_v36 = vld [vmem:[#allocation2 + $0x1d0] sm:$0xff] }
 0xd62   :  { %7293 = vst.msk [vmem:[#allocation2 + $0x1d8] sm:$0xff] %vm7233_vm8, %v7160_v34  ;;  %9438 = vmatmul.msk.f32.gmra.mxu2 %vm7756_vm10, %v7741_v36 }
 0xd63   :  { %v7547_v40 = vpop.permute.xlu0 %7546  ;;  %7678 = vst.msk [vmem:[#allocation2 + $0x1d8] sm:$0xff] %vm7618_vm9, %v7545_v31  ;;  %v8159_v31 = vsel %vm3712_vm11, %v14881_v2, 0.0 }
 0xd64   :  { %v8160_v27 = vadd.f32 %v8159_v31, %v8158_v18  ;;  %v8177_v18 = vsel %vm3712_vm11, %v14974_v9, 0.0 }
 0xd66   :  { %v8162_v13 = vadd.f32 %v8161_v63, %v8160_v27  ;;  %v8179_v27 = vsel %vm3712_vm11, %v14979_v60, 0.0 }
 0xd67   :  { %v6395_v47 = vpop.permute.xlu2 %6394 }
 0xd68   :  { %6525 = vst.msk [vmem:[#allocation2 + $0x1f0] sm:$0xff] %vm6462_vm6, %v6395_v47 }
 0xd69   :  { %v6777_v7 = vpop.permute.xlu1 %6776 }
 0xd6a   :  { %6909 = vst.msk [vmem:[#allocation2 + $0x1e0] sm:$0xff] %vm6848_vm7, %v6777_v7  ;;  %v7742_v21 = vld [vmem:[#allocation2 + $0x1d8] sm:$0xff] }
 0xd6b   :  { %v7164_v22 = vpop.permute.xlu0 %7163  ;;  %7294 = vst.msk [vmem:[#allocation2 + $0x1e0] sm:$0xff] %vm7233_vm8, %v7162_v50  ;;  %9439 = vmatmul.msk.f32.gmra.mxu2 %vm7756_vm10, %v7742_v21  ;;  %v8163_v50 = vsel %vm3712_vm11, %v14905_v38, 0.0  ;;  %v8169_v21 = vsel %vm3712_vm11, %v14934_v54, 0.0 }
 0xd6c   :  { %7679 = vst.msk [vmem:[#allocation2 + $0x1e0] sm:$0xff] %vm7618_vm9, %v7547_v40  ;;  %v8164_v34 = vadd.f32 %v8163_v50, %v8162_v13  ;;  %v8167_v40 = vsel %vm3712_vm11, %v14923_v58, 0.0 }
 0xd6e   :  { %v8166_v7 = vadd.f32 %v8165_v45, %v8164_v34 }
 0xd6f   :  { %v7551_v44 = vpop.permute.xlu2 %7550 }
 0xd71   :  { %v6393_v62 = vpop.permute.xlu1 %6392 }
 0xd72   :  { %6524 = vst.msk [vmem:[#allocation2 + $0x1e8] sm:$0xff] %vm6462_vm6, %v6393_v62  ;;  %v8171_v62 = vsel %vm3712_vm11, %v14945_v52, 0.0 }
 0xd73   :  { %v6781_v55 = vpop.permute.xlu0 %6780  ;;  %6910 = vst.msk [vmem:[#allocation2 + $0x1e8] sm:$0xff] %vm6848_vm7, %v6779_v5  ;;  %v7743_v61 = vld [vmem:[#allocation2 + $0x1e0] sm:$0xff] }
 0xd74   :  { %7295 = vst.msk [vmem:[#allocation2 + $0x1e8] sm:$0xff] %vm7233_vm8, %v7164_v22  ;;  %9440 = vmatmul.msk.f32.gmra.mxu2 %vm7756_vm10, %v7743_v61  ;;  %v8168_v22 = vadd.f32 %v8167_v40, %v8166_v7  ;;  %v15101_v61 = vpop.f32.mrf.mxu1  ;;  %v8187_v7 = vsel %vm3712_vm11, %v15010_v56, 0.0 }
 0xd75   :  { %6911 = vst.msk [vmem:[#allocation2 + $0x1f0] sm:$0xff] %vm6848_vm7, %v6781_v55 }
 0xd76   :  { %v8170_v55 = vadd.f32 %v8169_v21, %v8168_v22 }
 0xd77   :  { %v7168_v5 = vpop.permute.xlu2 %7167 }
 0xd79   :  { %v7549_v3 = vpop.permute.xlu1 %7548 }
 0xd7a   :  { %7680 = vst.msk [vmem:[#allocation2 + $0x1e8] sm:$0xff] %vm7618_vm9, %v7549_v3  ;;  %v8173_v3 = vsel %vm3712_vm11, %v14954_v49, 0.0 }
 0xd7b   :  { %v6397_v53 = vpop.permute.xlu0 %6396 }
 0xd7c   :  { %6526 = vst.msk [vmem:[#allocation2 + $0x1f8] sm:$0xff] %vm6462_vm6, %v6397_v53  ;;  %v15105_v53 = vpop.f32.mrf.mxu2  ;;  %v15114_v13 = vpop.f32.mrf.mxu1 }
 0xd81   :  { %v7166_v51 = vpop.permute.xlu1 %7165  ;;  %v7744_v41 = vld [vmem:[#allocation2 + $0x1e8] sm:$0xff] }
 0xd82   :  { %7296 = vst.msk [vmem:[#allocation2 + $0x1f0] sm:$0xff] %vm7233_vm8, %v7166_v51  ;;  %9441 = vmatmul.msk.f32.gmra.mxu2 %vm7756_vm10, %v7744_v41  ;;  %v8175_v51 = vsel %vm3712_vm11, %v14963_v8, 0.0 }
 0xd83   :  { %7681 = vst.msk [vmem:[#allocation2 + $0x1f0] sm:$0xff] %vm7618_vm9, %v7551_v44  ;;  %v7553_v47 = vpop.permute.xlu0 %7552  ;;  %v8172_v44 = vadd.f32 %v8171_v62, %v8170_v55  ;;  %v8189_v62 = vsel %vm3712_vm11, %v15018_v28, 0.0 }
 0xd84   :  { %v15118_v45 = vpop.f32.mrf.mxu2  ;;  %v15126_v22 = vpop.f32.mrf.mxu1 }
 0xd85   :  { %v8174_v31 = vadd.f32 %v8173_v3, %v8172_v44  ;;  %16312 = vst [vmem:[#allocation5_spill] sm:$0xff] %v15118_v45  ;;  %v8191_v44 = vsel %vm3712_vm11, %v15026_v35, 0.0 }
 0xd86   :  { %16313 = vst [vmem:[#allocation9_spill] sm:$0xff] %v15126_v22 }
 0xd87   :  { %v8176_v63 = vadd.f32 %v8175_v51, %v8174_v31 }
 0xd89   :  { %v6783_v12 = vpop.permute.xlu1 %6782  ;;  %v8178_v50 = vadd.f32 %v8177_v18, %v8176_v63  ;;  %v8195_v18 = vsel %vm3712_vm11, %v15041_v6, 0.0 }
 0xd8a   :  { %6912 = vst.msk [vmem:[#allocation2 + $0x1f8] sm:$0xff] %vm6848_vm7, %v6783_v12  ;;  %v7745_v36 = vld [vmem:[#allocation2 + $0x1f0] sm:$0xff] }
 0xd8b   :  { %7297 = vst.msk [vmem:[#allocation2 + $0x1f8] sm:$0xff] %vm7233_vm8, %v7168_v5  ;;  %9442 = vmatmul.msk.f32.gmra.mxu2 %vm7756_vm10, %v7745_v36  ;;  %v8181_v5 = vsel %vm3712_vm11, %v14988_v23, 0.0  ;;  %v8180_v12 = vadd.f32 %v8179_v27, %v8178_v50  ;;  %v8185_v36 = vsel %vm3712_vm11, %v15003_v11, 0.0  ;;  %v8197_v50 = vsel %vm3712_vm11, %v15049_v46, 0.0 }
 0xd8c   :  { %7682 = vst.msk [vmem:[#allocation2 + $0x1f8] sm:$0xff] %vm7618_vm9, %v7553_v47  ;;  %v8183_v47 = vsel %vm3712_vm11, %v14996_v48, 0.0  ;;  %v15130_v55 = vpop.f32.mrf.mxu2  ;;  %v15138_v27 = vpop.f32.mrf.mxu1 }
 0xd8d   :  { %v8182_v34 = vadd.f32 %v8181_v5, %v8180_v12  ;;  %16314 = vst [vmem:[#allocation11_spill] sm:$0xff] %v15130_v55 }
 0xd8f   :  { %v8184_v40 = vadd.f32 %v8183_v47, %v8182_v34  ;;  %v8199_v47 = vsel %vm3712_vm11, %v15057_v29, 0.0 }
 0xd91   :  { %v8186_v21 = vadd.f32 %v8185_v36, %v8184_v40  ;;  %v8201_v36 = vsel %vm3712_vm11, %v15066_v59, 0.0 }
 0xd93   :  { %v7746_v41 = vld [vmem:[#allocation2 + $0x1f8] sm:$0xff]  ;;  %v8188_v3 = vadd.f32 %v8187_v7, %v8186_v21  ;;  %v8203_v7 = vsel %vm3712_vm11, %v15072_v16, 0.0 }
 0xd94   :  { %9443 = vmatmul.msk.f32.gmra.mxu2 %vm7756_vm10, %v7746_v41  ;;  %v8193_v41 = vsel %vm3712_vm11, %v15035_v42, 0.0  ;;  %v15142_v5 = vpop.f32.mrf.mxu2 }
 0xd95   :  { %v8190_v51 = vadd.f32 %v8189_v62, %v8188_v3  ;;  %v15150_v62 = vpop.f32.mrf.mxu1  ;;  %v8205_v3 = vsel %vm3712_vm11, %v15087_v24, 0.0 }
 0xd97   :  { %v8192_v31 = vadd.f32 %v8191_v44, %v8190_v51 }
 0xd99   :  { %v8194_v63 = vadd.f32 %v8193_v41, %v8192_v31  ;;  %v8207_v41 = vsel %vm3712_vm11, %v15101_v61, 0.0 }
 0xd9b   :  { %v8196_v12 = vadd.f32 %v8195_v18, %v8194_v63  ;;  %v8209_v18 = vsel %vm3712_vm11, %v15114_v13, 0.0 }
 0xd9c   :  { %v15154_v44 = vpop.f32.mrf.mxu2 }
 0xd9d   :  { %v8198_v34 = vadd.f32 %v8197_v50, %v8196_v12  ;;  %16315 = vst [vmem:[#allocation12_spill] sm:$0xff] %v15154_v44  ;;  %v8211_v50 = vsel %vm3712_vm11, %v15126_v22, 0.0 }
 0xd9f   :  { %v8200_v40 = vadd.f32 %v8199_v47, %v8198_v34 }
 0xda1   :  { %v8202_v21 = vadd.f32 %v8201_v36, %v8200_v40  ;;  %v8213_v36 = vsel %vm3712_vm11, %v15138_v27, 0.0 }
 0xda3   :  { %v8204_v51 = vadd.f32 %v8203_v7, %v8202_v21  ;;  %v8215_v7 = vsel %vm3712_vm11, %v15150_v62, 0.0 }
 0xda4   :  { %v15164_v34 = vpop.f32.mrf.mxu2 }
 0xda5   :  { %v8206_v31 = vadd.f32 %v8205_v3, %v8204_v51  ;;  %16317 = vst [vmem:[#allocation15_spill] sm:$0xff] %v15164_v34 }
 0xda7   :  { %v8208_v63 = vadd.f32 %v8207_v41, %v8206_v31 }
 0xda9   :  { %v8210_v12 = vadd.f32 %v8209_v18, %v8208_v63 }
 0xdab   :  { %v8212_v40 = vadd.f32 %v8211_v50, %v8210_v12  ;;  %v8221_v50 = vsel %vm3712_vm11, %v14972_v20, 0.0 }
 0xdac   :  { %v15174_v18 = vpop.f32.mrf.mxu2 }
 0xdad   :  { %v8214_v21 = vadd.f32 %v8213_v36, %v8212_v40  ;;  %16318 = vst [vmem:[#allocation16_spill] sm:$0xff] %v15174_v18  ;;  %v8223_v36 = vsel %vm3712_vm11, %v14977_v25, 0.0 }
 0xdaf   :  { %v15162_v47 = vpop.f32.mrf.mxu1  ;;  %v8216_v51 = vadd.f32 %v8215_v7, %v8214_v21  ;;  %v8225_v7 = vsel %vm3712_vm11, %v14986_v57, 0.0 }
 0xdb0   :  { %16316 = vst [vmem:[#allocation14_spill] sm:$0xff] %v15162_v47  ;;  %v8217_v3 = vsel %vm3712_vm11, %v15162_v47, 0.0 }
 0xdb1   :  { %v8218_v41 = vadd.f32 %v8217_v3, %v8216_v51  ;;  %v8227_v3 = vsel %vm3712_vm11, %v14994_v30, 0.0 }
 0xdb4   :  { %v15186_v51 = vpop.f32.mrf.mxu2 }
 0xdb5   :  { %16319 = vst [vmem:[#allocation17_spill] sm:$0xff] %v15186_v51 }
 0xdc0   :  { %v15172_v31 = vpop.f32.mrf.mxu1 }
 0xdc1   :  { %v8219_v63 = vsel %vm3712_vm11, %v15172_v31, 0.0 }
 0xdc2   :  { %v8220_v22 = vadd.f32 %v8219_v63, %v8218_v41  ;;  %v8229_v41 = vsel %vm3712_vm11, %v15001_v37, 0.0 }
 0xdc4   :  { %v8222_v12 = vadd.f32 %v8221_v50, %v8220_v22  ;;  %v8231_v22 = vsel %vm3712_vm11, %v15008_v26, 0.0 }
 0xdc6   :  { %v8224_v40 = vadd.f32 %v8223_v36, %v8222_v12  ;;  %v8233_v12 = vsel %vm3712_vm11, %v15016_v14, 0.0 }
 0xdc8   :  { %v8226_v21 = vadd.f32 %v8225_v7, %v8224_v40  ;;  %v8235_v40 = vsel %vm3712_vm11, %v15024_v43, 0.0  ;;  %v15196_v7 = vpop.f32.mrf.mxu2 }
 0xdc9   :  { %16320 = vst [vmem:[#allocation19_spill] sm:$0xff] %v15196_v7 }
 0xdca   :  { %v8228_v47 = vadd.f32 %v8227_v3, %v8226_v21  ;;  %v8237_v21 = vsel %vm3712_vm11, %v15033_v0, 0.0 }
 0xdcc   :  { %v8230_v63 = vadd.f32 %v8229_v41, %v8228_v47  ;;  %v8239_v47 = vsel %vm3712_vm11, %v15039_v33, 0.0 }
 0xdce   :  { %v8232_v50 = vadd.f32 %v8231_v22, %v8230_v63  ;;  %v8241_v63 = vsel %vm3712_vm11, %v15047_v19, 0.0 }
 0xdd0   :  { %v8234_v36 = vadd.f32 %v8233_v12, %v8232_v50  ;;  %v8243_v50 = vsel %vm3712_vm11, %v15055_v39, 0.0  ;;  %v15206_v12 = vpop.f32.mrf.mxu2 }
 0xdd1   :  { %16321 = vst [vmem:[#allocation20_spill] sm:$0xff] %v15206_v12 }
 0xdd2   :  { %v8236_v30 = vadd.f32 %v8235_v40, %v8234_v36  ;;  %v8245_v36 = vsel %vm3712_vm11, %v15064_v32, 0.0 }
 0xdd4   :  { %v8238_v3 = vadd.f32 %v8237_v21, %v8236_v30  ;;  %v8247_v30 = vsel %vm3712_vm11, %v15070_v4, 0.0 }
 0xdd6   :  { %v8240_v41 = vadd.f32 %v8239_v47, %v8238_v3  ;;  %v8249_v3 = vsel %vm3712_vm11, %v15085_v17, 0.0 }
 0xdd8   :  { %v8242_v22 = vadd.f32 %v8241_v63, %v8240_v41  ;;  %v15214_v19 = vpop.f32.mrf.mxu2  ;;  %v8251_v41 = vsel %vm3712_vm11, %v15105_v53, 0.0 }
 0xdd9   :  { %16322 = vst [vmem:[#allocation21_spill] sm:$0xff] %v15214_v19 }
 0xdda   :  { %v8244_v43 = vadd.f32 %v8243_v50, %v8242_v22  ;;  %v8253_v22 = vsel %vm3712_vm11, %v15118_v45, 0.0 }
 0xddc   :  { %v8246_v40 = vadd.f32 %v8245_v36, %v8244_v43  ;;  %v8255_v43 = vsel %vm3712_vm11, %v15130_v55, 0.0 }
 0xdde   :  { %v8248_v21 = vadd.f32 %v8247_v30, %v8246_v40  ;;  %v8257_v40 = vsel %vm3712_vm11, %v15142_v5, 0.0 }
 0xde0   :  { %v8250_v47 = vadd.f32 %v8249_v3, %v8248_v21  ;;  %v8259_v3 = vsel %vm3712_vm11, %v15154_v44, 0.0 }
 0xde2   :  { %v8252_v63 = vadd.f32 %v8251_v41, %v8250_v47  ;;  %v8261_v41 = vsel %vm3712_vm11, %v15164_v34, 0.0 }
 0xde4   :  { %v8254_v50 = vadd.f32 %v8253_v22, %v8252_v63  ;;  %v8263_v22 = vsel %vm3712_vm11, %v15174_v18, 0.0 }
 0xde5   :  { %v15220_v32 = vpop.f32.mrf.mxu2 }
 0xde6   :  { %16323 = vst [vmem:[#allocation23_spill] sm:$0xff] %v15220_v32  ;;  %v8256_v36 = vadd.f32 %v8255_v43, %v8254_v50  ;;  %v8265_v50 = vsel %vm3712_vm11, %v15186_v51, 0.0  ;;  %v16329_v51 = vld [vmem:[#allocation45_spill] sm:$0xff] }
 0xde8   :  { %v8258_v30 = vadd.f32 %v8257_v40, %v8256_v36  ;;  %v8267_v36 = vsel %vm3712_vm11, %v15196_v7, 0.0 }
 0xdea   :  { %v8260_v47 = vadd.f32 %v8259_v3, %v8258_v30  ;;  %v8269_v30 = vsel %vm3712_vm11, %v15206_v12, 0.0 }
 0xdec   :  { %v8262_v63 = vadd.f32 %v8261_v41, %v8260_v47  ;;  %v8271_v47 = vsel %vm3712_vm11, %v15214_v19, 0.0 }
 0xdee   :  { %v15226_v21 = vpop.f32.mrf.mxu2  ;;  %v8264_v45 = vadd.f32 %v8263_v22, %v8262_v63  ;;  %v8273_v22 = vsel %vm3712_vm11, %v15220_v32, 0.0 }
 0xdef   :  { %16324 = vst [vmem:[#allocation24_spill] sm:$0xff] %v15226_v21 }
 0xdf0   :  { %v8266_v43 = vadd.f32 %v8265_v50, %v8264_v45  ;;  %v8275_v50 = vsel %vm3712_vm11, %v15226_v21, 0.0 }
 0xdf2   :  { %v8268_v40 = vadd.f32 %v8267_v36, %v8266_v43 }
 0xdf4   :  { %v8270_v3 = vadd.f32 %v8269_v30, %v8268_v40 }
 0xdf6   :  { %v8272_v41 = vadd.f32 %v8271_v47, %v8270_v3 }
 0xdf7   :  { %v15234_v55 = vpop.f32.mrf.mxu2 }
 0xdf8   :  { %16325 = vst [vmem:[#allocation26_spill] sm:$0xff] %v15234_v55  ;;  %v8274_v45 = vadd.f32 %v8273_v22, %v8272_v41  ;;  %v8277_v36 = vsel %vm3712_vm11, %v15234_v55, 0.0 }
 0xdfa   :  { %v8276_v43 = vadd.f32 %v8275_v50, %v8274_v45 }
 0xdfc   :  { %v8278_v30 = vadd.f32 %v8277_v36, %v8276_v43 }
 0xe05   :  { %v15240_v44 = vpop.f32.mrf.mxu2 }
 0xe06   :  { %16326 = vst [vmem:[#allocation27_spill] sm:$0xff] %v15240_v44  ;;  %v8279_v40 = vsel %vm3712_vm11, %v15240_v44, 0.0 }
 0xe07   :  { %v8280_v47 = vadd.f32 %v8279_v40, %v8278_v30 }
 0xe0e   :  { %v15246_v63 = vpop.f32.mrf.mxu2 }
 0xe0f   :  { %16327 = vst [vmem:[#allocation28_spill] sm:$0xff] %v15246_v63  ;;  %v8281_v3 = vsel %vm3712_vm11, %v15246_v63, 0.0 }
 0xe10   :  { %v8282_v22 = vadd.f32 %v8281_v3, %v8280_v47 }
 0xe17   :  { %v15256_v12 = vpop.f32.mrf.mxu2 }
 0xe18   :  { %16328 = vst [vmem:[#allocation29_spill] sm:$0xff] %v15256_v12  ;;  %v8283_v41 = vsel %vm3712_vm11, %v15256_v12, 0.0 }
 0xe19   :  { %v8284_v32 = vadd.f32 %v8283_v41, %v8282_v22 }
 0xe1b   :  { %v8285_v21 = vrot.slane %v8284_v32, 4 }
 0xe1d   :  { %v8286_v45 = vadd.f32 %v8285_v21, %v8284_v32 }
 0xe1f   :  { %v8287_v50 = vrot.slane %v8286_v45, 2 }
 0xe21   :  { %v8288_v19 = vadd.f32 %v8287_v50, %v8286_v45 }
 0xe23   :  { %v8289_v55 = vrot.slane %v8288_v19, 1 }
 0xe25   :  { %v8290_v7 = vadd.f32 %v8289_v55, %v8288_v19 }
 0xe27   :  { %v15263_v44 = vmul.f32 %v8290_v7, %v16329_v51 }
 0xe29   :  { %v8292_v43 = vsub.f32 %v14865_v1, %v15263_v44  ;;  %v8293_v36 = vsub.f32 %v14881_v2, %v15263_v44  ;;  %v8294_v40 = vsub.f32 %v14892_v15, %v15263_v44  ;;  %v8295_v30 = vsub.f32 %v14905_v38, %v15263_v44 }
 0xe2a   :  { %v8296_v19 = vsub.f32 %v14911_v10, %v15263_v44  ;;  %v8297_v7 = vsub.f32 %v14923_v58, %v15263_v44  ;;  %v8298_v45 = vsub.f32 %v14934_v54, %v15263_v44  ;;  %v8299_v10 = vsub.f32 %v14945_v52, %v15263_v44 }
 0xe2b   :  { %v8356_v32 = vmul.f32 %v8292_v43, %v8292_v43  ;;  %v8357_v21 = vmul.f32 %v8293_v36, %v8293_v36  ;;  %v8358_v55 = vmul.f32 %v8294_v40, %v8294_v40  ;;  %v8359_v3 = vmul.f32 %v8295_v30, %v8295_v30 }
 0xe2c   :  { %v8360_v50 = vmul.f32 %v8296_v19, %v8296_v19  ;;  %v8361_v40 = vmul.f32 %v8297_v7, %v8297_v7  ;;  %v8300_v30 = vsub.f32 %v14954_v49, %v15263_v44  ;;  %v8301_v19 = vsub.f32 %v14963_v8, %v15263_v44 }
 0xe2d   :  { %v8420_v47 = vsel %vm3712_vm11, %v8356_v32, 0.0  ;;  %v8421_v41 = vsel %vm3712_vm11, %v8357_v21, 0.0  ;;  %v8423_v43 = vsel %vm3712_vm11, %v8358_v55, 0.0  ;;  %v8425_v38 = vsel %vm3712_vm11, %v8359_v3, 0.0 }
 0xe2e   :  { %v8422_v22 = vadd.f32 %v8421_v41, %v8420_v47  ;;  %v8362_v32 = vmul.f32 %v8298_v45, %v8298_v45  ;;  %v8427_v21 = vsel %vm3712_vm11, %v8360_v50, 0.0  ;;  %v8363_v41 = vmul.f32 %v8299_v10, %v8299_v10 }
 0xe2f   :  { %v8429_v55 = vsel %vm3712_vm11, %v8361_v40, 0.0  ;;  %v8302_v7 = vsub.f32 %v14974_v9, %v15263_v44  ;;  %v8303_v45 = vsub.f32 %v14979_v60, %v15263_v44  ;;  %v8304_v10 = vsub.f32 %v14988_v23, %v15263_v44 }
 0xe30   :  { %v8424_v36 = vadd.f32 %v8423_v43, %v8422_v22  ;;  %v8364_v43 = vmul.f32 %v8300_v30, %v8300_v30  ;;  %v8305_v30 = vsub.f32 %v14996_v48, %v15263_v44 }
 0xe32   :  { %v8426_v58 = vadd.f32 %v8425_v38, %v8424_v36  ;;  %v8431_v38 = vsel %vm3712_vm11, %v8362_v32, 0.0  ;;  %v8365_v36 = vmul.f32 %v8301_v19, %v8301_v19  ;;  %v8435_v40 = vsel %vm3712_vm11, %v8364_v43, 0.0 }
 0xe33   :  { %v8306_v19 = vsub.f32 %v15003_v11, %v15263_v44 }
 0xe34   :  { %v8428_v47 = vadd.f32 %v8427_v21, %v8426_v58  ;;  %v8433_v58 = vsel %vm3712_vm11, %v8363_v41, 0.0  ;;  %v8366_v21 = vmul.f32 %v8302_v7, %v8302_v7  ;;  %v8437_v32 = vsel %vm3712_vm11, %v8365_v36, 0.0 }
 0xe35   :  { %v8307_v7 = vsub.f32 %v15010_v56, %v15263_v44 }
 0xe36   :  { %v8430_v22 = vadd.f32 %v8429_v55, %v8428_v47  ;;  %v8367_v55 = vmul.f32 %v8303_v45, %v8303_v45  ;;  %v8439_v41 = vsel %vm3712_vm11, %v8366_v21, 0.0  ;;  %v8308_v45 = vsub.f32 %v15018_v28, %v15263_v44 }
 0xe38   :  { %v8432_v3 = vadd.f32 %v8431_v38, %v8430_v22  ;;  %v8368_v38 = vmul.f32 %v8304_v10, %v8304_v10  ;;  %v8441_v43 = vsel %vm3712_vm11, %v8367_v55, 0.0  ;;  %v8309_v10 = vsub.f32 %v15026_v35, %v15263_v44 }
 0xe3a   :  { %v8434_v50 = vadd.f32 %v8433_v58, %v8432_v3  ;;  %v8369_v58 = vmul.f32 %v8305_v30, %v8305_v30  ;;  %v8443_v36 = vsel %vm3712_vm11, %v8368_v38, 0.0  ;;  %v8310_v30 = vsub.f32 %v15035_v42, %v15263_v44 }
 0xe3c   :  { %v8436_v47 = vadd.f32 %v8435_v40, %v8434_v50  ;;  %v8370_v40 = vmul.f32 %v8306_v19, %v8306_v19  ;;  %v8445_v21 = vsel %vm3712_vm11, %v8369_v58, 0.0  ;;  %v8311_v19 = vsub.f32 %v15041_v6, %v15263_v44 }
 0xe3e   :  { %v8438_v22 = vadd.f32 %v8437_v32, %v8436_v47  ;;  %v8371_v32 = vmul.f32 %v8307_v7, %v8307_v7  ;;  %v8447_v55 = vsel %vm3712_vm11, %v8370_v40, 0.0  ;;  %v8312_v7 = vsub.f32 %v15049_v46, %v15263_v44 }
 0xe40   :  { %v8440_v3 = vadd.f32 %v8439_v41, %v8438_v22  ;;  %v8372_v41 = vmul.f32 %v8308_v45, %v8308_v45  ;;  %v8449_v38 = vsel %vm3712_vm11, %v8371_v32, 0.0  ;;  %v8313_v45 = vsub.f32 %v15057_v29, %v15263_v44 }
 0xe42   :  { %v8442_v50 = vadd.f32 %v8441_v43, %v8440_v3  ;;  %v8373_v43 = vmul.f32 %v8309_v10, %v8309_v10  ;;  %v8451_v58 = vsel %vm3712_vm11, %v8372_v41, 0.0  ;;  %v8314_v10 = vsub.f32 %v15066_v59, %v15263_v44 }
 0xe44   :  { %v8444_v47 = vadd.f32 %v8443_v36, %v8442_v50  ;;  %v8374_v36 = vmul.f32 %v8310_v30, %v8310_v30  ;;  %v8453_v40 = vsel %vm3712_vm11, %v8373_v43, 0.0  ;;  %v8315_v30 = vsub.f32 %v15072_v16, %v15263_v44 }
 0xe46   :  { %v8446_v22 = vadd.f32 %v8445_v21, %v8444_v47  ;;  %v8375_v21 = vmul.f32 %v8311_v19, %v8311_v19  ;;  %v8455_v32 = vsel %vm3712_vm11, %v8374_v36, 0.0  ;;  %v8316_v19 = vsub.f32 %v15087_v24, %v15263_v44 }
 0xe48   :  { %v8448_v3 = vadd.f32 %v8447_v55, %v8446_v22  ;;  %v8376_v55 = vmul.f32 %v8312_v7, %v8312_v7  ;;  %v8457_v41 = vsel %vm3712_vm11, %v8375_v21, 0.0  ;;  %v8317_v7 = vsub.f32 %v15101_v61, %v15263_v44 }
 0xe4a   :  { %v8450_v50 = vadd.f32 %v8449_v38, %v8448_v3  ;;  %v8377_v38 = vmul.f32 %v8313_v45, %v8313_v45  ;;  %v8459_v43 = vsel %vm3712_vm11, %v8376_v55, 0.0  ;;  %v8318_v45 = vsub.f32 %v15114_v13, %v15263_v44 }
 0xe4b   :  { %v8381_v24 = vmul.f32 %v8317_v7, %v8317_v7 }
 0xe4c   :  { %v8452_v47 = vadd.f32 %v8451_v58, %v8450_v50  ;;  %v8378_v58 = vmul.f32 %v8314_v10, %v8314_v10  ;;  %v8461_v36 = vsel %vm3712_vm11, %v8377_v38, 0.0 }
 0xe4e   :  { %v8454_v22 = vadd.f32 %v8453_v40, %v8452_v47  ;;  %v8379_v40 = vmul.f32 %v8315_v30, %v8315_v30  ;;  %v8463_v21 = vsel %vm3712_vm11, %v8378_v58, 0.0  ;;  %v8320_v30 = vsub.f32 %v15138_v27, %v15263_v44 }
 0xe4f   :  { %v8469_v58 = vsel %vm3712_vm11, %v8381_v24, 0.0 }
 0xe50   :  { %v8456_v3 = vadd.f32 %v8455_v32, %v8454_v22  ;;  %v8380_v32 = vmul.f32 %v8316_v19, %v8316_v19  ;;  %v8465_v55 = vsel %vm3712_vm11, %v8379_v40, 0.0  ;;  %v8321_v19 = vsub.f32 %v15150_v62, %v15263_v44 }
 0xe52   :  { %v8458_v50 = vadd.f32 %v8457_v41, %v8456_v3  ;;  %v16330_v41 = vld [vmem:[#allocation9_spill] sm:$0xff]  ;;  %v8467_v38 = vsel %vm3712_vm11, %v8380_v32, 0.0 }
 0xe53   :  { %v8319_v10 = vsub.f32 %v16330_v41, %v15263_v44  ;;  %v8384_v41 = vmul.f32 %v8320_v30, %v8320_v30  ;;  %v8325_v30 = vsub.f32 %v14977_v25, %v15263_v44 }
 0xe54   :  { %v8460_v47 = vadd.f32 %v8459_v43, %v8458_v50  ;;  %v8382_v43 = vmul.f32 %v8318_v45, %v8318_v45  ;;  %v8323_v45 = vsub.f32 %v15172_v31, %v15263_v44 }
 0xe55   :  { %v8475_v24 = vsel %vm3712_vm11, %v8384_v41, 0.0 }
 0xe56   :  { %v8462_v22 = vadd.f32 %v8461_v36, %v8460_v47  ;;  %v8383_v36 = vmul.f32 %v8319_v10, %v8319_v10  ;;  %v8471_v40 = vsel %vm3712_vm11, %v8382_v43, 0.0  ;;  %v8324_v10 = vsub.f32 %v14972_v20, %v15263_v44 }
 0xe57   :  { %v8389_v20 = vmul.f32 %v8325_v30, %v8325_v30  ;;  %v8330_v30 = vsub.f32 %v15016_v14, %v15263_v44 }
 0xe58   :  { %v8464_v3 = vadd.f32 %v8463_v21, %v8462_v22  ;;  %v16331_v21 = vld [vmem:[#allocation14_spill] sm:$0xff]  ;;  %v8473_v32 = vsel %vm3712_vm11, %v8383_v36, 0.0 }
 0xe59   :  { %v8322_v7 = vsub.f32 %v16331_v21, %v15263_v44 }
 0xe5a   :  { %v8466_v50 = vadd.f32 %v8465_v55, %v8464_v3  ;;  %v8385_v55 = vmul.f32 %v8321_v19, %v8321_v19  ;;  %v8326_v19 = vsub.f32 %v14986_v57, %v15263_v44 }
 0xe5c   :  { %v8468_v47 = vadd.f32 %v8467_v38, %v8466_v50  ;;  %v8386_v38 = vmul.f32 %v8322_v7, %v8322_v7  ;;  %v8477_v43 = vsel %vm3712_vm11, %v8385_v55, 0.0 }
 0xe5e   :  { %v8470_v22 = vadd.f32 %v8469_v58, %v8468_v47  ;;  %v8387_v58 = vmul.f32 %v8323_v45, %v8323_v45  ;;  %v8479_v36 = vsel %vm3712_vm11, %v8386_v38, 0.0  ;;  %v8328_v45 = vsub.f32 %v15001_v37, %v15263_v44 }
 0xe5f   :  { %v8485_v38 = vsel %vm3712_vm11, %v8389_v20, 0.0 }
 0xe60   :  { %v8472_v3 = vadd.f32 %v8471_v40, %v8470_v22  ;;  %v8388_v40 = vmul.f32 %v8324_v10, %v8324_v10  ;;  %v8481_v41 = vsel %vm3712_vm11, %v8387_v58, 0.0  ;;  %v8329_v10 = vsub.f32 %v15008_v26, %v15263_v44 }
 0xe62   :  { %v8474_v50 = vadd.f32 %v8473_v32, %v8472_v3  ;;  %v16332_v32 = vld [vmem:[#allocation36_spill] sm:$0xff]  ;;  %v8483_v55 = vsel %vm3712_vm11, %v8388_v40, 0.0  ;;  %v8393_v37 = vmul.f32 %v8329_v10, %v8329_v10 }
 0xe63   :  { %v8327_v7 = vsub.f32 %v16332_v32, %v15263_v44 }
 0xe64   :  { %v8476_v47 = vadd.f32 %v8475_v24, %v8474_v50  ;;  %v8390_v24 = vmul.f32 %v8326_v19, %v8326_v19 }
 0xe66   :  { %v8478_v22 = vadd.f32 %v8477_v43, %v8476_v47  ;;  %v8391_v43 = vmul.f32 %v8327_v7, %v8327_v7  ;;  %v8487_v58 = vsel %vm3712_vm11, %v8390_v24, 0.0  ;;  %v8332_v7 = vsub.f32 %v15033_v0, %v15263_v44 }
 0xe67   :  { %v8493_v24 = vsel %vm3712_vm11, %v8393_v37, 0.0 }
 0xe68   :  { %v8480_v3 = vadd.f32 %v8479_v36, %v8478_v22  ;;  %v8392_v36 = vmul.f32 %v8328_v45, %v8328_v45  ;;  %v8489_v40 = vsel %vm3712_vm11, %v8391_v43, 0.0  ;;  %v8333_v45 = vsub.f32 %v15039_v33, %v15263_v44 }
 0xe6a   :  { %v8482_v50 = vadd.f32 %v8481_v41, %v8480_v3  ;;  %v16333_v41 = vld [vmem:[#allocation38_spill] sm:$0xff]  ;;  %v8491_v20 = vsel %vm3712_vm11, %v8392_v36, 0.0 }
 0xe6b   :  { %v8331_v19 = vsub.f32 %v16333_v41, %v15263_v44  ;;  %v8396_v41 = vmul.f32 %v8332_v7, %v8332_v7  ;;  %v8337_v7 = vsub.f32 %v15070_v4, %v15263_v44 }
 0xe6c   :  { %v8484_v47 = vadd.f32 %v8483_v55, %v8482_v50  ;;  %v8394_v55 = vmul.f32 %v8330_v30, %v8330_v30  ;;  %v8335_v30 = vsub.f32 %v15055_v39, %v15263_v44 }
 0xe6d   :  { %v8499_v37 = vsel %vm3712_vm11, %v8396_v41, 0.0 }
 0xe6e   :  { %v8486_v22 = vadd.f32 %v8485_v38, %v8484_v47  ;;  %v8395_v38 = vmul.f32 %v8331_v19, %v8331_v19  ;;  %v8495_v43 = vsel %vm3712_vm11, %v8394_v55, 0.0 }
 0xe70   :  { %v8488_v3 = vadd.f32 %v8487_v58, %v8486_v22  ;;  %v16334_v58 = vld [vmem:[#allocation40_spill] sm:$0xff]  ;;  %v8497_v36 = vsel %vm3712_vm11, %v8395_v38, 0.0 }
 0xe71   :  { %v8334_v10 = vsub.f32 %v16334_v58, %v15263_v44 }
 0xe72   :  { %v8490_v50 = vadd.f32 %v8489_v40, %v8488_v3  ;;  %v8397_v40 = vmul.f32 %v8333_v45, %v8333_v45  ;;  %v8338_v45 = vsub.f32 %v15085_v17, %v15263_v44 }
 0xe73   :  { %v8398_v33 = vmul.f32 %v8334_v10, %v8334_v10  ;;  %v8339_v10 = vsub.f32 %v15105_v53, %v15263_v44 }
 0xe74   :  { %v8492_v47 = vadd.f32 %v8491_v20, %v8490_v50  ;;  %v16335_v20 = vld [vmem:[#allocation41_spill] sm:$0xff]  ;;  %v8501_v55 = vsel %vm3712_vm11, %v8397_v40, 0.0  ;;  %v8402_v4 = vmul.f32 %v8338_v45, %v8338_v45 }
 0xe75   :  { %v8336_v19 = vsub.f32 %v16335_v20, %v15263_v44  ;;  %v8503_v38 = vsel %vm3712_vm11, %v8398_v33, 0.0  ;;  %v8403_v17 = vmul.f32 %v8339_v10, %v8339_v10  ;;  %v8344_v10 = vsub.f32 %v15164_v34, %v15263_v44 }
 0xe76   :  { %v8494_v22 = vadd.f32 %v8493_v24, %v8492_v47  ;;  %v8399_v24 = vmul.f32 %v8335_v30, %v8335_v30 }
 0xe78   :  { %v8496_v3 = vadd.f32 %v8495_v43, %v8494_v22  ;;  %v8400_v43 = vmul.f32 %v8336_v19, %v8336_v19  ;;  %v8505_v41 = vsel %vm3712_vm11, %v8399_v24, 0.0  ;;  %v8511_v24 = vsel %vm3712_vm11, %v8402_v4, 0.0 }
 0xe7a   :  { %v8498_v50 = vadd.f32 %v8497_v36, %v8496_v3  ;;  %v8401_v36 = vmul.f32 %v8337_v7, %v8337_v7  ;;  %v8507_v40 = vsel %vm3712_vm11, %v8400_v43, 0.0  ;;  %v8342_v7 = vsub.f32 %v15142_v5, %v15263_v44 }
 0xe7b   :  { %v8513_v43 = vsel %vm3712_vm11, %v8403_v17, 0.0 }
 0xe7c   :  { %v8500_v47 = vadd.f32 %v8499_v37, %v8498_v50  ;;  %v16336_v37 = vld [vmem:[#allocation5_spill] sm:$0xff]  ;;  %v8509_v33 = vsel %vm3712_vm11, %v8401_v36, 0.0 }
 0xe7d   :  { %v8340_v30 = vsub.f32 %v16336_v37, %v15263_v44 }
 0xe7e   :  { %v8502_v22 = vadd.f32 %v8501_v55, %v8500_v47  ;;  %v16337_v55 = vld [vmem:[#allocation11_spill] sm:$0xff] }
 0xe7f   :  { %v8341_v19 = vsub.f32 %v16337_v55, %v15263_v44 }
 0xe80   :  { %v8504_v3 = vadd.f32 %v8503_v38, %v8502_v22  ;;  %v8404_v38 = vmul.f32 %v8340_v30, %v8340_v30  ;;  %v8345_v30 = vsub.f32 %v15174_v18, %v15263_v44 }
 0xe81   :  { %v8405_v37 = vmul.f32 %v8341_v19, %v8341_v19 }
 0xe82   :  { %v8506_v50 = vadd.f32 %v8505_v41, %v8504_v3  ;;  %v16338_v41 = vld [vmem:[#allocation12_spill] sm:$0xff]  ;;  %v8515_v36 = vsel %vm3712_vm11, %v8404_v38, 0.0  ;;  %v8409_v34 = vmul.f32 %v8345_v30, %v8345_v30 }
 0xe83   :  { %v8343_v45 = vsub.f32 %v16338_v41, %v15263_v44  ;;  %v8517_v4 = vsel %vm3712_vm11, %v8405_v37, 0.0  ;;  %v8408_v41 = vmul.f32 %v8344_v10, %v8344_v10 }
 0xe84   :  { %v8508_v47 = vadd.f32 %v8507_v40, %v8506_v50  ;;  %v8406_v40 = vmul.f32 %v8342_v7, %v8342_v7 }
 0xe85   :  { %v8523_v37 = vsel %vm3712_vm11, %v8408_v41, 0.0 }
 0xe86   :  { %v8510_v22 = vadd.f32 %v8509_v33, %v8508_v47  ;;  %v8407_v33 = vmul.f32 %v8343_v45, %v8343_v45  ;;  %v8519_v17 = vsel %vm3712_vm11, %v8406_v40, 0.0  ;;  %v8525_v40 = vsel %vm3712_vm11, %v8409_v34, 0.0 }
 0xe88   :  { %v8512_v3 = vadd.f32 %v8511_v24, %v8510_v22  ;;  %v16339_v24 = vld [vmem:[#allocation17_spill] sm:$0xff]  ;;  %v8521_v38 = vsel %vm3712_vm11, %v8407_v33, 0.0 }
 0xe89   :  { %v8346_v19 = vsub.f32 %v16339_v24, %v15263_v44 }
 0xe8a   :  { %v8514_v50 = vadd.f32 %v8513_v43, %v8512_v3  ;;  %v16340_v43 = vld [vmem:[#allocation19_spill] sm:$0xff] }
 0xe8b   :  { %v8347_v7 = vsub.f32 %v16340_v43, %v15263_v44  ;;  %v8410_v18 = vmul.f32 %v8346_v19, %v8346_v19 }
 0xe8c   :  { %v8516_v47 = vadd.f32 %v8515_v36, %v8514_v50  ;;  %v16341_v36 = vld [vmem:[#allocation20_spill] sm:$0xff] }
 0xe8d   :  { %v8348_v45 = vsub.f32 %v16341_v36, %v15263_v44  ;;  %v8411_v24 = vmul.f32 %v8347_v7, %v8347_v7  ;;  %v8527_v33 = vsel %vm3712_vm11, %v8410_v18, 0.0 }
 0xe8e   :  { %v8518_v22 = vadd.f32 %v8517_v4, %v8516_v47  ;;  %v16342_v4 = vld [vmem:[#allocation21_spill] sm:$0xff] }
 0xe8f   :  { %v8349_v10 = vsub.f32 %v16342_v4, %v15263_v44  ;;  %v8412_v43 = vmul.f32 %v8348_v45, %v8348_v45  ;;  %v8529_v41 = vsel %vm3712_vm11, %v8411_v24, 0.0 }
 0xe90   :  { %v8520_v3 = vadd.f32 %v8519_v17, %v8518_v22  ;;  %v16343_v17 = vld [vmem:[#allocation23_spill] sm:$0xff] }
 0xe91   :  { %v8350_v30 = vsub.f32 %v16343_v17, %v15263_v44  ;;  %v8413_v36 = vmul.f32 %v8349_v10, %v8349_v10  ;;  %v8531_v34 = vsel %vm3712_vm11, %v8412_v43, 0.0  ;;  %v8354_v10 = vsub.f32 %v15246_v63, %v15263_v44 }
 0xe92   :  { %v8522_v50 = vadd.f32 %v8521_v38, %v8520_v3  ;;  %v16344_v38 = vld [vmem:[#allocation24_spill] sm:$0xff] }
 0xe93   :  { %v8351_v19 = vsub.f32 %v16344_v38, %v15263_v44  ;;  %v8414_v4 = vmul.f32 %v8350_v30, %v8350_v30  ;;  %v8533_v18 = vsel %vm3712_vm11, %v8413_v36, 0.0  ;;  %v8355_v30 = vsub.f32 %v15256_v12, %v15263_v44 }
 0xe94   :  { %v8524_v47 = vadd.f32 %v8523_v37, %v8522_v50  ;;  %v16345_v37 = vld [vmem:[#allocation26_spill] sm:$0xff] }
 0xe95   :  { %v8352_v7 = vsub.f32 %v16345_v37, %v15263_v44  ;;  %v8415_v17 = vmul.f32 %v8351_v19, %v8351_v19  ;;  %v8535_v24 = vsel %vm3712_vm11, %v8414_v4, 0.0  ;;  %v8419_v36 = vmul.f32 %v8355_v30, %v8355_v30 }
 0xe96   :  { %v8526_v22 = vadd.f32 %v8525_v40, %v8524_v47  ;;  %v16346_v40 = vld [vmem:[#allocation27_spill] sm:$0xff] }
 0xe97   :  { %v8353_v45 = vsub.f32 %v16346_v40, %v15263_v44  ;;  %v8537_v43 = vsel %vm3712_vm11, %v8415_v17, 0.0  ;;  %v8545_v4 = vsel %vm3712_vm11, %v8419_v36, 0.0  ;;  %v8567_v36 = vld [vmem:[%s16084_s6] sm:$0x1] }
 0xe98   :  { %v8528_v3 = vadd.f32 %v8527_v33, %v8526_v22  ;;  %v8416_v33 = vmul.f32 %v8352_v7, %v8352_v7 }
 0xe9a   :  { %v8530_v50 = vadd.f32 %v8529_v41, %v8528_v3  ;;  %v8417_v41 = vmul.f32 %v8353_v45, %v8353_v45  ;;  %v8539_v19 = vsel %vm3712_vm11, %v8416_v33, 0.0 }
 0xe9c   :  { %v8532_v47 = vadd.f32 %v8531_v34, %v8530_v50  ;;  %v8418_v34 = vmul.f32 %v8354_v10, %v8354_v10 }
 0xe9e   :  { %v8534_v22 = vadd.f32 %v8533_v18, %v8532_v47  ;;  %v8541_v47 = vsel %vm3712_vm11, %v8417_v41, 0.0  ;;  %v8543_v7 = vsel %vm3712_vm11, %v8418_v34, 0.0 }
 0xea0   :  { %v8536_v3 = vadd.f32 %v8535_v24, %v8534_v22 }
 0xea2   :  { %v8538_v50 = vadd.f32 %v8537_v43, %v8536_v3 }
 0xea4   :  { %v8540_v40 = vadd.f32 %v8539_v19, %v8538_v50 }
 0xea6   :  { %v8542_v18 = vadd.f32 %v8541_v47, %v8540_v40 }
 0xea8   :  { %v8544_v63 = vadd.f32 %v8543_v7, %v8542_v18 }
 0xeaa   :  { %v8546_v22 = vadd.f32 %v8545_v4, %v8544_v63  ;;  %v8554_v63 = vld [vmem:[%s16083_s5] sm:$0x1] }
 0xeac   :  { %v8547_v24 = vrot.slane %v8546_v22, 4 }
 0xeae   :  { %v8548_v12 = vadd.f32 %v8547_v24, %v8546_v22  ;;  %v16348_v24 = vld [vmem:[#allocation30_spill] sm:$0xff] }
 0xeb0   :  { %v8549_v45 = vrot.slane %v8548_v12, 2 }
 0xeb2   :  { %v8550_v37 = vadd.f32 %v8549_v45, %v8548_v12 }
 0xeb4   :  { %v8551_v17 = vrot.slane %v8550_v37, 1 }
 0xeb6   :  { %v8552_v3 = vadd.f32 %v8551_v17, %v8550_v37  ;;  %v16349_v17 = vld [vmem:[#allocation32_spill] sm:$0xff] }
 0xeb8   :  { %v8553_v10 = vmul.f32 %v8552_v3, %v16329_v51 }
 0xeba   :  { %v8555_v33 = vadd.f32 1e-05, %v8553_v10 }
 0xebc   :  { %9476 = vrsqrt.f32 %v8555_v33  ;;  %vm8562_vm13 = vweird.f32 %v8555_v33 }
 0xec2   :  { %v9477_v30 = vpop.eup %9476 }
 0xec3   :  { %v8557_v43 = vmul.f32 %v9477_v30, %v8555_v33  ;;  %vm8563_vm12 = vweird.f32 %v9477_v30 }
 0xec4   :  { %vm8564_vm14 = vmor %vm8562_vm13, %vm8563_vm12 }
 0xec5   :  { %v8558_v41 = vmul.f32 %v9477_v30, %v8557_v43  ;;  %v16351_v43 = vld [vmem:[#allocation9_spill] sm:$0xff] }
 0xec7   :  { %v8559_v40 = vmul.f32 0.5, %v8558_v41 }
 0xec9   :  { %v8560_v50 = vsub.f32 1.5, %v8559_v40  ;;  %v16352_v40 = vld [vmem:[#allocation34_spill] sm:$0xff] }
 0xecb   :  { %v8561_v34 = vmul.f32 %v9477_v30, %v8560_v50 }
 0xecd   :  { %v8565_v12 = vsel %vm8564_vm14, %v9477_v30, %v8561_v34  ;;  %v16350_v30 = vld [vmem:[#allocation44_spill] sm:$0xff]  ;;  %v16353_v34 = vld [vmem:[#allocation37_spill] sm:$0xff] }
 0xece   :  { %v8566_v19 = vmul.f32 %v8565_v12, %v8554_v63  ;;  %v16354_v12 = vld [vmem:[#allocation38_spill] sm:$0xff] }
 0xed0   :  { %v8568_v37 = vmul.f32 %v8566_v19, %v15263_v44  ;;  %v15462_v51 = vperm.slane %v8566_v19, 0  ;;  %v16347_v44 = vld [vmem:[#allocation25_spill] sm:$0xff]  ;;  %v16355_v19 = vld [vmem:[#allocation39_spill] sm:$0xff] }
 0xed2   :  { %v8569_v47 = vsub.f32 %v8567_v36, %v8568_v37  ;;  %v15469_v18 = vmul.f32 %v15462_v51, %v14865_v1  ;;  %v15473_v7 = vmul.f32 %v15462_v51, %v14881_v2  ;;  %v15477_v4 = vmul.f32 %v15462_v51, %v14892_v15 }
 0xed3   :  { %v15481_v22 = vmul.f32 %v15462_v51, %v16347_v44  ;;  %v15485_v45 = vmul.f32 %v15462_v51, %v16348_v24  ;;  %v15489_v1 = vmul.f32 %v15462_v51, %v16349_v17  ;;  %v15493_v2 = vmul.f32 %v15462_v51, %v14934_v54  ;;  %v16356_v44 = vld [vmem:[#allocation42_spill] sm:$0xff]  ;;  %v16357_v24 = vld [vmem:[#allocation43_spill] sm:$0xff] }
 0xed4   :  { %v15497_v15 = vmul.f32 %v15462_v51, %v14945_v52  ;;  %v15501_v3 = vmul.f32 %v15462_v51, %v14954_v49  ;;  %v15505_v10 = vmul.f32 %v15462_v51, %v14963_v8  ;;  %v15509_v33 = vmul.f32 %v15462_v51, %v14974_v9 }
 0xed5   :  { %v15513_v54 = vmul.f32 %v15462_v51, %v14979_v60  ;;  %v15517_v52 = vmul.f32 %v15462_v51, %v14988_v23  ;;  %v15521_v49 = vmul.f32 %v15462_v51, %v14996_v48  ;;  %v15525_v8 = vmul.f32 %v15462_v51, %v15003_v11 }
 0xed6   :  { %v15529_v9 = vmul.f32 %v15462_v51, %v15010_v56  ;;  %v15533_v60 = vmul.f32 %v15462_v51, %v15018_v28  ;;  %v15537_v23 = vmul.f32 %v15462_v51, %v15026_v35  ;;  %v15541_v48 = vmul.f32 %v15462_v51, %v15035_v42 }
 0xed7   :  { %v15545_v11 = vmul.f32 %v15462_v51, %v15041_v6  ;;  %v15549_v56 = vmul.f32 %v15462_v51, %v15049_v46  ;;  %v15553_v28 = vmul.f32 %v15462_v51, %v15057_v29  ;;  %v15557_v35 = vmul.f32 %v15462_v51, %v15066_v59 }
 0xed8   :  { %v15561_v42 = vmul.f32 %v15462_v51, %v15072_v16  ;;  %v15565_v6 = vmul.f32 %v15462_v51, %v16350_v30  ;;  %v15569_v46 = vmul.f32 %v15462_v51, %v15101_v61  ;;  %v15573_v29 = vmul.f32 %v15462_v51, %v15114_v13  ;;  %v16358_v30 = vld [vmem:[#allocation5_spill] sm:$0xff] }
 0xed9   :  { %v15577_v59 = vmul.f32 %v15462_v51, %v16351_v43  ;;  %v15581_v16 = vmul.f32 %v15462_v51, %v15138_v27  ;;  %v15585_v41 = vmul.f32 %v15462_v51, %v15150_v62  ;;  %v15589_v61 = vmul.f32 %v15462_v51, %v16331_v21 }
 0xeda   :  { %v15593_v13 = vmul.f32 %v15462_v51, %v15172_v31  ;;  %v15597_v50 = vmul.f32 %v15462_v51, %v16352_v40  ;;  %v15601_v27 = vmul.f32 %v15462_v51, %v14977_v25  ;;  %v15605_v62 = vmul.f32 %v15462_v51, %v14986_v57  ;;  %v16360_v40 = vld [vmem:[#allocation12_spill] sm:$0xff] }
 0xedb   :  { %v15609_v21 = vmul.f32 %v15462_v51, %v16332_v32  ;;  %v15613_v31 = vmul.f32 %v15462_v51, %v16353_v34  ;;  %v15617_v63 = vmul.f32 %v15462_v51, %v15008_v26  ;;  %v15621_v25 = vmul.f32 %v15462_v51, %v15016_v14 }
 0xedc   :  { %v15625_v57 = vmul.f32 %v15462_v51, %v16354_v12  ;;  %v15629_v32 = vmul.f32 %v15462_v51, %v15033_v0  ;;  %v15633_v37 = vmul.f32 %v15462_v51, %v16355_v19  ;;  %v15637_v26 = vmul.f32 %v15462_v51, %v16334_v58 }
 0xedd   :  { %v15641_v14 = vmul.f32 %v15462_v51, %v15055_v39  ;;  %v15645_v36 = vmul.f32 %v15462_v51, %v16335_v20  ;;  %v15649_v0 = vmul.f32 %v15462_v51, %v16356_v44  ;;  %v15653_v17 = vmul.f32 %v15462_v51, %v16357_v24  ;;  %v16364_v44 = vld [vmem:[#allocation16_spill] sm:$0xff] }
 0xede   :  { %v15657_v58 = vmul.f32 %v15462_v51, %v15105_v53  ;;  %v15661_v39 = vmul.f32 %v15462_v51, %v16358_v30  ;;  %v15665_v20 = vmul.f32 %v15462_v51, %v16337_v55  ;;  %v15669_v43 = vmul.f32 %v15462_v51, %v15142_v5  ;;  %v16362_v53 = vld [vmem:[#allocation15_spill] sm:$0xff]  ;;  %v16365_v55 = vld [vmem:[#allocation17_spill] sm:$0xff] }
 0xedf   :  { %v15673_v34 = vmul.f32 %v15462_v51, %v16360_v40  ;;  %v15675_v12 = vperm.slane %v8569_v47, 0  ;;  %v15679_v19 = vmul.f32 %v15462_v51, %v16362_v53  ;;  %v15683_v24 = vmul.f32 %v15462_v51, %v16364_v44  ;;  %v16367_v5 = vld [vmem:[#allocation19_spill] sm:$0xff]  ;;  %v16369_v40 = vld [vmem:[#allocation20_spill] sm:$0xff] }
 0xee0   :  { %16359 = vst [vmem:[#allocation31_spill] sm:$0xff] %v15669_v43  ;;  %v15687_v30 = vmul.f32 %v15462_v51, %v16365_v55  ;;  %v15691_v43 = vmul.f32 %v15462_v51, %v16367_v5  ;;  %v15695_v47 = vmul.f32 %v15462_v51, %v16369_v40  ;;  %v15707_v55 = vmul.f32 %v15462_v51, %v16344_v38 }
 0xee1   :  { %16361 = vst [vmem:[#allocation33_spill] sm:$0xff] %v15673_v34  ;;  %v16371_v34 = vld [vmem:[#allocation21_spill] sm:$0xff]  ;;  %v8640_v38 = vadd.f32 %v15675_v12, %v15469_v18  ;;  %v8647_v18 = vadd.f32 %v15675_v12, %v15497_v15  ;;  %v15761_v15 = vadd.f32 %v15675_v12, %v15525_v8  ;;  %v15789_v8 = vadd.f32 %v15675_v12, %v15553_v28 }
 0xee2   :  { %16363 = vst [vmem:[#allocation35_spill] sm:$0xff] %v15679_v19  ;;  %v15699_v53 = vmul.f32 %v15462_v51, %v16371_v34  ;;  %v16373_v19 = vld [vmem:[#allocation23_spill] sm:$0xff]  ;;  %v15817_v28 = vadd.f32 %v15675_v12, %v15581_v16  ;;  %v15845_v16 = vadd.f32 %v15675_v12, %v15609_v21  ;;  %v15861_v21 = vadd.f32 %v15675_v12, %v15625_v57 }
 0xee3   :  { %16366 = vst [vmem:[#allocation7_spill] sm:$0xff] %v15687_v30  ;;  %v15703_v44 = vmul.f32 %v15462_v51, %v16373_v19  ;;  %v16375_v30 = vld [vmem:[#allocation26_spill] sm:$0xff] }
 0xee4   :  { %16368 = vst [vmem:[#allocation6_spill] sm:$0xff] %v15691_v43  ;;  %v15711_v5 = vmul.f32 %v15462_v51, %v16375_v30  ;;  %v16377_v43 = vld [vmem:[#allocation27_spill] sm:$0xff]  ;;  %v8642_v30 = vadd.f32 %v15675_v12, %v15477_v4  ;;  %v15745_v4 = vadd.f32 %v15675_v12, %v15505_v10  ;;  %v15769_v10 = vadd.f32 %v15675_v12, %v15533_v60 }
 0xee5   :  { %16370 = vst [vmem:[#allocation8_spill] sm:$0xff] %v15695_v47  ;;  %v15715_v40 = vmul.f32 %v15462_v51, %v16377_v43  ;;  %v16379_v47 = vld [vmem:[#allocation28_spill] sm:$0xff]  ;;  %v8643_v43 = vadd.f32 %v15675_v12, %v15481_v22  ;;  %v8650_v22 = vadd.f32 %v15675_v12, %v15509_v33  ;;  %v15773_v33 = vadd.f32 %v15675_v12, %v15537_v23 }
 0xee6   :  { %16372 = vst [vmem:[#allocation10_spill] sm:$0xff] %v15699_v53  ;;  %v15719_v34 = vmul.f32 %v15462_v51, %v16379_v47  ;;  %v16381_v53 = vld [vmem:[#allocation29_spill] sm:$0xff]  ;;  %v8644_v47 = vadd.f32 %v15675_v12, %v15485_v45  ;;  %v8651_v45 = vadd.f32 %v15675_v12, %v15513_v54  ;;  %v15777_v54 = vadd.f32 %v15675_v12, %v15541_v48 }
 0xee7   :  { %16374 = vst [vmem:[#allocation18_spill] sm:$0xff] %v15707_v55  ;;  %v15723_v19 = vmul.f32 %v15462_v51, %v16381_v53  ;;  %v8641_v55 = vadd.f32 %v15675_v12, %v15473_v7  ;;  %v8646_v51 = vadd.f32 %v15675_v12, %v15493_v2  ;;  %v8648_v7 = vadd.f32 %v15675_v12, %v15501_v3 }
 0xee8   :  { %16376 = vst [vmem:[#allocation13_spill] sm:$0xff] %v15711_v5  ;;  %v15757_v2 = vadd.f32 %v15675_v12, %v15521_v49  ;;  %v15765_v3 = vadd.f32 %v15675_v12, %v15529_v9  ;;  %v15785_v49 = vadd.f32 %v15675_v12, %v15549_v56  ;;  %v15793_v9 = vadd.f32 %v15675_v12, %v15557_v35 }
 0xee9   :  { %16378 = vst [vmem:[#allocation22_spill] sm:$0xff] %v15715_v40  ;;  %v15797_v60 = vadd.f32 %v15675_v12, %v15561_v42  ;;  %v15801_v23 = vadd.f32 %v15675_v12, %v15565_v6  ;;  %v15805_v48 = vadd.f32 %v15675_v12, %v15569_v46  ;;  %v15813_v56 = vadd.f32 %v15675_v12, %v15577_v59 }
 0xeea   :  { %16380 = vst [vmem:[#allocation45_spill] sm:$0xff] %v15719_v34  ;;  %v8645_v34 = vadd.f32 %v15675_v12, %v15489_v1  ;;  %v15753_v1 = vadd.f32 %v15675_v12, %v15517_v52  ;;  %v15781_v52 = vadd.f32 %v15675_v12, %v15545_v11  ;;  %v15809_v11 = vadd.f32 %v15675_v12, %v15573_v29 }
 0xeeb   :  { %16382 = vst [vmem:[#allocation14_spill] sm:$0xff] %v15723_v19  ;;  %v15821_v35 = vadd.f32 %v15675_v12, %v15585_v41  ;;  %v15825_v42 = vadd.f32 %v15675_v12, %v15589_v61  ;;  %v15829_v6 = vadd.f32 %v15675_v12, %v15593_v13  ;;  %v15833_v46 = vadd.f32 %v15675_v12, %v15597_v50 }
 0xeec   :  { %v15837_v29 = vadd.f32 %v15675_v12, %v15601_v27  ;;  %v15841_v59 = vadd.f32 %v15675_v12, %v15605_v62  ;;  %v15849_v41 = vadd.f32 %v15675_v12, %v15613_v31  ;;  %v15853_v61 = vadd.f32 %v15675_v12, %v15617_v63 }
 0xeed   :  { %v8704_v13 = vmax.f32 %v8640_v38, 0.0  ;;  %v8705_v50 = vmax.f32 %v8641_v55, 0.0  ;;  %v8706_v27 = vmax.f32 %v8642_v30, 0.0  ;;  %v8707_v53 = vmax.f32 %v8643_v43, 0.0 }
 0xeee   :  { %v8708_v19 = vmax.f32 %v8644_v47, 0.0  ;;  %v8710_v40 = vmax.f32 %v8646_v51, 0.0  ;;  %v15857_v62 = vadd.f32 %v15675_v12, %v15621_v25  ;;  %v8709_v31 = vmax.f32 %v8645_v34, 0.0 }
 0xeef   :  { %v8711_v5 = vmax.f32 %v8647_v18, 0.0  ;;  %v15865_v63 = vadd.f32 %v15675_v12, %v15629_v32  ;;  %v15869_v55 = vadd.f32 %v15675_v12, %v15633_v37  ;;  %v8712_v38 = vmax.f32 %v8648_v7, 0.0 }
 0xef0   :  { %v8714_v30 = vmax.f32 %v8650_v22, 0.0  ;;  %v15873_v25 = vadd.f32 %v15675_v12, %v15637_v26  ;;  %v8713_v43 = vmax.f32 %v15745_v4, 0.0  ;;  %v8715_v57 = vmax.f32 %v8651_v45, 0.0 }
 0xef1   :  { %v8716_v34 = vmax.f32 %v15753_v1, 0.0  ;;  %v8718_v47 = vmax.f32 %v15761_v15, 0.0  ;;  %v8768_v51 = vmax.f32 %v8704_v13, %v8706_v27  ;;  %v8769_v32 = vmax.f32 %v8705_v50, %v8707_v53 }
 0xef2   :  { %v8770_v18 = vmax.f32 %v8708_v19, %v8710_v40  ;;  %v15880_v37 = vadd.f32 %v15675_v12, %v15641_v14  ;;  %v8717_v7 = vmax.f32 %v15757_v2, 0.0  ;;  %v8719_v22 = vmax.f32 %v15765_v3, 0.0 }
 0xef3   :  { %v8771_v26 = vmax.f32 %v8709_v31, %v8711_v5  ;;  %v15886_v4 = vadd.f32 %v15675_v12, %v15645_v36  ;;  %v8720_v45 = vmax.f32 %v15769_v10, 0.0  ;;  %v8722_v1 = vmax.f32 %v15777_v54, 0.0  ;;  %8800 = vst.msk [vmem:[#allocation4] sm:$0xff] %vm3712_vm11, %v8768_v51  ;;  %v16386_v51 = vld [vmem:[#allocation7_spill] sm:$0xff] }
 0xef4   :  { %v8772_v15 = vmax.f32 %v8712_v38, %v8714_v30  ;;  %v15893_v14 = vadd.f32 %v15675_v12, %v15649_v0  ;;  %v8721_v40 = vmax.f32 %v15773_v33, 0.0  ;;  %v8723_v19 = vmax.f32 %v15781_v52, 0.0  ;;  %8801 = vst.msk [vmem:[#allocation4 + $0x8] sm:$0xff] %vm3712_vm11, %v8769_v32  ;;  %v16385_v30 = vld [vmem:[#allocation35_spill] sm:$0xff] }
 0xef5   :  { %v8773_v5 = vmax.f32 %v8713_v43, %v8715_v57  ;;  %v15900_v36 = vadd.f32 %v15675_v12, %v15653_v17  ;;  %v8724_v2 = vmax.f32 %v15785_v49, 0.0  ;;  %v8726_v3 = vmax.f32 %v15793_v9, 0.0  ;;  %8802 = vst.msk [vmem:[#allocation4 + $0x10] sm:$0xff] %vm3712_vm11, %v8770_v18 }
 0xef6   :  { %v8774_v10 = vmax.f32 %v8716_v34, %v8718_v47  ;;  %v15907_v0 = vadd.f32 %v15675_v12, %v15657_v58  ;;  %v8725_v33 = vmax.f32 %v15789_v8, 0.0  ;;  %v8727_v54 = vmax.f32 %v15797_v60, 0.0  ;;  %8803 = vst.msk [vmem:[#allocation4 + $0x18] sm:$0xff] %vm3712_vm11, %v8771_v26  ;;  %v16388_v26 = vld [vmem:[#allocation8_spill] sm:$0xff] }
 0xef7   :  { %v8775_v52 = vmax.f32 %v8717_v7, %v8719_v22  ;;  %v15914_v17 = vadd.f32 %v15675_v12, %v15661_v39  ;;  %v8728_v49 = vmax.f32 %v15801_v23, 0.0  ;;  %v8730_v9 = vmax.f32 %v15809_v11, 0.0  ;;  %8804 = vst.msk [vmem:[#allocation4 + $0x20] sm:$0xff] %vm3712_vm11, %v8772_v15  ;;  %v16383_v39 = vld [vmem:[#allocation31_spill] sm:$0xff]  ;;  %v16387_v7 = vld [vmem:[#allocation6_spill] sm:$0xff] }
 0xef8   :  { %v8776_v13 = vmax.f32 %v8720_v45, %v8722_v1  ;;  %v15921_v58 = vadd.f32 %v15675_v12, %v15665_v20  ;;  %v8729_v8 = vmax.f32 %v15805_v48, 0.0  ;;  %v8731_v60 = vmax.f32 %v15813_v56, 0.0  ;;  %8805 = vst.msk [vmem:[#allocation4 + $0x28] sm:$0xff] %vm3712_vm11, %v8773_v5  ;;  %v16384_v20 = vld [vmem:[#allocation33_spill] sm:$0xff]  ;;  %v16389_v15 = vld [vmem:[#allocation10_spill] sm:$0xff] }
 0xef9   :  { %v8777_v50 = vmax.f32 %v8721_v40, %v8723_v19  ;;  %v15928_v27 = vadd.f32 %v15675_v12, %v16383_v39  ;;  %v8732_v23 = vmax.f32 %v15817_v28, 0.0  ;;  %v8734_v11 = vmax.f32 %v15825_v42, 0.0  ;;  %8806 = vst.msk [vmem:[#allocation4 + $0x30] sm:$0xff] %vm3712_vm11, %v8774_v10 }
 0xefa   :  { %v8778_v53 = vmax.f32 %v8724_v2, %v8726_v3  ;;  %v15935_v31 = vadd.f32 %v15675_v12, %v16384_v20  ;;  %v8733_v48 = vmax.f32 %v15821_v35, 0.0  ;;  %v8735_v56 = vmax.f32 %v15829_v6, 0.0  ;;  %8807 = vst.msk [vmem:[#allocation4 + $0x38] sm:$0xff] %vm3712_vm11, %v8775_v52  ;;  %v16390_v3 = vld [vmem:[#allocation18_spill] sm:$0xff] }
 0xefb   :  { %v8779_v38 = vmax.f32 %v8725_v33, %v8727_v54  ;;  %v15942_v43 = vadd.f32 %v15675_v12, %v16385_v30  ;;  %v8736_v28 = vmax.f32 %v15833_v46, 0.0  ;;  %v8738_v42 = vmax.f32 %v15841_v59, 0.0  ;;  %8808 = vst.msk [vmem:[#allocation4 + $0x40] sm:$0xff] %vm3712_vm11, %v8776_v13  ;;  %v16391_v54 = vld [vmem:[#allocation13_spill] sm:$0xff] }
 0xefc   :  { %v8780_v57 = vmax.f32 %v8728_v49, %v8730_v9  ;;  %v15949_v34 = vadd.f32 %v15675_v12, %v15683_v24  ;;  %v8737_v35 = vmax.f32 %v15837_v29, 0.0  ;;  %v8739_v6 = vmax.f32 %v15845_v16, 0.0  ;;  %8809 = vst.msk [vmem:[#allocation4 + $0x48] sm:$0xff] %vm3712_vm11, %v8777_v50  ;;  %v16392_v49 = vld [vmem:[#allocation22_spill] sm:$0xff] }
 0xefd   :  { %v8781_v47 = vmax.f32 %v8729_v8, %v8731_v60  ;;  %v8694_v32 = vadd.f32 %v15675_v12, %v16386_v51  ;;  %v8740_v46 = vmax.f32 %v15849_v41, 0.0  ;;  %v8742_v59 = vmax.f32 %v15857_v62, 0.0  ;;  %8810 = vst.msk [vmem:[#allocation4 + $0x50] sm:$0xff] %vm3712_vm11, %v8778_v53  ;;  %v16393_v8 = vld [vmem:[#allocation45_spill] sm:$0xff] }
 0xefe   :  { %v8782_v18 = vmax.f32 %v8732_v23, %v8734_v11  ;;  %v8695_v24 = vadd.f32 %v15675_v12, %v16387_v7  ;;  %v8741_v29 = vmax.f32 %v15853_v61, 0.0  ;;  %v8743_v16 = vmax.f32 %v15861_v21, 0.0  ;;  %8811 = vst.msk [vmem:[#allocation4 + $0x58] sm:$0xff] %vm3712_vm11, %v8779_v38  ;;  %v8864_v51 = vld [vmem:[#allocation4 + $0x1] ss:$2 sm:$0xff] }
 0xeff   :  { %v8783_v22 = vmax.f32 %v8733_v48, %v8735_v56  ;;  %v8696_v45 = vadd.f32 %v15675_v12, %v16388_v26  ;;  %v8744_v41 = vmax.f32 %v15865_v63, 0.0  ;;  %v8746_v62 = vmax.f32 %v15873_v25, 0.0  ;;  %8812 = vst.msk [vmem:[#allocation4 + $0x60] sm:$0xff] %vm3712_vm11, %v8780_v57  ;;  %v8836_v7 = vld [vmem:[#allocation4 + $0x20] ss:$2 sm:$0xff] }
 0xf00   :  { %v8784_v1 = vmax.f32 %v8736_v28, %v8738_v42  ;;  %v8697_v40 = vadd.f32 %v15675_v12, %v16389_v15  ;;  %v8745_v61 = vmax.f32 %v15869_v55, 0.0  ;;  %v8747_v21 = vmax.f32 %v15880_v37, 0.0  ;;  %8813 = vst.msk [vmem:[#allocation4 + $0x68] sm:$0xff] %vm3712_vm11, %v8781_v47  ;;  %v8832_v47 = vld [vmem:[#allocation4] ss:$2 sm:$0xff] }
 0xf01   :  { %v8785_v19 = vmax.f32 %v8737_v35, %v8739_v6  ;;  %v8698_v5 = vadd.f32 %v15675_v12, %v15703_v44  ;;  %v8748_v63 = vmax.f32 %v15886_v4, 0.0  ;;  %v8750_v25 = vmax.f32 %v15900_v36, 0.0  ;;  %8814 = vst.msk [vmem:[#allocation4 + $0x70] sm:$0xff] %vm3712_vm11, %v8782_v18 }
 0xf02   :  { %v8786_v2 = vmax.f32 %v8740_v46, %v8742_v59  ;;  %v8699_v10 = vadd.f32 %v15675_v12, %v16390_v3  ;;  %v8749_v55 = vmax.f32 %v15893_v14, 0.0  ;;  %v8751_v37 = vmax.f32 %v15907_v0, 0.0  ;;  %8815 = vst.msk [vmem:[#allocation4 + $0x78] sm:$0xff] %vm3712_vm11, %v8783_v22  ;;  %v8834_v46 = vld [vmem:[#allocation4 + $0x10] ss:$2 sm:$0xff] }
 0xf03   :  { %v8787_v33 = vmax.f32 %v8741_v29, %v8743_v16  ;;  %v8700_v44 = vadd.f32 %v15675_v12, %v16391_v54  ;;  %v8752_v4 = vmax.f32 %v15914_v17, 0.0  ;;  %v8754_v36 = vmax.f32 %v15928_v27, 0.0  ;;  %8816 = vst.msk [vmem:[#allocation4 + $0x80] sm:$0xff] %vm3712_vm11, %v8784_v1  ;;  %v16394_v27 = vld [vmem:[#allocation14_spill] sm:$0xff]  ;;  %v8866_v59 = vld [vmem:[#allocation4 + $0x11] ss:$2 sm:$0xff] }
 0xf04   :  { %v8788_v52 = vmax.f32 %v8744_v41, %v8746_v62  ;;  %v8701_v9 = vadd.f32 %v15675_v12, %v16392_v49  ;;  %v8753_v14 = vmax.f32 %v15921_v58, 0.0  ;;  %v8755_v0 = vmax.f32 %v15935_v31, 0.0  ;;  %8817 = vst.msk [vmem:[#allocation4 + $0x88] sm:$0xff] %vm3712_vm11, %v8785_v19  ;;  %v8838_v29 = vld [vmem:[#allocation4 + $0x30] ss:$2 sm:$0xff] }
 0xf05   :  { %v8789_v13 = vmax.f32 %v8745_v61, %v8747_v21  ;;  %v8702_v60 = vadd.f32 %v15675_v12, %v16393_v8  ;;  %v8756_v17 = vmax.f32 %v15942_v43, 0.0  ;;  %v8758_v50 = vmax.f32 %v8694_v32, 0.0  ;;  %8818 = vst.msk [vmem:[#allocation4 + $0x90] sm:$0xff] %vm3712_vm11, %v8786_v2  ;;  %v8870_v16 = vld [vmem:[#allocation4 + $0x31] ss:$2 sm:$0xff] }
 0xf06   :  { %v8790_v39 = vmax.f32 %v8748_v63, %v8750_v25  ;;  %v8703_v23 = vadd.f32 %v15675_v12, %v16394_v27  ;;  %v8757_v11 = vmax.f32 %v15949_v34, 0.0  ;;  %v8759_v58 = vmax.f32 %v8695_v24, 0.0  ;;  %8819 = vst.msk [vmem:[#allocation4 + $0x98] sm:$0xff] %vm3712_vm11, %v8787_v33  ;;  %v8868_v24 = vld [vmem:[#allocation4 + $0x21] ss:$2 sm:$0xff] }
 0xf07   :  { %v8791_v53 = vmax.f32 %v8749_v55, %v8751_v37  ;;  %v8760_v20 = vmax.f32 %v8696_v45, 0.0  ;;  %v8762_v31 = vmax.f32 %v8698_v5, 0.0  ;;  %v8792_v48 = vmax.f32 %v8752_v4, %v8754_v36  ;;  %8820 = vst.msk [vmem:[#allocation4 + $0xa0] sm:$0xff] %vm3712_vm11, %v8788_v52  ;;  %v8840_v26 = vld [vmem:[#allocation4 + $0x40] ss:$2 sm:$0xff] }
 0xf08   :  { %v8761_v56 = vmax.f32 %v8697_v40, 0.0  ;;  %v8763_v38 = vmax.f32 %v8699_v10, 0.0  ;;  %v8793_v30 = vmax.f32 %v8753_v14, %v8755_v0  ;;  %8821 = vst.msk [vmem:[#allocation4 + $0xa8] sm:$0xff] %vm3712_vm11, %v8789_v13  ;;  %v8764_v43 = vmax.f32 %v8700_v44, 0.0  ;;  %v8872_v45 = vld [vmem:[#allocation4 + $0x41] ss:$2 sm:$0xff] }
 0xf09   :  { %v8766_v28 = vmax.f32 %v8702_v60, 0.0  ;;  %v8794_v42 = vmax.f32 %v8756_v17, %v8758_v50  ;;  %8822 = vst.msk [vmem:[#allocation4 + $0xb0] sm:$0xff] %vm3712_vm11, %v8790_v39  ;;  %v8765_v12 = vmax.f32 %v8701_v9, 0.0  ;;  %v8767_v57 = vmax.f32 %v8703_v23, 0.0  ;;  %v8842_v62 = vld [vmem:[#allocation4 + $0x50] ss:$2 sm:$0xff] }
 0xf0a   :  { %v8795_v34 = vmax.f32 %v8757_v11, %v8759_v58  ;;  %8823 = vst.msk [vmem:[#allocation4 + $0xb8] sm:$0xff] %vm3712_vm11, %v8791_v53  ;;  %v8796_v35 = vmax.f32 %v8760_v20, %v8762_v31  ;;  %v8797_v6 = vmax.f32 %v8761_v56, %v8763_v38  ;;  %v8895_v22 = vmax.f32 %v8832_v47, %v8864_v51  ;;  %v8874_v1 = vld [vmem:[#allocation4 + $0x51] ss:$2 sm:$0xff]  ;;  %v8844_v40 = vld [vmem:[#allocation4 + $0x60] ss:$2 sm:$0xff] }
 0xf0b   :  { %8824 = vst.msk [vmem:[#allocation4 + $0xc0] sm:$0xff] %vm3712_vm11, %v8792_v48  ;;  %v8798_v32 = vmax.f32 %v8764_v43, %v8766_v28  ;;  %v8799_v18 = vmax.f32 %v8765_v12, %v8767_v57  ;;  %v8896_v41 = vmax.f32 %v8834_v46, %v8866_v59  ;;  %v8897_v15 = vmax.f32 %v8836_v7, %v8868_v24  ;;  %v8876_v61 = vld [vmem:[#allocation4 + $0x61] ss:$2 sm:$0xff]  ;;  %v8846_v19 = vld [vmem:[#allocation4 + $0x70] ss:$2 sm:$0xff] }
 0xf0c   :  { %8825 = vst.msk [vmem:[#allocation4 + $0xc8] sm:$0xff] %vm3712_vm11, %v8793_v30  ;;  %v8898_v21 = vmax.f32 %v8838_v29, %v8870_v16  ;;  %v8878_v5 = vld [vmem:[#allocation4 + $0x71] ss:$2 sm:$0xff]  ;;  %v8899_v63 = vmax.f32 %v8840_v26, %v8872_v45  ;;  %v8848_v25 = vld [vmem:[#allocation4 + $0x80] ss:$2 sm:$0xff]  ;;  %v8900_v3 = vmax.f32 %v8842_v62, %v8874_v1  ;;  %v8901_v37 = vmax.f32 %v8844_v40, %v8876_v61 }
 0xf0d   :  { %8826 = vst.msk [vmem:[#allocation4 + $0xd0] sm:$0xff] %vm3712_vm11, %v8794_v42  ;;  %v8880_v2 = vld [vmem:[#allocation4 + $0x81] ss:$2 sm:$0xff]  ;;  %v8850_v10 = vld [vmem:[#allocation4 + $0x90] ss:$2 sm:$0xff]  ;;  %v8902_v44 = vmax.f32 %v8846_v19, %v8878_v5 }
 0xf0e   :  { %8827 = vst.msk [vmem:[#allocation4 + $0xd8] sm:$0xff] %vm3712_vm11, %v8795_v34  ;;  %v8882_v55 = vld [vmem:[#allocation4 + $0x91] ss:$2 sm:$0xff]  ;;  %v8903_v52 = vmax.f32 %v8848_v25, %v8880_v2 }
 0xf0f   :  { %8828 = vst.msk [vmem:[#allocation4 + $0xe0] sm:$0xff] %vm3712_vm11, %v8796_v35  ;;  %v8852_v33 = vld [vmem:[#allocation4 + $0xa0] ss:$2 sm:$0xff]  ;;  %v8884_v54 = vld [vmem:[#allocation4 + $0xa1] ss:$2 sm:$0xff]  ;;  %v8904_v14 = vmax.f32 %v8850_v10, %v8882_v55 }
 0xf10   :  { %8829 = vst.msk [vmem:[#allocation4 + $0xe8] sm:$0xff] %vm3712_vm11, %v8797_v6  ;;  %v8905_v8 = vmax.f32 %v8852_v33, %v8884_v54 }
 0xf11   :  { %8830 = vst.msk [vmem:[#allocation4 + $0xf0] sm:$0xff] %vm3712_vm11, %v8798_v32  ;;  %v8854_v4 = vld [vmem:[#allocation4 + $0xb0] ss:$2 sm:$0xff]  ;;  %v8886_v36 = vld [vmem:[#allocation4 + $0xb1] ss:$2 sm:$0xff] }
 0xf12   :  { %8831 = vst.msk [vmem:[#allocation4 + $0xf8] sm:$0xff] %vm3712_vm11, %v8799_v18  ;;  %v8906_v50 = vmax.f32 %v8854_v4, %v8886_v36 }
 0xf13   :  { %8911 = vst.msk [vmem:[%s16085_s7] sm:$0xff] %vm3712_vm11, %v8895_v22  ;;  %v8856_v49 = vld [vmem:[#allocation4 + $0xc0] ss:$2 sm:$0xff]  ;;  %v8888_v9 = vld [vmem:[#allocation4 + $0xc1] ss:$2 sm:$0xff] }
 0xf14   :  { %8912 = vst.msk [vmem:[%s16085_s7 + $0x8] sm:$0xff] %vm3712_vm11, %v8896_v41  ;;  %v8907_v23 = vmax.f32 %v8856_v49, %v8888_v9 }
 0xf15   :  { %8913 = vst.msk [vmem:[%s16085_s7 + $0x10] sm:$0xff] %vm3712_vm11, %v8897_v15  ;;  %v8858_v0 = vld [vmem:[#allocation4 + $0xd0] ss:$2 sm:$0xff]  ;;  %v8890_v13 = vld [vmem:[#allocation4 + $0xd1] ss:$2 sm:$0xff] }
 0xf16   :  { %8914 = vst.msk [vmem:[%s16085_s7 + $0x18] sm:$0xff] %vm3712_vm11, %v8898_v21  ;;  %v8908_v11 = vmax.f32 %v8858_v0, %v8890_v13 }
 0xf17   :  { %8915 = vst.msk [vmem:[%s16085_s7 + $0x20] sm:$0xff] %vm3712_vm11, %v8899_v63  ;;  %v8860_v60 = vld [vmem:[#allocation4 + $0xe0] ss:$2 sm:$0xff]  ;;  %v8892_v17 = vld [vmem:[#allocation4 + $0xe1] ss:$2 sm:$0xff] }
 0xf18   :  { %8916 = vst.msk [vmem:[%s16085_s7 + $0x28] sm:$0xff] %vm3712_vm11, %v8900_v3  ;;  %v8909_v58 = vmax.f32 %v8860_v60, %v8892_v17 }
 0xf19   :  { %8917 = vst.msk [vmem:[%s16085_s7 + $0x30] sm:$0xff] %vm3712_vm11, %v8901_v37  ;;  %v8862_v39 = vld [vmem:[#allocation4 + $0xf0] ss:$2 sm:$0xff]  ;;  %v8894_v27 = vld [vmem:[#allocation4 + $0xf1] ss:$2 sm:$0xff] }
 0xf1a   :  { %8918 = vst.msk [vmem:[%s16085_s7 + $0x38] sm:$0xff] %vm3712_vm11, %v8902_v44  ;;  %v8910_v53 = vmax.f32 %v8862_v39, %v8894_v27 }
 0xf1b   :  { %8919 = vst.msk [vmem:[%s16085_s7 + $0x40] sm:$0xff] %vm3712_vm11, %v8903_v52 }
 0xf1c   :  { %8920 = vst.msk [vmem:[%s16085_s7 + $0x48] sm:$0xff] %vm3712_vm11, %v8904_v14 }
 0xf1d   :  { %8921 = vst.msk [vmem:[%s16085_s7 + $0x50] sm:$0xff] %vm3712_vm11, %v8905_v8 }
 0xf1e   :  { %8922 = vst.msk [vmem:[%s16085_s7 + $0x58] sm:$0xff] %vm3712_vm11, %v8906_v50 }
 0xf1f   :  { %8923 = vst.msk [vmem:[%s16085_s7 + $0x60] sm:$0xff] %vm3712_vm11, %v8907_v23 }
 0xf20   :  { %8924 = vst.msk [vmem:[%s16085_s7 + $0x68] sm:$0xff] %vm3712_vm11, %v8908_v11 }
 0xf21   :  { %8925 = vst.msk [vmem:[%s16085_s7 + $0x70] sm:$0xff] %vm3712_vm11, %v8909_v58 }
 0xf22   :  { %8926 = vst.msk [vmem:[%s16085_s7 + $0x78] sm:$0xff] %vm3712_vm11, %v8910_v53 }

</bundles_post_ra>
